<compile_context>
chip_gen: v7x
topology: tpu7x:2x2x1
jax: 0.10.0
libtpu: 0.0.40
codegen_flags: <defaults>
</compile_context>

<pallas_src>
import jax
import jax.numpy as jnp
from jax.experimental import pallas as pl
from jax.experimental.pallas import tpu as pltpu

# (in_features, out_features) for fc0 .. fcf
LAYER_DIMS = [
    (52 * 8 + 16 * 4, 512),  # fc0
    (512, 512),              # fc1
    (512, 512),              # fc2
    (512, 256),              # fc3  (+ avgpool 512->256 shortcut)
    (256, 128),              # fc4  (+ avgpool 256->128 shortcut)
    (128, 128),              # fc5
    (128, 128),              # fc6
    (128, 128),              # fc7
    (128, 128),              # fc8
    (128, 128),              # fc9
    (128, 128),              # fca
    (128, 128),              # fcb
    (128, 128),              # fcc
    (128, 128),              # fcd
    (128, 64),               # fce  (+ avgpool 128->64 shortcut)
    (64, 1),                 # fcf
]
NUM_LAYERS = len(LAYER_DIMS)
POOL_FUSED = (3, 4, 14)      # layers whose avgpool shortcut is fused into W
TILE_B = 128                 # batch tile (multiple of 8; fills MXU M dim)
OUT_LANES = 128              # lane-dense padded output width for fcf


def _pool_matrix(d):
  """(d, d//2) matrix P with P[2i, i] = P[2i+1, i] = 0.5  (AvgPool1d(2))."""
  eye = jnp.eye(d // 2, dtype=jnp.float32)
  return jnp.repeat(eye, 2, axis=0) * 0.5


def prepare_kernel_params(params):
  """params: flat [w0, b0, ..., w15, b15] f32; w: (din, dout), b: (1, dout).

  Returns the kernel parameter list: bf16 weights (pool-shortcut layers fused
  as [W | P], final layer padded to 128 output lanes) and f32 biases.
  """
  kp = []
  for i, (din, dout) in enumerate(LAYER_DIMS):
    w = params[2 * i]
    b = params[2 * i + 1]
    if i in POOL_FUSED:
      # Fuse avgpool(2) shortcut: one matmul against [W | P], bias [b | 0].
      p = _pool_matrix(din)                                   # (din, din//2)
      w = jnp.concatenate([w, p], axis=1)
      b = jnp.concatenate([b, jnp.zeros((1, din // 2), jnp.float32)], axis=1)
    elif i == NUM_LAYERS - 1:
      # Pad the N=1 output layer to 128 lanes (lane-dense output stores).
      w = jnp.concatenate(
          [w, jnp.zeros((din, OUT_LANES - dout), jnp.float32)], axis=1)
      b = jnp.concatenate(
          [b, jnp.zeros((1, OUT_LANES - dout), jnp.float32)], axis=1)
    kp.append(w.astype(jnp.bfloat16))
    kp.append(b.astype(jnp.float32))
  return kp


def mro_last_kernel(*refs):
  # refs = (x_ref, w0, b0, ..., w15, b15, out_ref); one (TILE_B, .) batch tile.
  x_ref = refs[0]
  out_ref = refs[-1]
  wb = refs[1:-1]

  def matmul(h, idx):
    w = wb[2 * idx][...]                       # bf16, resident in VMEM
    b = wb[2 * idx + 1][...]                   # f32
    return jnp.dot(h.astype(jnp.bfloat16), w,
                   preferred_element_type=jnp.float32) + b

  def residual_block(h, idx):
    return jnp.maximum(matmul(h, idx), 0.0) + h

  def pool_block(h, idx):
    # Fused [W | P]: first half is the linear, second half is avgpool(h).
    dout = LAYER_DIMS[idx][1]
    y = matmul(h, idx)                         # (TILE_B, 2*dout)
    return jnp.maximum(y[:, :dout], 0.0) + y[:, dout:]

  h = x_ref[...]                               # (TILE_B, 480) f32
  h = jnp.maximum(matmul(h, 0), 0.0)           # fc0
  h = residual_block(h, 1)                     # fc1
  h = residual_block(h, 2)                     # fc2
  h = pool_block(h, 3)                         # fc3 + avgpool(512->256)
  h = pool_block(h, 4)                         # fc4 + avgpool(256->128)
  for i in range(5, 14):                       # fc5 .. fcd
    h = residual_block(h, i)
  h = pool_block(h, 14)                        # fce + avgpool(128->64)
  out_ref[...] = matmul(h, 15)                 # fcf, padded to 128 lanes


@jax.jit
def mro_last_forward(x, kparams):
  """x: (B, 480) f32.  kparams: output of prepare_kernel_params."""
  batch, in_dim = x.shape
  padded_b = ((batch + TILE_B - 1) // TILE_B) * TILE_B
  if padded_b != batch:
    x = jnp.pad(x, ((0, padded_b - batch), (0, 0)))

  in_specs = [pl.BlockSpec((TILE_B, in_dim), lambda i: (i, 0))]
  for p in kparams:
    # Full-array blocks with a constant index map: stay resident in VMEM.
    in_specs.append(pl.BlockSpec(p.shape, lambda i: (0, 0)))
  out_spec = pl.BlockSpec((TILE_B, OUT_LANES), lambda i: (i, 0))

  out = pl.pallas_call(
      mro_last_kernel,
      out_shape=jax.ShapeDtypeStruct((padded_b, OUT_LANES), jnp.float32),
      grid=(padded_b // TILE_B,),
      in_specs=in_specs,
      out_specs=out_spec,
      compiler_params=pltpu.CompilerParams(
          dimension_semantics=("parallel",),
          vmem_limit_bytes=48 << 20,           # v7x-safe (< 64 MiB / TC)
      ),
  )(x, *kparams)
  return out[:batch, :1]


def init_params(key):
  """Deterministic PyTorch-Linear-style init: U(-1/sqrt(in), 1/sqrt(in))."""
  params = []
  for (din, dout) in LAYER_DIMS:
    key, kw, kb = jax.random.split(key, 3)
    bound = 1.0 / (din ** 0.5)
    w = jax.random.uniform(kw, (din, dout), jnp.float32, -bound, bound)
    b = jax.random.uniform(kb, (1, dout), jnp.float32, -bound, bound)
    params += [w, b]
  return params


def reference_forward(x, params):
  """Pure-JAX reference with the PyTorch structure (separate linears + true
  AvgPool1d(2)), using the same bf16 weight/activation precision as the
  kernel so the comparison tolerance can stay tight."""
  def lin(h, i):
    w = params[2 * i].astype(jnp.bfloat16)
    b = params[2 * i + 1]
    return jnp.dot(h.astype(jnp.bfloat16), w,
                   preferred_element_type=jnp.float32) + b

  def avgp(h):
    hb = h.astype(jnp.bfloat16).astype(jnp.float32)
    bsz, d = hb.shape
    return hb.reshape(bsz, d // 2, 2).mean(axis=-1)

  h = jax.nn.relu(lin(x, 0))
  h = jax.nn.relu(lin(h, 1)) + h
  h = jax.nn.relu(lin(h, 2)) + h
  h = jax.nn.relu(lin(h, 3)) + avgp(h)
  h = jax.nn.relu(lin(h, 4)) + avgp(h)
  for i in range(5, 14):
    h = jax.nn.relu(lin(h, i)) + h
  h = jax.nn.relu(lin(h, 14)) + avgp(h)
  return lin(h, 15)


if __name__ == "__main__":
  key = jax.random.PRNGKey(0)
  key, kx = jax.random.split(key)

  batch = 8
  in_dim = 52 * 8 + 16 * 4  # 480
  x = jax.random.normal(kx, (batch, in_dim), jnp.float32)
  params = init_params(key)
  kparams = prepare_kernel_params(params)

  out = mro_last_forward(x, kparams)
  out = jax.block_until_ready(out)

  ref = reference_forward(x, params)
  assert out.shape == (batch, 1), out.shape
  assert jnp.allclose(out, ref, atol=2e-3, rtol=2e-3), (
      f"mismatch: max abs err {jnp.max(jnp.abs(out - ref))}")

  print("KERNEL_OK")
</pallas_src>

<mosaic_0001>
module attributes {stable_mosaic.version = 11 : i64} {
  func.func @mro_last_kernel(%arg0: i32, %arg1: memref<128x480xf32, #tpu.memory_space<vmem>>, %arg2: memref<480x512xbf16, #tpu.memory_space<vmem>>, %arg3: memref<1x512xf32, #tpu.memory_space<vmem>>, %arg4: memref<512x512xbf16, #tpu.memory_space<vmem>>, %arg5: memref<1x512xf32, #tpu.memory_space<vmem>>, %arg6: memref<512x512xbf16, #tpu.memory_space<vmem>>, %arg7: memref<1x512xf32, #tpu.memory_space<vmem>>, %arg8: memref<512x512xbf16, #tpu.memory_space<vmem>>, %arg9: memref<1x512xf32, #tpu.memory_space<vmem>>, %arg10: memref<256x256xbf16, #tpu.memory_space<vmem>>, %arg11: memref<1x256xf32, #tpu.memory_space<vmem>>, %arg12: memref<128x128xbf16, #tpu.memory_space<vmem>>, %arg13: memref<1x128xf32, #tpu.memory_space<vmem>>, %arg14: memref<128x128xbf16, #tpu.memory_space<vmem>>, %arg15: memref<1x128xf32, #tpu.memory_space<vmem>>, %arg16: memref<128x128xbf16, #tpu.memory_space<vmem>>, %arg17: memref<1x128xf32, #tpu.memory_space<vmem>>, %arg18: memref<128x128xbf16, #tpu.memory_space<vmem>>, %arg19: memref<1x128xf32, #tpu.memory_space<vmem>>, %arg20: memref<128x128xbf16, #tpu.memory_space<vmem>>, %arg21: memref<1x128xf32, #tpu.memory_space<vmem>>, %arg22: memref<128x128xbf16, #tpu.memory_space<vmem>>, %arg23: memref<1x128xf32, #tpu.memory_space<vmem>>, %arg24: memref<128x128xbf16, #tpu.memory_space<vmem>>, %arg25: memref<1x128xf32, #tpu.memory_space<vmem>>, %arg26: memref<128x128xbf16, #tpu.memory_space<vmem>>, %arg27: memref<1x128xf32, #tpu.memory_space<vmem>>, %arg28: memref<128x128xbf16, #tpu.memory_space<vmem>>, %arg29: memref<1x128xf32, #tpu.memory_space<vmem>>, %arg30: memref<128x128xbf16, #tpu.memory_space<vmem>>, %arg31: memref<1x128xf32, #tpu.memory_space<vmem>>, %arg32: memref<64x128xbf16, #tpu.memory_space<vmem>>, %arg33: memref<1x128xf32, #tpu.memory_space<vmem>>, %arg34: memref<128x128xf32, #tpu.memory_space<vmem>>) attributes {dimension_semantics = [#tpu.dimension_semantics<parallel>], iteration_bounds = array<i64: 1>, scalar_prefetch = 0 : i64, scratch_operands = 0 : i64, tpu.core_type = #tpu.core_type<tc>, window_params = [{transform_indices = @transform_0, window_bounds = array<i64: 128, 480>}, {pipeline_mode = #tpu.pipeline_mode<synchronous>, transform_indices = @transform_1, window_bounds = array<i64: 480, 512>}, {pipeline_mode = #tpu.pipeline_mode<synchronous>, transform_indices = @transform_2, window_bounds = array<i64: 1, 512>}, {pipeline_mode = #tpu.pipeline_mode<synchronous>, transform_indices = @transform_3, window_bounds = array<i64: 512, 512>}, {pipeline_mode = #tpu.pipeline_mode<synchronous>, transform_indices = @transform_4, window_bounds = array<i64: 1, 512>}, {pipeline_mode = #tpu.pipeline_mode<synchronous>, transform_indices = @transform_5, window_bounds = array<i64: 512, 512>}, {pipeline_mode = #tpu.pipeline_mode<synchronous>, transform_indices = @transform_6, window_bounds = array<i64: 1, 512>}, {pipeline_mode = #tpu.pipeline_mode<synchronous>, transform_indices = @transform_7, window_bounds = array<i64: 512, 512>}, {pipeline_mode = #tpu.pipeline_mode<synchronous>, transform_indices = @transform_8, window_bounds = array<i64: 1, 512>}, {pipeline_mode = #tpu.pipeline_mode<synchronous>, transform_indices = @transform_9, window_bounds = array<i64: 256, 256>}, {pipeline_mode = #tpu.pipeline_mode<synchronous>, transform_indices = @transform_10, window_bounds = array<i64: 1, 256>}, {pipeline_mode = #tpu.pipeline_mode<synchronous>, transform_indices = @transform_11, window_bounds = array<i64: 128, 128>}, {pipeline_mode = #tpu.pipeline_mode<synchronous>, transform_indices = @transform_12, window_bounds = array<i64: 1, 128>}, {pipeline_mode = #tpu.pipeline_mode<synchronous>, transform_indices = @transform_13, window_bounds = array<i64: 128, 128>}, {pipeline_mode = #tpu.pipeline_mode<synchronous>, transform_indices = @transform_14, window_bounds = array<i64: 1, 128>}, {pipeline_mode = #tpu.pipeline_mode<synchronous>, transform_indices = @transform_15, window_bounds = array<i64: 128, 128>}, {pipeline_mode = #tpu.pipeline_mode<synchronous>, transform_indices = @transform_16, window_bounds = array<i64: 1, 128>}, {pipeline_mode = #tpu.pipeline_mode<synchronous>, transform_indices = @transform_17, window_bounds = array<i64: 128, 128>}, {pipeline_mode = #tpu.pipeline_mode<synchronous>, transform_indices = @transform_18, window_bounds = array<i64: 1, 128>}, {pipeline_mode = #tpu.pipeline_mode<synchronous>, transform_indices = @transform_19, window_bounds = array<i64: 128, 128>}, {pipeline_mode = #tpu.pipeline_mode<synchronous>, transform_indices = @transform_20, window_bounds = array<i64: 1, 128>}, {pipeline_mode = #tpu.pipeline_mode<synchronous>, transform_indices = @transform_21, window_bounds = array<i64: 128, 128>}, {pipeline_mode = #tpu.pipeline_mode<synchronous>, transform_indices = @transform_22, window_bounds = array<i64: 1, 128>}, {pipeline_mode = #tpu.pipeline_mode<synchronous>, transform_indices = @transform_23, window_bounds = array<i64: 128, 128>}, {pipeline_mode = #tpu.pipeline_mode<synchronous>, transform_indices = @transform_24, window_bounds = array<i64: 1, 128>}, {pipeline_mode = #tpu.pipeline_mode<synchronous>, transform_indices = @transform_25, window_bounds = array<i64: 128, 128>}, {pipeline_mode = #tpu.pipeline_mode<synchronous>, transform_indices = @transform_26, window_bounds = array<i64: 1, 128>}, {pipeline_mode = #tpu.pipeline_mode<synchronous>, transform_indices = @transform_27, window_bounds = array<i64: 128, 128>}, {pipeline_mode = #tpu.pipeline_mode<synchronous>, transform_indices = @transform_28, window_bounds = array<i64: 1, 128>}, {pipeline_mode = #tpu.pipeline_mode<synchronous>, transform_indices = @transform_29, window_bounds = array<i64: 128, 128>}, {pipeline_mode = #tpu.pipeline_mode<synchronous>, transform_indices = @transform_30, window_bounds = array<i64: 1, 128>}, {pipeline_mode = #tpu.pipeline_mode<synchronous>, transform_indices = @transform_31, window_bounds = array<i64: 64, 128>}, {pipeline_mode = #tpu.pipeline_mode<synchronous>, transform_indices = @transform_32, window_bounds = array<i64: 1, 128>}, {transform_indices = @transform_33, window_bounds = array<i64: 128, 128>}]} {
    %c0 = arith.constant 0 : index
    %c0_0 = arith.constant 0 : index
    %0 = vector.load %arg1[%c0, %c0_0] : memref<128x480xf32, #tpu.memory_space<vmem>>, vector<128x480xf32>
    %c0_1 = arith.constant 0 : index
    %c0_2 = arith.constant 0 : index
    %1 = vector.load %arg2[%c0_1, %c0_2] : memref<480x512xbf16, #tpu.memory_space<vmem>>, vector<480x512xbf16>
    %c0_3 = arith.constant 0 : index
    %c0_4 = arith.constant 0 : index
    %2 = vector.load %arg3[%c0_3, %c0_4] : memref<1x512xf32, #tpu.memory_space<vmem>>, vector<1x512xf32>
    %3 = arith.truncf %0 : vector<128x480xf32> to vector<128x480xbf16>
    %cst = arith.constant dense<0.000000e+00> : vector<128x512xf32>
    %4 = tpu.matmul %3, %1, %cst {dimension_numbers = #tpu.dot_dimension_numbers<[1], [0], [0], [1], [0, 0, 1, 1], [], []>} : vector<128x480xbf16>, vector<480x512xbf16>, vector<128x512xf32> -> vector<128x512xf32>
    %5 = vector.broadcast %2 : vector<1x512xf32> to vector<128x512xf32>
    %6 = arith.addf %4, %5 : vector<128x512xf32>
    %cst_5 = arith.constant 0.000000e+00 : f32
    %7 = vector.broadcast %cst_5 : f32 to vector<128x512xf32>
    %8 = arith.maximumf %6, %7 : vector<128x512xf32>
    %c0_6 = arith.constant 0 : index
    %c0_7 = arith.constant 0 : index
    %9 = vector.load %arg4[%c0_6, %c0_7] : memref<512x512xbf16, #tpu.memory_space<vmem>>, vector<512x512xbf16>
    %c0_8 = arith.constant 0 : index
    %c0_9 = arith.constant 0 : index
    %10 = vector.load %arg5[%c0_8, %c0_9] : memref<1x512xf32, #tpu.memory_space<vmem>>, vector<1x512xf32>
    %11 = arith.truncf %8 : vector<128x512xf32> to vector<128x512xbf16>
    %cst_10 = arith.constant dense<0.000000e+00> : vector<128x512xf32>
    %12 = tpu.matmul %11, %9, %cst_10 {dimension_numbers = #tpu.dot_dimension_numbers<[1], [0], [0], [1], [0, 0, 1, 1], [], []>} : vector<128x512xbf16>, vector<512x512xbf16>, vector<128x512xf32> -> vector<128x512xf32>
    %13 = vector.broadcast %10 : vector<1x512xf32> to vector<128x512xf32>
    %14 = arith.addf %12, %13 : vector<128x512xf32>
    %cst_11 = arith.constant 0.000000e+00 : f32
    %15 = vector.broadcast %cst_11 : f32 to vector<128x512xf32>
    %16 = arith.maximumf %14, %15 : vector<128x512xf32>
    %17 = arith.addf %16, %8 : vector<128x512xf32>
    %c0_12 = arith.constant 0 : index
    %c0_13 = arith.constant 0 : index
    %18 = vector.load %arg6[%c0_12, %c0_13] : memref<512x512xbf16, #tpu.memory_space<vmem>>, vector<512x512xbf16>
    %c0_14 = arith.constant 0 : index
    %c0_15 = arith.constant 0 : index
    %19 = vector.load %arg7[%c0_14, %c0_15] : memref<1x512xf32, #tpu.memory_space<vmem>>, vector<1x512xf32>
    %20 = arith.truncf %17 : vector<128x512xf32> to vector<128x512xbf16>
    %cst_16 = arith.constant dense<0.000000e+00> : vector<128x512xf32>
    %21 = tpu.matmul %20, %18, %cst_16 {dimension_numbers = #tpu.dot_dimension_numbers<[1], [0], [0], [1], [0, 0, 1, 1], [], []>} : vector<128x512xbf16>, vector<512x512xbf16>, vector<128x512xf32> -> vector<128x512xf32>
    %22 = vector.broadcast %19 : vector<1x512xf32> to vector<128x512xf32>
    %23 = arith.addf %21, %22 : vector<128x512xf32>
    %cst_17 = arith.constant 0.000000e+00 : f32
    %24 = vector.broadcast %cst_17 : f32 to vector<128x512xf32>
    %25 = arith.maximumf %23, %24 : vector<128x512xf32>
    %26 = arith.addf %25, %17 : vector<128x512xf32>
    %c0_18 = arith.constant 0 : index
    %c0_19 = arith.constant 0 : index
    %27 = vector.load %arg8[%c0_18, %c0_19] : memref<512x512xbf16, #tpu.memory_space<vmem>>, vector<512x512xbf16>
    %c0_20 = arith.constant 0 : index
    %c0_21 = arith.constant 0 : index
    %28 = vector.load %arg9[%c0_20, %c0_21] : memref<1x512xf32, #tpu.memory_space<vmem>>, vector<1x512xf32>
    %29 = arith.truncf %26 : vector<128x512xf32> to vector<128x512xbf16>
    %cst_22 = arith.constant dense<0.000000e+00> : vector<128x512xf32>
    %30 = tpu.matmul %29, %27, %cst_22 {dimension_numbers = #tpu.dot_dimension_numbers<[1], [0], [0], [1], [0, 0, 1, 1], [], []>} : vector<128x512xbf16>, vector<512x512xbf16>, vector<128x512xf32> -> vector<128x512xf32>
    %31 = vector.broadcast %28 : vector<1x512xf32> to vector<128x512xf32>
    %32 = arith.addf %30, %31 : vector<128x512xf32>
    %33 = vector.extract_strided_slice %32 {offsets = [0, 0], sizes = [128, 256], strides = [1, 1]} : vector<128x512xf32> to vector<128x256xf32>
    %cst_23 = arith.constant 0.000000e+00 : f32
    %34 = vector.broadcast %cst_23 : f32 to vector<128x256xf32>
    %35 = arith.maximumf %33, %34 : vector<128x256xf32>
    %36 = vector.extract_strided_slice %32 {offsets = [0, 256], sizes = [128, 256], strides = [1, 1]} : vector<128x512xf32> to vector<128x256xf32>
    %37 = arith.addf %35, %36 : vector<128x256xf32>
    %c0_24 = arith.constant 0 : index
    %c0_25 = arith.constant 0 : index
    %38 = vector.load %arg10[%c0_24, %c0_25] : memref<256x256xbf16, #tpu.memory_space<vmem>>, vector<256x256xbf16>
    %c0_26 = arith.constant 0 : index
    %c0_27 = arith.constant 0 : index
    %39 = vector.load %arg11[%c0_26, %c0_27] : memref<1x256xf32, #tpu.memory_space<vmem>>, vector<1x256xf32>
    %40 = arith.truncf %37 : vector<128x256xf32> to vector<128x256xbf16>
    %cst_28 = arith.constant dense<0.000000e+00> : vector<128x256xf32>
    %41 = tpu.matmul %40, %38, %cst_28 {dimension_numbers = #tpu.dot_dimension_numbers<[1], [0], [0], [1], [0, 0, 1, 1], [], []>} : vector<128x256xbf16>, vector<256x256xbf16>, vector<128x256xf32> -> vector<128x256xf32>
    %42 = vector.broadcast %39 : vector<1x256xf32> to vector<128x256xf32>
    %43 = arith.addf %41, %42 : vector<128x256xf32>
    %44 = vector.extract_strided_slice %43 {offsets = [0, 0], sizes = [128, 128], strides = [1, 1]} : vector<128x256xf32> to vector<128x128xf32>
    %cst_29 = arith.constant 0.000000e+00 : f32
    %45 = vector.broadcast %cst_29 : f32 to vector<128x128xf32>
    %46 = arith.maximumf %44, %45 : vector<128x128xf32>
    %47 = vector.extract_strided_slice %43 {offsets = [0, 128], sizes = [128, 128], strides = [1, 1]} : vector<128x256xf32> to vector<128x128xf32>
    %48 = arith.addf %46, %47 : vector<128x128xf32>
    %c0_30 = arith.constant 0 : index
    %c0_31 = arith.constant 0 : index
    %49 = vector.load %arg12[%c0_30, %c0_31] : memref<128x128xbf16, #tpu.memory_space<vmem>>, vector<128x128xbf16>
    %c0_32 = arith.constant 0 : index
    %c0_33 = arith.constant 0 : index
    %50 = vector.load %arg13[%c0_32, %c0_33] : memref<1x128xf32, #tpu.memory_space<vmem>>, vector<1x128xf32>
    %51 = arith.truncf %48 : vector<128x128xf32> to vector<128x128xbf16>
    %cst_34 = arith.constant dense<0.000000e+00> : vector<128x128xf32>
    %52 = tpu.matmul %51, %49, %cst_34 {dimension_numbers = #tpu.dot_dimension_numbers<[1], [0], [0], [1], [0, 0, 1, 1], [], []>} : vector<128x128xbf16>, vector<128x128xbf16>, vector<128x128xf32> -> vector<128x128xf32>
    %53 = vector.broadcast %50 : vector<1x128xf32> to vector<128x128xf32>
    %54 = arith.addf %52, %53 : vector<128x128xf32>
    %cst_35 = arith.constant 0.000000e+00 : f32
    %55 = vector.broadcast %cst_35 : f32 to vector<128x128xf32>
    %56 = arith.maximumf %54, %55 : vector<128x128xf32>
    %57 = arith.addf %56, %48 : vector<128x128xf32>
    %c0_36 = arith.constant 0 : index
    %c0_37 = arith.constant 0 : index
    %58 = vector.load %arg14[%c0_36, %c0_37] : memref<128x128xbf16, #tpu.memory_space<vmem>>, vector<128x128xbf16>
    %c0_38 = arith.constant 0 : index
    %c0_39 = arith.constant 0 : index
    %59 = vector.load %arg15[%c0_38, %c0_39] : memref<1x128xf32, #tpu.memory_space<vmem>>, vector<1x128xf32>
    %60 = arith.truncf %57 : vector<128x128xf32> to vector<128x128xbf16>
    %cst_40 = arith.constant dense<0.000000e+00> : vector<128x128xf32>
    %61 = tpu.matmul %60, %58, %cst_40 {dimension_numbers = #tpu.dot_dimension_numbers<[1], [0], [0], [1], [0, 0, 1, 1], [], []>} : vector<128x128xbf16>, vector<128x128xbf16>, vector<128x128xf32> -> vector<128x128xf32>
    %62 = vector.broadcast %59 : vector<1x128xf32> to vector<128x128xf32>
    %63 = arith.addf %61, %62 : vector<128x128xf32>
    %cst_41 = arith.constant 0.000000e+00 : f32
    %64 = vector.broadcast %cst_41 : f32 to vector<128x128xf32>
    %65 = arith.maximumf %63, %64 : vector<128x128xf32>
    %66 = arith.addf %65, %57 : vector<128x128xf32>
    %c0_42 = arith.constant 0 : index
    %c0_43 = arith.constant 0 : index
    %67 = vector.load %arg16[%c0_42, %c0_43] : memref<128x128xbf16, #tpu.memory_space<vmem>>, vector<128x128xbf16>
    %c0_44 = arith.constant 0 : index
    %c0_45 = arith.constant 0 : index
    %68 = vector.load %arg17[%c0_44, %c0_45] : memref<1x128xf32, #tpu.memory_space<vmem>>, vector<1x128xf32>
    %69 = arith.truncf %66 : vector<128x128xf32> to vector<128x128xbf16>
    %cst_46 = arith.constant dense<0.000000e+00> : vector<128x128xf32>
    %70 = tpu.matmul %69, %67, %cst_46 {dimension_numbers = #tpu.dot_dimension_numbers<[1], [0], [0], [1], [0, 0, 1, 1], [], []>} : vector<128x128xbf16>, vector<128x128xbf16>, vector<128x128xf32> -> vector<128x128xf32>
    %71 = vector.broadcast %68 : vector<1x128xf32> to vector<128x128xf32>
    %72 = arith.addf %70, %71 : vector<128x128xf32>
    %cst_47 = arith.constant 0.000000e+00 : f32
    %73 = vector.broadcast %cst_47 : f32 to vector<128x128xf32>
    %74 = arith.maximumf %72, %73 : vector<128x128xf32>
    %75 = arith.addf %74, %66 : vector<128x128xf32>
    %c0_48 = arith.constant 0 : index
    %c0_49 = arith.constant 0 : index
    %76 = vector.load %arg18[%c0_48, %c0_49] : memref<128x128xbf16, #tpu.memory_space<vmem>>, vector<128x128xbf16>
    %c0_50 = arith.constant 0 : index
    %c0_51 = arith.constant 0 : index
    %77 = vector.load %arg19[%c0_50, %c0_51] : memref<1x128xf32, #tpu.memory_space<vmem>>, vector<1x128xf32>
    %78 = arith.truncf %75 : vector<128x128xf32> to vector<128x128xbf16>
    %cst_52 = arith.constant dense<0.000000e+00> : vector<128x128xf32>
    %79 = tpu.matmul %78, %76, %cst_52 {dimension_numbers = #tpu.dot_dimension_numbers<[1], [0], [0], [1], [0, 0, 1, 1], [], []>} : vector<128x128xbf16>, vector<128x128xbf16>, vector<128x128xf32> -> vector<128x128xf32>
    %80 = vector.broadcast %77 : vector<1x128xf32> to vector<128x128xf32>
    %81 = arith.addf %79, %80 : vector<128x128xf32>
    %cst_53 = arith.constant 0.000000e+00 : f32
    %82 = vector.broadcast %cst_53 : f32 to vector<128x128xf32>
    %83 = arith.maximumf %81, %82 : vector<128x128xf32>
    %84 = arith.addf %83, %75 : vector<128x128xf32>
    %c0_54 = arith.constant 0 : index
    %c0_55 = arith.constant 0 : index
    %85 = vector.load %arg20[%c0_54, %c0_55] : memref<128x128xbf16, #tpu.memory_space<vmem>>, vector<128x128xbf16>
    %c0_56 = arith.constant 0 : index
    %c0_57 = arith.constant 0 : index
    %86 = vector.load %arg21[%c0_56, %c0_57] : memref<1x128xf32, #tpu.memory_space<vmem>>, vector<1x128xf32>
    %87 = arith.truncf %84 : vector<128x128xf32> to vector<128x128xbf16>
    %cst_58 = arith.constant dense<0.000000e+00> : vector<128x128xf32>
    %88 = tpu.matmul %87, %85, %cst_58 {dimension_numbers = #tpu.dot_dimension_numbers<[1], [0], [0], [1], [0, 0, 1, 1], [], []>} : vector<128x128xbf16>, vector<128x128xbf16>, vector<128x128xf32> -> vector<128x128xf32>
    %89 = vector.broadcast %86 : vector<1x128xf32> to vector<128x128xf32>
    %90 = arith.addf %88, %89 : vector<128x128xf32>
    %cst_59 = arith.constant 0.000000e+00 : f32
    %91 = vector.broadcast %cst_59 : f32 to vector<128x128xf32>
    %92 = arith.maximumf %90, %91 : vector<128x128xf32>
    %93 = arith.addf %92, %84 : vector<128x128xf32>
    %c0_60 = arith.constant 0 : index
    %c0_61 = arith.constant 0 : index
    %94 = vector.load %arg22[%c0_60, %c0_61] : memref<128x128xbf16, #tpu.memory_space<vmem>>, vector<128x128xbf16>
    %c0_62 = arith.constant 0 : index
    %c0_63 = arith.constant 0 : index
    %95 = vector.load %arg23[%c0_62, %c0_63] : memref<1x128xf32, #tpu.memory_space<vmem>>, vector<1x128xf32>
    %96 = arith.truncf %93 : vector<128x128xf32> to vector<128x128xbf16>
    %cst_64 = arith.constant dense<0.000000e+00> : vector<128x128xf32>
    %97 = tpu.matmul %96, %94, %cst_64 {dimension_numbers = #tpu.dot_dimension_numbers<[1], [0], [0], [1], [0, 0, 1, 1], [], []>} : vector<128x128xbf16>, vector<128x128xbf16>, vector<128x128xf32> -> vector<128x128xf32>
    %98 = vector.broadcast %95 : vector<1x128xf32> to vector<128x128xf32>
    %99 = arith.addf %97, %98 : vector<128x128xf32>
    %cst_65 = arith.constant 0.000000e+00 : f32
    %100 = vector.broadcast %cst_65 : f32 to vector<128x128xf32>
    %101 = arith.maximumf %99, %100 : vector<128x128xf32>
    %102 = arith.addf %101, %93 : vector<128x128xf32>
    %c0_66 = arith.constant 0 : index
    %c0_67 = arith.constant 0 : index
    %103 = vector.load %arg24[%c0_66, %c0_67] : memref<128x128xbf16, #tpu.memory_space<vmem>>, vector<128x128xbf16>
    %c0_68 = arith.constant 0 : index
    %c0_69 = arith.constant 0 : index
    %104 = vector.load %arg25[%c0_68, %c0_69] : memref<1x128xf32, #tpu.memory_space<vmem>>, vector<1x128xf32>
    %105 = arith.truncf %102 : vector<128x128xf32> to vector<128x128xbf16>
    %cst_70 = arith.constant dense<0.000000e+00> : vector<128x128xf32>
    %106 = tpu.matmul %105, %103, %cst_70 {dimension_numbers = #tpu.dot_dimension_numbers<[1], [0], [0], [1], [0, 0, 1, 1], [], []>} : vector<128x128xbf16>, vector<128x128xbf16>, vector<128x128xf32> -> vector<128x128xf32>
    %107 = vector.broadcast %104 : vector<1x128xf32> to vector<128x128xf32>
    %108 = arith.addf %106, %107 : vector<128x128xf32>
    %cst_71 = arith.constant 0.000000e+00 : f32
    %109 = vector.broadcast %cst_71 : f32 to vector<128x128xf32>
    %110 = arith.maximumf %108, %109 : vector<128x128xf32>
    %111 = arith.addf %110, %102 : vector<128x128xf32>
    %c0_72 = arith.constant 0 : index
    %c0_73 = arith.constant 0 : index
    %112 = vector.load %arg26[%c0_72, %c0_73] : memref<128x128xbf16, #tpu.memory_space<vmem>>, vector<128x128xbf16>
    %c0_74 = arith.constant 0 : index
    %c0_75 = arith.constant 0 : index
    %113 = vector.load %arg27[%c0_74, %c0_75] : memref<1x128xf32, #tpu.memory_space<vmem>>, vector<1x128xf32>
    %114 = arith.truncf %111 : vector<128x128xf32> to vector<128x128xbf16>
    %cst_76 = arith.constant dense<0.000000e+00> : vector<128x128xf32>
    %115 = tpu.matmul %114, %112, %cst_76 {dimension_numbers = #tpu.dot_dimension_numbers<[1], [0], [0], [1], [0, 0, 1, 1], [], []>} : vector<128x128xbf16>, vector<128x128xbf16>, vector<128x128xf32> -> vector<128x128xf32>
    %116 = vector.broadcast %113 : vector<1x128xf32> to vector<128x128xf32>
    %117 = arith.addf %115, %116 : vector<128x128xf32>
    %cst_77 = arith.constant 0.000000e+00 : f32
    %118 = vector.broadcast %cst_77 : f32 to vector<128x128xf32>
    %119 = arith.maximumf %117, %118 : vector<128x128xf32>
    %120 = arith.addf %119, %111 : vector<128x128xf32>
    %c0_78 = arith.constant 0 : index
    %c0_79 = arith.constant 0 : index
    %121 = vector.load %arg28[%c0_78, %c0_79] : memref<128x128xbf16, #tpu.memory_space<vmem>>, vector<128x128xbf16>
    %c0_80 = arith.constant 0 : index
    %c0_81 = arith.constant 0 : index
    %122 = vector.load %arg29[%c0_80, %c0_81] : memref<1x128xf32, #tpu.memory_space<vmem>>, vector<1x128xf32>
    %123 = arith.truncf %120 : vector<128x128xf32> to vector<128x128xbf16>
    %cst_82 = arith.constant dense<0.000000e+00> : vector<128x128xf32>
    %124 = tpu.matmul %123, %121, %cst_82 {dimension_numbers = #tpu.dot_dimension_numbers<[1], [0], [0], [1], [0, 0, 1, 1], [], []>} : vector<128x128xbf16>, vector<128x128xbf16>, vector<128x128xf32> -> vector<128x128xf32>
    %125 = vector.broadcast %122 : vector<1x128xf32> to vector<128x128xf32>
    %126 = arith.addf %124, %125 : vector<128x128xf32>
    %cst_83 = arith.constant 0.000000e+00 : f32
    %127 = vector.broadcast %cst_83 : f32 to vector<128x128xf32>
    %128 = arith.maximumf %126, %127 : vector<128x128xf32>
    %129 = arith.addf %128, %120 : vector<128x128xf32>
    %c0_84 = arith.constant 0 : index
    %c0_85 = arith.constant 0 : index
    %130 = vector.load %arg30[%c0_84, %c0_85] : memref<128x128xbf16, #tpu.memory_space<vmem>>, vector<128x128xbf16>
    %c0_86 = arith.constant 0 : index
    %c0_87 = arith.constant 0 : index
    %131 = vector.load %arg31[%c0_86, %c0_87] : memref<1x128xf32, #tpu.memory_space<vmem>>, vector<1x128xf32>
    %132 = arith.truncf %129 : vector<128x128xf32> to vector<128x128xbf16>
    %cst_88 = arith.constant dense<0.000000e+00> : vector<128x128xf32>
    %133 = tpu.matmul %132, %130, %cst_88 {dimension_numbers = #tpu.dot_dimension_numbers<[1], [0], [0], [1], [0, 0, 1, 1], [], []>} : vector<128x128xbf16>, vector<128x128xbf16>, vector<128x128xf32> -> vector<128x128xf32>
    %134 = vector.broadcast %131 : vector<1x128xf32> to vector<128x128xf32>
    %135 = arith.addf %133, %134 : vector<128x128xf32>
    %136 = vector.extract_strided_slice %135 {offsets = [0, 0], sizes = [128, 64], strides = [1, 1]} : vector<128x128xf32> to vector<128x64xf32>
    %cst_89 = arith.constant 0.000000e+00 : f32
    %137 = vector.broadcast %cst_89 : f32 to vector<128x64xf32>
    %138 = arith.maximumf %136, %137 : vector<128x64xf32>
    %139 = vector.extract_strided_slice %135 {offsets = [0, 64], sizes = [128, 64], strides = [1, 1]} : vector<128x128xf32> to vector<128x64xf32>
    %140 = arith.addf %138, %139 : vector<128x64xf32>
    %c0_90 = arith.constant 0 : index
    %c0_91 = arith.constant 0 : index
    %141 = vector.load %arg32[%c0_90, %c0_91] : memref<64x128xbf16, #tpu.memory_space<vmem>>, vector<64x128xbf16>
    %c0_92 = arith.constant 0 : index
    %c0_93 = arith.constant 0 : index
    %142 = vector.load %arg33[%c0_92, %c0_93] : memref<1x128xf32, #tpu.memory_space<vmem>>, vector<1x128xf32>
    %143 = arith.truncf %140 : vector<128x64xf32> to vector<128x64xbf16>
    %cst_94 = arith.constant dense<0.000000e+00> : vector<128x128xf32>
    %144 = tpu.matmul %143, %141, %cst_94 {dimension_numbers = #tpu.dot_dimension_numbers<[1], [0], [0], [1], [0, 0, 1, 1], [], []>} : vector<128x64xbf16>, vector<64x128xbf16>, vector<128x128xf32> -> vector<128x128xf32>
    %145 = vector.broadcast %142 : vector<1x128xf32> to vector<128x128xf32>
    %146 = arith.addf %144, %145 : vector<128x128xf32>
    %c0_95 = arith.constant 0 : index
    %c0_96 = arith.constant 0 : index
    %147 = vector.load %arg34[%c0_95, %c0_96] : memref<128x128xf32, #tpu.memory_space<vmem>>, vector<128x128xf32>
    tpu.vector_store %arg34[%c0_95, %c0_96], %146 {strides = array<i32>} : memref<128x128xf32, #tpu.memory_space<vmem>>, vector<128x128xf32>,
    return
  }
  func.func @transform_0(%arg0: i32) -> (i32, i32) {
    %c0_i32 = arith.constant 0 : i32
    %c0_i32_0 = arith.constant 0 : i32
    return %arg0, %c0_i32 : i32, i32
  }
  func.func @transform_1(%arg0: i32) -> (i32, i32) {
    %c0_i32 = arith.constant 0 : i32
    %c0_i32_0 = arith.constant 0 : i32
    %c0_i32_1 = arith.constant 0 : i32
    return %c0_i32, %c0_i32_0 : i32, i32
  }
  func.func @transform_2(%arg0: i32) -> (i32, i32) {
    %c0_i32 = arith.constant 0 : i32
    %c0_i32_0 = arith.constant 0 : i32
    %c0_i32_1 = arith.constant 0 : i32
    return %c0_i32, %c0_i32_0 : i32, i32
  }
  func.func @transform_3(%arg0: i32) -> (i32, i32) {
    %c0_i32 = arith.constant 0 : i32
    %c0_i32_0 = arith.constant 0 : i32
    %c0_i32_1 = arith.constant 0 : i32
    return %c0_i32, %c0_i32_0 : i32, i32
  }
  func.func @transform_4(%arg0: i32) -> (i32, i32) {
    %c0_i32 = arith.constant 0 : i32
    %c0_i32_0 = arith.constant 0 : i32
    %c0_i32_1 = arith.constant 0 : i32
    return %c0_i32, %c0_i32_0 : i32, i32
  }
  func.func @transform_5(%arg0: i32) -> (i32, i32) {
    %c0_i32 = arith.constant 0 : i32
    %c0_i32_0 = arith.constant 0 : i32
    %c0_i32_1 = arith.constant 0 : i32
    return %c0_i32, %c0_i32_0 : i32, i32
  }
  func.func @transform_6(%arg0: i32) -> (i32, i32) {
    %c0_i32 = arith.constant 0 : i32
    %c0_i32_0 = arith.constant 0 : i32
    %c0_i32_1 = arith.constant 0 : i32
    return %c0_i32, %c0_i32_0 : i32, i32
  }
  func.func @transform_7(%arg0: i32) -> (i32, i32) {
    %c0_i32 = arith.constant 0 : i32
    %c0_i32_0 = arith.constant 0 : i32
    %c0_i32_1 = arith.constant 0 : i32
    return %c0_i32, %c0_i32_0 : i32, i32
  }
  func.func @transform_8(%arg0: i32) -> (i32, i32) {
    %c0_i32 = arith.constant 0 : i32
    %c0_i32_0 = arith.constant 0 : i32
    %c0_i32_1 = arith.constant 0 : i32
    return %c0_i32, %c0_i32_0 : i32, i32
  }
  func.func @transform_9(%arg0: i32) -> (i32, i32) {
    %c0_i32 = arith.constant 0 : i32
    %c0_i32_0 = arith.constant 0 : i32
    %c0_i32_1 = arith.constant 0 : i32
    return %c0_i32, %c0_i32_0 : i32, i32
  }
  func.func @transform_10(%arg0: i32) -> (i32, i32) {
    %c0_i32 = arith.constant 0 : i32
    %c0_i32_0 = arith.constant 0 : i32
    %c0_i32_1 = arith.constant 0 : i32
    return %c0_i32, %c0_i32_0 : i32, i32
  }
  func.func @transform_11(%arg0: i32) -> (i32, i32) {
    %c0_i32 = arith.constant 0 : i32
    %c0_i32_0 = arith.constant 0 : i32
    %c0_i32_1 = arith.constant 0 : i32
    return %c0_i32, %c0_i32_0 : i32, i32
  }
  func.func @transform_12(%arg0: i32) -> (i32, i32) {
    %c0_i32 = arith.constant 0 : i32
    %c0_i32_0 = arith.constant 0 : i32
    %c0_i32_1 = arith.constant 0 : i32
    return %c0_i32, %c0_i32_0 : i32, i32
  }
  func.func @transform_13(%arg0: i32) -> (i32, i32) {
    %c0_i32 = arith.constant 0 : i32
    %c0_i32_0 = arith.constant 0 : i32
    %c0_i32_1 = arith.constant 0 : i32
    return %c0_i32, %c0_i32_0 : i32, i32
  }
  func.func @transform_14(%arg0: i32) -> (i32, i32) {
    %c0_i32 = arith.constant 0 : i32
    %c0_i32_0 = arith.constant 0 : i32
    %c0_i32_1 = arith.constant 0 : i32
    return %c0_i32, %c0_i32_0 : i32, i32
  }
  func.func @transform_15(%arg0: i32) -> (i32, i32) {
    %c0_i32 = arith.constant 0 : i32
    %c0_i32_0 = arith.constant 0 : i32
    %c0_i32_1 = arith.constant 0 : i32
    return %c0_i32, %c0_i32_0 : i32, i32
  }
  func.func @transform_16(%arg0: i32) -> (i32, i32) {
    %c0_i32 = arith.constant 0 : i32
    %c0_i32_0 = arith.constant 0 : i32
    %c0_i32_1 = arith.constant 0 : i32
    return %c0_i32, %c0_i32_0 : i32, i32
  }
  func.func @transform_17(%arg0: i32) -> (i32, i32) {
    %c0_i32 = arith.constant 0 : i32
    %c0_i32_0 = arith.constant 0 : i32
    %c0_i32_1 = arith.constant 0 : i32
    return %c0_i32, %c0_i32_0 : i32, i32
  }
  func.func @transform_18(%arg0: i32) -> (i32, i32) {
    %c0_i32 = arith.constant 0 : i32
    %c0_i32_0 = arith.constant 0 : i32
    %c0_i32_1 = arith.constant 0 : i32
    return %c0_i32, %c0_i32_0 : i32, i32
  }
  func.func @transform_19(%arg0: i32) -> (i32, i32) {
    %c0_i32 = arith.constant 0 : i32
    %c0_i32_0 = arith.constant 0 : i32
    %c0_i32_1 = arith.constant 0 : i32
    return %c0_i32, %c0_i32_0 : i32, i32
  }
  func.func @transform_20(%arg0: i32) -> (i32, i32) {
    %c0_i32 = arith.constant 0 : i32
    %c0_i32_0 = arith.constant 0 : i32
    %c0_i32_1 = arith.constant 0 : i32
    return %c0_i32, %c0_i32_0 : i32, i32
  }
  func.func @transform_21(%arg0: i32) -> (i32, i32) {
    %c0_i32 = arith.constant 0 : i32
    %c0_i32_0 = arith.constant 0 : i32
    %c0_i32_1 = arith.constant 0 : i32
    return %c0_i32, %c0_i32_0 : i32, i32
  }
  func.func @transform_22(%arg0: i32) -> (i32, i32) {
    %c0_i32 = arith.constant 0 : i32
    %c0_i32_0 = arith.constant 0 : i32
    %c0_i32_1 = arith.constant 0 : i32
    return %c0_i32, %c0_i32_0 : i32, i32
  }
  func.func @transform_23(%arg0: i32) -> (i32, i32) {
    %c0_i32 = arith.constant 0 : i32
    %c0_i32_0 = arith.constant 0 : i32
    %c0_i32_1 = arith.constant 0 : i32
    return %c0_i32, %c0_i32_0 : i32, i32
  }
  func.func @transform_24(%arg0: i32) -> (i32, i32) {
    %c0_i32 = arith.constant 0 : i32
    %c0_i32_0 = arith.constant 0 : i32
    %c0_i32_1 = arith.constant 0 : i32
    return %c0_i32, %c0_i32_0 : i32, i32
  }
  func.func @transform_25(%arg0: i32) -> (i32, i32) {
    %c0_i32 = arith.constant 0 : i32
    %c0_i32_0 = arith.constant 0 : i32
    %c0_i32_1 = arith.constant 0 : i32
    return %c0_i32, %c0_i32_0 : i32, i32
  }
  func.func @transform_26(%arg0: i32) -> (i32, i32) {
    %c0_i32 = arith.constant 0 : i32
    %c0_i32_0 = arith.constant 0 : i32
    %c0_i32_1 = arith.constant 0 : i32
    return %c0_i32, %c0_i32_0 : i32, i32
  }
  func.func @transform_27(%arg0: i32) -> (i32, i32) {
    %c0_i32 = arith.constant 0 : i32
    %c0_i32_0 = arith.constant 0 : i32
    %c0_i32_1 = arith.constant 0 : i32
    return %c0_i32, %c0_i32_0 : i32, i32
  }
  func.func @transform_28(%arg0: i32) -> (i32, i32) {
    %c0_i32 = arith.constant 0 : i32
    %c0_i32_0 = arith.constant 0 : i32
    %c0_i32_1 = arith.constant 0 : i32
    return %c0_i32, %c0_i32_0 : i32, i32
  }
  func.func @transform_29(%arg0: i32) -> (i32, i32) {
    %c0_i32 = arith.constant 0 : i32
    %c0_i32_0 = arith.constant 0 : i32
    %c0_i32_1 = arith.constant 0 : i32
    return %c0_i32, %c0_i32_0 : i32, i32
  }
  func.func @transform_30(%arg0: i32) -> (i32, i32) {
    %c0_i32 = arith.constant 0 : i32
    %c0_i32_0 = arith.constant 0 : i32
    %c0_i32_1 = arith.constant 0 : i32
    return %c0_i32, %c0_i32_0 : i32, i32
  }
  func.func @transform_31(%arg0: i32) -> (i32, i32) {
    %c0_i32 = arith.constant 0 : i32
    %c0_i32_0 = arith.constant 0 : i32
    %c0_i32_1 = arith.constant 0 : i32
    return %c0_i32, %c0_i32_0 : i32, i32
  }
  func.func @transform_32(%arg0: i32) -> (i32, i32) {
    %c0_i32 = arith.constant 0 : i32
    %c0_i32_0 = arith.constant 0 : i32
    %c0_i32_1 = arith.constant 0 : i32
    return %c0_i32, %c0_i32_0 : i32, i32
  }
  func.func @transform_33(%arg0: i32) -> (i32, i32) {
    %c0_i32 = arith.constant 0 : i32
    %c0_i32_0 = arith.constant 0 : i32
    return %arg0, %c0_i32 : i32, i32
  }
}

</mosaic_0001>

<bundles_post_ra>
// kernel: mro_last_forward.1
= control target key start
LH: loop header
LB: loop body
LE: loop exit
PB: predicated region body
PF: predicated region fallthrough
CT: control target
= control target key end

     0   :  { %s11749_s6 = smov 1   ;;  %s11750_s10 = smov 2   ;;  %s14425_s0 = inlined_call_operand.smem [shape: u32[34], index: -1, kind: input, shape index: {}] }
   0x1   :  { %s11814_s5 = sld [smem:[%s14425_s0]]   ;;  %s11751_s14 = smov 3  }
   0x2   :  { %s11819_s9 = sld [smem:[%s14425_s0 + %s11749_s6]]   ;;  %s11752_s18 = smov 4  }
   0x3   :  { %s11824_s13 = sld [smem:[%s14425_s0 + %s11750_s10]]   ;;  %s11753_s22 = smov 5  }
   0x4   :  { %s11829_s17 = sld [smem:[%s14425_s0 + %s11751_s14]]   ;;  %s11754_s26 = smov 6  }
   0x5   :  { %s11834_s21 = sld [smem:[%s14425_s0 + %s11752_s18]]   ;;  %s11755_s30 = smov 7  }
   0x6   :  { %s11839_s25 = sld [smem:[%s14425_s0 + %s11753_s22]]   ;;  %s11756_s4 = smov 8  }
   0x7   :  { %14575 = sst [smem:[#allocation44_spill]] %s11814_s5  ;;  %s11757_s10 = smov 9  }
   0x8   :  { %s11844_s29 = sld [smem:[%s14425_s0 + %s11754_s26]]   ;;  %s11758_s15 = smov 10  }
   0x9   :  { %s11849_s3 = sld [smem:[%s14425_s0 + %s11755_s30]]   ;;  %s11759_s20 = smov 11  }
   0xa   :  { %s11854_s8 = sld [smem:[%s14425_s0 + %s11756_s4]]   ;;  %s11760_s26 = smov 12  }
   0xb   :  { %s11859_s14 = sld [smem:[%s14425_s0 + %s11757_s10]]   ;;  %s11761_s1 = smov 13  }
   0xc   :  { %s11864_s19 = sld [smem:[%s14425_s0 + %s11758_s15]]   ;;  %s11762_s7 = smov 14  }
   0xd   :  { %s11869_s24 = sld [smem:[%s14425_s0 + %s11759_s20]]   ;;  %s11763_s15 = smov 15  }
   0xe   :  { %s11874_s30 = sld [smem:[%s14425_s0 + %s11760_s26]]   ;;  %s11764_s22 = smov 16  }
   0xf   :  { %s11879_s6 = sld [smem:[%s14425_s0 + %s11761_s1]]   ;;  %s11765_s28 = smov 17  }
  0x10   :  { %s11884_s12 = sld [smem:[%s14425_s0 + %s11762_s7]]   ;;  %s11766_s7 = smov 18  }
  0x11   :  { %14576 = sst [smem:[#allocation45_spill]] %s11859_s14 }
  0x12   :  { %14577 = sst [smem:[#allocation46_spill]] %s11864_s19 }
  0x13   :  { %14578 = sst [smem:[#allocation47_spill]] %s11869_s24 }
  0x14   :  { %14579 = sst [smem:[#allocation48_spill]] %s11874_s30 }
  0x15   :  { %14580 = sst [smem:[#allocation49_spill]] %s11879_s6 }
  0x16   :  { %s11889_s20 = sld [smem:[%s14425_s0 + %s11763_s15]]   ;;  %s11767_s15 = smov 19  }
  0x17   :  { %s11894_s27 = sld [smem:[%s14425_s0 + %s11764_s22]]   ;;  %s11768_s22 = smov 20  }
  0x18   :  { %s11899_s4 = sld [smem:[%s14425_s0 + %s11765_s28]]   ;;  %s11769_s28 = smov 21  }
  0x19   :  { %s11904_s30 = sld [smem:[%s14425_s0 + %s11766_s7]]   ;;  %s11770_s7 = smov 22  }
  0x1a   :  { %s11914_s19 = sld [smem:[%s14425_s0 + %s11768_s22]]   ;;  %s11772_s22 = smov 24  }
  0x1b   :  { %s11924_s6 = sld [smem:[%s14425_s0 + %s11770_s7]]   ;;  %s11774_s7 = smov 26  }
  0x1c   :  { %14581 = sst [smem:[#allocation50_spill]] %s11889_s20 }
  0x1d   :  { %s11909_s20 = sld [smem:[%s14425_s0 + %s11767_s15]]   ;;  %s11771_s15 = smov 23  }
  0x1e   :  { %14582 = sst [smem:[#allocation51_spill]] %s11899_s4 }
  0x1f   :  { %14583 = sst [smem:[#allocation52_spill]] %s11904_s30 }
  0x20   :  { %s11919_s4 = sld [smem:[%s14425_s0 + %s11769_s28]]   ;;  %s11773_s28 = smov 25  }
  0x21   :  { %s11934_s24 = sld [smem:[%s14425_s0 + %s11772_s22]]   ;;  %s11776_s22 = smov 28  }
  0x22   :  { %s11939_s14 = sld [smem:[%s14425_s0 + %s11773_s28]]   ;;  %s11777_s28 = smov 29  }
  0x23   :  { %14584 = sst [smem:[#allocation53_spill]] %s11909_s20 }
  0x24   :  { %s11929_s20 = sld [smem:[%s14425_s0 + %s11771_s15]]   ;;  %s11775_s15 = smov 27  }
  0x25   :  { %s11944_s5 = sld [smem:[%s14425_s0 + %s11774_s7]]   ;;  %s11778_s7 = smov 30  }
  0x26   :  { %14585 = sst [smem:[#allocation54_spill]] %s11919_s4 }
  0x27   :  { %s11954_s4 = sld [smem:[%s14425_s0 + %s11776_s22]]   ;;  %s11780_s22 = smov 32  }
  0x28   :  { %14587 = sst [smem:[#allocation56_spill]] %s11939_s14 }
  0x29   :  { %s11959_s14 = sld [smem:[%s14425_s0 + %s11777_s28]]   ;;  %s11781_s28 = smov 33  }
  0x2a   :  { %14586 = sst [smem:[#allocation55_spill]] %s11929_s20 }
  0x2b   :  { %s11949_s20 = sld [smem:[%s14425_s0 + %s11775_s15]]   ;;  %s11779_s15 = smov 31  }
  0x2c   :  { %s11964_s30 = sld [smem:[%s14425_s0 + %s11778_s7]]  }
  0x2d   :  { %14589 = sst [smem:[#allocation58_spill]] %s11954_s4 }
  0x2e   :  { %s11974_s4 = sld [smem:[%s14425_s0 + %s11780_s22]]  }
  0x2f   :  { %14590 = sst [smem:[#allocation59_spill]] %s11959_s14 }
  0x30   :  { %s11979_s14 = sld [smem:[%s14425_s0 + %s11781_s28]]  }
  0x31   :  { %14588 = sst [smem:[#allocation57_spill]] %s11949_s20 }
  0x32   :  { %s11969_s20 = sld [smem:[%s14425_s0 + %s11779_s15]]  }
  0x33   :  { %72 = vsyncpa [#allocation3], 0 }
  0x34   :  { %73 = vsyncpa [#allocation5], 0 }
  0x35   :  { %74 = vsyncpa [#allocation8], 0 }
  0x36   :  { %75 = vsyncpa [#allocation11], 0 }
  0x37   :  { %76 = vsyncpa [#allocation14], 0 }
  0x38   :  { %77 = vsyncpa [#allocation17], 0 }
  0x39   :  { %78 = vsyncpa [#allocation20], 0 }
  0x3a   :  { %79 = vsyncpa [#allocation23], 0 }
  0x3b   :  { %80 = vsyncpa [#allocation26], 0 }
  0x3c   :  { %81 = vsyncpa [#allocation29], 0 }
  0x3d   :  { %82 = vsyncpa [#allocation32], 0  ;;  %s11782_s7 = smov [#allocation4]   ;;  %s11783_s11 = smov [#allocation7]  }
  0x3e   :  { %s103_s10 = sshll.u32 %s11782_s7, 4  ;;  %s125_s15 = sshll.u32 %s11783_s11, 4  ;;  %s104_s10 = int_to_ptr.vmem [resolvable:$true] %s103_s10  ;;  %s126_s15 = int_to_ptr.vmem [resolvable:$true] %s125_s15 }
  0x3f   :  { %s11287_s0 = scalar_lea.hbm %s11824_s13, 64 }
  0x40   :  { %p11288_p0 = scmp.ne.s32.totalorder %s11824_s13, %s11287_s0  ;;  %p11291_p1 = scmp.lt.u32.totalorder %s11287_s0, %s11824_s13 }
  0x42   :  { %p11293_p2 = pnand %p11291_p1, %p11288_p0 }
  0x44   :  { %11296 = shalt.err (!%p11293_p2)
}
  0x45   :  { %s11297_s16 = scalar_lea.vmem %s104_s10, 64  ;;  %p11302_p4 = scmp.lt.s32.totalorder %s104_s10, %s104_s10 }
  0x46   :  { %p11298_p3 = scmp.ne.s32.totalorder %s104_s10, %s11297_s16  ;;  %p11303_p5 = scmp.lt.s32.totalorder %s11297_s16, %s11297_s16 }
  0x48   :  { %p11304_p6 = por %p11303_p5, %p11302_p4 }
  0x4a   :  { %p11305_p7 = pnand %p11304_p6, %p11298_p3 }
  0x4c   :  { %11308 = shalt.err (!%p11305_p7)
}
  0x4d   :  { %106 = dma.hbm_to_vmem [thread:$0]  %s11824_s13, 64, %s104_s10, [#allocation5]  }
  0x4e   :  { %s11309_s18 = scalar_lea.hbm %s11834_s21, 64 }
  0x4f   :  { %p11310_p8 = scmp.ne.s32.totalorder %s11834_s21, %s11309_s18  ;;  %p11313_p9 = scmp.lt.u32.totalorder %s11309_s18, %s11834_s21 }
  0x51   :  { %p11315_p10 = pnand %p11313_p9, %p11310_p8 }
  0x53   :  { %11318 = shalt.err (!%p11315_p10)
}
  0x54   :  { %s11319_s22 = scalar_lea.vmem %s126_s15, 64  ;;  %p11324_p12 = scmp.lt.s32.totalorder %s126_s15, %s126_s15 }
  0x55   :  { %p11320_p11 = scmp.ne.s32.totalorder %s126_s15, %s11319_s22  ;;  %p11325_p13 = scmp.lt.s32.totalorder %s11319_s22, %s11319_s22 }
  0x57   :  { %p11326_p0 = por %p11325_p13, %p11324_p12 }
  0x59   :  { %p11327_p1 = pnand %p11326_p0, %p11320_p11 }
  0x5b   :  { %11330 = shalt.err (!%p11327_p1)
}
  0x5c   :  { %128 = dma.hbm_to_vmem [thread:$0]  %s11834_s21, 64, %s126_s15, [#allocation8]  }
  0x5d   :  { %s11784_s23 = smov [#allocation10]   ;;  %s11785_s13 = smov [#allocation13]  }
  0x5e   :  { %s147_s26 = sshll.u32 %s11784_s23, 4  ;;  %s169_s28 = sshll.u32 %s11785_s13, 4  ;;  %s148_s26 = int_to_ptr.vmem [resolvable:$true] %s147_s26  ;;  %s170_s28 = int_to_ptr.vmem [resolvable:$true] %s169_s28 }
  0x5f   :  { %s11331_s1 = scalar_lea.hbm %s11844_s29, 64 }
  0x60   :  { %p11332_p2 = scmp.ne.s32.totalorder %s11844_s29, %s11331_s1  ;;  %p11335_p3 = scmp.lt.u32.totalorder %s11331_s1, %s11844_s29 }
  0x62   :  { %p11337_p4 = pnand %p11335_p3, %p11332_p2 }
  0x64   :  { %11340 = shalt.err (!%p11337_p4)
}
  0x65   :  { %s11341_s2 = scalar_lea.vmem %s148_s26, 64  ;;  %p11346_p6 = scmp.lt.s32.totalorder %s148_s26, %s148_s26 }
  0x66   :  { %p11342_p5 = scmp.ne.s32.totalorder %s148_s26, %s11341_s2  ;;  %p11347_p7 = scmp.lt.s32.totalorder %s11341_s2, %s11341_s2 }
  0x68   :  { %p11348_p8 = por %p11347_p7, %p11346_p6 }
  0x6a   :  { %p11349_p9 = pnand %p11348_p8, %p11342_p5 }
  0x6c   :  { %11352 = shalt.err (!%p11349_p9)
}
  0x6d   :  { %150 = dma.hbm_to_vmem [thread:$0]  %s11844_s29, 64, %s148_s26, [#allocation11]  }
  0x6e   :  { %s11353_s21 = scalar_lea.hbm %s11854_s8, 64 }
  0x6f   :  { %p11354_p10 = scmp.ne.s32.totalorder %s11854_s8, %s11353_s21  ;;  %p11357_p11 = scmp.lt.u32.totalorder %s11353_s21, %s11854_s8 }
  0x71   :  { %p11359_p12 = pnand %p11357_p11, %p11354_p10 }
  0x73   :  { %11362 = shalt.err (!%p11359_p12)
}
  0x74   :  { %s11363_s7 = scalar_lea.vmem %s170_s28, 64  ;;  %p11368_p0 = scmp.lt.s32.totalorder %s170_s28, %s170_s28 }
  0x75   :  { %p11364_p13 = scmp.ne.s32.totalorder %s170_s28, %s11363_s7  ;;  %p11369_p1 = scmp.lt.s32.totalorder %s11363_s7, %s11363_s7 }
  0x77   :  { %p11370_p2 = por %p11369_p1, %p11368_p0 }
  0x79   :  { %p11371_p3 = pnand %p11370_p2, %p11364_p13 }
  0x7b   :  { %11374 = shalt.err (!%p11371_p3)
}
  0x7c   :  { %172 = dma.hbm_to_vmem [thread:$0]  %s11854_s8, 64, %s170_s28, [#allocation14]  }
  0x7d   :  { %s11786_s10 = smov [#allocation16]   ;;  %s11787_s29 = smov [#allocation19]  }
  0x7e   :  { %s201_s11 = sshll.u32 %s11786_s10, 4  ;;  %s225_s15 = sshll.u32 %s11787_s29, 4  ;;  %s202_s11 = int_to_ptr.vmem [resolvable:$true] %s201_s11  ;;  %s226_s15 = int_to_ptr.vmem [resolvable:$true] %s225_s15 }
  0x7f   :  { %s11375_s0 = scalar_lea.hbm %s11894_s27, 16 }
  0x80   :  { %p11376_p4 = scmp.ne.s32.totalorder %s11894_s27, %s11375_s0  ;;  %p11379_p5 = scmp.lt.u32.totalorder %s11375_s0, %s11894_s27 }
  0x82   :  { %p11381_p6 = pnand %p11379_p5, %p11376_p4 }
  0x84   :  { %11384 = shalt.err (!%p11381_p6)
}
  0x85   :  { %s11385_s16 = scalar_lea.vmem %s202_s11, 16  ;;  %s11389_s18 = scalar_lea.vmem %s202_s11, 32 }
  0x86   :  { %p11386_p7 = scmp.ne.s32.totalorder %s202_s11, %s11385_s16  ;;  %p11390_p8 = scmp.lt.s32.totalorder %s202_s11, %s202_s11 }
  0x87   :  { %p11391_p9 = scmp.lt.s32.totalorder %s11389_s18, %s11385_s16 }
  0x89   :  { %p11392_p10 = por %p11391_p9, %p11390_p8 }
  0x8b   :  { %p11393_p11 = pnand %p11392_p10, %p11386_p7 }
  0x8d   :  { %11396 = shalt.err (!%p11393_p11)
}
  0x8e   :  { %204 = dma.hbm_to_vmem [thread:$0]  %s11894_s27, 16, %s202_s11, [#allocation17]  }
  0x8f   :  { %s11397_s8 = scalar_lea.hbm %s11914_s19, 16 }
  0x90   :  { %p11398_p12 = scmp.ne.s32.totalorder %s11914_s19, %s11397_s8  ;;  %p11401_p13 = scmp.lt.u32.totalorder %s11397_s8, %s11914_s19 }
  0x92   :  { %p11403_p0 = pnand %p11401_p13, %p11398_p12 }
  0x94   :  { %11406 = shalt.err (!%p11403_p0)
}
  0x95   :  { %s11407_s22 = scalar_lea.vmem %s226_s15, 16  ;;  %s11411_s23 = scalar_lea.vmem %s226_s15, 32 }
  0x96   :  { %p11408_p1 = scmp.ne.s32.totalorder %s226_s15, %s11407_s22  ;;  %p11412_p2 = scmp.lt.s32.totalorder %s226_s15, %s226_s15 }
  0x97   :  { %p11413_p3 = scmp.lt.s32.totalorder %s11411_s23, %s11407_s22 }
  0x99   :  { %p11414_p4 = por %p11413_p3, %p11412_p2 }
  0x9b   :  { %p11415_p5 = pnand %p11414_p4, %p11408_p1 }
  0x9d   :  { %11418 = shalt.err (!%p11415_p5)
}
  0x9e   :  { %228 = dma.hbm_to_vmem [thread:$0]  %s11914_s19, 16, %s226_s15, [#allocation20]  }
  0x9f   :  { %s11788_s26 = smov [#allocation22]   ;;  %s11789_s13 = smov [#allocation25]  }
  0xa0   :  { %s247_s27 = sshll.u32 %s11788_s26, 4  ;;  %s269_s28 = sshll.u32 %s11789_s13, 4  ;;  %s248_s27 = int_to_ptr.vmem [resolvable:$true] %s247_s27  ;;  %s270_s28 = int_to_ptr.vmem [resolvable:$true] %s269_s28 }
  0xa1   :  { %s11419_s1 = scalar_lea.hbm %s11924_s6, 16 }
  0xa2   :  { %p11420_p6 = scmp.ne.s32.totalorder %s11924_s6, %s11419_s1  ;;  %p11423_p7 = scmp.lt.u32.totalorder %s11419_s1, %s11924_s6 }
  0xa4   :  { %p11425_p8 = pnand %p11423_p7, %p11420_p6 }
  0xa6   :  { %11428 = shalt.err (!%p11425_p8)
}
  0xa7   :  { %s11429_s2 = scalar_lea.vmem %s248_s27, 16  ;;  %s11433_s21 = scalar_lea.vmem %s248_s27, 32 }
  0xa8   :  { %p11430_p9 = scmp.ne.s32.totalorder %s248_s27, %s11429_s2  ;;  %p11434_p10 = scmp.lt.s32.totalorder %s248_s27, %s248_s27 }
  0xa9   :  { %p11435_p11 = scmp.lt.s32.totalorder %s11433_s21, %s11429_s2 }
  0xab   :  { %p11436_p12 = por %p11435_p11, %p11434_p10 }
  0xad   :  { %p11437_p13 = pnand %p11436_p12, %p11430_p9 }
  0xaf   :  { %11440 = shalt.err (!%p11437_p13)
}
  0xb0   :  { %250 = dma.hbm_to_vmem [thread:$0]  %s11924_s6, 16, %s248_s27, [#allocation23]  }
  0xb1   :  { %s11441_s19 = scalar_lea.hbm %s11934_s24, 16 }
  0xb2   :  { %p11442_p0 = scmp.ne.s32.totalorder %s11934_s24, %s11441_s19  ;;  %p11445_p1 = scmp.lt.u32.totalorder %s11441_s19, %s11934_s24 }
  0xb4   :  { %p11447_p2 = pnand %p11445_p1, %p11442_p0 }
  0xb6   :  { %11450 = shalt.err (!%p11447_p2)
}
  0xb7   :  { %s11451_s7 = scalar_lea.vmem %s270_s28, 16  ;;  %s11455_s10 = scalar_lea.vmem %s270_s28, 32 }
  0xb8   :  { %p11452_p3 = scmp.ne.s32.totalorder %s270_s28, %s11451_s7  ;;  %p11456_p4 = scmp.lt.s32.totalorder %s270_s28, %s270_s28 }
  0xb9   :  { %p11457_p5 = scmp.lt.s32.totalorder %s11455_s10, %s11451_s7 }
  0xbb   :  { %p11458_p6 = por %p11457_p5, %p11456_p4 }
  0xbd   :  { %p11459_p7 = pnand %p11458_p6, %p11452_p3 }
  0xbf   :  { %11462 = shalt.err (!%p11459_p7)
}
  0xc0   :  { %272 = dma.hbm_to_vmem [thread:$0]  %s11934_s24, 16, %s270_s28, [#allocation26]  }
  0xc1   :  { %s11790_s11 = smov [#allocation28]   ;;  %s11791_s29 = smov [#allocation2]  }
  0xc2   :  { %s291_s6 = sshll.u32 %s11790_s11, 4  ;;  %s90_s15 = sshll.u32 %s11791_s29, 4  ;;  %s292_s6 = int_to_ptr.vmem [resolvable:$true] %s291_s6  ;;  %s12013_s15 = int_to_ptr.vmem [resolvable:$true] %s90_s15 }
  0xc3   :  { %s11463_s0 = scalar_lea.hbm %s11944_s5, 16 }
  0xc4   :  { %p11464_p8 = scmp.ne.s32.totalorder %s11944_s5, %s11463_s0  ;;  %p11467_p9 = scmp.lt.u32.totalorder %s11463_s0, %s11944_s5 }
  0xc6   :  { %p11469_p10 = pnand %p11467_p9, %p11464_p8 }
  0xc8   :  { %11472 = shalt.err (!%p11469_p10)
}
  0xc9   :  { %s11473_s16 = scalar_lea.vmem %s292_s6, 16  ;;  %s11477_s18 = scalar_lea.vmem %s292_s6, 32 }
  0xca   :  { %p11474_p11 = scmp.ne.s32.totalorder %s292_s6, %s11473_s16  ;;  %p11478_p12 = scmp.lt.s32.totalorder %s292_s6, %s292_s6 }
  0xcb   :  { %p11479_p13 = scmp.lt.s32.totalorder %s11477_s18, %s11473_s16 }
  0xcd   :  { %p11480_p0 = por %p11479_p13, %p11478_p12 }
  0xcf   :  { %p11481_p1 = pnand %p11480_p0, %p11474_p11 }
  0xd1   :  { %11484 = shalt.err (!%p11481_p1)
}
  0xd2   :  { %294 = dma.hbm_to_vmem [thread:$0]  %s11944_s5, 16, %s292_s6, [#allocation29]  }
  0xd3   :  { %s11485_s24 = scalar_lea.hbm %s11819_s9, 15360 }
  0xd4   :  { %p11486_p2 = scmp.ne.s32.totalorder %s11819_s9, %s11485_s24  ;;  %p11489_p3 = scmp.lt.u32.totalorder %s11485_s24, %s11819_s9 }
  0xd6   :  { %p11491_p4 = pnand %p11489_p3, %p11486_p2 }
  0xd8   :  { %11494 = shalt.err (!%p11491_p4)
}
  0xd9   :  { %s11495_s8 = scalar_lea.vmem %s12013_s15, 15360  ;;  %p11500_p6 = scmp.lt.s32.totalorder %s12013_s15, %s12013_s15 }
  0xda   :  { %p11496_p5 = scmp.ne.s32.totalorder %s12013_s15, %s11495_s8  ;;  %p11501_p7 = scmp.lt.s32.totalorder %s11495_s8, %s11495_s8 }
  0xdc   :  { %p11502_p8 = por %p11501_p7, %p11500_p6 }
  0xde   :  { %p11503_p9 = pnand %p11502_p8, %p11496_p5 }
  0xe0   :  { %11506 = shalt.err (!%p11503_p9)
}
  0xe1   :  { %s11792_s22 = smov 256   ;;  %s11793_s5 = smov 16  }
  0xe2   :  { %96 = dma.hbm_to_vmem [thread:$0]  %s11819_s9, 15360, %s12013_s15, [#allocation3], %s11792_s22, %s11792_s22, %s11793_s5  }
  0xe3   :  { %s11794_s23 = smov [#allocation6]   ;;  %s11795_s27 = smov [#allocation9]  }
  0xe4   :  { %s112_s26 = sshll.u32 %s11794_s23, 4  ;;  %s134_s13 = sshll.u32 %s11795_s27, 4  ;;  %s113_s26 = int_to_ptr.vmem [resolvable:$true] %s112_s26  ;;  %s12031_s13 = int_to_ptr.vmem [resolvable:$true] %s134_s13 }
  0xe5   :  { %s11507_s28 = scalar_lea.hbm %s11829_s17, 16384 }
  0xe6   :  { %p11508_p10 = scmp.ne.s32.totalorder %s11829_s17, %s11507_s28  ;;  %p11511_p11 = scmp.lt.u32.totalorder %s11507_s28, %s11829_s17 }
  0xe8   :  { %p11513_p12 = pnand %p11511_p11, %p11508_p10 }
  0xea   :  { %11516 = shalt.err (!%p11513_p12)
}
  0xeb   :  { %s11517_s1 = scalar_lea.vmem %s113_s26, 16384  ;;  %p11522_p0 = scmp.lt.s32.totalorder %s113_s26, %s113_s26 }
  0xec   :  { %p11518_p13 = scmp.ne.s32.totalorder %s113_s26, %s11517_s1  ;;  %p11523_p1 = scmp.lt.s32.totalorder %s11517_s1, %s11517_s1 }
  0xee   :  { %p11524_p2 = por %p11523_p1, %p11522_p0 }
  0xf0   :  { %p11525_p3 = pnand %p11524_p2, %p11518_p13 }
  0xf2   :  { %11528 = shalt.err (!%p11525_p3)
}
  0xf3   :  { %118 = dma.hbm_to_vmem [thread:$0]  %s11829_s17, 16384, %s113_s26, [#allocation5], %s11792_s22, %s11792_s22, %s11793_s5  }
  0xf4   :  { %s11529_s9 = scalar_lea.hbm %s11839_s25, 16384 }
  0xf5   :  { %p11530_p4 = scmp.ne.s32.totalorder %s11839_s25, %s11529_s9  ;;  %p11533_p5 = scmp.lt.u32.totalorder %s11529_s9, %s11839_s25 }
  0xf7   :  { %p11535_p6 = pnand %p11533_p5, %p11530_p4 }
  0xf9   :  { %11538 = shalt.err (!%p11535_p6)
}
  0xfa   :  { %s11539_s2 = scalar_lea.vmem %s12031_s13, 16384  ;;  %p11544_p8 = scmp.lt.s32.totalorder %s12031_s13, %s12031_s13 }
  0xfb   :  { %p11540_p7 = scmp.ne.s32.totalorder %s12031_s13, %s11539_s2  ;;  %p11545_p9 = scmp.lt.s32.totalorder %s11539_s2, %s11539_s2 }
  0xfd   :  { %p11546_p10 = por %p11545_p9, %p11544_p8 }
  0xff   :  { %p11547_p11 = pnand %p11546_p10, %p11540_p7 }
 0x101   :  { %11550 = shalt.err (!%p11547_p11)
}
 0x102   :  { %140 = dma.hbm_to_vmem [thread:$0]  %s11839_s25, 16384, %s12031_s13, [#allocation8], %s11792_s22, %s11792_s22, %s11793_s5  }
 0x103   :  { %s11796_s17 = smov [#allocation12]   ;;  %s11797_s19 = smov [#allocation15]  }
 0x104   :  { %s156_s21 = sshll.u32 %s11796_s17, 4  ;;  %s189_s7 = sshll.u32 %s11797_s19, 4  ;;  %s157_s21 = int_to_ptr.vmem [resolvable:$true] %s156_s21  ;;  %s190_s7 = int_to_ptr.vmem [resolvable:$true] %s189_s7 }
 0x105   :  { %s11551_s10 = scalar_lea.hbm %s11849_s3, 16384 }
 0x106   :  { %p11552_p12 = scmp.ne.s32.totalorder %s11849_s3, %s11551_s10  ;;  %p11555_p13 = scmp.lt.u32.totalorder %s11551_s10, %s11849_s3 }
 0x108   :  { %p11557_p0 = pnand %p11555_p13, %p11552_p12 }
 0x10a   :  { %11560 = shalt.err (!%p11557_p0)
}
 0x10b   :  { %s11561_s11 = scalar_lea.vmem %s157_s21, 16384  ;;  %p11566_p2 = scmp.lt.s32.totalorder %s157_s21, %s157_s21 }
 0x10c   :  { %p11562_p1 = scmp.ne.s32.totalorder %s157_s21, %s11561_s11  ;;  %p11567_p3 = scmp.lt.s32.totalorder %s11561_s11, %s11561_s11 }
 0x10e   :  { %p11568_p4 = por %p11567_p3, %p11566_p2 }
 0x110   :  { %p11569_p5 = pnand %p11568_p4, %p11562_p1 }
 0x112   :  { %11572 = shalt.err (!%p11569_p5)
}
 0x113   :  { %162 = dma.hbm_to_vmem [thread:$0]  %s11849_s3, 16384, %s157_s21, [#allocation11], %s11792_s22, %s11792_s22, %s11793_s5  }
 0x114   :  { %s11573_s25 = scalar_lea.hbm %s11884_s12, 16 }
 0x115   :  { %p11574_p6 = scmp.ne.s32.totalorder %s11884_s12, %s11573_s25  ;;  %p11577_p7 = scmp.lt.u32.totalorder %s11573_s25, %s11884_s12 }
 0x117   :  { %p11579_p8 = pnand %p11577_p7, %p11574_p6 }
 0x119   :  { %11582 = shalt.err (!%p11579_p8)
}
 0x11a   :  { %s11583_s6 = scalar_lea.vmem %s190_s7, 16  ;;  %s11587_s29 = scalar_lea.vmem %s190_s7, 32 }
 0x11b   :  { %p11584_p9 = scmp.ne.s32.totalorder %s190_s7, %s11583_s6  ;;  %p11588_p10 = scmp.lt.s32.totalorder %s190_s7, %s190_s7 }
 0x11c   :  { %p11589_p11 = scmp.lt.s32.totalorder %s11587_s29, %s11583_s6 }
 0x11e   :  { %p11590_p12 = por %p11589_p11, %p11588_p10 }
 0x120   :  { %p11591_p13 = pnand %p11590_p12, %p11584_p9 }
 0x122   :  { %11594 = shalt.err (!%p11591_p13)
}
 0x123   :  { %s14591_s15 = sld [smem:[#allocation52_spill]]  ;;  %s11798_s0 = smov [#allocation18]  }
 0x124   :  { %192 = dma.hbm_to_vmem [thread:$0]  %s11884_s12, 16, %s190_s7, [#allocation14]  }
 0x125   :  { %s213_s3 = sshll.u32 %s11798_s0, 4  ;;  %s11799_s16 = smov [#allocation21]   ;;  %s214_s3 = int_to_ptr.vmem [resolvable:$true] %s213_s3 }
 0x126   :  { %s234_s18 = sshll.u32 %s11799_s16, 4  ;;  %s12063_s18 = int_to_ptr.vmem [resolvable:$true] %s234_s18 }
 0x129   :  { %s11595_s24 = scalar_lea.hbm %s14591_s15, 16 }
 0x12a   :  { %p11596_p0 = scmp.ne.s32.totalorder %s14591_s15, %s11595_s24  ;;  %p11599_p1 = scmp.lt.u32.totalorder %s11595_s24, %s14591_s15 }
 0x12c   :  { %p11601_p2 = pnand %p11599_p1, %p11596_p0 }
 0x12e   :  { %11604 = shalt.err (!%p11601_p2)
}
 0x12f   :  { %s11605_s8 = scalar_lea.vmem %s214_s3, 16  ;;  %s11609_s22 = scalar_lea.vmem %s214_s3, 32 }
 0x130   :  { %p11606_p3 = scmp.ne.s32.totalorder %s214_s3, %s11605_s8  ;;  %p11610_p4 = scmp.lt.s32.totalorder %s214_s3, %s214_s3 }
 0x131   :  { %p11611_p5 = scmp.lt.s32.totalorder %s11609_s22, %s11605_s8 }
 0x133   :  { %p11612_p6 = por %p11611_p5, %p11610_p4 }
 0x135   :  { %p11613_p7 = pnand %p11612_p6, %p11606_p3 }
 0x137   :  { %11616 = shalt.err (!%p11613_p7)
}
 0x138   :  { %s14592_s12 = sld [smem:[#allocation54_spill]] }
 0x139   :  { %216 = dma.hbm_to_vmem [thread:$0]  %s14591_s15, 16, %s214_s3, [#allocation17]  }
 0x13e   :  { %s11617_s5 = scalar_lea.hbm %s14592_s12, 1024 }
 0x13f   :  { %p11618_p8 = scmp.ne.s32.totalorder %s14592_s12, %s11617_s5  ;;  %p11621_p9 = scmp.lt.u32.totalorder %s11617_s5, %s14592_s12 }
 0x141   :  { %p11623_p10 = pnand %p11621_p9, %p11618_p8 }
 0x143   :  { %11626 = shalt.err (!%p11623_p10)
}
 0x144   :  { %s11627_s23 = scalar_lea.vmem %s12063_s18, 1024  ;;  %p11632_p12 = scmp.lt.s32.totalorder %s12063_s18, %s12063_s18 }
 0x145   :  { %p11628_p11 = scmp.ne.s32.totalorder %s12063_s18, %s11627_s23  ;;  %p11633_p13 = scmp.lt.s32.totalorder %s11627_s23, %s11627_s23 }
 0x147   :  { %p11634_p0 = por %p11633_p13, %p11632_p12 }
 0x149   :  { %p11635_p1 = pnand %p11634_p0, %p11628_p11 }
 0x14b   :  { %11638 = shalt.err (!%p11635_p1)
}
 0x14c   :  { %s11800_s26 = smov 64   ;;  %s14593_s27 = sld [smem:[#allocation55_spill]] }
 0x14d   :  { %s11801_s13 = smov 4   ;;  %s11802_s28 = smov [#allocation24]  }
 0x14e   :  { %240 = dma.hbm_to_vmem [thread:$0]  %s14592_s12, 1024, %s12063_s18, [#allocation20], %s11800_s26, %s11800_s26, %s11801_s13  }
 0x14f   :  { %s256_s1 = sshll.u32 %s11802_s28, 4  ;;  %s11803_s9 = smov [#allocation27]   ;;  %s257_s1 = int_to_ptr.vmem [resolvable:$true] %s256_s1 }
 0x150   :  { %s278_s2 = sshll.u32 %s11803_s9, 4  ;;  %s12081_s2 = int_to_ptr.vmem [resolvable:$true] %s278_s2 }
 0x152   :  { %s11639_s17 = scalar_lea.hbm %s14593_s27, 1024 }
 0x153   :  { %p11640_p2 = scmp.ne.s32.totalorder %s14593_s27, %s11639_s17  ;;  %p11643_p3 = scmp.lt.u32.totalorder %s11639_s17, %s14593_s27 }
 0x155   :  { %p11645_p4 = pnand %p11643_p3, %p11640_p2 }
 0x157   :  { %11648 = shalt.err (!%p11645_p4)
}
 0x158   :  { %s11649_s21 = scalar_lea.vmem %s257_s1, 1024  ;;  %p11654_p6 = scmp.lt.s32.totalorder %s257_s1, %s257_s1 }
 0x159   :  { %p11650_p5 = scmp.ne.s32.totalorder %s257_s1, %s11649_s21  ;;  %p11655_p7 = scmp.lt.s32.totalorder %s11649_s21, %s11649_s21 }
 0x15b   :  { %p11656_p8 = por %p11655_p7, %p11654_p6 }
 0x15d   :  { %p11657_p9 = pnand %p11656_p8, %p11650_p5 }
 0x15f   :  { %11660 = shalt.err (!%p11657_p9)
}
 0x160   :  { %s14594_s19 = sld [smem:[#allocation56_spill]] }
 0x161   :  { %262 = dma.hbm_to_vmem [thread:$0]  %s14593_s27, 1024, %s257_s1, [#allocation23], %s11800_s26, %s11800_s26, %s11801_s13  }
 0x166   :  { %s11661_s7 = scalar_lea.hbm %s14594_s19, 1024 }
 0x167   :  { %p11662_p10 = scmp.ne.s32.totalorder %s14594_s19, %s11661_s7  ;;  %p11665_p11 = scmp.lt.u32.totalorder %s11661_s7, %s14594_s19 }
 0x169   :  { %p11667_p12 = pnand %p11665_p11, %p11662_p10 }
 0x16b   :  { %11670 = shalt.err (!%p11667_p12)
}
 0x16c   :  { %s11671_s10 = scalar_lea.vmem %s12081_s2, 1024  ;;  %p11676_p0 = scmp.lt.s32.totalorder %s12081_s2, %s12081_s2 }
 0x16d   :  { %p11672_p13 = scmp.ne.s32.totalorder %s12081_s2, %s11671_s10  ;;  %p11677_p1 = scmp.lt.s32.totalorder %s11671_s10, %s11671_s10 }
 0x16f   :  { %p11678_p2 = por %p11677_p1, %p11676_p0 }
 0x171   :  { %p11679_p3 = pnand %p11678_p2, %p11672_p13 }
 0x173   :  { %11682 = shalt.err (!%p11679_p3)
}
 0x174   :  { %s14595_s11 = sld [smem:[#allocation59_spill]]  ;;  %s11804_s25 = smov [#allocation30]  }
 0x175   :  { %284 = dma.hbm_to_vmem [thread:$0]  %s14594_s19, 1024, %s12081_s2, [#allocation26], %s11800_s26, %s11800_s26, %s11801_s13  }
 0x176   :  { %s304_s6 = sshll.u32 %s11804_s25, 4  ;;  %s11805_s29 = smov [#allocation31]   ;;  %s305_s6 = int_to_ptr.vmem [resolvable:$true] %s304_s6 }
 0x177   :  { %s318_s15 = sshll.u32 %s11805_s29, 4  ;;  %s12102_s15 = int_to_ptr.vmem [resolvable:$true] %s318_s15 }
 0x17a   :  { %s11683_s0 = scalar_lea.hbm %s14595_s11, 1024 }
 0x17b   :  { %p11684_p4 = scmp.ne.s32.totalorder %s14595_s11, %s11683_s0  ;;  %p11687_p5 = scmp.lt.u32.totalorder %s11683_s0, %s14595_s11 }
 0x17d   :  { %p11689_p6 = pnand %p11687_p5, %p11684_p4 }
 0x17f   :  { %11692 = shalt.err (!%p11689_p6)
}
 0x180   :  { %s11693_s3 = scalar_lea.vmem %s305_s6, 1024  ;;  %p11698_p8 = scmp.lt.s32.totalorder %s305_s6, %s305_s6 }
 0x181   :  { %p11694_p7 = scmp.ne.s32.totalorder %s305_s6, %s11693_s3  ;;  %p11699_p9 = scmp.lt.s32.totalorder %s11693_s3, %s11693_s3 }
 0x183   :  { %p11700_p10 = por %p11699_p9, %p11698_p8 }
 0x185   :  { %p11701_p11 = pnand %p11700_p10, %p11694_p7 }
 0x187   :  { %11704 = shalt.err (!%p11701_p11)
}
 0x188   :  { %310 = dma.hbm_to_vmem [thread:$0]  %s14595_s11, 1024, %s305_s6, [#allocation29], %s11800_s26, %s11800_s26, %s11801_s13  }
 0x189   :  { %s11705_s16 = scalar_lea.hbm %s11969_s20, 512 }
 0x18a   :  { %p11706_p12 = scmp.ne.s32.totalorder %s11969_s20, %s11705_s16  ;;  %p11709_p13 = scmp.lt.u32.totalorder %s11705_s16, %s11969_s20 }
 0x18c   :  { %p11711_p0 = pnand %p11709_p13, %p11706_p12 }
 0x18e   :  { %11714 = shalt.err (!%p11711_p0)
}
 0x18f   :  { %s11715_s18 = scalar_lea.vmem %s12102_s15, 512  ;;  %p11720_p2 = scmp.lt.s32.totalorder %s12102_s15, %s12102_s15 }
 0x190   :  { %p11716_p1 = scmp.ne.s32.totalorder %s12102_s15, %s11715_s18  ;;  %p11721_p3 = scmp.lt.s32.totalorder %s11715_s18, %s11715_s18 }
 0x192   :  { %p11722_p4 = por %p11721_p3, %p11720_p2 }
 0x194   :  { %p11723_p5 = pnand %p11722_p4, %p11716_p1 }
 0x196   :  { %11726 = shalt.err (!%p11723_p5)
}
 0x197   :  { %324 = dma.hbm_to_vmem [thread:$0]  %s11969_s20, 512, %s12102_s15, [#allocation32], %s11800_s26, %s11800_s26, %s11801_s13  }
 0x198   :  { %11727 = dma.done.wait [#allocation3], 15360  }
 0x199   :  { %11728 = vsyncadd [#allocation3], 4294951936 }
 0x19a   :  { %11729 = dma.done.wait [#allocation5], 16448  }
 0x19b   :  { %11730 = vsyncadd [#allocation5], 4294950848 }
 0x19c   :  { %11731 = dma.done.wait [#allocation8], 16448  }
 0x19d   :  { %11732 = vsyncadd [#allocation8], 4294950848 }
 0x19e   :  { %11733 = dma.done.wait [#allocation11], 16448  }
 0x19f   :  { %11734 = vsyncadd [#allocation11], 4294950848 }
 0x1a0   :  { %11735 = dma.done.wait [#allocation14], 80  }
 0x1a1   :  { %11736 = vsyncadd [#allocation14], 4294967216 }
 0x1a2   :  { %11737 = dma.done.wait [#allocation17], 32  }
 0x1a3   :  { %11738 = vsyncadd [#allocation17], 4294967264 }
 0x1a4   :  { %11739 = dma.done.wait [#allocation20], 1040  }
 0x1a5   :  { %11740 = vsyncadd [#allocation20], 4294966256 }
 0x1a6   :  { %11741 = dma.done.wait [#allocation23], 1040  }
 0x1a7   :  { %11742 = vsyncadd [#allocation23], 4294966256 }
 0x1a8   :  { %11743 = dma.done.wait [#allocation26], 1040  }
 0x1a9   :  { %11744 = vsyncadd [#allocation26], 4294966256 }
 0x1aa   :  { %11745 = dma.done.wait [#allocation29], 1040  }
 0x1ab   :  { %11746 = vsyncadd [#allocation29], 4294966256 }
 0x1ac   :  { %11747 = dma.done.wait [#allocation32], 512  }
 0x1ad   :  { %11748 = vsyncadd [#allocation32], 4294966784  ;;  %v10399_v0 = vld [vmem:[#allocation2 + $0x4] ss:$16 sps:$4 sm:$0xff]   ;;  %v10401_v1 = vld [vmem:[#allocation2 + $0xc] ss:$16 sps:$4 sm:$0xff]  }
 0x1ae   :  { %1251 = vmatprep.subr.bf16.mxu0 %v10399_v0  ;;  %v10403_v2 = vld [vmem:[#allocation2] ss:$16 sps:$4 sm:$0xff]   ;;  %v10404_v3 = vld [vmem:[#allocation2 + $0x8] ss:$16 sps:$4 sm:$0xff]   ;;  %1477 = vmatprep.subr.bf16.mxu1 %v10401_v1  ;;  %v10405_v4 = vld [vmem:[#allocation2 + $0x24] ss:$16 sps:$4 sm:$0xff]  }
 0x1af   :  { %1252 = vmatpush1.bf16.msra.mxu0 %v10403_v2  ;;  %1478 = vmatpush1.bf16.msra.mxu1 %v10404_v3  ;;  %v10407_v5 = vld [vmem:[#allocation2 + $0x2c] ss:$16 sps:$4 sm:$0xff]   ;;  %v10409_v6 = vld [vmem:[#allocation2 + $0x20] ss:$16 sps:$4 sm:$0xff]   ;;  %v10410_v7 = vld [vmem:[#allocation2 + $0x28] ss:$16 sps:$4 sm:$0xff]  }
 0x1b0   :  { %1253 = vmatprep.subr.bf16.mxu0 %v10405_v4  ;;  %1479 = vmatprep.subr.bf16.mxu1 %v10407_v5  ;;  %v10411_v8 = vld [vmem:[#allocation2 + $0x44] ss:$16 sps:$4 sm:$0xff]   ;;  %v10413_v9 = vld [vmem:[#allocation2 + $0x4c] ss:$16 sps:$4 sm:$0xff]   ;;  %v10415_v10 = vld [vmem:[#allocation2 + $0x40] ss:$16 sps:$4 sm:$0xff]  }
 0x1b1   :  { %v10416_v11 = vld [vmem:[#allocation2 + $0x48] ss:$16 sps:$4 sm:$0xff]   ;;  %v10417_v12 = vld [vmem:[#allocation2 + $0x64] ss:$16 sps:$4 sm:$0xff]   ;;  %v10419_v13 = vld [vmem:[#allocation2 + $0x6c] ss:$16 sps:$4 sm:$0xff]  }
 0x1b2   :  { %v10421_v14 = vld [vmem:[#allocation2 + $0x60] ss:$16 sps:$4 sm:$0xff]   ;;  %v10422_v15 = vld [vmem:[#allocation2 + $0x68] ss:$16 sps:$4 sm:$0xff]   ;;  %v10423_v16 = vld [vmem:[#allocation2 + $0x84] ss:$16 sps:$4 sm:$0xff]  }
 0x1b3   :  { %1254 = vmatpush1.bf16.msra.mxu0 %v10409_v6  ;;  %1480 = vmatpush1.bf16.msra.mxu1 %v10410_v7  ;;  %v10425_v17 = vld [vmem:[#allocation2 + $0x8c] ss:$16 sps:$4 sm:$0xff]   ;;  %v10427_v18 = vld [vmem:[#allocation2 + $0x80] ss:$16 sps:$4 sm:$0xff]   ;;  %v10428_v19 = vld [vmem:[#allocation2 + $0x88] ss:$16 sps:$4 sm:$0xff]  }
 0x1b4   :  { %1255 = vmatprep.subr.bf16.mxu0 %v10411_v8  ;;  %1481 = vmatprep.subr.bf16.mxu1 %v10413_v9  ;;  %v10429_v20 = vld [vmem:[#allocation2 + $0xa4] ss:$16 sps:$4 sm:$0xff]   ;;  %v10431_v21 = vld [vmem:[#allocation2 + $0xac] ss:$16 sps:$4 sm:$0xff]   ;;  %v10433_v22 = vld [vmem:[#allocation2 + $0xa0] ss:$16 sps:$4 sm:$0xff]  }
 0x1b5   :  { %v10434_v23 = vld [vmem:[#allocation2 + $0xa8] ss:$16 sps:$4 sm:$0xff]   ;;  %v10435_v24 = vld [vmem:[#allocation2 + $0xc4] ss:$16 sps:$4 sm:$0xff]   ;;  %v10437_v25 = vld [vmem:[#allocation2 + $0xcc] ss:$16 sps:$4 sm:$0xff]  }
 0x1b6   :  { %v10439_v26 = vld [vmem:[#allocation2 + $0xc0] ss:$16 sps:$4 sm:$0xff]   ;;  %v10440_v27 = vld [vmem:[#allocation2 + $0xc8] ss:$16 sps:$4 sm:$0xff]   ;;  %v10441_v28 = vld [vmem:[#allocation2 + $0xe4] ss:$16 sps:$4 sm:$0xff]  }
 0x1b7   :  { %1256 = vmatpush1.bf16.msra.mxu0 %v10415_v10  ;;  %1482 = vmatpush1.bf16.msra.mxu1 %v10416_v11  ;;  %v10443_v29 = vld [vmem:[#allocation2 + $0xec] ss:$16 sps:$4 sm:$0xff]   ;;  %v10445_v30 = vld [vmem:[#allocation2 + $0xe0] ss:$16 sps:$4 sm:$0xff]   ;;  %v10446_v31 = vld [vmem:[#allocation2 + $0xe8] ss:$16 sps:$4 sm:$0xff]  }
 0x1b8   :  { %1257 = vmatprep.subr.bf16.mxu0 %v10417_v12  ;;  %1483 = vmatprep.subr.bf16.mxu1 %v10419_v13  ;;  %v10447_v32 = vld [vmem:[#allocation2 + $0x104] ss:$16 sps:$4 sm:$0xff]   ;;  %v10449_v33 = vld [vmem:[#allocation2 + $0x10c] ss:$16 sps:$4 sm:$0xff]   ;;  %v10451_v34 = vld [vmem:[#allocation2 + $0x100] ss:$16 sps:$4 sm:$0xff]  }
 0x1b9   :  { %v10452_v35 = vld [vmem:[#allocation2 + $0x108] ss:$16 sps:$4 sm:$0xff]   ;;  %v10453_v36 = vld [vmem:[#allocation2 + $0x124] ss:$16 sps:$4 sm:$0xff]   ;;  %v10455_v37 = vld [vmem:[#allocation2 + $0x12c] ss:$16 sps:$4 sm:$0xff]  }
 0x1ba   :  { %v10457_v38 = vld [vmem:[#allocation2 + $0x120] ss:$16 sps:$4 sm:$0xff]   ;;  %s14596_s20 = sld [smem:[#allocation44_spill]]  ;;  %v10458_v39 = vld [vmem:[#allocation2 + $0x128] ss:$16 sps:$4 sm:$0xff]   ;;  %vm1226_vm0 = vcmask 785408  }
 0x1bb   :  { %1258 = vmatpush1.bf16.msra.mxu0 %v10421_v14  ;;  %1484 = vmatpush1.bf16.msra.mxu1 %v10422_v15  ;;  %v10459_v40 = vld [vmem:[#allocation2 + $0x144] ss:$16 sps:$4 sm:$0xff]   ;;  %v10461_v41 = vld [vmem:[#allocation2 + $0x14c] ss:$16 sps:$4 sm:$0xff]   ;;  %v10463_v42 = vld [vmem:[#allocation2 + $0x140] ss:$16 sps:$4 sm:$0xff]  }
 0x1bc   :  { %1259 = vmatprep.subr.bf16.mxu0 %v10423_v16  ;;  %1485 = vmatprep.subr.bf16.mxu1 %v10425_v17  ;;  %v10464_v43 = vld [vmem:[#allocation2 + $0x148] ss:$16 sps:$4 sm:$0xff]   ;;  %v10465_v44 = vld [vmem:[#allocation2 + $0x164] ss:$16 sps:$4 sm:$0xff]   ;;  %v10467_v45 = vld [vmem:[#allocation2 + $0x16c] ss:$16 sps:$4 sm:$0xff]  }
 0x1bd   :  { %v10469_v47 = vld [vmem:[#allocation2 + $0x160] ss:$16 sps:$4 sm:$0xff]   ;;  %v10470_v48 = vld [vmem:[#allocation2 + $0x168] ss:$16 sps:$4 sm:$0xff]   ;;  %v10471_v50 = vld [vmem:[#allocation2 + $0x184] ss:$16 sps:$4 sm:$0xff]  }
 0x1be   :  { %v10473_v52 = vld [vmem:[#allocation2 + $0x18c] ss:$16 sps:$4 sm:$0xff]   ;;  %v10475_v53 = vld [vmem:[#allocation2 + $0x180] ss:$16 sps:$4 sm:$0xff]   ;;  %v10476_v54 = vld [vmem:[#allocation2 + $0x188] ss:$16 sps:$4 sm:$0xff]  }
 0x1bf   :  { %1260 = vmatpush1.bf16.msra.mxu0 %v10427_v18  ;;  %1486 = vmatpush1.bf16.msra.mxu1 %v10428_v19  ;;  %v10477_v55 = vld [vmem:[#allocation2 + $0x1a4] ss:$16 sps:$4 sm:$0xff]   ;;  %v10479_v56 = vld [vmem:[#allocation2 + $0x1ac] ss:$16 sps:$4 sm:$0xff]   ;;  %v10481_v57 = vld [vmem:[#allocation2 + $0x1a0] ss:$16 sps:$4 sm:$0xff]  }
 0x1c0   :  { %1261 = vmatprep.subr.bf16.mxu0 %v10429_v20  ;;  %1487 = vmatprep.subr.bf16.mxu1 %v10431_v21  ;;  %v389_v46 = vld [vmem:[%s14596_s20 + $0x8] sm:$0xff]  ;;  %v10483_v59 = vld [vmem:[#allocation2 + $0x1c4] ss:$16 sps:$4 sm:$0xff]   ;;  %v10487_v61 = vld [vmem:[#allocation2 + $0x1c0] ss:$16 sps:$4 sm:$0xff]   ;;  %s14826_s24 = sld [smem:[#allocation45_spill]] }
 0x1c1   :  { %v393_v49 = vld [vmem:[%s14596_s20 + $0x28] sm:$0xff]  ;;  %v10489_v63 = vld [vmem:[#allocation2 + $0x1e4] ss:$16 sps:$4 sm:$0xff]   ;;  %v10493_v1 = vld [vmem:[#allocation2 + $0x1e0] ss:$16 sps:$4 sm:$0xff]   ;;  %s14828_s8 = sld [smem:[#allocation47_spill]] }
 0x1c2   :  { %v574_v51 = vpack.c.bf16 %v393_v49, %v389_v46  ;;  %v10482_v58 = vld [vmem:[#allocation2 + $0x1a8] ss:$16 sps:$4 sm:$0xff]   ;;  %v10485_v60 = vld [vmem:[#allocation2 + $0x1cc] ss:$16 sps:$4 sm:$0xff]   ;;  %v388_v3 = vld [vmem:[%s14596_s20] sm:$0xff]  ;;  %s14833_s22 = sld [smem:[#allocation49_spill]] }
 0x1c3   :  { %1262 = vmatpush1.bf16.msra.mxu0 %v10433_v22  ;;  %1488 = vmatpush1.bf16.msra.mxu1 %v10434_v23  ;;  %v10488_v62 = vld [vmem:[#allocation2 + $0x1c8] ss:$16 sps:$4 sm:$0xff]   ;;  %v10491_v0 = vld [vmem:[#allocation2 + $0x1ec] ss:$16 sps:$4 sm:$0xff]   ;;  %v392_v4 = vld [vmem:[%s14596_s20 + $0x20] sm:$0xff]  ;;  %s14834_s12 = sld [smem:[#allocation46_spill]] }
 0x1c4   :  { %1263 = vmatprep.subr.bf16.mxu0 %v10435_v24  ;;  %1489 = vmatprep.subr.bf16.mxu1 %v10437_v25  ;;  %v10494_v2 = vld [vmem:[#allocation2 + $0x1e8] ss:$16 sps:$4 sm:$0xff]   ;;  %v10497_v5 = vld [vmem:[#allocation2 + $0x204] ss:$16 sps:$4 sm:$0xff]   ;;  %v10503_v8 = vld [vmem:[#allocation2 + $0x20c] ss:$16 sps:$4 sm:$0xff]   ;;  %v573_v9 = vpack.c.bf16 %v392_v4, %v388_v3 }
 0x1c5   :  { %1283 = vmatprep.mubr.bf16.mxu0 %v574_v51  ;;  %1509 = vmatprep.mubr.bf16.mxu1 %v574_v51  ;;  %v397_v6 = vld [vmem:[%s14596_s20 + $0x48] sm:$0xff]  ;;  %v10495_v10 = vld [vmem:[#allocation2 + $0x200] ss:$16 sps:$4 sm:$0xff]   ;;  %v10500_v12 = vld [vmem:[#allocation2 + $0x224] ss:$16 sps:$4 sm:$0xff]   ;;  %s14835_s5 = sld [smem:[#allocation50_spill]] }
 0x1c6   :  { %v401_v7 = vld [vmem:[%s14596_s20 + $0x68] sm:$0xff]  ;;  %v10498_v13 = vld [vmem:[#allocation2 + $0x220] ss:$16 sps:$4 sm:$0xff]   ;;  %v10506_v17 = vld [vmem:[#allocation2 + $0x244] ss:$16 sps:$4 sm:$0xff]   ;;  %s14836_s23 = sld [smem:[#allocation48_spill]] }
 0x1c7   :  { %1264 = vmatpush1.bf16.msra.mxu0 %v10439_v26  ;;  %1490 = vmatpush1.bf16.msra.mxu1 %v10440_v27  ;;  %v578_v11 = vpack.c.bf16 %v401_v7, %v397_v6  ;;  %v396_v14 = vld [vmem:[%s14596_s20 + $0x40] sm:$0xff]  ;;  %v10501_v16 = vld [vmem:[#allocation2 + $0x208] ss:$16 sps:$4 sm:$0xff]   ;;  %v10509_v18 = vld [vmem:[#allocation2 + $0x22c] ss:$16 sps:$4 sm:$0xff]   ;;  %s14837_s27 = sld [smem:[#allocation51_spill]] }
 0x1c8   :  { %1265 = vmatprep.subr.bf16.mxu0 %v10441_v28  ;;  %1491 = vmatprep.subr.bf16.mxu1 %v10443_v29  ;;  %v400_v15 = vld [vmem:[%s14596_s20 + $0x60] sm:$0xff]  ;;  %v405_v19 = vld [vmem:[%s14596_s20 + $0x88] sm:$0xff]  ;;  %s14838_s13 = sld [smem:[#allocation53_spill]]  ;;  %s14839_s28 = sld [smem:[#allocation57_spill]]  ;;  %vm8465_vm1 = vcmask 523264  }
 0x1c9   :  { %v409_v20 = vld [vmem:[%s14596_s20 + $0xa8] sm:$0xff]  ;;  %v577_v22 = vpack.c.bf16 %v400_v15, %v396_v14  ;;  %v10504_v23 = vld [vmem:[#allocation2 + $0x240] ss:$16 sps:$4 sm:$0xff]   ;;  %v10512_v25 = vld [vmem:[#allocation2 + $0x264] ss:$16 sps:$4 sm:$0xff]   ;;  %s14840_s1 = sld [smem:[#allocation58_spill]] }
 0x1ca   :  { %v10507_v21 = vld [vmem:[#allocation2 + $0x228] ss:$16 sps:$4 sm:$0xff]   ;;  %v582_v24 = vpack.c.bf16 %v409_v20, %v405_v19  ;;  %v10510_v26 = vld [vmem:[#allocation2 + $0x260] ss:$16 sps:$4 sm:$0xff]   ;;  %v10515_v28 = vld [vmem:[#allocation2 + $0x24c] ss:$16 sps:$4 sm:$0xff]  }
 0x1cb   :  { %1266 = vmatpush1.bf16.msra.mxu0 %v10445_v30  ;;  %1492 = vmatpush1.bf16.msra.mxu1 %v10446_v31  ;;  %v404_v27 = vld [vmem:[%s14596_s20 + $0x80] sm:$0xff]  ;;  %v10513_v30 = vld [vmem:[#allocation2 + $0x248] ss:$16 sps:$4 sm:$0xff]   ;;  %v10521_v31 = vld [vmem:[#allocation2 + $0x26c] ss:$16 sps:$4 sm:$0xff]  }
 0x1cc   :  { %1267 = vmatprep.subr.bf16.mxu0 %v10447_v32  ;;  %1493 = vmatprep.subr.bf16.mxu1 %v10449_v33  ;;  %v408_v29 = vld [vmem:[%s14596_s20 + $0xa0] sm:$0xff]  ;;  %v413_v33 = vld [vmem:[%s14596_s20 + $0xc8] sm:$0xff] }
 0x1cd   :  { %v10518_v32 = vld [vmem:[#allocation2 + $0x284] ss:$16 sps:$4 sm:$0xff]   ;;  %v10533_v46 = vld [vmem:[#allocation2 + $0x2ac] ss:$16 sps:$4 sm:$0xff]   ;;  %v10531_v51 = vld [vmem:[#allocation2 + $0x2a8] ss:$16 sps:$4 sm:$0xff]  }
 0x1ce   :  { %v428_v3 = vld [vmem:[%s14596_s20 + $0x140] sm:$0xff]  ;;  %v10548_v4 = vld [vmem:[#allocation2 + $0x30c] ss:$16 sps:$4 sm:$0xff]   ;;  %v10546_v7 = vld [vmem:[#allocation2 + $0x308] ss:$16 sps:$4 sm:$0xff]  }
 0x1cf   :  { %1268 = vmatpush1.bf16.msra.mxu0 %v10451_v34  ;;  %1494 = vmatpush1.bf16.msra.mxu1 %v10452_v35  ;;  %v417_v34 = vld [vmem:[%s14596_s20 + $0xe8] sm:$0xff]  ;;  %v581_v35 = vpack.c.bf16 %v408_v29, %v404_v27  ;;  %v432_v6 = vld [vmem:[%s14596_s20 + $0x160] sm:$0xff] }
 0x1d0   :  { %1269 = vmatprep.subr.bf16.mxu0 %v10453_v36  ;;  %1495 = vmatprep.subr.bf16.mxu1 %v10455_v37  ;;  %v10516_v36 = vld [vmem:[#allocation2 + $0x280] ss:$16 sps:$4 sm:$0xff]   ;;  %v10519_v37 = vld [vmem:[#allocation2 + $0x268] ss:$16 sps:$4 sm:$0xff]   ;;  %v10560_v20 = vld [vmem:[#allocation2 + $0x34c] ss:$16 sps:$4 sm:$0xff]  }
 0x1d1   :  { %v10552_v14 = vld [vmem:[#allocation2 + $0x328] ss:$16 sps:$4 sm:$0xff]  }
 0x1d2   :  { %v10558_v19 = vld [vmem:[#allocation2 + $0x348] ss:$16 sps:$4 sm:$0xff]  }
 0x1d3   :  { %1270 = vmatpush1.bf16.msra.mxu0 %v10457_v38  ;;  %1496 = vmatpush1.bf16.msra.mxu1 %v10458_v39  ;;  %v586_v38 = vpack.c.bf16 %v417_v34, %v413_v33  ;;  %v10524_v39 = vld [vmem:[#allocation2 + $0x2a4] ss:$16 sps:$4 sm:$0xff]   ;;  %v10570_v33 = vld [vmem:[#allocation2 + $0x388] ss:$16 sps:$4 sm:$0xff]   ;;  %v10572_v34 = vld [vmem:[#allocation2 + $0x38c] ss:$16 sps:$4 sm:$0xff]  }
 0x1d4   :  { %1271 = vmatprep.subr.bf16.mxu0 %v10459_v40  ;;  %1497 = vmatprep.subr.bf16.mxu1 %v10461_v41  ;;  %v10527_v40 = vld [vmem:[#allocation2 + $0x28c] ss:$16 sps:$4 sm:$0xff]   ;;  %v10522_v41 = vld [vmem:[#allocation2 + $0x2a0] ss:$16 sps:$4 sm:$0xff]  }
 0x1d7   :  { %1272 = vmatpush1.bf16.msra.mxu0 %v10463_v42  ;;  %1498 = vmatpush1.bf16.msra.mxu1 %v10464_v43  ;;  %v412_v42 = vld [vmem:[%s14596_s20 + $0xc0] sm:$0xff] }
 0x1d8   :  { %1273 = vmatprep.subr.bf16.mxu0 %v10465_v44  ;;  %1499 = vmatprep.subr.bf16.mxu1 %v10467_v45  ;;  %v416_v43 = vld [vmem:[%s14596_s20 + $0xe0] sm:$0xff]  ;;  %v10525_v44 = vld [vmem:[#allocation2 + $0x288] ss:$16 sps:$4 sm:$0xff]  }
 0x1d9   :  { %v10530_v45 = vld [vmem:[#allocation2 + $0x2c4] ss:$16 sps:$4 sm:$0xff]   ;;  %v585_v49 = vpack.c.bf16 %v416_v43, %v412_v42  ;;  %v10576_v42 = vld [vmem:[#allocation2 + $0x3a8] ss:$16 sps:$4 sm:$0xff]  }
 0x1db   :  { %1274 = vmatpush1.bf16.msra.mxu0 %v10469_v47  ;;  %1500 = vmatpush1.bf16.msra.mxu1 %v10470_v48  ;;  %v421_v47 = vld [vmem:[%s14596_s20 + $0x108] sm:$0xff] }
 0x1dc   :  { %1275 = vmatprep.subr.bf16.mxu0 %v10471_v50  ;;  %1501 = vmatprep.subr.bf16.mxu1 %v10473_v52  ;;  %v425_v48 = vld [vmem:[%s14596_s20 + $0x128] sm:$0xff]  ;;  %v10528_v50 = vld [vmem:[#allocation2 + $0x2c0] ss:$16 sps:$4 sm:$0xff]  }
 0x1dd   :  { %v590_v52 = vpack.c.bf16 %v425_v48, %v421_v47  ;;  %v399_v47 = vld [vmem:[%s14596_s20 + $0x58] sm:$0xff] }
 0x1de   :  { %v403_v48 = vld [vmem:[%s14596_s20 + $0x78] sm:$0xff] }
 0x1df   :  { %1276 = vmatpush1.bf16.msra.mxu0 %v10475_v53  ;;  %1502 = vmatpush1.bf16.msra.mxu1 %v10476_v54  ;;  %v10536_v53 = vld [vmem:[#allocation2 + $0x2e4] ss:$16 sps:$4 sm:$0xff]   ;;  %v10539_v54 = vld [vmem:[#allocation2 + $0x2cc] ss:$16 sps:$4 sm:$0xff]  }
 0x1e0   :  { %1277 = vmatprep.subr.bf16.mxu0 %v10477_v55  ;;  %1503 = vmatprep.subr.bf16.mxu1 %v10479_v56  ;;  %v420_v55 = vld [vmem:[%s14596_s20 + $0x100] sm:$0xff] }
 0x1e1   :  { %v424_v56 = vld [vmem:[%s14596_s20 + $0x120] sm:$0xff] }
 0x1e3   :  { %1278 = vmatpush1.bf16.msra.mxu0 %v10481_v57  ;;  %1504 = vmatpush1.bf16.msra.mxu1 %v10482_v58  ;;  %v10534_v57 = vld [vmem:[#allocation2 + $0x2e0] ss:$16 sps:$4 sm:$0xff]   ;;  %v10537_v58 = vld [vmem:[#allocation2 + $0x2c8] ss:$16 sps:$4 sm:$0xff]  }
 0x1e4   :  { %1279 = vmatprep.subr.bf16.mxu0 %v10483_v59  ;;  %1505 = vmatprep.subr.bf16.mxu1 %v10485_v60  ;;  %v10542_v59 = vld [vmem:[#allocation2 + $0x2ec] ss:$16 sps:$4 sm:$0xff]   ;;  %v10545_v60 = vld [vmem:[#allocation2 + $0x304] ss:$16 sps:$4 sm:$0xff]  }
 0x1e7   :  { %1280 = vmatpush1.bf16.msra.mxu0 %v10487_v61  ;;  %1506 = vmatpush1.bf16.msra.mxu1 %v10488_v62  ;;  %v429_v61 = vld [vmem:[%s14596_s20 + $0x148] sm:$0xff] }
 0x1e8   :  { %1281 = vmatprep.subr.bf16.mxu0 %v10489_v63  ;;  %1507 = vmatprep.subr.bf16.mxu1 %v10491_v0  ;;  %v433_v62 = vld [vmem:[%s14596_s20 + $0x168] sm:$0xff]  ;;  %v589_v63 = vpack.c.bf16 %v424_v56, %v420_v55  ;;  %v10590_v56 = vld [vmem:[#allocation6 + $0x2c] ss:$16 sps:$4 sm:$0xff]  }
 0x1e9   :  { %v10540_v0 = vld [vmem:[#allocation2 + $0x2e8] ss:$16 sps:$4 sm:$0xff]  }
 0x1ea   :  { %v10587_v55 = vld [vmem:[#allocation6 + $0x24] ss:$16 sps:$4 sm:$0xff]  }
 0x1eb   :  { %1282 = vmatpush1.bf16.msra.mxu0 %v10493_v1  ;;  %1508 = vmatpush1.bf16.msra.mxu1 %v10494_v2  ;;  %v10543_v1 = vld [vmem:[#allocation2 + $0x300] ss:$16 sps:$4 sm:$0xff]   ;;  %v594_v2 = vpack.c.bf16 %v433_v62, %v429_v61  ;;  %v10593_v61 = vld [vmem:[#allocation6 + $0x44] ss:$16 sps:$4 sm:$0xff]  }
 0x1ec   :  { %1364 = vmatprep.subr.bf16.mxu0 %v10497_v5  ;;  %1590 = vmatprep.subr.bf16.mxu1 %v10503_v8  ;;  %v10551_v5 = vld [vmem:[#allocation2 + $0x324] ss:$16 sps:$4 sm:$0xff]   ;;  %v10549_v8 = vld [vmem:[#allocation2 + $0x320] ss:$16 sps:$4 sm:$0xff]  }
 0x1ed   :  { %v10596_v62 = vld [vmem:[#allocation6 + $0x4c] ss:$16 sps:$4 sm:$0xff]  }
 0x1ee   :  { %1284 = vmatmul.mubr.bf16.vlgmr.msra.gmra.mrb[0].mxu0 %v573_v9  ;;  %1510 = vmatmul.mubr.bf16.vlgmr.msra.gmra.mrb[0].mxu1 %v573_v9  ;;  %v10554_v9 = vld [vmem:[#allocation2 + $0x32c] ss:$16 sps:$4 sm:$0xff]  }
 0x1ef   :  { %1365 = vmatpush1.bf16.msra.mxu0 %v10495_v10  ;;  %1293 = vmatprep.mubr.bf16.mxu0 %v578_v11  ;;  %v10557_v10 = vld [vmem:[#allocation2 + $0x344] ss:$16 sps:$4 sm:$0xff]  }
 0x1f0   :  { %1366 = vmatprep.subr.bf16.mxu0 %v10500_v12  ;;  %1519 = vmatprep.mubr.bf16.mxu1 %v578_v11  ;;  %v437_v11 = vld [vmem:[%s14596_s20 + $0x188] sm:$0xff] }
 0x1f1   :  { %1591 = vmatpush1.bf16.msra.mxu1 %v10501_v16  ;;  %v441_v12 = vld [vmem:[%s14596_s20 + $0x1a8] sm:$0xff]  ;;  %v10555_v16 = vld [vmem:[#allocation2 + $0x340] ss:$16 sps:$4 sm:$0xff]  }
 0x1f2   :  { %1592 = vmatprep.subr.bf16.mxu1 %v10509_v18  ;;  %v598_v15 = vpack.c.bf16 %v441_v12, %v437_v11  ;;  %v440_v18 = vld [vmem:[%s14596_s20 + $0x1a0] sm:$0xff]  ;;  %v10605_v11 = vld [vmem:[#allocation6 + $0x84] ss:$16 sps:$4 sm:$0xff]  }
 0x1f3   :  { %1367 = vmatpush1.bf16.msra.mxu0 %v10498_v13  ;;  %v593_v13 = vpack.c.bf16 %v432_v6, %v428_v3  ;;  %v406_v3 = vld [vmem:[%s14596_s20 + $0x90] sm:$0xff] }
 0x1f4   :  { %1368 = vmatprep.subr.bf16.mxu0 %v10506_v17  ;;  %v436_v17 = vld [vmem:[%s14596_s20 + $0x180] sm:$0xff] }
 0x1f5   :  { %1593 = vmatpush1.bf16.msra.mxu1 %v10507_v21  ;;  %v10563_v21 = vld [vmem:[#allocation2 + $0x364] ss:$16 sps:$4 sm:$0xff]   ;;  %v597_v27 = vpack.c.bf16 %v440_v18, %v436_v17  ;;  %v10602_v6 = vld [vmem:[#allocation6 + $0x6c] ss:$16 sps:$4 sm:$0xff]   ;;  %v10611_v17 = vld [vmem:[#allocation6 + $0xa4] ss:$16 sps:$4 sm:$0xff]  }
 0x1f6   :  { %1294 = vmatmul.mubr.bf16.gmra.mrb[4].mxu0 %v577_v22  ;;  %1520 = vmatmul.mubr.bf16.gmra.mrb[4].mxu1 %v577_v22  ;;  %v10561_v22 = vld [vmem:[#allocation2 + $0x360] ss:$16 sps:$4 sm:$0xff]  }
 0x1f7   :  { %1369 = vmatpush1.bf16.msra.mxu0 %v10504_v23  ;;  %1303 = vmatprep.mubr.bf16.mxu0 %v582_v24  ;;  %v10566_v23 = vld [vmem:[#allocation2 + $0x36c] ss:$16 sps:$4 sm:$0xff]   ;;  %v10608_v12 = vld [vmem:[#allocation6 + $0x8c] ss:$16 sps:$4 sm:$0xff]  }
 0x1f8   :  { %1370 = vmatprep.subr.bf16.mxu0 %v10512_v25  ;;  %1529 = vmatprep.mubr.bf16.mxu1 %v582_v24  ;;  %v445_v24 = vld [vmem:[%s14596_s20 + $0x1c8] sm:$0xff]  ;;  %v10614_v18 = vld [vmem:[#allocation6 + $0xac] ss:$16 sps:$4 sm:$0xff]  }
 0x1f9   :  { %1594 = vmatprep.subr.bf16.mxu1 %v10515_v28  ;;  %v449_v25 = vld [vmem:[%s14596_s20 + $0x1e8] sm:$0xff] }
 0x1fa   :  { %1595 = vmatpush1.bf16.msra.mxu1 %v10513_v30  ;;  %v10564_v28 = vld [vmem:[#allocation2 + $0x368] ss:$16 sps:$4 sm:$0xff]   ;;  %v602_v29 = vpack.c.bf16 %v449_v25, %v445_v24  ;;  %v10567_v30 = vld [vmem:[#allocation2 + $0x380] ss:$16 sps:$4 sm:$0xff]   ;;  %v10612_v24 = vld [vmem:[#allocation6 + $0xa8] ss:$16 sps:$4 sm:$0xff]  }
 0x1fb   :  { %1371 = vmatpush1.bf16.msra.mxu0 %v10510_v26  ;;  %1596 = vmatprep.subr.bf16.mxu1 %v10521_v31  ;;  %v10569_v26 = vld [vmem:[#allocation2 + $0x384] ss:$16 sps:$4 sm:$0xff]   ;;  %v10617_v25 = vld [vmem:[#allocation6 + $0xc4] ss:$16 sps:$4 sm:$0xff]  }
 0x1fc   :  { %1372 = vmatprep.subr.bf16.mxu0 %v10518_v32  ;;  %v444_v31 = vld [vmem:[%s14596_s20 + $0x1c0] sm:$0xff] }
 0x1fd   :  { %v448_v32 = vld [vmem:[%s14596_s20 + $0x1e0] sm:$0xff] }
 0x1fe   :  { %1304 = vmatmul.mubr.bf16.gmra.mrb[8].mxu0 %v581_v35  ;;  %1530 = vmatmul.mubr.bf16.gmra.mrb[8].mxu1 %v581_v35  ;;  %v10575_v35 = vld [vmem:[#allocation2 + $0x3a4] ss:$16 sps:$4 sm:$0xff]  }
 0x1ff   :  { %1373 = vmatpush1.bf16.msra.mxu0 %v10516_v36  ;;  %1597 = vmatpush1.bf16.msra.mxu1 %v10519_v37  ;;  %v10573_v36 = vld [vmem:[#allocation2 + $0x3a0] ss:$16 sps:$4 sm:$0xff]   ;;  %v10578_v37 = vld [vmem:[#allocation2 + $0x3ac] ss:$16 sps:$4 sm:$0xff]  }
 0x200   :  { %1313 = vmatprep.mubr.bf16.mxu0 %v586_v38  ;;  %1374 = vmatprep.subr.bf16.mxu0 %v10524_v39  ;;  %v395_v39 = vld [vmem:[%s14596_s20 + $0x38] sm:$0xff] }
 0x201   :  { %1539 = vmatprep.mubr.bf16.mxu1 %v586_v38  ;;  %1598 = vmatprep.subr.bf16.mxu1 %v10527_v40  ;;  %v391_v38 = vld [vmem:[%s14596_s20 + $0x18] sm:$0xff] }
 0x202   :  { %v10581_v40 = vld [vmem:[#allocation6 + $0x4] ss:$16 sps:$4 sm:$0xff]   ;;  %v576_v43 = vpack.c.bf16 %v395_v39, %v391_v38  ;;  %v10624_v38 = vld [vmem:[#allocation6 + $0xe8] ss:$16 sps:$4 sm:$0xff]  }
 0x203   :  { %1375 = vmatpush1.bf16.msra.mxu0 %v10522_v41  ;;  %1599 = vmatpush1.bf16.msra.mxu1 %v10525_v44  ;;  %v601_v41 = vpack.c.bf16 %v448_v32, %v444_v31  ;;  %v10584_v44 = vld [vmem:[#allocation6 + $0xc] ss:$16 sps:$4 sm:$0xff]   ;;  %v10623_v31 = vld [vmem:[#allocation6 + $0xe4] ss:$16 sps:$4 sm:$0xff]  }
 0x204   :  { %1376 = vmatprep.subr.bf16.mxu0 %v10530_v45  ;;  %1600 = vmatprep.subr.bf16.mxu1 %v10533_v46  ;;  %v390_v45 = vld [vmem:[%s14596_s20 + $0x10] sm:$0xff]  ;;  %v10629_v39 = vld [vmem:[#allocation6 + $0x104] ss:$16 sps:$4 sm:$0xff]  }
 0x205   :  { %v394_v46 = vld [vmem:[%s14596_s20 + $0x30] sm:$0xff] }
 0x206   :  { %1314 = vmatmul.mubr.bf16.gmra.mrb[12].mxu0 %v585_v49  ;;  %1540 = vmatmul.mubr.bf16.gmra.mrb[12].mxu1 %v585_v49  ;;  %v575_v49 = vpack.c.bf16 %v394_v46, %v390_v45  ;;  %v10626_v32 = vld [vmem:[#allocation6 + $0xec] ss:$16 sps:$4 sm:$0xff]   ;;  %v10635_v45 = vld [vmem:[#allocation6 + $0x124] ss:$16 sps:$4 sm:$0xff]  }
 0x207   :  { %1377 = vmatpush1.bf16.msra.mxu0 %v10528_v50  ;;  %1601 = vmatpush1.bf16.msra.mxu1 %v10531_v51  ;;  %v580_v50 = vpack.c.bf16 %v403_v48, %v399_v47  ;;  %v10579_v51 = vld [vmem:[#allocation6] ss:$16 sps:$4 sm:$0xff]   ;;  %v10638_v46 = vld [vmem:[#allocation6 + $0x12c] ss:$16 sps:$4 sm:$0xff]  }
 0x208   :  { %1323 = vmatprep.mubr.bf16.mxu0 %v590_v52  ;;  %1549 = vmatprep.mubr.bf16.mxu1 %v590_v52  ;;  %v10582_v52 = vld [vmem:[#allocation6 + $0x8] ss:$16 sps:$4 sm:$0xff]   ;;  %v430_v47 = vld [vmem:[%s14596_s20 + $0x150] sm:$0xff] }
 0x209   :  { %1378 = vmatprep.subr.bf16.mxu0 %v10536_v53  ;;  %1602 = vmatprep.subr.bf16.mxu1 %v10539_v54  ;;  %v398_v53 = vld [vmem:[%s14596_s20 + $0x50] sm:$0xff] }
 0x20a   :  { %v402_v54 = vld [vmem:[%s14596_s20 + $0x70] sm:$0xff] }
 0x20b   :  { %1379 = vmatpush1.bf16.msra.mxu0 %v10534_v57  ;;  %1603 = vmatpush1.bf16.msra.mxu1 %v10537_v58  ;;  %v407_v57 = vld [vmem:[%s14596_s20 + $0x98] sm:$0xff]  ;;  %v434_v48 = vld [vmem:[%s14596_s20 + $0x170] sm:$0xff] }
 0x20c   :  { %1604 = vmatprep.subr.bf16.mxu1 %v10542_v59  ;;  %1380 = vmatprep.subr.bf16.mxu0 %v10545_v60  ;;  %v411_v58 = vld [vmem:[%s14596_s20 + $0xb8] sm:$0xff]  ;;  %v10585_v59 = vld [vmem:[#allocation6 + $0x20] ss:$16 sps:$4 sm:$0xff]  }
 0x20d   :  { %v10588_v60 = vld [vmem:[#allocation6 + $0x28] ss:$16 sps:$4 sm:$0xff]  }
 0x20e   :  { %1324 = vmatmul.mubr.bf16.gmra.mrb[16].mxu0 %v589_v63  ;;  %1550 = vmatmul.mubr.bf16.gmra.mrb[16].mxu1 %v589_v63  ;;  %v579_v63 = vpack.c.bf16 %v402_v54, %v398_v53  ;;  %v10641_v53 = vld [vmem:[#allocation6 + $0x144] ss:$16 sps:$4 sm:$0xff]   ;;  %v10644_v54 = vld [vmem:[#allocation6 + $0x14c] ss:$16 sps:$4 sm:$0xff]  }
 0x20f   :  { %1605 = vmatpush1.bf16.msra.mxu1 %v10540_v0  ;;  %1381 = vmatpush1.bf16.msra.mxu0 %v10543_v1  ;;  %v584_v0 = vpack.c.bf16 %v411_v58, %v407_v57  ;;  %v10591_v1 = vld [vmem:[#allocation6 + $0x40] ss:$16 sps:$4 sm:$0xff]   ;;  %v10642_v57 = vld [vmem:[#allocation6 + $0x148] ss:$16 sps:$4 sm:$0xff]  }
 0x210   :  { %1333 = vmatprep.mubr.bf16.mxu0 %v594_v2  ;;  %1559 = vmatprep.mubr.bf16.mxu1 %v594_v2  ;;  %v10594_v2 = vld [vmem:[#allocation6 + $0x48] ss:$16 sps:$4 sm:$0xff]  }
 0x211   :  { %1606 = vmatprep.subr.bf16.mxu1 %v10548_v4  ;;  %1382 = vmatprep.subr.bf16.mxu0 %v10551_v5  ;;  %v410_v4 = vld [vmem:[%s14596_s20 + $0xb0] sm:$0xff]  ;;  %v10599_v5 = vld [vmem:[#allocation6 + $0x64] ss:$16 sps:$4 sm:$0xff]  }
 0x213   :  { %1607 = vmatpush1.bf16.msra.mxu1 %v10546_v7  ;;  %1383 = vmatpush1.bf16.msra.mxu0 %v10549_v8  ;;  %v415_v7 = vld [vmem:[%s14596_s20 + $0xd8] sm:$0xff] }
 0x214   :  { %1608 = vmatprep.subr.bf16.mxu1 %v10554_v9  ;;  %1384 = vmatprep.subr.bf16.mxu0 %v10557_v10  ;;  %v419_v8 = vld [vmem:[%s14596_s20 + $0xf8] sm:$0xff]  ;;  %v10597_v9 = vld [vmem:[#allocation6 + $0x60] ss:$16 sps:$4 sm:$0xff]  }
 0x215   :  { %v10600_v10 = vld [vmem:[#allocation6 + $0x68] ss:$16 sps:$4 sm:$0xff]  }
 0x216   :  { %1334 = vmatmul.mubr.bf16.gmra.mrb[20].mxu0 %v593_v13  ;;  %1560 = vmatmul.mubr.bf16.gmra.mrb[20].mxu1 %v593_v13  ;;  %v583_v13 = vpack.c.bf16 %v410_v4, %v406_v3  ;;  %v10653_v3 = vld [vmem:[#allocation6 + $0x184] ss:$16 sps:$4 sm:$0xff]   ;;  %v10656_v4 = vld [vmem:[#allocation6 + $0x18c] ss:$16 sps:$4 sm:$0xff]  }
 0x217   :  { %1609 = vmatpush1.bf16.msra.mxu1 %v10552_v14  ;;  %1343 = vmatprep.mubr.bf16.mxu0 %v598_v15  ;;  %v10603_v14 = vld [vmem:[#allocation6 + $0x80] ss:$16 sps:$4 sm:$0xff]  }
 0x218   :  { %1385 = vmatpush1.bf16.msra.mxu0 %v10555_v16  ;;  %1569 = vmatprep.mubr.bf16.mxu1 %v598_v15  ;;  %v10606_v15 = vld [vmem:[#allocation6 + $0x88] ss:$16 sps:$4 sm:$0xff]   ;;  %v588_v16 = vpack.c.bf16 %v419_v8, %v415_v7 }
 0x219   :  { %1610 = vmatprep.subr.bf16.mxu1 %v10560_v20  ;;  %1386 = vmatprep.subr.bf16.mxu0 %v10563_v21  ;;  %v418_v20 = vld [vmem:[%s14596_s20 + $0xf0] sm:$0xff]  ;;  %v423_v21 = vld [vmem:[%s14596_s20 + $0x118] sm:$0xff] }
 0x21a   :  { %v10654_v7 = vld [vmem:[#allocation6 + $0x188] ss:$16 sps:$4 sm:$0xff]  }
 0x21b   :  { %1611 = vmatpush1.bf16.msra.mxu1 %v10558_v19  ;;  %v414_v19 = vld [vmem:[%s14596_s20 + $0xd0] sm:$0xff] }
 0x21c   :  { %1387 = vmatpush1.bf16.msra.mxu0 %v10561_v22  ;;  %1612 = vmatprep.subr.bf16.mxu1 %v10566_v23  ;;  %v427_v22 = vld [vmem:[%s14596_s20 + $0x138] sm:$0xff]  ;;  %v10609_v23 = vld [vmem:[#allocation6 + $0xa0] ss:$16 sps:$4 sm:$0xff]  }
 0x21d   :  { %1388 = vmatprep.subr.bf16.mxu0 %v10569_v26  ;;  %v10620_v26 = vld [vmem:[#allocation6 + $0xcc] ss:$16 sps:$4 sm:$0xff]  }
 0x21e   :  { %1344 = vmatmul.mubr.bf16.gmra.mrb[24].mxu0 %v597_v27  ;;  %1570 = vmatmul.mubr.bf16.gmra.mrb[24].mxu1 %v597_v27  ;;  %v587_v27 = vpack.c.bf16 %v418_v20, %v414_v19  ;;  %v10666_v19 = vld [vmem:[#allocation6 + $0x1c8] ss:$16 sps:$4 sm:$0xff]   ;;  %v10671_v20 = vld [vmem:[#allocation6 + $0x1e4] ss:$16 sps:$4 sm:$0xff]  }
 0x21f   :  { %1613 = vmatpush1.bf16.msra.mxu1 %v10564_v28  ;;  %1353 = vmatprep.mubr.bf16.mxu0 %v602_v29  ;;  %v10615_v28 = vld [vmem:[#allocation6 + $0xc0] ss:$16 sps:$4 sm:$0xff]  }
 0x220   :  { %1579 = vmatprep.mubr.bf16.mxu1 %v602_v29  ;;  %1389 = vmatpush1.bf16.msra.mxu0 %v10567_v30  ;;  %v10618_v29 = vld [vmem:[#allocation6 + $0xc8] ss:$16 sps:$4 sm:$0xff]   ;;  %v592_v30 = vpack.c.bf16 %v427_v22, %v423_v21  ;;  %v10674_v21 = vld [vmem:[#allocation6 + $0x1ec] ss:$16 sps:$4 sm:$0xff]   ;;  %v10669_v22 = vld [vmem:[#allocation6 + $0x1e0] ss:$16 sps:$4 sm:$0xff]  }
 0x221   :  { %1614 = vmatprep.subr.bf16.mxu1 %v10572_v34  ;;  %1390 = vmatprep.subr.bf16.mxu0 %v10575_v35  ;;  %v426_v34 = vld [vmem:[%s14596_s20 + $0x130] sm:$0xff]  ;;  %v431_v35 = vld [vmem:[%s14596_s20 + $0x158] sm:$0xff] }
 0x223   :  { %1615 = vmatpush1.bf16.msra.mxu1 %v10570_v33  ;;  %v422_v33 = vld [vmem:[%s14596_s20 + $0x110] sm:$0xff] }
 0x224   :  { %1616 = vmatprep.subr.bf16.mxu1 %v10578_v37  ;;  %1391 = vmatpush1.bf16.msra.mxu0 %v10573_v36  ;;  %v435_v36 = vld [vmem:[%s14596_s20 + $0x178] sm:$0xff]  ;;  %v10621_v37 = vld [vmem:[#allocation6 + $0xe0] ss:$16 sps:$4 sm:$0xff]  }
 0x225   :  { %2589 = vmatprep.subr.bf16.mxu0 %v10581_v40  ;;  %v10632_v40 = vld [vmem:[#allocation6 + $0x10c] ss:$16 sps:$4 sm:$0xff]  }
 0x226   :  { %1354 = vmatmul.mubr.bf16.gmra.mrb[28].mxu0 %v601_v41  ;;  %1580 = vmatmul.mubr.bf16.gmra.mrb[28].mxu1 %v601_v41  ;;  %v591_v41 = vpack.c.bf16 %v426_v34, %v422_v33 }
 0x227   :  { %1617 = vmatpush1.bf16.msra.mxu1 %v10576_v42  ;;  %8771 = vmatprep.mubr.msk.bf16.mxu0 %vm1226_vm0, %v576_v43  ;;  %v10627_v42 = vld [vmem:[#allocation6 + $0x100] ss:$16 sps:$4 sm:$0xff]  }
 0x228   :  { %8779 = vmatprep.mubr.msk.bf16.mxu1 %vm1226_vm0, %v576_v43  ;;  %2815 = vmatprep.subr.bf16.mxu1 %v10584_v44  ;;  %v10630_v43 = vld [vmem:[#allocation6 + $0x108] ss:$16 sps:$4 sm:$0xff]   ;;  %v596_v44 = vpack.c.bf16 %v435_v36, %v431_v35 }
 0x22e   :  { %1397 = vmatmul.mubr.bf16.vlgmr.msra.gmra.mrb[0].mxu0 %v575_v49  ;;  %1623 = vmatmul.mubr.bf16.vlgmr.msra.gmra.mrb[0].mxu1 %v575_v49  ;;  %v439_v49 = vld [vmem:[%s14596_s20 + $0x198] sm:$0xff] }
 0x22f   :  { %8772 = vmatprep.mubr.msk.bf16.mxu0 %vm1226_vm0, %v580_v50  ;;  %8780 = vmatprep.mubr.msk.bf16.mxu1 %vm1226_vm0, %v580_v50  ;;  %v443_v50 = vld [vmem:[%s14596_s20 + $0x1b8] sm:$0xff] }
 0x230   :  { %2590 = vmatpush1.bf16.msra.mxu0 %v10579_v51  ;;  %2816 = vmatpush1.bf16.msra.mxu1 %v10582_v52  ;;  %v10633_v51 = vld [vmem:[#allocation6 + $0x120] ss:$16 sps:$4 sm:$0xff]   ;;  %v10636_v52 = vld [vmem:[#allocation6 + $0x128] ss:$16 sps:$4 sm:$0xff]   ;;  %v600_v58 = vpack.c.bf16 %v443_v50, %v439_v49 }
 0x231   :  { %2591 = vmatprep.subr.bf16.mxu0 %v10587_v55  ;;  %2817 = vmatprep.subr.bf16.mxu1 %v10590_v56  ;;  %v595_v55 = vpack.c.bf16 %v434_v48, %v430_v47  ;;  %v10639_v56 = vld [vmem:[#allocation6 + $0x140] ss:$16 sps:$4 sm:$0xff]  }
 0x234   :  { %2592 = vmatpush1.bf16.msra.mxu0 %v10585_v59  ;;  %2818 = vmatpush1.bf16.msra.mxu1 %v10588_v60  ;;  %v10647_v59 = vld [vmem:[#allocation6 + $0x164] ss:$16 sps:$4 sm:$0xff]   ;;  %v10650_v60 = vld [vmem:[#allocation6 + $0x16c] ss:$16 sps:$4 sm:$0xff]  }
 0x235   :  { %2593 = vmatprep.subr.bf16.mxu0 %v10593_v61  ;;  %2819 = vmatprep.subr.bf16.mxu1 %v10596_v62  ;;  %v438_v61 = vld [vmem:[%s14596_s20 + $0x190] sm:$0xff] }
 0x236   :  { %1407 = vmatmul.mubr.bf16.gmra.mrb[4].mxu0 %v579_v63  ;;  %1633 = vmatmul.mubr.bf16.gmra.mrb[4].mxu1 %v579_v63  ;;  %v442_v62 = vld [vmem:[%s14596_s20 + $0x1b0] sm:$0xff]  ;;  %v447_v63 = vld [vmem:[%s14596_s20 + $0x1d8] sm:$0xff] }
 0x237   :  { %8773 = vmatprep.mubr.msk.bf16.mxu0 %vm1226_vm0, %v584_v0  ;;  %8781 = vmatprep.mubr.msk.bf16.mxu1 %vm1226_vm0, %v584_v0  ;;  %v451_v0 = vld [vmem:[%s14596_s20 + $0x1f8] sm:$0xff] }
 0x238   :  { %2594 = vmatpush1.bf16.msra.mxu0 %v10591_v1  ;;  %2820 = vmatpush1.bf16.msra.mxu1 %v10594_v2  ;;  %v10645_v1 = vld [vmem:[#allocation6 + $0x160] ss:$16 sps:$4 sm:$0xff]   ;;  %v10648_v2 = vld [vmem:[#allocation6 + $0x168] ss:$16 sps:$4 sm:$0xff]   ;;  %v604_v8 = vpack.c.bf16 %v451_v0, %v447_v63 }
 0x239   :  { %2595 = vmatprep.subr.bf16.mxu0 %v10599_v5  ;;  %2821 = vmatprep.subr.bf16.mxu1 %v10602_v6  ;;  %v599_v5 = vpack.c.bf16 %v442_v62, %v438_v61  ;;  %v10651_v6 = vld [vmem:[#allocation6 + $0x180] ss:$16 sps:$4 sm:$0xff]  }
 0x23c   :  { %2596 = vmatpush1.bf16.msra.mxu0 %v10597_v9  ;;  %2822 = vmatpush1.bf16.msra.mxu1 %v10600_v10  ;;  %v10659_v9 = vld [vmem:[#allocation6 + $0x1a4] ss:$16 sps:$4 sm:$0xff]   ;;  %v10662_v10 = vld [vmem:[#allocation6 + $0x1ac] ss:$16 sps:$4 sm:$0xff]  }
 0x23d   :  { %2597 = vmatprep.subr.bf16.mxu0 %v10605_v11  ;;  %2823 = vmatprep.subr.bf16.mxu1 %v10608_v12  ;;  %v446_v11 = vld [vmem:[%s14596_s20 + $0x1d0] sm:$0xff] }
 0x23e   :  { %1417 = vmatmul.mubr.bf16.gmra.mrb[8].mxu0 %v583_v13  ;;  %1643 = vmatmul.mubr.bf16.gmra.mrb[8].mxu1 %v583_v13  ;;  %v450_v12 = vld [vmem:[%s14596_s20 + $0x1f0] sm:$0xff] }
 0x23f   :  { %8774 = vmatprep.mubr.msk.bf16.mxu0 %vm1226_vm0, %v588_v16  ;;  %8782 = vmatprep.mubr.msk.bf16.mxu1 %vm1226_vm0, %v588_v16  ;;  %v10657_v13 = vld [vmem:[#allocation6 + $0x1a0] ss:$16 sps:$4 sm:$0xff]   ;;  %v10665_v16 = vld [vmem:[#allocation6 + $0x1c4] ss:$16 sps:$4 sm:$0xff]  }
 0x240   :  { %2598 = vmatpush1.bf16.msra.mxu0 %v10603_v14  ;;  %2824 = vmatpush1.bf16.msra.mxu1 %v10606_v15  ;;  %v10660_v14 = vld [vmem:[#allocation6 + $0x1a8] ss:$16 sps:$4 sm:$0xff]   ;;  %v603_v15 = vpack.c.bf16 %v450_v12, %v446_v11 }
 0x241   :  { %2599 = vmatprep.subr.bf16.mxu0 %v10611_v17  ;;  %2825 = vmatprep.subr.bf16.mxu1 %v10614_v18  ;;  %v10668_v17 = vld [vmem:[#allocation6 + $0x1cc] ss:$16 sps:$4 sm:$0xff]   ;;  %v10663_v18 = vld [vmem:[#allocation6 + $0x1c0] ss:$16 sps:$4 sm:$0xff]  }
 0x244   :  { %2600 = vmatpush1.bf16.msra.mxu0 %v10609_v23  ;;  %2826 = vmatpush1.bf16.msra.mxu1 %v10612_v24  ;;  %v10672_v23 = vld [vmem:[#allocation6 + $0x1e8] ss:$16 sps:$4 sm:$0xff]   ;;  %v10677_v24 = vld [vmem:[#allocation6 + $0x204] ss:$16 sps:$4 sm:$0xff]  }
 0x245   :  { %2601 = vmatprep.subr.bf16.mxu0 %v10617_v25  ;;  %2827 = vmatprep.subr.bf16.mxu1 %v10620_v26  ;;  %v10680_v25 = vld [vmem:[#allocation6 + $0x20c] ss:$16 sps:$4 sm:$0xff]   ;;  %v606_v26 = vlaneseq }
 0x246   :  { %1427 = vmatmul.mubr.bf16.gmra.mrb[12].mxu0 %v587_v27  ;;  %1653 = vmatmul.mubr.bf16.gmra.mrb[12].mxu1 %v587_v27 }
 0x247   :  { %8775 = vmatprep.mubr.msk.bf16.mxu0 %vm1226_vm0, %v592_v30  ;;  %8783 = vmatprep.mubr.msk.bf16.mxu1 %vm1226_vm0, %v592_v30  ;;  %v12203_v27 = vshrl.u32 %v606_v26, 7  ;;  %v12211_v30 = vld [vmem:[#allocation4] sm:$0xf] }
 0x248   :  { %2602 = vmatpush1.bf16.msra.mxu0 %v10615_v28  ;;  %2828 = vmatpush1.bf16.msra.mxu1 %v10618_v29 }
 0x249   :  { %2603 = vmatprep.subr.bf16.mxu0 %v10623_v31  ;;  %2829 = vmatprep.subr.bf16.mxu1 %v10626_v32  ;;  %v12206_v28 = vsub.s32 0, %v12203_v27  ;;  %v12209_v29 = vsub.s32 1, %v12203_v27 }
 0x24b   :  { %14597 = vst [vmem:[#allocation60_spill] sm:$0xff] %v12206_v28  ;;  %14598 = vst [vmem:[#allocation61_spill] sm:$0xff] %v12209_v29  ;;  %v12215_v31 = vrot.slane %v12211_v30, %v12209_v29  ;;  %v12219_v32 = vrot.slane %v12211_v30, %v12206_v28 }
 0x24c   :  { %2604 = vmatpush1.bf16.msra.mxu0 %v10621_v37  ;;  %2830 = vmatpush1.bf16.msra.mxu1 %v10624_v38 }
 0x24d   :  { %2605 = vmatprep.subr.bf16.mxu0 %v10629_v39  ;;  %2831 = vmatprep.subr.bf16.mxu1 %v10632_v40 }
 0x24e   :  { %1437 = vmatmul.mubr.bf16.gmra.mrb[16].mxu0 %v591_v41  ;;  %1663 = vmatmul.mubr.bf16.gmra.mrb[16].mxu1 %v591_v41 }
 0x24f   :  { %8776 = vmatprep.mubr.msk.bf16.mxu0 %vm1226_vm0, %v596_v44  ;;  %8784 = vmatprep.mubr.msk.bf16.mxu1 %vm1226_vm0, %v596_v44 }
 0x250   :  { %2606 = vmatpush1.bf16.msra.mxu0 %v10627_v42  ;;  %2832 = vmatpush1.bf16.msra.mxu1 %v10630_v43 }
 0x251   :  { %2607 = vmatprep.subr.bf16.mxu0 %v10635_v45  ;;  %2833 = vmatprep.subr.bf16.mxu1 %v10638_v46 }
 0x254   :  { %2608 = vmatpush1.bf16.msra.mxu0 %v10633_v51  ;;  %2834 = vmatpush1.bf16.msra.mxu1 %v10636_v52  ;;  %v10675_v52 = vld [vmem:[#allocation6 + $0x200] ss:$16 sps:$4 sm:$0xff]  }
 0x255   :  { %2609 = vmatprep.subr.bf16.mxu0 %v10641_v53  ;;  %2835 = vmatprep.subr.bf16.mxu1 %v10644_v54  ;;  %v10678_v53 = vld [vmem:[#allocation6 + $0x208] ss:$16 sps:$4 sm:$0xff]  }
 0x256   :  { %1447 = vmatmul.mubr.bf16.gmra.mrb[20].mxu0 %v595_v55  ;;  %1673 = vmatmul.mubr.bf16.gmra.mrb[20].mxu1 %v595_v55 }
 0x257   :  { %8777 = vmatprep.mubr.msk.bf16.mxu0 %vm1226_vm0, %v600_v58  ;;  %8785 = vmatprep.mubr.msk.bf16.mxu1 %vm1226_vm0, %v600_v58  ;;  %v10686_v58 = vld [vmem:[#allocation6 + $0x22c] ss:$16 sps:$4 sm:$0xff]  }
 0x258   :  { %2610 = vmatpush1.bf16.msra.mxu0 %v10639_v56  ;;  %2836 = vmatpush1.bf16.msra.mxu1 %v10642_v57  ;;  %v10683_v57 = vld [vmem:[#allocation6 + $0x224] ss:$16 sps:$4 sm:$0xff]  }
 0x259   :  { %2611 = vmatprep.subr.bf16.mxu0 %v10647_v59  ;;  %2837 = vmatprep.subr.bf16.mxu1 %v10650_v60 }
 0x25c   :  { %2612 = vmatpush1.bf16.msra.mxu0 %v10645_v1  ;;  %2838 = vmatpush1.bf16.msra.mxu1 %v10648_v2 }
 0x25d   :  { %2613 = vmatprep.subr.bf16.mxu0 %v10653_v3  ;;  %2839 = vmatprep.subr.bf16.mxu1 %v10656_v4  ;;  %v10681_v3 = vld [vmem:[#allocation6 + $0x220] ss:$16 sps:$4 sm:$0xff]   ;;  %v10684_v4 = vld [vmem:[#allocation6 + $0x228] ss:$16 sps:$4 sm:$0xff]  }
 0x25e   :  { %1457 = vmatmul.mubr.bf16.gmra.mrb[24].mxu0 %v599_v5  ;;  %1683 = vmatmul.mubr.bf16.gmra.mrb[24].mxu1 %v599_v5 }
 0x25f   :  { %8778 = vmatprep.mubr.msk.bf16.mxu0 %vm1226_vm0, %v604_v8  ;;  %8786 = vmatprep.mubr.msk.bf16.mxu1 %vm1226_vm0, %v604_v8 }
 0x260   :  { %2614 = vmatpush1.bf16.msra.mxu0 %v10651_v6  ;;  %2840 = vmatpush1.bf16.msra.mxu1 %v10654_v7  ;;  %v10689_v6 = vld [vmem:[#allocation6 + $0x244] ss:$16 sps:$4 sm:$0xff]   ;;  %v10692_v7 = vld [vmem:[#allocation6 + $0x24c] ss:$16 sps:$4 sm:$0xff]  }
 0x261   :  { %2615 = vmatprep.subr.bf16.mxu0 %v10659_v9  ;;  %2841 = vmatprep.subr.bf16.mxu1 %v10662_v10 }
 0x264   :  { %2616 = vmatpush1.bf16.msra.mxu0 %v10657_v13  ;;  %2842 = vmatpush1.bf16.msra.mxu1 %v10660_v14  ;;  %v10687_v14 = vld [vmem:[#allocation6 + $0x240] ss:$16 sps:$4 sm:$0xff]  }
 0x265   :  { %2617 = vmatprep.subr.bf16.mxu0 %v10665_v16  ;;  %2843 = vmatprep.subr.bf16.mxu1 %v10668_v17 }
 0x266   :  { %1467 = vmatmul.mubr.bf16.gmra.mrb[28].mxu0 %v603_v15  ;;  %1693 = vmatmul.mubr.bf16.gmra.mrb[28].mxu1 %v603_v15  ;;  %v10690_v15 = vld [vmem:[#allocation6 + $0x248] ss:$16 sps:$4 sm:$0xff]  }
 0x268   :  { %2618 = vmatpush1.bf16.msra.mxu0 %v10663_v18  ;;  %2844 = vmatpush1.bf16.msra.mxu1 %v10666_v19  ;;  %v10695_v19 = vld [vmem:[#allocation6 + $0x264] ss:$16 sps:$4 sm:$0xff]  }
 0x269   :  { %2619 = vmatprep.subr.bf16.mxu0 %v10671_v20  ;;  %2845 = vmatprep.subr.bf16.mxu1 %v10674_v21  ;;  %v10698_v20 = vld [vmem:[#allocation6 + $0x26c] ss:$16 sps:$4 sm:$0xff]  }
 0x26c   :  { %2620 = vmatpush1.bf16.msra.mxu0 %v10669_v22  ;;  %2846 = vmatpush1.bf16.msra.mxu1 %v10672_v23 }
 0x26d   :  { %2702 = vmatprep.subr.bf16.mxu0 %v10677_v24  ;;  %2928 = vmatprep.subr.bf16.mxu1 %v10680_v25 }
 0x301   :  { %v1398_v33 = vpop.f32.mrb[0].mxu0  ;;  %v12221_v34 = vpop.f32.mrb[0].mxu1 }
 0x302   :  { %v1400_v35 = vpop.f32.mrb[1].mxu0  ;;  %v12223_v36 = vpop.f32.mrb[1].mxu1  ;;  %v12231_v40 = vadd.f32 %v1398_v33, %v12219_v32 }
 0x303   :  { %v12226_v37 = vadd.f32 %v1400_v35, %v12215_v31  ;;  %v1402_v38 = vpop.f32.mrb[2].mxu0  ;;  %v12228_v39 = vpop.f32.mrb[2].mxu1 }
 0x304   :  { %v12234_v41 = vadd.f32 %v1402_v38, %v12219_v32  ;;  %v1404_v42 = vpop.f32.mrb[3].mxu0  ;;  %v12236_v43 = vpop.f32.mrb[3].mxu1  ;;  %v14451_v48 = vmax.f32 %v12231_v40, 0.0  ;;  %v10693_v38 = vld [vmem:[#allocation6 + $0x260] ss:$16 sps:$4 sm:$0xff]  }
 0x305   :  { %v12239_v44 = vadd.f32 %v1404_v42, %v12215_v31  ;;  %v14453_v46 = vmax.f32 %v12226_v37, 0.0  ;;  %v10696_v42 = vld [vmem:[#allocation6 + $0x268] ss:$16 sps:$4 sm:$0xff]  }
 0x306   :  { %v14454_v45 = vmax.f32 %v12234_v41, 0.0 }
 0x307   :  { %v14452_v47 = vmax.f32 %v12239_v44, 0.0 }
 0x308   :  { %v1896_v54 = vpack.c.bf16 %v14454_v45, %v14451_v48  ;;  %v10734_v45 = vld [vmem:[#allocation6 + $0x32c] ss:$16 sps:$4 sm:$0xff]  }
 0x309   :  { %v1897_v49 = vpack.c.bf16 %v14452_v47, %v14453_v46  ;;  %v1408_v50 = vpop.f32.mrb[4].mxu0  ;;  %v12249_v51 = vpop.f32.mrb[4].mxu1  ;;  %v10731_v46 = vld [vmem:[#allocation6 + $0x324] ss:$16 sps:$4 sm:$0xff]  }
 0x30a   :  { %v1410_v55 = vpop.f32.mrb[5].mxu0  ;;  %v12255_v56 = vpop.f32.mrb[5].mxu1  ;;  %v12263_v62 = vadd.f32 %v1408_v50, %v12219_v32  ;;  %v10701_v50 = vld [vmem:[#allocation6 + $0x284] ss:$16 sps:$4 sm:$0xff]  }
 0x30b   :  { %v12258_v59 = vadd.f32 %v1410_v55, %v12215_v31  ;;  %v1412_v60 = vpop.f32.mrb[6].mxu0  ;;  %v12260_v61 = vpop.f32.mrb[6].mxu1  ;;  %2621 = vmatprep.mubr.bf16.mxu0 %v1897_v49  ;;  %2847 = vmatprep.mubr.bf16.mxu1 %v1897_v49 }
 0x30c   :  { %v12266_v63 = vadd.f32 %v1412_v60, %v12219_v32  ;;  %v1414_v0 = vpop.f32.mrb[7].mxu0  ;;  %v12268_v1 = vpop.f32.mrb[7].mxu1  ;;  %2622 = vmatmul.mubr.bf16.vlgmr.msra.gmra.mrb[32].mxu0 %v1896_v54  ;;  %2848 = vmatmul.mubr.bf16.vlgmr.msra.gmra.mrb[32].mxu1 %v1896_v54  ;;  %v14447_v10 = vmax.f32 %v12263_v62, 0.0 }
 0x30d   :  { %v12271_v2 = vadd.f32 %v1414_v0, %v12215_v31  ;;  %2703 = vmatpush1.bf16.msra.mxu0 %v10675_v52  ;;  %2929 = vmatpush1.bf16.msra.mxu1 %v10678_v53  ;;  %v14449_v8 = vmax.f32 %v12258_v59, 0.0  ;;  %v10704_v52 = vld [vmem:[#allocation6 + $0x28c] ss:$16 sps:$4 sm:$0xff]   ;;  %v10699_v0 = vld [vmem:[#allocation6 + $0x280] ss:$16 sps:$4 sm:$0xff]  }
 0x30e   :  { %v14450_v5 = vmax.f32 %v12266_v63, 0.0  ;;  %2704 = vmatprep.subr.bf16.mxu0 %v10683_v57  ;;  %2930 = vmatprep.subr.bf16.mxu1 %v10686_v58 }
 0x30f   :  { %v14448_v9 = vmax.f32 %v12271_v2, 0.0 }
 0x310   :  { %v1900_v16 = vpack.c.bf16 %v14450_v5, %v14447_v10 }
 0x311   :  { %v1901_v11 = vpack.c.bf16 %v14448_v9, %v14449_v8  ;;  %v1418_v12 = vpop.f32.mrb[8].mxu0  ;;  %v12281_v13 = vpop.f32.mrb[8].mxu1  ;;  %2705 = vmatpush1.bf16.msra.mxu0 %v10681_v3  ;;  %2931 = vmatpush1.bf16.msra.mxu1 %v10684_v4  ;;  %v10702_v3 = vld [vmem:[#allocation6 + $0x288] ss:$16 sps:$4 sm:$0xff]   ;;  %v10728_v9 = vld [vmem:[#allocation6 + $0x30c] ss:$16 sps:$4 sm:$0xff]  }
 0x312   :  { %v1420_v17 = vpop.f32.mrb[9].mxu0  ;;  %v12287_v18 = vpop.f32.mrb[9].mxu1  ;;  %2706 = vmatprep.subr.bf16.mxu0 %v10689_v6  ;;  %2932 = vmatprep.subr.bf16.mxu1 %v10692_v7  ;;  %v12295_v24 = vadd.f32 %v1418_v12, %v12219_v32  ;;  %v10710_v12 = vld [vmem:[#allocation6 + $0x2ac] ss:$16 sps:$4 sm:$0xff]  }
 0x313   :  { %v12290_v21 = vadd.f32 %v1420_v17, %v12215_v31  ;;  %v1422_v22 = vpop.f32.mrb[10].mxu0  ;;  %v12292_v23 = vpop.f32.mrb[10].mxu1  ;;  %2631 = vmatprep.mubr.bf16.mxu0 %v1901_v11  ;;  %2857 = vmatprep.mubr.bf16.mxu1 %v1901_v11  ;;  %v10707_v11 = vld [vmem:[#allocation6 + $0x2a4] ss:$16 sps:$4 sm:$0xff]  }
 0x314   :  { %14600 = vst [vmem:[#allocation63_spill] sm:$0xff] %v12295_v24  ;;  %v12298_v25 = vadd.f32 %v1422_v22, %v12219_v32  ;;  %v1424_v26 = vpop.f32.mrb[11].mxu0  ;;  %v12300_v33 = vpop.f32.mrb[11].mxu1  ;;  %2632 = vmatmul.mubr.bf16.gmra.mrb[36].mxu0 %v1900_v16  ;;  %2858 = vmatmul.mubr.bf16.gmra.mrb[36].mxu1 %v1900_v16  ;;  %v14439_v55 = vmax.f32 %v12295_v24, 0.0 }
 0x315   :  { %14599 = vst [vmem:[#allocation62_spill] sm:$0xff] %v12290_v21  ;;  %v12303_v35 = vadd.f32 %v1424_v26, %v12215_v31  ;;  %2707 = vmatpush1.bf16.msra.mxu0 %v10687_v14  ;;  %2933 = vmatpush1.bf16.msra.mxu1 %v10690_v15  ;;  %v14441_v53 = vmax.f32 %v12290_v21, 0.0 }
 0x316   :  { %v14442_v49 = vmax.f32 %v12298_v25, 0.0  ;;  %2708 = vmatprep.subr.bf16.mxu0 %v10695_v19  ;;  %2934 = vmatprep.subr.bf16.mxu1 %v10698_v20 }
 0x317   :  { %14601 = vst [vmem:[#allocation64_spill] sm:$0xff] %v12303_v35  ;;  %v14440_v54 = vmax.f32 %v12303_v35, 0.0 }
 0x318   :  { %v1904_v4 = vpack.c.bf16 %v14442_v49, %v14439_v55  ;;  %v10722_v49 = vld [vmem:[#allocation6 + $0x2ec] ss:$16 sps:$4 sm:$0xff]  }
 0x319   :  { %v1905_v57 = vpack.c.bf16 %v14440_v54, %v14441_v53  ;;  %v1428_v58 = vpop.f32.mrb[12].mxu0  ;;  %v12313_v60 = vpop.f32.mrb[12].mxu1  ;;  %2709 = vmatpush1.bf16.msra.mxu0 %v10693_v38  ;;  %2935 = vmatpush1.bf16.msra.mxu1 %v10696_v42  ;;  %v10705_v38 = vld [vmem:[#allocation6 + $0x2a0] ss:$16 sps:$4 sm:$0xff]   ;;  %v10708_v42 = vld [vmem:[#allocation6 + $0x2a8] ss:$16 sps:$4 sm:$0xff]  }
 0x31a   :  { %v1430_v6 = vpop.f32.mrb[13].mxu0  ;;  %v12319_v7 = vpop.f32.mrb[13].mxu1  ;;  %2710 = vmatprep.subr.bf16.mxu0 %v10701_v50  ;;  %2936 = vmatprep.subr.bf16.mxu1 %v10704_v52  ;;  %v12327_v17 = vadd.f32 %v1428_v58, %v12219_v32  ;;  %v10713_v52 = vld [vmem:[#allocation6 + $0x2c4] ss:$16 sps:$4 sm:$0xff]  }
 0x31b   :  { %v12322_v14 = vadd.f32 %v1430_v6, %v12215_v31  ;;  %v1432_v15 = vpop.f32.mrb[14].mxu0  ;;  %v12324_v16 = vpop.f32.mrb[14].mxu1  ;;  %2641 = vmatprep.mubr.bf16.mxu0 %v1905_v57  ;;  %2867 = vmatprep.mubr.bf16.mxu1 %v1905_v57  ;;  %v10716_v57 = vld [vmem:[#allocation6 + $0x2cc] ss:$16 sps:$4 sm:$0xff]   ;;  %v10719_v53 = vld [vmem:[#allocation6 + $0x2e4] ss:$16 sps:$4 sm:$0xff]  }
 0x31c   :  { %14603 = vst [vmem:[#allocation66_spill] sm:$0xff] %v12327_v17  ;;  %v12330_v19 = vadd.f32 %v1432_v15, %v12219_v32  ;;  %v1434_v20 = vpop.f32.mrb[15].mxu0  ;;  %v12332_v22 = vpop.f32.mrb[15].mxu1  ;;  %2642 = vmatmul.mubr.bf16.gmra.mrb[40].mxu0 %v1904_v4  ;;  %2868 = vmatmul.mubr.bf16.gmra.mrb[40].mxu1 %v1904_v4  ;;  %v14445_v15 = vmax.f32 %v12327_v17, 0.0 }
 0x31d   :  { %14602 = vst [vmem:[#allocation65_spill] sm:$0xff] %v12322_v14  ;;  %v12335_v26 = vadd.f32 %v1434_v20, %v12215_v31  ;;  %2711 = vmatpush1.bf16.msra.mxu0 %v10699_v0  ;;  %2937 = vmatpush1.bf16.msra.mxu1 %v10702_v3  ;;  %v14444_v58 = vmax.f32 %v12322_v14, 0.0 }
 0x31e   :  { %14604 = vst [vmem:[#allocation67_spill] sm:$0xff] %v12330_v19  ;;  %v14446_v50 = vmax.f32 %v12330_v19, 0.0  ;;  %2712 = vmatprep.subr.bf16.mxu0 %v10707_v11  ;;  %2938 = vmatprep.subr.bf16.mxu1 %v10710_v12  ;;  %v10711_v11 = vld [vmem:[#allocation6 + $0x2c0] ss:$16 sps:$4 sm:$0xff]   ;;  %v10714_v12 = vld [vmem:[#allocation6 + $0x2c8] ss:$16 sps:$4 sm:$0xff]  }
 0x31f   :  { %14605 = vst [vmem:[#allocation68_spill] sm:$0xff] %v12335_v26  ;;  %v14443_v6 = vmax.f32 %v12335_v26, 0.0 }
 0x320   :  { %v1908_v20 = vpack.c.bf16 %v14446_v50, %v14445_v15 }
 0x321   :  { %v1909_v0 = vpack.c.bf16 %v14443_v6, %v14444_v58  ;;  %v1438_v3 = vpop.f32.mrb[16].mxu0  ;;  %v12345_v4 = vpop.f32.mrb[16].mxu1  ;;  %2713 = vmatpush1.bf16.msra.mxu0 %v10705_v38  ;;  %2939 = vmatpush1.bf16.msra.mxu1 %v10708_v42 }
 0x322   :  { %v1440_v55 = vpop.f32.mrb[17].mxu0  ;;  %v12351_v54 = vpop.f32.mrb[17].mxu1  ;;  %2714 = vmatprep.subr.bf16.mxu0 %v10713_v52  ;;  %2940 = vmatprep.subr.bf16.mxu1 %v10716_v57  ;;  %v12359_v42 = vadd.f32 %v1438_v3, %v12219_v32  ;;  %v10720_v57 = vld [vmem:[#allocation6 + $0x2e8] ss:$16 sps:$4 sm:$0xff]   ;;  %v10725_v3 = vld [vmem:[#allocation6 + $0x304] ss:$16 sps:$4 sm:$0xff]  }
 0x323   :  { %v12354_v6 = vadd.f32 %v1440_v55, %v12215_v31  ;;  %v1442_v58 = vpop.f32.mrb[18].mxu0  ;;  %v12356_v38 = vpop.f32.mrb[18].mxu1  ;;  %2651 = vmatprep.mubr.bf16.mxu0 %v1909_v0  ;;  %2877 = vmatprep.mubr.bf16.mxu1 %v1909_v0  ;;  %v10717_v55 = vld [vmem:[#allocation6 + $0x2e0] ss:$16 sps:$4 sm:$0xff]  }
 0x324   :  { %14607 = vst [vmem:[#allocation70_spill] sm:$0xff] %v12359_v42  ;;  %v12362_v15 = vadd.f32 %v1442_v58, %v12219_v32  ;;  %v1444_v50 = vpop.f32.mrb[19].mxu0  ;;  %v12364_v10 = vpop.f32.mrb[19].mxu1  ;;  %2652 = vmatmul.mubr.bf16.gmra.mrb[44].mxu0 %v1908_v20  ;;  %2878 = vmatmul.mubr.bf16.gmra.mrb[44].mxu1 %v1908_v20  ;;  %v14457_v5 = vmax.f32 %v12359_v42, 0.0 }
 0x325   :  { %14606 = vst [vmem:[#allocation69_spill] sm:$0xff] %v12354_v6  ;;  %v12367_v52 = vadd.f32 %v1444_v50, %v12215_v31  ;;  %2715 = vmatpush1.bf16.msra.mxu0 %v10711_v11  ;;  %2941 = vmatpush1.bf16.msra.mxu1 %v10714_v12  ;;  %v14456_v58 = vmax.f32 %v12354_v6, 0.0 }
 0x326   :  { %14608 = vst [vmem:[#allocation71_spill] sm:$0xff] %v12362_v15  ;;  %v14458_v0 = vmax.f32 %v12362_v15, 0.0  ;;  %2716 = vmatprep.subr.bf16.mxu0 %v10719_v53  ;;  %2942 = vmatprep.subr.bf16.mxu1 %v10722_v49  ;;  %v10723_v53 = vld [vmem:[#allocation6 + $0x300] ss:$16 sps:$4 sm:$0xff]   ;;  %v10726_v49 = vld [vmem:[#allocation6 + $0x308] ss:$16 sps:$4 sm:$0xff]  }
 0x327   :  { %14609 = vst [vmem:[#allocation72_spill] sm:$0xff] %v12367_v52  ;;  %v14455_v8 = vmax.f32 %v12367_v52, 0.0  ;;  %v10740_v52 = vld [vmem:[#allocation6 + $0x34c] ss:$16 sps:$4 sm:$0xff]  }
 0x328   :  { %v1912_v20 = vpack.c.bf16 %v14458_v0, %v14457_v5 }
 0x329   :  { %v1913_v50 = vpack.c.bf16 %v14455_v8, %v14456_v58  ;;  %v1448_v11 = vpop.f32.mrb[20].mxu0  ;;  %v12377_v12 = vpop.f32.mrb[20].mxu1  ;;  %2717 = vmatpush1.bf16.msra.mxu0 %v10717_v55  ;;  %2943 = vmatpush1.bf16.msra.mxu1 %v10720_v57 }
 0x32a   :  { %v1450_v48 = vpop.f32.mrb[21].mxu0  ;;  %v12383_v47 = vpop.f32.mrb[21].mxu1  ;;  %2718 = vmatprep.subr.bf16.mxu0 %v10725_v3  ;;  %2944 = vmatprep.subr.bf16.mxu1 %v10728_v9  ;;  %v12391_v57 = vadd.f32 %v1448_v11, %v12219_v32  ;;  %v10732_v3 = vld [vmem:[#allocation6 + $0x328] ss:$16 sps:$4 sm:$0xff]   ;;  %v10737_v11 = vld [vmem:[#allocation6 + $0x344] ss:$16 sps:$4 sm:$0xff]  }
 0x32b   :  { %v12386_v8 = vadd.f32 %v1450_v48, %v12215_v31  ;;  %v1452_v58 = vpop.f32.mrb[22].mxu0  ;;  %v12388_v55 = vpop.f32.mrb[22].mxu1  ;;  %2661 = vmatprep.mubr.bf16.mxu0 %v1913_v50  ;;  %2887 = vmatprep.mubr.bf16.mxu1 %v1913_v50  ;;  %v10729_v48 = vld [vmem:[#allocation6 + $0x320] ss:$16 sps:$4 sm:$0xff]  }
 0x32c   :  { %14611 = vst [vmem:[#allocation74_spill] sm:$0xff] %v12391_v57  ;;  %v12394_v5 = vadd.f32 %v1452_v58, %v12219_v32  ;;  %v1454_v0 = vpop.f32.mrb[23].mxu0  ;;  %v12396_v42 = vpop.f32.mrb[23].mxu1  ;;  %2662 = vmatmul.mubr.bf16.gmra.mrb[48].mxu0 %v1912_v20  ;;  %2888 = vmatmul.mubr.bf16.gmra.mrb[48].mxu1 %v1912_v20  ;;  %v14469_v15 = vmax.f32 %v12391_v57, 0.0 }
 0x32d   :  { %14610 = vst [vmem:[#allocation73_spill] sm:$0xff] %v12386_v8  ;;  %v12399_v9 = vadd.f32 %v1454_v0, %v12215_v31  ;;  %2719 = vmatpush1.bf16.msra.mxu0 %v10723_v53  ;;  %2945 = vmatpush1.bf16.msra.mxu1 %v10726_v49  ;;  %v14468_v58 = vmax.f32 %v12386_v8, 0.0  ;;  %v10743_v8 = vld [vmem:[#allocation6 + $0x364] ss:$16 sps:$4 sm:$0xff]  }
 0x32e   :  { %14612 = vst [vmem:[#allocation75_spill] sm:$0xff] %v12394_v5  ;;  %v14470_v50 = vmax.f32 %v12394_v5, 0.0  ;;  %2720 = vmatprep.subr.bf16.mxu0 %v10731_v46  ;;  %2946 = vmatprep.subr.bf16.mxu1 %v10734_v45  ;;  %v10735_v46 = vld [vmem:[#allocation6 + $0x340] ss:$16 sps:$4 sm:$0xff]   ;;  %v10738_v45 = vld [vmem:[#allocation6 + $0x348] ss:$16 sps:$4 sm:$0xff]  }
 0x32f   :  { %14613 = vst [vmem:[#allocation76_spill] sm:$0xff] %v12399_v9  ;;  %v14467_v6 = vmax.f32 %v12399_v9, 0.0  ;;  %v10746_v9 = vld [vmem:[#allocation6 + $0x36c] ss:$16 sps:$4 sm:$0xff]  }
 0x330   :  { %v1916_v20 = vpack.c.bf16 %v14470_v50, %v14469_v15  ;;  %v10752_v5 = vld [vmem:[#allocation6 + $0x38c] ss:$16 sps:$4 sm:$0xff]  }
 0x331   :  { %v1917_v0 = vpack.c.bf16 %v14467_v6, %v14468_v58  ;;  %v1458_v53 = vpop.f32.mrb[24].mxu0  ;;  %v12409_v49 = vpop.f32.mrb[24].mxu1  ;;  %2721 = vmatpush1.bf16.msra.mxu0 %v10729_v48  ;;  %2947 = vmatpush1.bf16.msra.mxu1 %v10732_v3 }
 0x332   :  { %v1460_v17 = vpop.f32.mrb[25].mxu0  ;;  %v12415_v26 = vpop.f32.mrb[25].mxu1  ;;  %2722 = vmatprep.subr.bf16.mxu0 %v10737_v11  ;;  %2948 = vmatprep.subr.bf16.mxu1 %v10740_v52  ;;  %v12423_v3 = vadd.f32 %v1458_v53, %v12219_v32  ;;  %v12431_v52 = vsub.s32 3, %v12203_v27  ;;  %v10741_v11 = vld [vmem:[#allocation6 + $0x360] ss:$16 sps:$4 sm:$0xff]  }
 0x333   :  { %v12418_v6 = vadd.f32 %v1460_v17, %v12215_v31  ;;  %v1462_v58 = vpop.f32.mrb[26].mxu0  ;;  %v12420_v48 = vpop.f32.mrb[26].mxu1  ;;  %2671 = vmatprep.mubr.bf16.mxu0 %v1917_v0  ;;  %2897 = vmatprep.mubr.bf16.mxu1 %v1917_v0  ;;  %v10744_v0 = vld [vmem:[#allocation6 + $0x368] ss:$16 sps:$4 sm:$0xff]  }
 0x334   :  { %14615 = vst [vmem:[#allocation78_spill] sm:$0xff] %v12423_v3  ;;  %v12426_v15 = vadd.f32 %v1462_v58, %v12219_v32  ;;  %v1464_v50 = vpop.f32.mrb[27].mxu0  ;;  %v12428_v57 = vpop.f32.mrb[27].mxu1  ;;  %2672 = vmatmul.mubr.bf16.gmra.mrb[52].mxu0 %v1916_v20  ;;  %2898 = vmatmul.mubr.bf16.gmra.mrb[52].mxu1 %v1916_v20  ;;  %14617 = vst [vmem:[#allocation80_spill] sm:$0xff] %v12431_v52  ;;  %v10749_v58 = vld [vmem:[#allocation6 + $0x384] ss:$16 sps:$4 sm:$0xff]  }
 0x335   :  { %14614 = vst [vmem:[#allocation77_spill] sm:$0xff] %v12418_v6  ;;  %v12434_v17 = vadd.f32 %v1464_v50, %v12215_v31  ;;  %2723 = vmatpush1.bf16.msra.mxu0 %v10735_v46  ;;  %2949 = vmatpush1.bf16.msra.mxu1 %v10738_v45  ;;  %v14483_v14 = vmax.f32 %v12418_v6, 0.0  ;;  %v14484_v19 = vmax.f32 %v12423_v3, 0.0  ;;  %v12442_v50 = vrot.slane %v12211_v30, %v12431_v52  ;;  %v10750_v53 = vld [vmem:[#allocation6 + $0x388] ss:$16 sps:$4 sm:$0xff]  }
 0x336   :  { %14616 = vst [vmem:[#allocation79_spill] sm:$0xff] %v12426_v15  ;;  %2724 = vmatprep.subr.bf16.mxu0 %v10743_v8  ;;  %2950 = vmatprep.subr.bf16.mxu1 %v10746_v9  ;;  %v10747_v9 = vld [vmem:[#allocation6 + $0x380] ss:$16 sps:$4 sm:$0xff]   ;;  %v14619_v24 = vmax.f32 %v12426_v15, 0.0  ;;  %v10755_v6 = vld [vmem:[#allocation6 + $0x3a4] ss:$16 sps:$4 sm:$0xff]  }
 0x337   :  { %14618 = vst [vmem:[#allocation81_spill] sm:$0xff] %v12434_v17  ;;  %v14482_v20 = vmax.f32 %v12434_v17, 0.0  ;;  %v10758_v17 = vld [vmem:[#allocation6 + $0x3ac] ss:$16 sps:$4 sm:$0xff]   ;;  %v10762_v15 = vld [vmem:[#allocation6 + $0x3c8] ss:$16 sps:$4 sm:$0xff]  }
 0x338   :  { %v1920_v35 = vpack.c.bf16 %v14619_v24, %v14484_v19  ;;  %v12466_v24 = vsub.s32 2, %v12203_v27  ;;  %v10753_v27 = vld [vmem:[#allocation6 + $0x3a0] ss:$16 sps:$4 sm:$0xff]  }
 0x339   :  { %v1921_v46 = vpack.c.bf16 %v14482_v20, %v14483_v14  ;;  %v1468_v45 = vpop.f32.mrb[28].mxu0  ;;  %v12448_v8 = vpop.f32.mrb[28].mxu1  ;;  %2725 = vmatpush1.bf16.msra.mxu0 %v10741_v11  ;;  %2951 = vmatpush1.bf16.msra.mxu1 %v10744_v0  ;;  %v12458_v20 = vadd.f32 %v12236_v43, %v12442_v50 }
 0x33a   :  { %v1470_v21 = vpop.f32.mrb[29].mxu0  ;;  %v12454_v52 = vpop.f32.mrb[29].mxu1  ;;  %2726 = vmatprep.subr.bf16.mxu0 %v10749_v58  ;;  %2952 = vmatprep.subr.bf16.mxu1 %v10752_v5  ;;  %14620 = vst [vmem:[#allocation82_spill] sm:$0xff] %v12466_v24  ;;  %v12469_v58 = vadd.f32 %v1468_v45, %v12219_v32  ;;  %v10756_v45 = vld [vmem:[#allocation6 + $0x3a8] ss:$16 sps:$4 sm:$0xff]  }
 0x33b   :  { %v12461_v11 = vadd.f32 %v1470_v21, %v12215_v31  ;;  %v1472_v0 = vpop.f32.mrb[30].mxu0  ;;  %v12463_v14 = vpop.f32.mrb[30].mxu1  ;;  %2681 = vmatprep.mubr.bf16.mxu0 %v1921_v46  ;;  %2907 = vmatprep.mubr.bf16.mxu1 %v1921_v46  ;;  %v12478_v21 = vadd.f32 %v12223_v36, %v12442_v50 }
 0x33c   :  { %v12472_v5 = vadd.f32 %v1472_v0, %v12219_v32  ;;  %v1474_v19 = vpop.f32.mrb[31].mxu0  ;;  %v12474_v43 = vpop.f32.mrb[31].mxu1  ;;  %2682 = vmatmul.mubr.bf16.gmra.mrb[56].mxu0 %v1920_v35  ;;  %2908 = vmatmul.mubr.bf16.gmra.mrb[56].mxu1 %v1920_v35  ;;  %v10761_v32 = vld [vmem:[#allocation6 + $0x3c4] ss:$16 sps:$4 sm:$0xff]   ;;  %v10764_v0 = vld [vmem:[#allocation6 + $0x3cc] ss:$16 sps:$4 sm:$0xff]  }
 0x33d   :  { %v12481_v46 = vadd.f32 %v1474_v19, %v12215_v31  ;;  %2727 = vmatpush1.bf16.msra.mxu0 %v10747_v9  ;;  %2953 = vmatpush1.bf16.msra.mxu1 %v10750_v53  ;;  %v14489_v35 = vmax.f32 %v12461_v11, 0.0  ;;  %v12489_v31 = vrot.slane %v12211_v30, %v12466_v24  ;;  %v14491_v19 = vmax.f32 %v12469_v58, 0.0 }
 0x33e   :  { %v14496_v3 = vmax.f32 %v12472_v5, 0.0  ;;  %2728 = vmatprep.subr.bf16.mxu0 %v10755_v6  ;;  %2954 = vmatprep.subr.bf16.mxu1 %v10758_v17  ;;  %v14490_v53 = vmax.f32 %v12478_v21, 0.0  ;;  %v10759_v17 = vld [vmem:[#allocation6 + $0x3c0] ss:$16 sps:$4 sm:$0xff]  }
 0x33f   :  { %14621 = vst [vmem:[#allocation83_spill] sm:$0xff] %v12481_v46  ;;  %v14488_v36 = vmax.f32 %v12481_v46, 0.0  ;;  %v12499_v9 = vadd.f32 %v12228_v39, %v12489_v31  ;;  %v14622_v46 = vmax.f32 %v12458_v20, 0.0  ;;  %v10767_v39 = vld [vmem:[#allocation6 + $0x3e4] ss:$16 sps:$4 sm:$0xff]  }
 0x340   :  { %v1924_v30 = vpack.c.bf16 %v14496_v3, %v14491_v19  ;;  %v10791_v3 = vld [vmem:[#allocation9 + $0x64] ss:$16 sps:$4 sm:$0xff]  }
 0x341   :  { %v1925_v6 = vpack.c.bf16 %v14488_v36, %v14489_v35  ;;  %2729 = vmatpush1.bf16.msra.mxu0 %v10753_v27  ;;  %2955 = vmatpush1.bf16.msra.mxu1 %v10756_v45  ;;  %v1899_v36 = vpack.c.bf16 %v14622_v46, %v14490_v53  ;;  %v12511_v27 = vadd.f32 %v12268_v1, %v12442_v50  ;;  %v10770_v45 = vld [vmem:[#allocation6 + $0x3ec] ss:$16 sps:$4 sm:$0xff]   ;;  %v10765_v46 = vld [vmem:[#allocation6 + $0x3e0] ss:$16 sps:$4 sm:$0xff]   ;;  %v14495_v1 = vmax.f32 %v12499_v9, 0.0 }
 0x342   :  { %2730 = vmatprep.subr.bf16.mxu0 %v10761_v32  ;;  %2956 = vmatprep.subr.bf16.mxu1 %v10764_v0  ;;  %v12515_v35 = vadd.f32 %v12221_v34, %v12489_v31  ;;  %v12519_v32 = vadd.f32 %v12255_v56, %v12442_v50  ;;  %v10768_v0 = vld [vmem:[#allocation6 + $0x3e8] ss:$16 sps:$4 sm:$0xff]   ;;  %v10776_v34 = vld [vmem:[#allocation9 + $0xc] ss:$16 sps:$4 sm:$0xff]  }
 0x343   :  { %2691 = vmatprep.mubr.bf16.mxu0 %v1925_v6  ;;  %2917 = vmatprep.mubr.bf16.mxu1 %v1925_v6  ;;  %v10773_v6 = vld [vmem:[#allocation9 + $0x4] ss:$16 sps:$4 sm:$0xff]   ;;  %v14494_v53 = vmax.f32 %v12511_v27, 0.0 }
 0x344   :  { %2692 = vmatmul.mubr.bf16.gmra.mrb[60].mxu0 %v1924_v30  ;;  %2918 = vmatmul.mubr.bf16.gmra.mrb[60].mxu1 %v1924_v30  ;;  %v14492_v30 = vmax.f32 %v12515_v35, 0.0  ;;  %v14493_v19 = vmax.f32 %v12519_v32, 0.0 }
 0x345   :  { %2731 = vmatpush1.bf16.msra.mxu0 %v10759_v17  ;;  %2734 = vmatprep.mubr.bf16.mxu0 %v1899_v36 }
 0x346   :  { %2957 = vmatpush1.bf16.msra.mxu1 %v10762_v15  ;;  %2960 = vmatprep.mubr.bf16.mxu1 %v1899_v36  ;;  %v1898_v56 = vpack.c.bf16 %v14495_v1, %v14492_v30  ;;  %v12531_v15 = vadd.f32 %v12260_v61, %v12489_v31  ;;  %v10771_v36 = vld [vmem:[#allocation9] ss:$16 sps:$4 sm:$0xff]   ;;  %v1903_v17 = vpack.c.bf16 %v14494_v53, %v14493_v19  ;;  %v10782_v61 = vld [vmem:[#allocation9 + $0x2c] ss:$16 sps:$4 sm:$0xff]   ;;  %v10780_v19 = vld [vmem:[#allocation9 + $0x28] ss:$16 sps:$4 sm:$0xff]  }
 0x347   :  { %2732 = vmatprep.subr.bf16.mxu0 %v10767_v39  ;;  %2958 = vmatprep.subr.bf16.mxu1 %v10770_v45  ;;  %v12539_v39 = vadd.f32 %v12300_v33, %v12442_v50  ;;  %v10774_v45 = vld [vmem:[#allocation9 + $0x8] ss:$16 sps:$4 sm:$0xff]   ;;  %v12543_v30 = vadd.f32 %v12249_v51, %v12489_v31  ;;  %v10777_v33 = vld [vmem:[#allocation9 + $0x20] ss:$16 sps:$4 sm:$0xff]   ;;  %v10785_v51 = vld [vmem:[#allocation9 + $0x44] ss:$16 sps:$4 sm:$0xff]  }
 0x348   :  { %v10788_v1 = vld [vmem:[#allocation9 + $0x4c] ss:$16 sps:$4 sm:$0xff]  }
 0x349   :  { %2733 = vmatpush1.bf16.msra.mxu0 %v10765_v46  ;;  %v10779_v46 = vld [vmem:[#allocation9 + $0x24] ss:$16 sps:$4 sm:$0xff]   ;;  %v14497_v53 = vmax.f32 %v12543_v30, 0.0 }
 0x34a   :  { %2959 = vmatpush1.bf16.msra.mxu1 %v10768_v0  ;;  %3991 = vmatprep.subr.bf16.mxu0 %v10773_v6  ;;  %v12547_v0 = vadd.f32 %v12287_v18, %v12442_v50  ;;  %v14500_v6 = vmax.f32 %v12531_v15, 0.0 }
 0x34b   :  { %4217 = vmatprep.subr.bf16.mxu1 %v10776_v34  ;;  %v14499_v34 = vmax.f32 %v12539_v39, 0.0 }
 0x34c   :  { %2735 = vmatmul.mubr.bf16.vlgmr.msra.gmra.mrb[32].mxu0 %v1898_v56  ;;  %v14498_v18 = vmax.f32 %v12547_v0, 0.0 }
 0x34d   :  { %2961 = vmatmul.mubr.bf16.vlgmr.msra.gmra.mrb[32].mxu1 %v1898_v56  ;;  %2744 = vmatprep.mubr.bf16.mxu0 %v1903_v17  ;;  %v1902_v56 = vpack.c.bf16 %v14500_v6, %v14497_v53  ;;  %v12571_v53 = vadd.f32 %v12281_v13, %v12489_v31  ;;  %v10792_v13 = vld [vmem:[#allocation9 + $0x68] ss:$16 sps:$4 sm:$0xff]   ;;  %v10803_v6 = vld [vmem:[#allocation9 + $0xa4] ss:$16 sps:$4 sm:$0xff]  }
 0x34e   :  { %2970 = vmatprep.mubr.bf16.mxu1 %v1903_v17  ;;  %3992 = vmatpush1.bf16.msra.mxu0 %v10771_v36  ;;  %v12559_v36 = vadd.f32 %v12292_v23, %v12489_v31  ;;  %v10783_v17 = vld [vmem:[#allocation9 + $0x40] ss:$16 sps:$4 sm:$0xff]   ;;  %v10794_v23 = vld [vmem:[#allocation9 + $0x6c] ss:$16 sps:$4 sm:$0xff]  }
 0x34f   :  { %4218 = vmatpush1.bf16.msra.mxu1 %v10774_v45  ;;  %3993 = vmatprep.subr.bf16.mxu0 %v10779_v46  ;;  %v1907_v45 = vpack.c.bf16 %v14499_v34, %v14498_v18  ;;  %v12567_v46 = vadd.f32 %v12332_v22, %v12442_v50  ;;  %v10797_v18 = vld [vmem:[#allocation9 + $0x84] ss:$16 sps:$4 sm:$0xff]   ;;  %v10800_v34 = vld [vmem:[#allocation9 + $0x8c] ss:$16 sps:$4 sm:$0xff]  }
 0x350   :  { %4219 = vmatprep.subr.bf16.mxu1 %v10782_v61  ;;  %v10786_v61 = vld [vmem:[#allocation9 + $0x48] ss:$16 sps:$4 sm:$0xff]   ;;  %v14504_v22 = vmax.f32 %v12559_v36, 0.0 }
 0x352   :  { %3994 = vmatpush1.bf16.msra.mxu0 %v10777_v33  ;;  %v12575_v33 = vadd.f32 %v12319_v7, %v12442_v50 }
 0x353   :  { %4220 = vmatpush1.bf16.msra.mxu1 %v10780_v19  ;;  %3995 = vmatprep.subr.bf16.mxu0 %v10785_v51  ;;  %v10789_v19 = vld [vmem:[#allocation9 + $0x60] ss:$16 sps:$4 sm:$0xff]   ;;  %v14503_v51 = vmax.f32 %v12567_v46, 0.0 }
 0x354   :  { %2745 = vmatmul.mubr.bf16.gmra.mrb[36].mxu0 %v1902_v56  ;;  %4221 = vmatprep.subr.bf16.mxu1 %v10788_v1  ;;  %v14501_v1 = vmax.f32 %v12571_v53, 0.0  ;;  %v14502_v7 = vmax.f32 %v12575_v33, 0.0 }
 0x355   :  { %2971 = vmatmul.mubr.bf16.gmra.mrb[36].mxu1 %v1902_v56  ;;  %2754 = vmatprep.mubr.bf16.mxu0 %v1907_v45 }
 0x356   :  { %2980 = vmatprep.mubr.bf16.mxu1 %v1907_v45  ;;  %3996 = vmatpush1.bf16.msra.mxu0 %v10783_v17  ;;  %v1906_v56 = vpack.c.bf16 %v14504_v22, %v14501_v1  ;;  %v12587_v17 = vadd.f32 %v12324_v16, %v12489_v31  ;;  %v10795_v45 = vld [vmem:[#allocation9 + $0x80] ss:$16 sps:$4 sm:$0xff]   ;;  %v12599_v1 = vadd.f32 %v12313_v60, %v12489_v31  ;;  %v10806_v16 = vld [vmem:[#allocation9 + $0xac] ss:$16 sps:$4 sm:$0xff]   ;;  %v10804_v60 = vld [vmem:[#allocation9 + $0xa8] ss:$16 sps:$4 sm:$0xff]  }
 0x357   :  { %4222 = vmatpush1.bf16.msra.mxu1 %v10786_v61  ;;  %3997 = vmatprep.subr.bf16.mxu0 %v10791_v3  ;;  %v1911_v3 = vpack.c.bf16 %v14503_v51, %v14502_v7  ;;  %v12595_v61 = vadd.f32 %v12364_v10, %v12442_v50  ;;  %v10809_v7 = vld [vmem:[#allocation9 + $0xc4] ss:$16 sps:$4 sm:$0xff]   ;;  %v10812_v51 = vld [vmem:[#allocation9 + $0xcc] ss:$16 sps:$4 sm:$0xff]  }
 0x358   :  { %4223 = vmatprep.subr.bf16.mxu1 %v10794_v23  ;;  %v10798_v23 = vld [vmem:[#allocation9 + $0x88] ss:$16 sps:$4 sm:$0xff]   ;;  %14624 = vst [vmem:[#allocation85_spill] sm:$0xff] %v12599_v1  ;;  %v14508_v10 = vmax.f32 %v12587_v17, 0.0  ;;  %v10815_v22 = vld [vmem:[#allocation9 + $0xe4] ss:$16 sps:$4 sm:$0xff]  }
 0x359   :  { %14623 = vst [vmem:[#allocation84_spill] sm:$0xff] %v12595_v61 }
 0x35a   :  { %3998 = vmatpush1.bf16.msra.mxu0 %v10789_v19  ;;  %v12603_v19 = vadd.f32 %v12351_v54, %v12442_v50 }
 0x35b   :  { %4224 = vmatpush1.bf16.msra.mxu1 %v10792_v13  ;;  %3999 = vmatprep.subr.bf16.mxu0 %v10797_v18  ;;  %v10801_v18 = vld [vmem:[#allocation9 + $0xa0] ss:$16 sps:$4 sm:$0xff]   ;;  %v14507_v13 = vmax.f32 %v12595_v61, 0.0 }
 0x35c   :  { %2755 = vmatmul.mubr.bf16.gmra.mrb[40].mxu0 %v1906_v56  ;;  %4225 = vmatprep.subr.bf16.mxu1 %v10800_v34  ;;  %14625 = vst [vmem:[#allocation86_spill] sm:$0xff] %v12603_v19  ;;  %v14505_v34 = vmax.f32 %v12599_v1, 0.0  ;;  %v14506_v54 = vmax.f32 %v12603_v19, 0.0  ;;  %v10909_v19 = vld [vmem:[#allocation9 + $0x2e0] ss:$16 sps:$4 sm:$0xff]  }
 0x35d   :  { %2981 = vmatmul.mubr.bf16.gmra.mrb[40].mxu1 %v1906_v56  ;;  %2764 = vmatprep.mubr.bf16.mxu0 %v1911_v3 }
 0x35e   :  { %2990 = vmatprep.mubr.bf16.mxu1 %v1911_v3  ;;  %4000 = vmatpush1.bf16.msra.mxu0 %v10795_v45  ;;  %v1910_v56 = vpack.c.bf16 %v14508_v10, %v14505_v34  ;;  %v12615_v45 = vadd.f32 %v12356_v38, %v12489_v31  ;;  %v10807_v3 = vld [vmem:[#allocation9 + $0xc0] ss:$16 sps:$4 sm:$0xff]   ;;  %v12627_v34 = vadd.f32 %v12345_v4, %v12489_v31  ;;  %v10818_v38 = vld [vmem:[#allocation9 + $0xec] ss:$16 sps:$4 sm:$0xff]   ;;  %v10816_v4 = vld [vmem:[#allocation9 + $0xe8] ss:$16 sps:$4 sm:$0xff]  }
 0x35f   :  { %4226 = vmatpush1.bf16.msra.mxu1 %v10798_v23  ;;  %4001 = vmatprep.subr.bf16.mxu0 %v10803_v6  ;;  %v1915_v6 = vpack.c.bf16 %v14507_v13, %v14506_v54  ;;  %v12623_v23 = vadd.f32 %v12396_v42, %v12442_v50  ;;  %v10821_v54 = vld [vmem:[#allocation9 + $0x104] ss:$16 sps:$4 sm:$0xff]   ;;  %v10824_v13 = vld [vmem:[#allocation9 + $0x10c] ss:$16 sps:$4 sm:$0xff]  }
 0x360   :  { %4227 = vmatprep.subr.bf16.mxu1 %v10806_v16  ;;  %14626 = vst [vmem:[#allocation87_spill] sm:$0xff] %v12615_v45  ;;  %v10810_v16 = vld [vmem:[#allocation9 + $0xc8] ss:$16 sps:$4 sm:$0xff]   ;;  %14628 = vst [vmem:[#allocation89_spill] sm:$0xff] %v12627_v34  ;;  %v14512_v42 = vmax.f32 %v12615_v45, 0.0 }
 0x361   :  { %14627 = vst [vmem:[#allocation88_spill] sm:$0xff] %v12623_v23  ;;  %v10827_v10 = vld [vmem:[#allocation9 + $0x124] ss:$16 sps:$4 sm:$0xff]  }
 0x362   :  { %4002 = vmatpush1.bf16.msra.mxu0 %v10801_v18  ;;  %v12631_v18 = vadd.f32 %v12383_v47, %v12442_v50 }
 0x363   :  { %4228 = vmatpush1.bf16.msra.mxu1 %v10804_v60  ;;  %4003 = vmatprep.subr.bf16.mxu0 %v10809_v7  ;;  %v10813_v7 = vld [vmem:[#allocation9 + $0xe0] ss:$16 sps:$4 sm:$0xff]   ;;  %v14511_v60 = vmax.f32 %v12623_v23, 0.0 }
 0x364   :  { %2765 = vmatmul.mubr.bf16.gmra.mrb[44].mxu0 %v1910_v56  ;;  %4229 = vmatprep.subr.bf16.mxu1 %v10812_v51  ;;  %14629 = vst [vmem:[#allocation90_spill] sm:$0xff] %v12631_v18  ;;  %v14509_v51 = vmax.f32 %v12627_v34, 0.0  ;;  %v14510_v47 = vmax.f32 %v12631_v18, 0.0  ;;  %v10897_v18 = vld [vmem:[#allocation9 + $0x2a0] ss:$16 sps:$4 sm:$0xff]  }
 0x365   :  { %2991 = vmatmul.mubr.bf16.gmra.mrb[44].mxu1 %v1910_v56  ;;  %2774 = vmatprep.mubr.bf16.mxu0 %v1915_v6  ;;  %v14670_v34 = vld [vmem:[#allocation65_spill] sm:$0xff] }
 0x366   :  { %3000 = vmatprep.mubr.bf16.mxu1 %v1915_v6  ;;  %4004 = vmatpush1.bf16.msra.mxu0 %v10807_v3  ;;  %v1914_v56 = vpack.c.bf16 %v14512_v42, %v14509_v51  ;;  %v12643_v3 = vadd.f32 %v12388_v55, %v12489_v31  ;;  %v10819_v6 = vld [vmem:[#allocation9 + $0x100] ss:$16 sps:$4 sm:$0xff]   ;;  %v12655_v51 = vadd.f32 %v12377_v12, %v12489_v31  ;;  %v10830_v55 = vld [vmem:[#allocation9 + $0x12c] ss:$16 sps:$4 sm:$0xff]   ;;  %v10828_v12 = vld [vmem:[#allocation9 + $0x128] ss:$16 sps:$4 sm:$0xff]  }
 0x367   :  { %4230 = vmatpush1.bf16.msra.mxu1 %v10810_v16  ;;  %4005 = vmatprep.subr.bf16.mxu0 %v10815_v22  ;;  %v1919_v22 = vpack.c.bf16 %v14511_v60, %v14510_v47  ;;  %v12651_v16 = vadd.f32 %v12428_v57, %v12442_v50  ;;  %v10833_v47 = vld [vmem:[#allocation9 + $0x144] ss:$16 sps:$4 sm:$0xff]   ;;  %v10836_v60 = vld [vmem:[#allocation9 + $0x14c] ss:$16 sps:$4 sm:$0xff]   ;;  %v14671_v23 = vmax.f32 %v14670_v34, 0.0 }
 0x368   :  { %4231 = vmatprep.subr.bf16.mxu1 %v10818_v38  ;;  %14630 = vst [vmem:[#allocation91_spill] sm:$0xff] %v12643_v3  ;;  %v10822_v38 = vld [vmem:[#allocation9 + $0x108] ss:$16 sps:$4 sm:$0xff]   ;;  %14632 = vst [vmem:[#allocation93_spill] sm:$0xff] %v12655_v51  ;;  %v14522_v57 = vmax.f32 %v12643_v3, 0.0 }
 0x369   :  { %14631 = vst [vmem:[#allocation92_spill] sm:$0xff] %v12651_v16  ;;  %v10839_v42 = vld [vmem:[#allocation9 + $0x164] ss:$16 sps:$4 sm:$0xff]  }
 0x36a   :  { %4006 = vmatpush1.bf16.msra.mxu0 %v10813_v7  ;;  %v12659_v7 = vadd.f32 %v12415_v26, %v12442_v50 }
 0x36b   :  { %4232 = vmatpush1.bf16.msra.mxu1 %v10816_v4  ;;  %4007 = vmatprep.subr.bf16.mxu0 %v10821_v54  ;;  %v10825_v54 = vld [vmem:[#allocation9 + $0x120] ss:$16 sps:$4 sm:$0xff]   ;;  %v14515_v4 = vmax.f32 %v12651_v16, 0.0 }
 0x36c   :  { %2775 = vmatmul.mubr.bf16.gmra.mrb[48].mxu0 %v1914_v56  ;;  %4233 = vmatprep.subr.bf16.mxu1 %v10824_v13  ;;  %14633 = vst [vmem:[#allocation94_spill] sm:$0xff] %v12659_v7  ;;  %v14513_v13 = vmax.f32 %v12655_v51, 0.0  ;;  %v14514_v26 = vmax.f32 %v12659_v7, 0.0  ;;  %v14650_v51 = vmax.f32 %v12258_v59, 0.0 }
 0x36d   :  { %3001 = vmatmul.mubr.bf16.gmra.mrb[48].mxu1 %v1914_v56  ;;  %2784 = vmatprep.mubr.bf16.mxu0 %v1919_v22 }
 0x36e   :  { %3010 = vmatprep.mubr.bf16.mxu1 %v1919_v22  ;;  %4008 = vmatpush1.bf16.msra.mxu0 %v10819_v6  ;;  %v1918_v56 = vpack.c.bf16 %v14522_v57, %v14513_v13  ;;  %v12671_v6 = vadd.f32 %v12420_v48, %v12489_v31  ;;  %v10831_v22 = vld [vmem:[#allocation9 + $0x140] ss:$16 sps:$4 sm:$0xff]   ;;  %v12683_v13 = vadd.f32 %v12409_v49, %v12489_v31  ;;  %v10842_v48 = vld [vmem:[#allocation9 + $0x16c] ss:$16 sps:$4 sm:$0xff]   ;;  %v10840_v49 = vld [vmem:[#allocation9 + $0x168] ss:$16 sps:$4 sm:$0xff]  }
 0x36f   :  { %4234 = vmatpush1.bf16.msra.mxu1 %v10822_v38  ;;  %4009 = vmatprep.subr.bf16.mxu0 %v10827_v10  ;;  %v1923_v10 = vpack.c.bf16 %v14515_v4, %v14514_v26  ;;  %v12679_v38 = vadd.f32 %v12474_v43, %v12442_v50  ;;  %v10845_v26 = vld [vmem:[#allocation9 + $0x184] ss:$16 sps:$4 sm:$0xff]   ;;  %v10848_v4 = vld [vmem:[#allocation9 + $0x18c] ss:$16 sps:$4 sm:$0xff]  }
 0x370   :  { %4235 = vmatprep.subr.bf16.mxu1 %v10830_v55  ;;  %14634 = vst [vmem:[#allocation95_spill] sm:$0xff] %v12671_v6  ;;  %v10834_v55 = vld [vmem:[#allocation9 + $0x148] ss:$16 sps:$4 sm:$0xff]   ;;  %14636 = vst [vmem:[#allocation97_spill] sm:$0xff] %v12683_v13  ;;  %v14521_v43 = vmax.f32 %v12671_v6, 0.0 }
 0x371   :  { %14635 = vst [vmem:[#allocation96_spill] sm:$0xff] %v12679_v38 }
 0x372   :  { %4010 = vmatpush1.bf16.msra.mxu0 %v10825_v54  ;;  %v12687_v54 = vadd.f32 %v12454_v52, %v12442_v50 }
 0x373   :  { %4236 = vmatpush1.bf16.msra.mxu1 %v10828_v12  ;;  %4011 = vmatprep.subr.bf16.mxu0 %v10833_v47  ;;  %v10837_v47 = vld [vmem:[#allocation9 + $0x160] ss:$16 sps:$4 sm:$0xff]   ;;  %v14520_v12 = vmax.f32 %v12679_v38, 0.0 }
 0x374   :  { %2785 = vmatmul.mubr.bf16.gmra.mrb[52].mxu0 %v1918_v56  ;;  %4237 = vmatprep.subr.bf16.mxu1 %v10836_v60  ;;  %14637 = vst [vmem:[#allocation98_spill] sm:$0xff] %v12687_v54  ;;  %v14519_v60 = vmax.f32 %v12683_v13, 0.0  ;;  %v14518_v52 = vmax.f32 %v12687_v54, 0.0 }
 0x375   :  { %3011 = vmatmul.mubr.bf16.gmra.mrb[52].mxu1 %v1918_v56  ;;  %2794 = vmatprep.mubr.bf16.mxu0 %v1923_v10  ;;  %v12699_v56 = vadd.f32 %v12463_v14, %v12489_v31 }
 0x376   :  { %3020 = vmatprep.mubr.bf16.mxu1 %v1923_v10  ;;  %4012 = vmatpush1.bf16.msra.mxu0 %v10831_v22  ;;  %v1922_v50 = vpack.c.bf16 %v14521_v43, %v14519_v60  ;;  %v10843_v22 = vld [vmem:[#allocation9 + $0x180] ss:$16 sps:$4 sm:$0xff]   ;;  %v10846_v10 = vld [vmem:[#allocation9 + $0x188] ss:$16 sps:$4 sm:$0xff]  }
 0x377   :  { %4238 = vmatpush1.bf16.msra.mxu1 %v10834_v55  ;;  %4013 = vmatprep.subr.bf16.mxu0 %v10839_v42  ;;  %14638 = vst [vmem:[#allocation99_spill] sm:$0xff] %v12699_v56  ;;  %v1927_v42 = vpack.c.bf16 %v14520_v12, %v14518_v52  ;;  %v12707_v55 = vadd.f32 %v12448_v8, %v12489_v31  ;;  %v14517_v14 = vmax.f32 %v12699_v56, 0.0  ;;  %v10851_v8 = vld [vmem:[#allocation9 + $0x1a4] ss:$16 sps:$4 sm:$0xff]   ;;  %v10854_v31 = vld [vmem:[#allocation9 + $0x1ac] ss:$16 sps:$4 sm:$0xff]  }
 0x378   :  { %4239 = vmatprep.subr.bf16.mxu1 %v10842_v48 }
 0x379   :  { %14639 = vst [vmem:[#allocation100_spill] sm:$0xff] %v12707_v55  ;;  %v14516_v48 = vmax.f32 %v12707_v55, 0.0 }
 0x37a   :  { %4014 = vmatpush1.bf16.msra.mxu0 %v10837_v47  ;;  %v10849_v47 = vld [vmem:[#allocation9 + $0x1a0] ss:$16 sps:$4 sm:$0xff]  }
 0x37b   :  { %4240 = vmatpush1.bf16.msra.mxu1 %v10840_v49  ;;  %4015 = vmatprep.subr.bf16.mxu0 %v10845_v26  ;;  %v1926_v26 = vpack.c.bf16 %v14517_v14, %v14516_v48  ;;  %v10857_v49 = vld [vmem:[#allocation9 + $0x1c4] ss:$16 sps:$4 sm:$0xff]   ;;  %v10866_v48 = vld [vmem:[#allocation9 + $0x1ec] ss:$16 sps:$4 sm:$0xff]   ;;  %v10861_v14 = vld [vmem:[#allocation9 + $0x1e0] ss:$16 sps:$4 sm:$0xff]  }
 0x37c   :  { %2795 = vmatmul.mubr.bf16.gmra.mrb[56].mxu0 %v1922_v50  ;;  %4241 = vmatprep.subr.bf16.mxu1 %v10848_v4  ;;  %v10852_v4 = vld [vmem:[#allocation9 + $0x1a8] ss:$16 sps:$4 sm:$0xff]  }
 0x37d   :  { %3021 = vmatmul.mubr.bf16.gmra.mrb[56].mxu1 %v1922_v50  ;;  %2804 = vmatprep.mubr.bf16.mxu0 %v1927_v42  ;;  %v10860_v50 = vld [vmem:[#allocation9 + $0x1cc] ss:$16 sps:$4 sm:$0xff]  }
 0x37e   :  { %3030 = vmatprep.mubr.bf16.mxu1 %v1927_v42  ;;  %4016 = vmatpush1.bf16.msra.mxu0 %v10843_v22  ;;  %v10855_v22 = vld [vmem:[#allocation9 + $0x1c0] ss:$16 sps:$4 sm:$0xff]   ;;  %v10858_v42 = vld [vmem:[#allocation9 + $0x1c8] ss:$16 sps:$4 sm:$0xff]  }
 0x37f   :  { %4242 = vmatpush1.bf16.msra.mxu1 %v10846_v10  ;;  %4017 = vmatprep.subr.bf16.mxu0 %v10851_v8  ;;  %v10863_v10 = vld [vmem:[#allocation9 + $0x1e4] ss:$16 sps:$4 sm:$0xff]  }
 0x380   :  { %4243 = vmatprep.subr.bf16.mxu1 %v10854_v31  ;;  %v10869_v8 = vld [vmem:[#allocation9 + $0x204] ss:$16 sps:$4 sm:$0xff]   ;;  %v10872_v31 = vld [vmem:[#allocation9 + $0x20c] ss:$16 sps:$4 sm:$0xff]  }
 0x382   :  { %4018 = vmatpush1.bf16.msra.mxu0 %v10849_v47  ;;  %v12715_v47 = vld [vmem:[#allocation7] sm:$0xf] }
 0x383   :  { %4244 = vmatpush1.bf16.msra.mxu1 %v10852_v4  ;;  %4019 = vmatprep.subr.bf16.mxu0 %v10857_v49  ;;  %v12719_v4 = vrot.slane %v12715_v47, %v12206_v28  ;;  %v12723_v49 = vrot.slane %v12715_v47, %v12209_v29  ;;  %v14640_v28 = vmax.f32 %v12234_v41, 0.0 }
 0x384   :  { %2805 = vmatmul.mubr.bf16.gmra.mrb[60].mxu0 %v1926_v26  ;;  %4245 = vmatprep.subr.bf16.mxu1 %v10860_v50 }
 0x385   :  { %3031 = vmatmul.mubr.bf16.gmra.mrb[60].mxu1 %v1926_v26  ;;  %v10864_v26 = vld [vmem:[#allocation9 + $0x1e8] ss:$16 sps:$4 sm:$0xff]  }
 0x386   :  { %4020 = vmatpush1.bf16.msra.mxu0 %v10855_v22 }
 0x387   :  { %4246 = vmatpush1.bf16.msra.mxu1 %v10858_v42  ;;  %4021 = vmatprep.subr.bf16.mxu0 %v10863_v10 }
 0x388   :  { %4247 = vmatprep.subr.bf16.mxu1 %v10866_v48 }
 0x38a   :  { %4022 = vmatpush1.bf16.msra.mxu0 %v10861_v14 }
 0x38b   :  { %4248 = vmatpush1.bf16.msra.mxu1 %v10864_v26  ;;  %4104 = vmatprep.subr.bf16.mxu0 %v10869_v8 }
 0x38c   :  { %4330 = vmatprep.subr.bf16.mxu1 %v10872_v31 }
 0x41f   :  { %v2736_v50 = vpop.f32.mrb[32].mxu0 }
 0x420   :  { %v9894_v22 = vadd.f32 %v2736_v50, %v12719_v4  ;;  %v12726_v48 = vpop.f32.mrb[32].mxu1  ;;  %v2738_v14 = vpop.f32.mrb[33].mxu0 }
 0x421   :  { %v9895_v42 = vadd.f32 %v2738_v14, %v12723_v49  ;;  %v12729_v10 = vpop.f32.mrb[33].mxu1  ;;  %v2740_v26 = vpop.f32.mrb[34].mxu0  ;;  %v14642_v14 = vmax.f32 %v12226_v37, 0.0 }
 0x422   :  { %v9896_v8 = vadd.f32 %v2740_v26, %v12719_v4  ;;  %v12732_v31 = vpop.f32.mrb[34].mxu1  ;;  %v2742_v52 = vpop.f32.mrb[35].mxu0  ;;  %v3041_v57 = vmax.f32 %v9894_v22, 0.0  ;;  %v14644_v26 = vmax.f32 %v12239_v44, 0.0 }
 0x423   :  { %v3042_v60 = vmax.f32 %v9895_v42, 0.0  ;;  %v9897_v12 = vadd.f32 %v2742_v52, %v12723_v49  ;;  %v12735_v43 = vpop.f32.mrb[35].mxu1  ;;  %v14646_v52 = vmax.f32 %v12231_v40, 0.0 }
 0x424   :  { %v3045_v50 = vmax.f32 %v9896_v8, 0.0 }
 0x425   :  { %v3046_v29 = vmax.f32 %v9897_v12, 0.0  ;;  %v12743_v56 = vadd.f32 %v3042_v60, %v14642_v14  ;;  %v12751_v13 = vadd.f32 %v3041_v57, %v14646_v52  ;;  %v10870_v60 = vld [vmem:[#allocation9 + $0x208] ss:$16 sps:$4 sm:$0xff]  }
 0x426   :  { %v12739_v55 = vadd.f32 %v3045_v50, %v14640_v28 }
 0x427   :  { %14643 = vst [vmem:[#allocation102_spill] sm:$0xff] %v12743_v56  ;;  %v12747_v54 = vadd.f32 %v3046_v29, %v14644_v26  ;;  %v2746_v42 = vpop.f32.mrb[36].mxu0  ;;  %14647 = vst [vmem:[#allocation104_spill] sm:$0xff] %v12751_v13  ;;  %v10867_v29 = vld [vmem:[#allocation9 + $0x200] ss:$16 sps:$4 sm:$0xff]  }
 0x428   :  { %14641 = vst [vmem:[#allocation101_spill] sm:$0xff] %v12739_v55  ;;  %v9898_v22 = vadd.f32 %v2746_v42, %v12719_v4  ;;  %v12754_v12 = vpop.f32.mrb[36].mxu1  ;;  %v2748_v41 = vpop.f32.mrb[37].mxu0  ;;  %v3298_v40 = vpack.c.bf16 %v12739_v55, %v12751_v13  ;;  %v10875_v26 = vld [vmem:[#allocation9 + $0x224] ss:$16 sps:$4 sm:$0xff]   ;;  %v14648_v13 = vmax.f32 %v12266_v63, 0.0 }
 0x429   :  { %14645 = vst [vmem:[#allocation103_spill] sm:$0xff] %v12747_v54  ;;  %v9899_v28 = vadd.f32 %v2748_v41, %v12723_v49  ;;  %v12757_v8 = vpop.f32.mrb[37].mxu1  ;;  %v2750_v37 = vpop.f32.mrb[38].mxu0  ;;  %v3299_v44 = vpack.c.bf16 %v12747_v54, %v12743_v56  ;;  %v10878_v42 = vld [vmem:[#allocation9 + $0x22c] ss:$16 sps:$4 sm:$0xff]  }
 0x42a   :  { %v9900_v57 = vadd.f32 %v2750_v37, %v12719_v4  ;;  %v12764_v50 = vpop.f32.mrb[38].mxu1  ;;  %v2752_v14 = vpop.f32.mrb[39].mxu0  ;;  %v3049_v54 = vmax.f32 %v9898_v22, 0.0  ;;  %v10873_v37 = vld [vmem:[#allocation9 + $0x220] ss:$16 sps:$4 sm:$0xff]   ;;  %v14652_v22 = vmax.f32 %v12271_v2, 0.0 }
 0x42b   :  { %v3050_v52 = vmax.f32 %v9899_v28, 0.0  ;;  %v9901_v41 = vadd.f32 %v2752_v14, %v12723_v49  ;;  %v12767_v38 = vpop.f32.mrb[39].mxu1  ;;  %4023 = vmatprep.mubr.bf16.mxu0 %v3299_v44  ;;  %4249 = vmatprep.mubr.bf16.mxu1 %v3299_v44  ;;  %v10876_v55 = vld [vmem:[#allocation9 + $0x228] ss:$16 sps:$4 sm:$0xff]   ;;  %v10881_v28 = vld [vmem:[#allocation9 + $0x244] ss:$16 sps:$4 sm:$0xff]  }
 0x42c   :  { %v3053_v56 = vmax.f32 %v9900_v57, 0.0  ;;  %4024 = vmatmul.mubr.bf16.vlgmr.msra.gmra.mrb[64].mxu0 %v3298_v40  ;;  %4250 = vmatmul.mubr.bf16.vlgmr.msra.gmra.mrb[64].mxu1 %v3298_v40  ;;  %v10884_v14 = vld [vmem:[#allocation9 + $0x24c] ss:$16 sps:$4 sm:$0xff]  }
 0x42d   :  { %v3054_v6 = vmax.f32 %v9901_v41, 0.0  ;;  %4105 = vmatpush1.bf16.msra.mxu0 %v10867_v29  ;;  %4331 = vmatpush1.bf16.msra.mxu1 %v10870_v60  ;;  %v12775_v44 = vadd.f32 %v3050_v52, %v14650_v51  ;;  %v14654_v60 = vmax.f32 %v12263_v62, 0.0  ;;  %v10879_v51 = vld [vmem:[#allocation9 + $0x240] ss:$16 sps:$4 sm:$0xff]  }
 0x42e   :  { %v12771_v7 = vadd.f32 %v3053_v56, %v14648_v13  ;;  %4106 = vmatprep.subr.bf16.mxu0 %v10875_v26  ;;  %4332 = vmatprep.subr.bf16.mxu1 %v10878_v42 }
 0x42f   :  { %14651 = vst [vmem:[#allocation106_spill] sm:$0xff] %v12775_v44  ;;  %v12779_v40 = vadd.f32 %v3054_v6, %v14652_v22  ;;  %v2756_v29 = vpop.f32.mrb[40].mxu0  ;;  %v12783_v57 = vadd.f32 %v3049_v54, %v14654_v60  ;;  %v10882_v6 = vld [vmem:[#allocation9 + $0x248] ss:$16 sps:$4 sm:$0xff]   ;;  %v10887_v22 = vld [vmem:[#allocation9 + $0x264] ss:$16 sps:$4 sm:$0xff]  }
 0x430   :  { %14649 = vst [vmem:[#allocation105_spill] sm:$0xff] %v12771_v7  ;;  %v9902_v63 = vadd.f32 %v2756_v29, %v12719_v4  ;;  %v12786_v13 = vpop.f32.mrb[40].mxu1  ;;  %v2758_v56 = vpop.f32.mrb[41].mxu0  ;;  %v10890_v29 = vld [vmem:[#allocation9 + $0x26c] ss:$16 sps:$4 sm:$0xff]  }
 0x431   :  { %14653 = vst [vmem:[#allocation107_spill] sm:$0xff] %v12779_v40  ;;  %14655 = vst [vmem:[#allocation108_spill] sm:$0xff] %v12783_v57  ;;  %v9903_v26 = vadd.f32 %v2758_v56, %v12723_v49  ;;  %v12789_v42 = vpop.f32.mrb[41].mxu1  ;;  %v2760_v59 = vpop.f32.mrb[42].mxu0  ;;  %4107 = vmatpush1.bf16.msra.mxu0 %v10873_v37  ;;  %4333 = vmatpush1.bf16.msra.mxu1 %v10876_v55  ;;  %v3303_v2 = vpack.c.bf16 %v12779_v40, %v12775_v44  ;;  %v10885_v44 = vld [vmem:[#allocation9 + $0x260] ss:$16 sps:$4 sm:$0xff]  }
 0x432   :  { %v9904_v62 = vadd.f32 %v2760_v59, %v12719_v4  ;;  %v12794_v54 = vpop.f32.mrb[42].mxu1  ;;  %v2762_v52 = vpop.f32.mrb[43].mxu0  ;;  %v3302_v41 = vpack.c.bf16 %v12771_v7, %v12783_v57  ;;  %4108 = vmatprep.subr.bf16.mxu0 %v10881_v28  ;;  %4334 = vmatprep.subr.bf16.mxu1 %v10884_v14  ;;  %v3057_v56 = vmax.f32 %v9902_v63, 0.0  ;;  %v10888_v7 = vld [vmem:[#allocation9 + $0x268] ss:$16 sps:$4 sm:$0xff]   ;;  %v14656_v28 = vmax.f32 %v12298_v25, 0.0 }
 0x433   :  { %v3058_v60 = vmax.f32 %v9903_v26, 0.0  ;;  %v9905_v55 = vadd.f32 %v2762_v52, %v12723_v49  ;;  %v12799_v37 = vpop.f32.mrb[43].mxu1  ;;  %4033 = vmatprep.mubr.bf16.mxu0 %v3303_v2  ;;  %4259 = vmatprep.mubr.bf16.mxu1 %v3303_v2  ;;  %v10893_v26 = vld [vmem:[#allocation9 + $0x284] ss:$16 sps:$4 sm:$0xff]   ;;  %v10896_v52 = vld [vmem:[#allocation9 + $0x28c] ss:$16 sps:$4 sm:$0xff]  }
 0x434   :  { %v3061_v40 = vmax.f32 %v9904_v62, 0.0  ;;  %4034 = vmatmul.mubr.bf16.gmra.mrb[68].mxu0 %v3302_v41  ;;  %4260 = vmatmul.mubr.bf16.gmra.mrb[68].mxu1 %v3302_v41  ;;  %v14658_v57 = vld [vmem:[#allocation62_spill] sm:$0xff]  ;;  %v14661_v63 = vld [vmem:[#allocation64_spill] sm:$0xff] }
 0x435   :  { %v3062_v59 = vmax.f32 %v9905_v55, 0.0  ;;  %4109 = vmatpush1.bf16.msra.mxu0 %v10879_v51  ;;  %4335 = vmatpush1.bf16.msra.mxu1 %v10882_v6  ;;  %v14659_v16 = vmax.f32 %v14658_v57, 0.0  ;;  %v14662_v62 = vmax.f32 %v14661_v63, 0.0  ;;  %v14664_v6 = vld [vmem:[#allocation63_spill] sm:$0xff] }
 0x436   :  { %v12803_v14 = vadd.f32 %v3061_v40, %v14656_v28  ;;  %4110 = vmatprep.subr.bf16.mxu0 %v10887_v22  ;;  %4336 = vmatprep.subr.bf16.mxu1 %v10890_v29  ;;  %v14665_v55 = vmax.f32 %v14664_v6, 0.0  ;;  %v10899_v6 = vld [vmem:[#allocation9 + $0x2a4] ss:$16 sps:$4 sm:$0xff]  }
 0x437   :  { %v12807_v2 = vadd.f32 %v3058_v60, %v14659_v16  ;;  %v12811_v41 = vadd.f32 %v3062_v59, %v14662_v62  ;;  %v2766_v51 = vpop.f32.mrb[44].mxu0  ;;  %v10891_v60 = vld [vmem:[#allocation9 + $0x280] ss:$16 sps:$4 sm:$0xff]   ;;  %v10894_v59 = vld [vmem:[#allocation9 + $0x288] ss:$16 sps:$4 sm:$0xff]  }
 0x438   :  { %14657 = vst [vmem:[#allocation109_spill] sm:$0xff] %v12803_v14  ;;  %v12815_v3 = vadd.f32 %v3057_v56, %v14665_v55  ;;  %v9906_v25 = vadd.f32 %v2766_v51, %v12719_v4  ;;  %v12818_v40 = vpop.f32.mrb[44].mxu1  ;;  %v2768_v22 = vpop.f32.mrb[45].mxu0  ;;  %v10902_v55 = vld [vmem:[#allocation9 + $0x2ac] ss:$16 sps:$4 sm:$0xff]  }
 0x439   :  { %14660 = vst [vmem:[#allocation62_spill] sm:$0xff] %v12807_v2  ;;  %14663 = vst [vmem:[#allocation64_spill] sm:$0xff] %v12811_v41  ;;  %v9907_v29 = vadd.f32 %v2768_v22, %v12723_v49  ;;  %v12821_v28 = vpop.f32.mrb[45].mxu1  ;;  %v2770_v16 = vpop.f32.mrb[46].mxu0  ;;  %4111 = vmatpush1.bf16.msra.mxu0 %v10885_v44  ;;  %4337 = vmatpush1.bf16.msra.mxu1 %v10888_v7  ;;  %v3307_v57 = vpack.c.bf16 %v12811_v41, %v12807_v2 }
 0x43a   :  { %14666 = vst [vmem:[#allocation63_spill] sm:$0xff] %v12815_v3  ;;  %v9908_v56 = vadd.f32 %v2770_v16, %v12719_v4  ;;  %v12826_v63 = vpop.f32.mrb[46].mxu1  ;;  %v2772_v62 = vpop.f32.mrb[47].mxu0  ;;  %v3306_v51 = vpack.c.bf16 %v12803_v14, %v12815_v3  ;;  %4112 = vmatprep.subr.bf16.mxu0 %v10893_v26  ;;  %4338 = vmatprep.subr.bf16.mxu1 %v10896_v52  ;;  %v3065_v41 = vmax.f32 %v9906_v25, 0.0  ;;  %v10900_v14 = vld [vmem:[#allocation9 + $0x2a8] ss:$16 sps:$4 sm:$0xff]  }
 0x43b   :  { %v3066_v22 = vmax.f32 %v9907_v29, 0.0  ;;  %v9909_v7 = vadd.f32 %v2772_v62, %v12723_v49  ;;  %v12831_v44 = vpop.f32.mrb[47].mxu1  ;;  %4043 = vmatprep.mubr.bf16.mxu0 %v3307_v57  ;;  %4269 = vmatprep.mubr.bf16.mxu1 %v3307_v57  ;;  %v14667_v26 = vld [vmem:[#allocation67_spill] sm:$0xff]  ;;  %v14673_v25 = vld [vmem:[#allocation68_spill] sm:$0xff] }
 0x43c   :  { %v3069_v2 = vmax.f32 %v9908_v56, 0.0  ;;  %4044 = vmatmul.mubr.bf16.gmra.mrb[72].mxu0 %v3306_v51  ;;  %4270 = vmatmul.mubr.bf16.gmra.mrb[72].mxu1 %v3306_v51  ;;  %v14668_v52 = vmax.f32 %v14667_v26, 0.0  ;;  %v10905_v29 = vld [vmem:[#allocation9 + $0x2c4] ss:$16 sps:$4 sm:$0xff]   ;;  %v10908_v62 = vld [vmem:[#allocation9 + $0x2cc] ss:$16 sps:$4 sm:$0xff]  }
 0x43d   :  { %v3070_v16 = vmax.f32 %v9909_v7, 0.0  ;;  %4113 = vmatpush1.bf16.msra.mxu0 %v10891_v60  ;;  %4339 = vmatpush1.bf16.msra.mxu1 %v10894_v59  ;;  %v12839_v57 = vadd.f32 %v3066_v22, %v14671_v23  ;;  %v14674_v56 = vmax.f32 %v14673_v25, 0.0  ;;  %v14676_v59 = vld [vmem:[#allocation66_spill] sm:$0xff]  ;;  %v10903_v22 = vld [vmem:[#allocation9 + $0x2c0] ss:$16 sps:$4 sm:$0xff]  }
 0x43e   :  { %v12835_v3 = vadd.f32 %v3069_v2, %v14668_v52  ;;  %4114 = vmatprep.subr.bf16.mxu0 %v10899_v6  ;;  %4340 = vmatprep.subr.bf16.mxu1 %v10902_v55  ;;  %v14677_v7 = vmax.f32 %v14676_v59, 0.0  ;;  %v10911_v59 = vld [vmem:[#allocation9 + $0x2e4] ss:$16 sps:$4 sm:$0xff]  }
 0x43f   :  { %14672 = vst [vmem:[#allocation65_spill] sm:$0xff] %v12839_v57  ;;  %v12843_v51 = vadd.f32 %v3070_v16, %v14674_v56  ;;  %v2776_v60 = vpop.f32.mrb[48].mxu0  ;;  %v10906_v16 = vld [vmem:[#allocation9 + $0x2c8] ss:$16 sps:$4 sm:$0xff]  }
 0x440   :  { %14669 = vst [vmem:[#allocation67_spill] sm:$0xff] %v12835_v3  ;;  %v12847_v45 = vadd.f32 %v3065_v41, %v14677_v7  ;;  %v9910_v2 = vadd.f32 %v2776_v60, %v12719_v4  ;;  %v12850_v26 = vpop.f32.mrb[48].mxu1  ;;  %v2778_v6 = vpop.f32.mrb[49].mxu0  ;;  %v10914_v7 = vld [vmem:[#allocation9 + $0x2ec] ss:$16 sps:$4 sm:$0xff]  }
 0x441   :  { %14675 = vst [vmem:[#allocation68_spill] sm:$0xff] %v12843_v51  ;;  %14679 = vst [vmem:[#allocation110_spill] sm:$0xff] %v12850_v26  ;;  %v9911_v55 = vadd.f32 %v2778_v6, %v12723_v49  ;;  %v12853_v52 = vpop.f32.mrb[49].mxu1  ;;  %v2780_v34 = vpop.f32.mrb[50].mxu0  ;;  %4115 = vmatpush1.bf16.msra.mxu0 %v10897_v18  ;;  %4341 = vmatpush1.bf16.msra.mxu1 %v10900_v14  ;;  %v3311_v23 = vpack.c.bf16 %v12843_v51, %v12839_v57  ;;  %v14683_v26 = vld [vmem:[#allocation69_spill] sm:$0xff] }
 0x442   :  { %14678 = vst [vmem:[#allocation66_spill] sm:$0xff] %v12847_v45  ;;  %v9912_v41 = vadd.f32 %v2780_v34, %v12719_v4  ;;  %v12858_v25 = vpop.f32.mrb[50].mxu1  ;;  %v2782_v56 = vpop.f32.mrb[51].mxu0  ;;  %v3310_v60 = vpack.c.bf16 %v12835_v3, %v12847_v45  ;;  %4116 = vmatprep.subr.bf16.mxu0 %v10905_v29  ;;  %4342 = vmatprep.subr.bf16.mxu1 %v10908_v62  ;;  %v3073_v51 = vmax.f32 %v9910_v2, 0.0  ;;  %v10912_v3 = vld [vmem:[#allocation9 + $0x2e8] ss:$16 sps:$4 sm:$0xff]  }
 0x443   :  { %v3074_v6 = vmax.f32 %v9911_v55, 0.0  ;;  %v9913_v18 = vadd.f32 %v2782_v56, %v12723_v49  ;;  %v12863_v14 = vpop.f32.mrb[51].mxu1  ;;  %4053 = vmatprep.mubr.bf16.mxu0 %v3311_v23  ;;  %4279 = vmatprep.mubr.bf16.mxu1 %v3311_v23  ;;  %v14680_v29 = vld [vmem:[#allocation71_spill] sm:$0xff]  ;;  %v14684_v1 = vmax.f32 %v14683_v26, 0.0  ;;  %v14686_v2 = vld [vmem:[#allocation72_spill] sm:$0xff] }
 0x444   :  { %v3077_v57 = vmax.f32 %v9912_v41, 0.0  ;;  %4054 = vmatmul.mubr.bf16.gmra.mrb[76].mxu0 %v3310_v60  ;;  %4280 = vmatmul.mubr.bf16.gmra.mrb[76].mxu1 %v3310_v60  ;;  %v14681_v62 = vmax.f32 %v14680_v29, 0.0  ;;  %v10917_v55 = vld [vmem:[#allocation9 + $0x304] ss:$16 sps:$4 sm:$0xff]   ;;  %v10920_v56 = vld [vmem:[#allocation9 + $0x30c] ss:$16 sps:$4 sm:$0xff]  }
 0x445   :  { %v3078_v34 = vmax.f32 %v9913_v18, 0.0  ;;  %4117 = vmatpush1.bf16.msra.mxu0 %v10903_v22  ;;  %4343 = vmatpush1.bf16.msra.mxu1 %v10906_v16  ;;  %v12871_v23 = vadd.f32 %v3074_v6, %v14684_v1  ;;  %v14687_v41 = vmax.f32 %v14686_v2, 0.0  ;;  %v14689_v16 = vld [vmem:[#allocation70_spill] sm:$0xff]  ;;  %v10915_v6 = vld [vmem:[#allocation9 + $0x300] ss:$16 sps:$4 sm:$0xff]  }
 0x446   :  { %v12867_v45 = vadd.f32 %v3077_v57, %v14681_v62  ;;  %4118 = vmatprep.subr.bf16.mxu0 %v10911_v59  ;;  %4344 = vmatprep.subr.bf16.mxu1 %v10914_v7  ;;  %v14690_v18 = vmax.f32 %v14689_v16, 0.0  ;;  %v10923_v16 = vld [vmem:[#allocation9 + $0x324] ss:$16 sps:$4 sm:$0xff]  }
 0x447   :  { %14685 = vst [vmem:[#allocation69_spill] sm:$0xff] %v12871_v23  ;;  %v12875_v60 = vadd.f32 %v3078_v34, %v14687_v41  ;;  %v2786_v22 = vpop.f32.mrb[52].mxu0  ;;  %v10918_v34 = vld [vmem:[#allocation9 + $0x308] ss:$16 sps:$4 sm:$0xff]  }
 0x448   :  { %14682 = vst [vmem:[#allocation71_spill] sm:$0xff] %v12867_v45  ;;  %v12879_v61 = vadd.f32 %v3073_v51, %v14690_v18  ;;  %v9914_v57 = vadd.f32 %v2786_v22, %v12719_v4  ;;  %v12882_v29 = vpop.f32.mrb[52].mxu1  ;;  %v2788_v59 = vpop.f32.mrb[53].mxu0  ;;  %v10926_v18 = vld [vmem:[#allocation9 + $0x32c] ss:$16 sps:$4 sm:$0xff]  }
 0x449   :  { %14688 = vst [vmem:[#allocation72_spill] sm:$0xff] %v12875_v60  ;;  %14692 = vst [vmem:[#allocation111_spill] sm:$0xff] %v12882_v29  ;;  %v9915_v7 = vadd.f32 %v2788_v59, %v12723_v49  ;;  %v12885_v62 = vpop.f32.mrb[53].mxu1  ;;  %v2790_v1 = vpop.f32.mrb[54].mxu0  ;;  %4119 = vmatpush1.bf16.msra.mxu0 %v10909_v19  ;;  %4345 = vmatpush1.bf16.msra.mxu1 %v10912_v3  ;;  %v3315_v26 = vpack.c.bf16 %v12875_v60, %v12871_v23  ;;  %v10921_v29 = vld [vmem:[#allocation9 + $0x320] ss:$16 sps:$4 sm:$0xff]  }
 0x44a   :  { %14691 = vst [vmem:[#allocation70_spill] sm:$0xff] %v12879_v61  ;;  %14693 = vst [vmem:[#allocation112_spill] sm:$0xff] %v12885_v62  ;;  %v9916_v51 = vadd.f32 %v2790_v1, %v12719_v4  ;;  %v12890_v2 = vpop.f32.mrb[54].mxu1  ;;  %v2792_v41 = vpop.f32.mrb[55].mxu0  ;;  %v3314_v22 = vpack.c.bf16 %v12867_v45, %v12879_v61  ;;  %4120 = vmatprep.subr.bf16.mxu0 %v10917_v55  ;;  %4346 = vmatprep.subr.bf16.mxu1 %v10920_v56  ;;  %v3081_v60 = vmax.f32 %v9914_v57, 0.0  ;;  %v14696_v55 = vld [vmem:[#allocation75_spill] sm:$0xff] }
 0x44b   :  { %14694 = vst [vmem:[#allocation113_spill] sm:$0xff] %v12890_v2  ;;  %v3082_v59 = vmax.f32 %v9915_v7, 0.0  ;;  %v9917_v19 = vadd.f32 %v2792_v41, %v12723_v49  ;;  %v12895_v3 = vpop.f32.mrb[55].mxu1  ;;  %4063 = vmatprep.mubr.bf16.mxu0 %v3315_v26  ;;  %4289 = vmatprep.mubr.bf16.mxu1 %v3315_v26  ;;  %v10924_v45 = vld [vmem:[#allocation9 + $0x328] ss:$16 sps:$4 sm:$0xff]   ;;  %v14697_v56 = vmax.f32 %v14696_v55, 0.0 }
 0x44c   :  { %14695 = vst [vmem:[#allocation114_spill] sm:$0xff] %v12895_v3  ;;  %v3085_v23 = vmax.f32 %v9916_v51, 0.0  ;;  %4064 = vmatmul.mubr.bf16.gmra.mrb[80].mxu0 %v3314_v22  ;;  %4290 = vmatmul.mubr.bf16.gmra.mrb[80].mxu1 %v3314_v22  ;;  %v10929_v7 = vld [vmem:[#allocation9 + $0x344] ss:$16 sps:$4 sm:$0xff]   ;;  %v10932_v41 = vld [vmem:[#allocation9 + $0x34c] ss:$16 sps:$4 sm:$0xff]  }
 0x44d   :  { %v3086_v1 = vmax.f32 %v9917_v19, 0.0  ;;  %4121 = vmatpush1.bf16.msra.mxu0 %v10915_v6  ;;  %4347 = vmatpush1.bf16.msra.mxu1 %v10918_v34  ;;  %v14699_v2 = vld [vmem:[#allocation73_spill] sm:$0xff]  ;;  %v14702_v57 = vld [vmem:[#allocation76_spill] sm:$0xff]  ;;  %v14705_v34 = vld [vmem:[#allocation74_spill] sm:$0xff] }
 0x44e   :  { %v12899_v61 = vadd.f32 %v3085_v23, %v14697_v56  ;;  %4122 = vmatprep.subr.bf16.mxu0 %v10923_v16  ;;  %4348 = vmatprep.subr.bf16.mxu1 %v10926_v18  ;;  %v14700_v62 = vmax.f32 %v14699_v2, 0.0  ;;  %v14703_v51 = vmax.f32 %v14702_v57, 0.0  ;;  %v14706_v19 = vmax.f32 %v14705_v34, 0.0  ;;  %v10935_v34 = vld [vmem:[#allocation9 + $0x364] ss:$16 sps:$4 sm:$0xff]  }
 0x44f   :  { %v2796_v6 = vpop.f32.mrb[56].mxu0 }
 0x450   :  { %14698 = vst [vmem:[#allocation75_spill] sm:$0xff] %v12899_v61  ;;  %v12903_v26 = vadd.f32 %v3082_v59, %v14700_v62  ;;  %v12907_v22 = vadd.f32 %v3086_v1, %v14703_v51  ;;  %v12911_v3 = vadd.f32 %v3081_v60, %v14706_v19  ;;  %v9918_v23 = vadd.f32 %v2796_v6, %v12719_v4  ;;  %v12914_v55 = vpop.f32.mrb[56].mxu1  ;;  %v2798_v16 = vpop.f32.mrb[57].mxu0  ;;  %v10927_v59 = vld [vmem:[#allocation9 + $0x340] ss:$16 sps:$4 sm:$0xff]  }
 0x451   :  { %14708 = vst [vmem:[#allocation115_spill] sm:$0xff] %v12914_v55  ;;  %v9919_v18 = vadd.f32 %v2798_v16, %v12723_v49  ;;  %v12917_v56 = vpop.f32.mrb[57].mxu1  ;;  %v2800_v62 = vpop.f32.mrb[58].mxu0  ;;  %4123 = vmatpush1.bf16.msra.mxu0 %v10921_v29  ;;  %4349 = vmatpush1.bf16.msra.mxu1 %v10924_v45  ;;  %v10930_v1 = vld [vmem:[#allocation9 + $0x348] ss:$16 sps:$4 sm:$0xff]  }
 0x452   :  { %14701 = vst [vmem:[#allocation73_spill] sm:$0xff] %v12903_v26  ;;  %14704 = vst [vmem:[#allocation76_spill] sm:$0xff] %v12907_v22  ;;  %v3319_v2 = vpack.c.bf16 %v12907_v22, %v12903_v26  ;;  %v9920_v60 = vadd.f32 %v2800_v62, %v12719_v4  ;;  %v12922_v57 = vpop.f32.mrb[58].mxu1  ;;  %v2802_v51 = vpop.f32.mrb[59].mxu0  ;;  %v3318_v6 = vpack.c.bf16 %v12899_v61, %v12911_v3  ;;  %4124 = vmatprep.subr.bf16.mxu0 %v10929_v7  ;;  %v10938_v19 = vld [vmem:[#allocation9 + $0x36c] ss:$16 sps:$4 sm:$0xff]  }
 0x453   :  { %14707 = vst [vmem:[#allocation74_spill] sm:$0xff] %v12911_v3  ;;  %14709 = vst [vmem:[#allocation116_spill] sm:$0xff] %v12917_v56  ;;  %4350 = vmatprep.subr.bf16.mxu1 %v10932_v41  ;;  %v3090_v16 = vmax.f32 %v9919_v18, 0.0  ;;  %v9921_v45 = vadd.f32 %v2802_v51, %v12723_v49  ;;  %v12927_v29 = vpop.f32.mrb[59].mxu1  ;;  %v3089_v22 = vmax.f32 %v9918_v23, 0.0  ;;  %v14712_v62 = vld [vmem:[#allocation80_spill] sm:$0xff] }
 0x454   :  { %14710 = vst [vmem:[#allocation117_spill] sm:$0xff] %v12922_v57  ;;  %14711 = vst [vmem:[#allocation118_spill] sm:$0xff] %v12927_v29  ;;  %4073 = vmatprep.mubr.bf16.mxu0 %v3319_v2  ;;  %4299 = vmatprep.mubr.bf16.mxu1 %v3319_v2  ;;  %v3093_v26 = vmax.f32 %v9920_v60, 0.0  ;;  %v12931_v55 = vrot.slane %v12715_v47, %v14712_v62  ;;  %v10933_v7 = vld [vmem:[#allocation9 + $0x360] ss:$16 sps:$4 sm:$0xff]   ;;  %v14720_v29 = vld [vmem:[#allocation78_spill] sm:$0xff] }
 0x455   :  { %4074 = vmatmul.mubr.bf16.gmra.mrb[84].mxu0 %v3318_v6  ;;  %4300 = vmatmul.mubr.bf16.gmra.mrb[84].mxu1 %v3318_v6  ;;  %v3094_v61 = vmax.f32 %v9921_v45, 0.0  ;;  %v10936_v41 = vld [vmem:[#allocation9 + $0x368] ss:$16 sps:$4 sm:$0xff]   ;;  %v14713_v18 = vld [vmem:[#allocation79_spill] sm:$0xff]  ;;  %v14715_v6 = vld [vmem:[#allocation77_spill] sm:$0xff] }
 0x456   :  { %4125 = vmatpush1.bf16.msra.mxu0 %v10927_v59  ;;  %4351 = vmatpush1.bf16.msra.mxu1 %v10930_v1  ;;  %v14714_v3 = vmax.f32 %v14713_v18, 0.0  ;;  %v10941_v2 = vld [vmem:[#allocation9 + $0x384] ss:$16 sps:$4 sm:$0xff]   ;;  %v10944_v23 = vld [vmem:[#allocation9 + $0x38c] ss:$16 sps:$4 sm:$0xff]   ;;  %v9929_v60 = vadd.f32 %v12735_v43, %v12931_v55  ;;  %v14716_v57 = vmax.f32 %v14715_v6, 0.0  ;;  %v9927_v43 = vadd.f32 %v12729_v10, %v12931_v55 }
 0x457   :  { %4126 = vmatprep.subr.bf16.mxu0 %v10935_v34  ;;  %4352 = vmatprep.subr.bf16.mxu1 %v10938_v19  ;;  %v14717_v45 = vld [vmem:[#allocation81_spill] sm:$0xff]  ;;  %v2806_v56 = vpop.f32.mrb[60].mxu0  ;;  %v14721_v18 = vmax.f32 %v14720_v29, 0.0  ;;  %v10942_v29 = vld [vmem:[#allocation9 + $0x388] ss:$16 sps:$4 sm:$0xff]  }
 0x458   :  { %v12935_v51 = vadd.f32 %v3093_v26, %v14714_v3  ;;  %v12941_v62 = vadd.f32 %v3090_v16, %v14716_v57  ;;  %v14718_v59 = vmax.f32 %v14717_v45, 0.0  ;;  %v9922_v26 = vadd.f32 %v2806_v56, %v12719_v4  ;;  %v12952_v34 = vpop.f32.mrb[60].mxu1  ;;  %v2808_v19 = vpop.f32.mrb[61].mxu0 }
 0x459   :  { %v12949_v3 = vadd.f32 %v3089_v22, %v14721_v18  ;;  %14722 = vst [vmem:[#allocation77_spill] sm:$0xff] %v12952_v34  ;;  %v9923_v57 = vadd.f32 %v2808_v19, %v12723_v49  ;;  %v12957_v16 = vpop.f32.mrb[61].mxu1  ;;  %v2810_v6 = vpop.f32.mrb[62].mxu0  ;;  %v10939_v22 = vld [vmem:[#allocation9 + $0x380] ss:$16 sps:$4 sm:$0xff]   ;;  %v3048_v34 = vmax.f32 %v9929_v60, 0.0 }
 0x45a   :  { %v12945_v1 = vadd.f32 %v3094_v61, %v14718_v59  ;;  %14723 = vst [vmem:[#allocation81_spill] sm:$0xff] %v12957_v16  ;;  %4127 = vmatpush1.bf16.msra.mxu0 %v10933_v7  ;;  %4353 = vmatpush1.bf16.msra.mxu1 %v10936_v41  ;;  %v9924_v56 = vadd.f32 %v2810_v6, %v12719_v4  ;;  %v12962_v45 = vpop.f32.mrb[62].mxu1  ;;  %v2812_v59 = vpop.f32.mrb[63].mxu0  ;;  %v10947_v18 = vld [vmem:[#allocation9 + $0x3a4] ss:$16 sps:$4 sm:$0xff]   ;;  %v3097_v6 = vmax.f32 %v9922_v26, 0.0 }
 0x45b   :  { %v3322_v10 = vpack.c.bf16 %v12935_v51, %v12949_v3  ;;  %4128 = vmatprep.subr.bf16.mxu0 %v10941_v2  ;;  %4354 = vmatprep.subr.bf16.mxu1 %v10944_v23  ;;  %v10950_v19 = vld [vmem:[#allocation9 + $0x3ac] ss:$16 sps:$4 sm:$0xff]   ;;  %v3098_v7 = vmax.f32 %v9923_v57, 0.0  ;;  %v9925_v41 = vadd.f32 %v2812_v59, %v12723_v49  ;;  %v12967_v16 = vpop.f32.mrb[63].mxu1  ;;  %v12971_v4 = vrot.slane %v12715_v47, %v12466_v24  ;;  %v10945_v60 = vld [vmem:[#allocation9 + $0x3a0] ss:$16 sps:$4 sm:$0xff]  }
 0x45c   :  { %14719 = vst [vmem:[#allocation79_spill] sm:$0xff] %v12945_v1  ;;  %v3323_v61 = vpack.c.bf16 %v12945_v1, %v12941_v62  ;;  %v3101_v1 = vmax.f32 %v9924_v56, 0.0  ;;  %v3044_v2 = vmax.f32 %v9927_v43, 0.0  ;;  %v10948_v57 = vld [vmem:[#allocation9 + $0x3a8] ss:$16 sps:$4 sm:$0xff]   ;;  %v14724_v59 = vmax.f32 %v12472_v5, 0.0 }
 0x45d   :  { %v3102_v23 = vmax.f32 %v9925_v41, 0.0  ;;  %v9928_v49 = vadd.f32 %v12732_v31, %v12971_v4  ;;  %v10953_v47 = vld [vmem:[#allocation9 + $0x3c4] ss:$16 sps:$4 sm:$0xff]   ;;  %v10956_v26 = vld [vmem:[#allocation9 + $0x3cc] ss:$16 sps:$4 sm:$0xff]   ;;  %v14725_v56 = vmax.f32 %v12458_v20, 0.0  ;;  %v9933_v43 = vadd.f32 %v12767_v38, %v12931_v55 }
 0x45e   :  { %4083 = vmatprep.mubr.bf16.mxu0 %v3323_v61  ;;  %4309 = vmatprep.mubr.bf16.mxu1 %v3323_v61  ;;  %v12977_v61 = vadd.f32 %v3101_v1, %v14724_v59  ;;  %v14727_v31 = vld [vmem:[#allocation83_spill] sm:$0xff]  ;;  %v9926_v1 = vadd.f32 %v12726_v48, %v12971_v4  ;;  %v14731_v20 = vmax.f32 %v12478_v21, 0.0  ;;  %v14732_v59 = vmax.f32 %v12499_v9, 0.0 }
 0x45f   :  { %4084 = vmatmul.mubr.bf16.gmra.mrb[88].mxu0 %v3322_v10  ;;  %4310 = vmatmul.mubr.bf16.gmra.mrb[88].mxu1 %v3322_v10  ;;  %v12981_v10 = vadd.f32 %v3048_v34, %v14725_v56  ;;  %v14728_v41 = vmax.f32 %v14727_v31, 0.0  ;;  %v10960_v56 = vld [vmem:[#allocation9 + $0x3e8] ss:$16 sps:$4 sm:$0xff]   ;;  %v14734_v9 = vmax.f32 %v12515_v35, 0.0 }
 0x460   :  { %4129 = vmatpush1.bf16.msra.mxu0 %v10939_v22  ;;  %4355 = vmatpush1.bf16.msra.mxu1 %v10942_v29  ;;  %v14726_v22 = vmax.f32 %v12461_v11, 0.0  ;;  %v13001_v34 = vadd.f32 %v3044_v2, %v14731_v20  ;;  %v9931_v11 = vadd.f32 %v12757_v8, %v12931_v55  ;;  %v10959_v8 = vld [vmem:[#allocation9 + $0x3e4] ss:$16 sps:$4 sm:$0xff]   ;;  %v10962_v2 = vld [vmem:[#allocation9 + $0x3ec] ss:$16 sps:$4 sm:$0xff]   ;;  %v14735_v20 = vmax.f32 %v12519_v32, 0.0 }
 0x461   :  { %4130 = vmatprep.subr.bf16.mxu0 %v10947_v18  ;;  %4356 = vmatprep.subr.bf16.mxu1 %v10950_v19  ;;  %v12991_v5 = vadd.f32 %v3102_v23, %v14728_v41  ;;  %v14730_v18 = vmax.f32 %v12469_v58, 0.0  ;;  %v3047_v23 = vmax.f32 %v9928_v49, 0.0  ;;  %v10954_v58 = vld [vmem:[#allocation9 + $0x3c8] ss:$16 sps:$4 sm:$0xff]   ;;  %v10957_v49 = vld [vmem:[#allocation9 + $0x3e0] ss:$16 sps:$4 sm:$0xff]   ;;  %v9937_v41 = vadd.f32 %v12799_v37, %v12931_v55 }
 0x462   :  { %v12987_v29 = vadd.f32 %v3098_v7, %v14726_v22  ;;  %v10951_v7 = vld [vmem:[#allocation9 + $0x3c0] ss:$16 sps:$4 sm:$0xff]   ;;  %v3301_v21 = vpack.c.bf16 %v12981_v10, %v13001_v34  ;;  %v14733_v22 = vmax.f32 %v12511_v27, 0.0  ;;  %v9935_v27 = vadd.f32 %v12789_v42, %v12931_v55  ;;  %v10971_v32 = vld [vmem:[#allocation12 + $0x24] ss:$16 sps:$4 sm:$0xff]  }
 0x463   :  { %14729 = vst [vmem:[#allocation78_spill] sm:$0xff] %v12991_v5  ;;  %v12997_v19 = vadd.f32 %v3097_v6, %v14730_v18  ;;  %v3056_v6 = vmax.f32 %v9933_v43, 0.0  ;;  %v10965_v43 = vld [vmem:[#allocation12 + $0x4] ss:$16 sps:$4 sm:$0xff]   ;;  %v3064_v35 = vmax.f32 %v9937_v41, 0.0  ;;  %v14736_v42 = vmax.f32 %v12531_v15, 0.0 }
 0x464   :  { %4131 = vmatpush1.bf16.msra.mxu0 %v10945_v60  ;;  %4357 = vmatpush1.bf16.msra.mxu1 %v10948_v57  ;;  %v3327_v38 = vpack.c.bf16 %v12991_v5, %v12987_v29  ;;  %v3043_v60 = vmax.f32 %v9926_v1, 0.0  ;;  %v3052_v57 = vmax.f32 %v9931_v11, 0.0  ;;  %v10968_v1 = vld [vmem:[#allocation12 + $0xc] ss:$16 sps:$4 sm:$0xff]   ;;  %v14738_v15 = vmax.f32 %v12543_v30, 0.0 }
 0x465   :  { %v3326_v48 = vpack.c.bf16 %v12977_v61, %v12997_v19  ;;  %4132 = vmatprep.subr.bf16.mxu0 %v10953_v47  ;;  %4358 = vmatprep.subr.bf16.mxu1 %v10956_v26  ;;  %v13013_v47 = vadd.f32 %v3047_v23, %v14732_v59  ;;  %v9932_v26 = vadd.f32 %v12764_v50, %v12971_v4  ;;  %v10972_v59 = vld [vmem:[#allocation12 + $0x28] ss:$16 sps:$4 sm:$0xff]   ;;  %v10975_v30 = vld [vmem:[#allocation12 + $0x40] ss:$16 sps:$4 sm:$0xff]  }
 0x466   :  { %4093 = vmatprep.mubr.bf16.mxu0 %v3327_v38  ;;  %4319 = vmatprep.mubr.bf16.mxu1 %v3327_v38  ;;  %v13019_v31 = vadd.f32 %v3056_v6, %v14733_v22  ;;  %v13025_v18 = vadd.f32 %v3043_v60, %v14734_v9  ;;  %v9930_v50 = vadd.f32 %v12754_v12, %v12971_v4  ;;  %v10966_v12 = vld [vmem:[#allocation12 + $0x8] ss:$16 sps:$4 sm:$0xff]   ;;  %v3060_v6 = vmax.f32 %v9935_v27, 0.0  ;;  %v10986_v27 = vld [vmem:[#allocation12 + $0x6c] ss:$16 sps:$4 sm:$0xff]  }
 0x467   :  { %4094 = vmatmul.mubr.bf16.gmra.mrb[92].mxu0 %v3326_v48  ;;  %4320 = vmatmul.mubr.bf16.gmra.mrb[92].mxu1 %v3326_v48  ;;  %v13031_v11 = vadd.f32 %v3052_v57, %v14735_v20  ;;  %v3055_v38 = vmax.f32 %v9932_v26, 0.0  ;;  %v14737_v60 = vmax.f32 %v12539_v39, 0.0  ;;  %v10977_v26 = vld [vmem:[#allocation12 + $0x44] ss:$16 sps:$4 sm:$0xff]   ;;  %v14739_v39 = vmax.f32 %v12547_v0, 0.0  ;;  %v14799_v5 = vld [vmem:[#allocation103_spill] sm:$0xff] }
 0x468   :  { %4133 = vmatpush1.bf16.msra.mxu0 %v10951_v7  ;;  %4136 = vmatprep.mubr.bf16.mxu0 %v3301_v21  ;;  %v3300_v37 = vpack.c.bf16 %v13013_v47, %v13025_v18  ;;  %v10963_v7 = vld [vmem:[#allocation12] ss:$16 sps:$4 sm:$0xff]   ;;  %v3051_v48 = vmax.f32 %v9930_v50, 0.0  ;;  %v10983_v20 = vld [vmem:[#allocation12 + $0x64] ss:$16 sps:$4 sm:$0xff]  }
 0x469   :  { %4359 = vmatpush1.bf16.msra.mxu1 %v10954_v58  ;;  %4362 = vmatprep.mubr.bf16.mxu1 %v3301_v21  ;;  %v3305_v23 = vpack.c.bf16 %v13019_v31, %v13031_v11  ;;  %v10974_v58 = vld [vmem:[#allocation12 + $0x2c] ss:$16 sps:$4 sm:$0xff]   ;;  %v13041_v21 = vadd.f32 %v3055_v38, %v14736_v42  ;;  %v13047_v57 = vadd.f32 %v3064_v35, %v14737_v60  ;;  %v10981_v35 = vld [vmem:[#allocation12 + $0x60] ss:$16 sps:$4 sm:$0xff]  }
 0x46a   :  { %4134 = vmatprep.subr.bf16.mxu0 %v10959_v8  ;;  %4360 = vmatprep.subr.bf16.mxu1 %v10962_v2  ;;  %v9936_v8 = vadd.f32 %v12794_v54, %v12971_v4  ;;  %v10969_v2 = vld [vmem:[#allocation12 + $0x20] ss:$16 sps:$4 sm:$0xff]   ;;  %v9934_v54 = vadd.f32 %v12786_v13, %v12971_v4  ;;  %v13059_v22 = vadd.f32 %v3060_v6, %v14739_v39  ;;  %v10978_v13 = vld [vmem:[#allocation12 + $0x48] ss:$16 sps:$4 sm:$0xff]   ;;  %v10992_v42 = vld [vmem:[#allocation12 + $0x8c] ss:$16 sps:$4 sm:$0xff]  }
 0x46b   :  { %v9944_v39 = vadd.f32 %v12858_v25, %v12971_v4  ;;  %v14750_v25 = vld [vmem:[#allocation110_spill] sm:$0xff] }
 0x46c   :  { %4135 = vmatpush1.bf16.msra.mxu0 %v10957_v49  ;;  %v9941_v49 = vadd.f32 %v12831_v44, %v12931_v55  ;;  %v9939_v44 = vadd.f32 %v12821_v28, %v12931_v55  ;;  %v3063_v41 = vmax.f32 %v9936_v8, 0.0  ;;  %v3309_v50 = vpack.c.bf16 %v13047_v57, %v13059_v22 }
 0x46d   :  { %4361 = vmatpush1.bf16.msra.mxu1 %v10960_v56  ;;  %5393 = vmatprep.subr.bf16.mxu0 %v10965_v43  ;;  %v13053_v56 = vadd.f32 %v3051_v48, %v14738_v15  ;;  %v10980_v43 = vld [vmem:[#allocation12 + $0x4c] ss:$16 sps:$4 sm:$0xff]   ;;  %v3059_v0 = vmax.f32 %v9934_v54, 0.0  ;;  %v14740_v28 = vmax.f32 %v12559_v36, 0.0  ;;  %v10984_v48 = vld [vmem:[#allocation12 + $0x68] ss:$16 sps:$4 sm:$0xff]  }
 0x46e   :  { %5619 = vmatprep.subr.bf16.mxu1 %v10968_v1  ;;  %v3072_v9 = vmax.f32 %v9941_v49, 0.0  ;;  %v14742_v36 = vmax.f32 %v12571_v53, 0.0  ;;  %v10987_v53 = vld [vmem:[#allocation12 + $0x80] ss:$16 sps:$4 sm:$0xff]   ;;  %v10998_v15 = vld [vmem:[#allocation12 + $0xac] ss:$16 sps:$4 sm:$0xff]  }
 0x46f   :  { %4137 = vmatmul.mubr.bf16.vlgmr.msra.gmra.mrb[64].mxu0 %v3300_v37  ;;  %v3304_v1 = vpack.c.bf16 %v13041_v21, %v13053_v56  ;;  %v13069_v38 = vadd.f32 %v3063_v41, %v14740_v28  ;;  %v14745_v41 = vld [vmem:[#allocation84_spill] sm:$0xff]  ;;  %v11004_v28 = vld [vmem:[#allocation12 + $0xcc] ss:$16 sps:$4 sm:$0xff]  }
 0x470   :  { %4363 = vmatmul.mubr.bf16.vlgmr.msra.gmra.mrb[64].mxu1 %v3300_v37  ;;  %4146 = vmatprep.mubr.bf16.mxu0 %v3305_v23  ;;  %v3068_v37 = vmax.f32 %v9939_v44, 0.0  ;;  %v13081_v6 = vadd.f32 %v3059_v0, %v14742_v36  ;;  %v10993_v44 = vld [vmem:[#allocation12 + $0xa0] ss:$16 sps:$4 sm:$0xff]  }
 0x471   :  { %4372 = vmatprep.mubr.bf16.mxu1 %v3305_v23  ;;  %5394 = vmatpush1.bf16.msra.mxu0 %v10963_v7  ;;  %v9940_v7 = vadd.f32 %v12826_v63, %v12971_v4  ;;  %v14741_v23 = vmax.f32 %v12567_v46, 0.0  ;;  %v9938_v63 = vadd.f32 %v12818_v40, %v12971_v4  ;;  %v14743_v46 = vmax.f32 %v12575_v33, 0.0  ;;  %v10990_v40 = vld [vmem:[#allocation12 + $0x88] ss:$16 sps:$4 sm:$0xff]  }
 0x472   :  { %5620 = vmatpush1.bf16.msra.mxu1 %v10966_v12  ;;  %5395 = vmatprep.subr.bf16.mxu0 %v10971_v32  ;;  %v9945_v32 = vadd.f32 %v12863_v14, %v12931_v55  ;;  %v9943_v14 = vadd.f32 %v12853_v52, %v12931_v55  ;;  %v3308_v60 = vpack.c.bf16 %v13069_v38, %v13081_v6  ;;  %v14744_v52 = vmax.f32 %v12587_v17, 0.0  ;;  %v14748_v17 = vld [vmem:[#allocation85_spill] sm:$0xff] }
 0x473   :  { %5621 = vmatprep.subr.bf16.mxu1 %v10974_v58  ;;  %v13075_v12 = vadd.f32 %v3072_v9, %v14741_v23  ;;  %v10989_v58 = vld [vmem:[#allocation12 + $0x84] ss:$16 sps:$4 sm:$0xff]   ;;  %v13087_v8 = vadd.f32 %v3068_v37, %v14743_v46  ;;  %v3067_v33 = vmax.f32 %v9938_v63, 0.0  ;;  %v14749_v0 = vmax.f32 %v14748_v17, 0.0  ;;  %v10999_v63 = vld [vmem:[#allocation12 + $0xc0] ss:$16 sps:$4 sm:$0xff]  }
 0x474   :  { %v3080_v49 = vmax.f32 %v9945_v32, 0.0  ;;  %v3076_v54 = vmax.f32 %v9943_v14, 0.0  ;;  %v14747_v9 = vld [vmem:[#allocation114_spill] sm:$0xff]  ;;  %v9942_v37 = vadd.f32 %v14750_v25, %v12971_v4  ;;  %v14753_v32 = vld [vmem:[#allocation112_spill] sm:$0xff] }
 0x475   :  { %5396 = vmatpush1.bf16.msra.mxu0 %v10969_v2  ;;  %v3071_v2 = vmax.f32 %v9940_v7, 0.0  ;;  %v14751_v7 = vld [vmem:[#allocation86_spill] sm:$0xff] }
 0x476   :  { %5622 = vmatpush1.bf16.msra.mxu1 %v10972_v59  ;;  %5397 = vmatprep.subr.bf16.mxu0 %v10977_v26  ;;  %v3313_v59 = vpack.c.bf16 %v13075_v12, %v13087_v8  ;;  %v10995_v26 = vld [vmem:[#allocation12 + $0xa4] ss:$16 sps:$4 sm:$0xff]   ;;  %v11002_v14 = vld [vmem:[#allocation12 + $0xc8] ss:$16 sps:$4 sm:$0xff]  }
 0x477   :  { %4147 = vmatmul.mubr.bf16.gmra.mrb[68].mxu0 %v3304_v1  ;;  %5623 = vmatprep.subr.bf16.mxu1 %v10980_v43  ;;  %v13097_v43 = vadd.f32 %v3071_v2, %v14744_v52  ;;  %v11007_v2 = vld [vmem:[#allocation12 + $0xe4] ss:$16 sps:$4 sm:$0xff]  }
 0x478   :  { %4373 = vmatmul.mubr.bf16.gmra.mrb[68].mxu1 %v3304_v1  ;;  %4156 = vmatprep.mubr.bf16.mxu0 %v3309_v50  ;;  %v14746_v1 = vmax.f32 %v14745_v41, 0.0  ;;  %v14757_v52 = vld [vmem:[#allocation88_spill] sm:$0xff]  ;;  %v14759_v41 = vld [vmem:[#allocation118_spill] sm:$0xff] }
 0x479   :  { %4382 = vmatprep.mubr.bf16.mxu1 %v3309_v50  ;;  %5398 = vmatpush1.bf16.msra.mxu0 %v10975_v30  ;;  %v9949_v50 = vadd.f32 %v14747_v9, %v12931_v55  ;;  %v11008_v9 = vld [vmem:[#allocation12 + $0xe8] ss:$16 sps:$4 sm:$0xff]  }
 0x47a   :  { %5624 = vmatpush1.bf16.msra.mxu1 %v10978_v13  ;;  %5399 = vmatprep.subr.bf16.mxu0 %v10983_v20  ;;  %v13103_v30 = vadd.f32 %v3080_v49, %v14746_v1  ;;  %v10996_v13 = vld [vmem:[#allocation12 + $0xa8] ss:$16 sps:$4 sm:$0xff]   ;;  %v11001_v20 = vld [vmem:[#allocation12 + $0xc4] ss:$16 sps:$4 sm:$0xff]   ;;  %v9953_v1 = vadd.f32 %v14759_v41, %v12931_v55 }
 0x47b   :  { %5625 = vmatprep.subr.bf16.mxu1 %v10986_v27  ;;  %v13109_v27 = vadd.f32 %v3067_v33, %v14749_v0  ;;  %v14756_v33 = vld [vmem:[#allocation113_spill] sm:$0xff]  ;;  %v14762_v0 = vld [vmem:[#allocation111_spill] sm:$0xff] }
 0x47c   :  { %v9946_v25 = vadd.f32 %v14762_v0, %v12971_v4 }
 0x47d   :  { %5400 = vmatpush1.bf16.msra.mxu0 %v10981_v35  ;;  %v14752_v35 = vmax.f32 %v14751_v7, 0.0  ;;  %v3312_v36 = vpack.c.bf16 %v13097_v43, %v13109_v27 }
 0x47e   :  { %5626 = vmatpush1.bf16.msra.mxu1 %v10984_v48  ;;  %5401 = vmatprep.subr.bf16.mxu0 %v10989_v58  ;;  %v9947_v48 = vadd.f32 %v14753_v32, %v12931_v55  ;;  %v3079_v58 = vmax.f32 %v9944_v39, 0.0  ;;  %v14758_v39 = vmax.f32 %v14757_v52, 0.0  ;;  %v14765_v32 = vld [vmem:[#allocation116_spill] sm:$0xff] }
 0x47f   :  { %4157 = vmatmul.mubr.bf16.gmra.mrb[72].mxu0 %v3308_v60  ;;  %5627 = vmatprep.subr.bf16.mxu1 %v10992_v42  ;;  %v13115_v23 = vadd.f32 %v3076_v54, %v14752_v35  ;;  %v3088_v42 = vmax.f32 %v9949_v50, 0.0  ;;  %v11005_v54 = vld [vmem:[#allocation12 + $0xe0] ss:$16 sps:$4 sm:$0xff]   ;;  %v11013_v50 = vld [vmem:[#allocation12 + $0x104] ss:$16 sps:$4 sm:$0xff]  }
 0x480   :  { %4383 = vmatmul.mubr.bf16.gmra.mrb[72].mxu1 %v3308_v60  ;;  %4166 = vmatprep.mubr.bf16.mxu0 %v3313_v59  ;;  %v3075_v60 = vmax.f32 %v9942_v37, 0.0  ;;  %v3084_v49 = vmax.f32 %v9947_v48, 0.0  ;;  %v11016_v37 = vld [vmem:[#allocation12 + $0x10c] ss:$16 sps:$4 sm:$0xff]   ;;  %v9951_v48 = vadd.f32 %v14765_v32, %v12931_v55  ;;  %v11017_v52 = vld [vmem:[#allocation12 + $0x120] ss:$16 sps:$4 sm:$0xff]  }
 0x481   :  { %4392 = vmatprep.mubr.bf16.mxu1 %v3313_v59  ;;  %5402 = vmatpush1.bf16.msra.mxu0 %v10987_v53  ;;  %v3317_v46 = vpack.c.bf16 %v13103_v30, %v13115_v23  ;;  %v11010_v53 = vld [vmem:[#allocation12 + $0xec] ss:$16 sps:$4 sm:$0xff]   ;;  %v14774_v32 = vld [vmem:[#allocation94_spill] sm:$0xff] }
 0x482   :  { %5628 = vmatpush1.bf16.msra.mxu1 %v10990_v40  ;;  %5403 = vmatprep.subr.bf16.mxu0 %v10995_v26  ;;  %v14754_v59 = vld [vmem:[#allocation87_spill] sm:$0xff] }
 0x483   :  { %5629 = vmatprep.subr.bf16.mxu1 %v10998_v15  ;;  %v14755_v40 = vmax.f32 %v14754_v59, 0.0  ;;  %v9948_v15 = vadd.f32 %v14756_v33, %v12971_v4  ;;  %v14766_v59 = vld [vmem:[#allocation91_spill] sm:$0xff] }
 0x485   :  { %5404 = vmatpush1.bf16.msra.mxu0 %v10993_v44  ;;  %v13125_v26 = vadd.f32 %v3079_v58, %v14755_v40  ;;  %v13131_v44 = vadd.f32 %v3088_v42, %v14758_v39  ;;  %v3087_v58 = vmax.f32 %v9948_v15, 0.0  ;;  %v3096_v42 = vmax.f32 %v9953_v1, 0.0  ;;  %v14768_v15 = vld [vmem:[#allocation117_spill] sm:$0xff]  ;;  %v14769_v39 = vld [vmem:[#allocation92_spill] sm:$0xff] }
 0x486   :  { %5630 = vmatpush1.bf16.msra.mxu1 %v10996_v13  ;;  %5405 = vmatprep.subr.bf16.mxu0 %v11001_v20  ;;  %v14760_v13 = vld [vmem:[#allocation89_spill] sm:$0xff]  ;;  %v14767_v40 = vmax.f32 %v14766_v59, 0.0  ;;  %v14770_v41 = vmax.f32 %v14769_v39, 0.0 }
 0x487   :  { %4167 = vmatmul.mubr.bf16.gmra.mrb[76].mxu0 %v3312_v36  ;;  %5631 = vmatprep.subr.bf16.mxu1 %v11004_v28  ;;  %v14761_v20 = vmax.f32 %v14760_v13, 0.0  ;;  %v14763_v28 = vld [vmem:[#allocation90_spill] sm:$0xff] }
 0x488   :  { %4393 = vmatmul.mubr.bf16.gmra.mrb[76].mxu1 %v3312_v36  ;;  %4176 = vmatprep.mubr.bf16.mxu0 %v3317_v46  ;;  %v14764_v7 = vmax.f32 %v14763_v28, 0.0  ;;  %v13153_v33 = vadd.f32 %v3087_v58, %v14767_v40  ;;  %v13159_v1 = vadd.f32 %v3096_v42, %v14770_v41  ;;  %v11025_v13 = vld [vmem:[#allocation12 + $0x144] ss:$16 sps:$4 sm:$0xff]   ;;  %v11029_v39 = vld [vmem:[#allocation12 + $0x160] ss:$16 sps:$4 sm:$0xff]  }
 0x489   :  { %4402 = vmatprep.mubr.bf16.mxu1 %v3317_v46  ;;  %5406 = vmatpush1.bf16.msra.mxu0 %v10999_v63  ;;  %v13137_v17 = vadd.f32 %v3075_v60, %v14761_v20  ;;  %v11011_v63 = vld [vmem:[#allocation12 + $0x100] ss:$16 sps:$4 sm:$0xff]   ;;  %v3083_v60 = vmax.f32 %v9946_v25, 0.0 }
 0x48a   :  { %5632 = vmatpush1.bf16.msra.mxu1 %v11002_v14  ;;  %5407 = vmatprep.subr.bf16.mxu0 %v11007_v2  ;;  %v13143_v35 = vadd.f32 %v3084_v49, %v14764_v7  ;;  %v11014_v14 = vld [vmem:[#allocation12 + $0x108] ss:$16 sps:$4 sm:$0xff]   ;;  %v11019_v2 = vld [vmem:[#allocation12 + $0x124] ss:$16 sps:$4 sm:$0xff]   ;;  %v3092_v49 = vmax.f32 %v9951_v48, 0.0  ;;  %v14775_v48 = vmax.f32 %v14774_v32, 0.0 }
 0x48b   :  { %5633 = vmatprep.subr.bf16.mxu1 %v11010_v53  ;;  %v3316_v36 = vpack.c.bf16 %v13125_v26, %v13137_v17  ;;  %v11022_v53 = vld [vmem:[#allocation12 + $0x12c] ss:$16 sps:$4 sm:$0xff]   ;;  %v14779_v41 = vld [vmem:[#allocation96_spill] sm:$0xff] }
 0x48c   :  { %v3321_v46 = vpack.c.bf16 %v13131_v44, %v13143_v35  ;;  %v14771_v20 = vld [vmem:[#allocation93_spill] sm:$0xff]  ;;  %v13171_v58 = vadd.f32 %v3092_v49, %v14775_v48  ;;  %v14785_v48 = vld [vmem:[#allocation98_spill] sm:$0xff] }
 0x48d   :  { %5408 = vmatpush1.bf16.msra.mxu0 %v11005_v54  ;;  %v9952_v54 = vadd.f32 %v14768_v15, %v12971_v4  ;;  %v14772_v0 = vmax.f32 %v14771_v20, 0.0  ;;  %v11028_v7 = vld [vmem:[#allocation12 + $0x14c] ss:$16 sps:$4 sm:$0xff]   ;;  %v11037_v20 = vld [vmem:[#allocation12 + $0x184] ss:$16 sps:$4 sm:$0xff]  }
 0x48e   :  { %5634 = vmatpush1.bf16.msra.mxu1 %v11008_v9  ;;  %5409 = vmatprep.subr.bf16.mxu0 %v11013_v50  ;;  %v9957_v9 = vadd.f32 %v12967_v16, %v12931_v55  ;;  %v11020_v50 = vld [vmem:[#allocation12 + $0x128] ss:$16 sps:$4 sm:$0xff]   ;;  %v11034_v49 = vld [vmem:[#allocation12 + $0x16c] ss:$16 sps:$4 sm:$0xff]  }
 0x48f   :  { %4177 = vmatmul.mubr.bf16.gmra.mrb[80].mxu0 %v3316_v36  ;;  %5635 = vmatprep.subr.bf16.mxu1 %v11016_v37  ;;  %v13165_v25 = vadd.f32 %v3083_v60, %v14772_v0  ;;  %v14773_v37 = vld [vmem:[#allocation115_spill] sm:$0xff]  ;;  %v14782_v0 = vld [vmem:[#allocation97_spill] sm:$0xff] }
 0x490   :  { %4403 = vmatmul.mubr.bf16.gmra.mrb[80].mxu1 %v3316_v36  ;;  %4186 = vmatprep.mubr.bf16.mxu0 %v3321_v46  ;;  %v9950_v28 = vadd.f32 %v14773_v37, %v12971_v4  ;;  %v14776_v36 = vld [vmem:[#allocation81_spill] sm:$0xff]  ;;  %v14783_v37 = vmax.f32 %v14782_v0, 0.0 }
 0x491   :  { %4412 = vmatprep.mubr.bf16.mxu1 %v3321_v46  ;;  %5410 = vmatpush1.bf16.msra.mxu0 %v11011_v63  ;;  %v9955_v16 = vadd.f32 %v14776_v36, %v12931_v55  ;;  %v3095_v63 = vmax.f32 %v9952_v54, 0.0  ;;  %v3320_v42 = vpack.c.bf16 %v13153_v33, %v13165_v25  ;;  %v11023_v46 = vld [vmem:[#allocation12 + $0x140] ss:$16 sps:$4 sm:$0xff]   ;;  %v11026_v60 = vld [vmem:[#allocation12 + $0x148] ss:$16 sps:$4 sm:$0xff]   ;;  %v14786_v36 = vmax.f32 %v14785_v48, 0.0 }
 0x492   :  { %5636 = vmatpush1.bf16.msra.mxu1 %v11014_v14  ;;  %5411 = vmatprep.subr.bf16.mxu0 %v11019_v2  ;;  %v3104_v14 = vmax.f32 %v9957_v9, 0.0  ;;  %v3325_v2 = vpack.c.bf16 %v13159_v1, %v13171_v58  ;;  %v3091_v59 = vmax.f32 %v9950_v28, 0.0  ;;  %v14777_v55 = vld [vmem:[#allocation95_spill] sm:$0xff]  ;;  %v14780_v9 = vmax.f32 %v14779_v41, 0.0 }
 0x493   :  { %5637 = vmatprep.subr.bf16.mxu1 %v11022_v53  ;;  %v11031_v53 = vld [vmem:[#allocation12 + $0x164] ss:$16 sps:$4 sm:$0xff]   ;;  %v3100_v40 = vmax.f32 %v9955_v16, 0.0  ;;  %v14778_v15 = vmax.f32 %v14777_v55, 0.0  ;;  %v11041_v41 = vld [vmem:[#allocation12 + $0x1a0] ss:$16 sps:$4 sm:$0xff]  }
 0x494   :  { %v13191_v28 = vadd.f32 %v3091_v59, %v14783_v37  ;;  %v11047_v0 = vld [vmem:[#allocation12 + $0x1c0] ss:$16 sps:$4 sm:$0xff]   ;;  %v11050_v37 = vld [vmem:[#allocation12 + $0x1c8] ss:$16 sps:$4 sm:$0xff]  }
 0x495   :  { %5412 = vmatpush1.bf16.msra.mxu0 %v11017_v52  ;;  %v13181_v54 = vadd.f32 %v3095_v63, %v14778_v15  ;;  %v9956_v52 = vadd.f32 %v12962_v45, %v12971_v4  ;;  %v11040_v45 = vld [vmem:[#allocation12 + $0x18c] ss:$16 sps:$4 sm:$0xff]   ;;  %v13197_v16 = vadd.f32 %v3100_v40, %v14786_v36  ;;  %v11056_v48 = vld [vmem:[#allocation12 + $0x1e8] ss:$16 sps:$4 sm:$0xff]   ;;  %v11061_v36 = vld [vmem:[#allocation12 + $0x204] ss:$16 sps:$4 sm:$0xff]  }
 0x496   :  { %5638 = vmatpush1.bf16.msra.mxu1 %v11020_v50  ;;  %5413 = vmatprep.subr.bf16.mxu0 %v11025_v13  ;;  %v13187_v50 = vadd.f32 %v3104_v14, %v14780_v9  ;;  %v11032_v13 = vld [vmem:[#allocation12 + $0x168] ss:$16 sps:$4 sm:$0xff]  }
 0x497   :  { %4187 = vmatmul.mubr.bf16.gmra.mrb[84].mxu0 %v3320_v42  ;;  %5639 = vmatprep.subr.bf16.mxu1 %v11028_v7  ;;  %v14784_v7 = vld [vmem:[#allocation77_spill] sm:$0xff]  ;;  %14787 = vst [vmem:[#allocation84_spill] sm:$0xff] %v13197_v16  ;;  %v3103_v63 = vmax.f32 %v9956_v52, 0.0  ;;  %v11043_v52 = vld [vmem:[#allocation12 + $0x1a4] ss:$16 sps:$4 sm:$0xff]  }
 0x498   :  { %4413 = vmatmul.mubr.bf16.gmra.mrb[84].mxu1 %v3320_v42  ;;  %4196 = vmatprep.mubr.bf16.mxu0 %v3325_v2  ;;  %14781 = vst [vmem:[#allocation83_spill] sm:$0xff] %v13187_v50  ;;  %v9954_v32 = vadd.f32 %v14784_v7, %v12971_v4  ;;  %v3324_v42 = vpack.c.bf16 %v13181_v54, %v13191_v28  ;;  %v14788_v4 = vld [vmem:[#allocation99_spill] sm:$0xff]  ;;  %v11055_v7 = vld [vmem:[#allocation12 + $0x1e4] ss:$16 sps:$4 sm:$0xff]  }
 0x499   :  { %4422 = vmatprep.mubr.bf16.mxu1 %v3325_v2  ;;  %5414 = vmatpush1.bf16.msra.mxu0 %v11023_v46  ;;  %v11035_v46 = vld [vmem:[#allocation12 + $0x180] ss:$16 sps:$4 sm:$0xff]   ;;  %v3329_v14 = vpack.c.bf16 %v13187_v50, %v13197_v16  ;;  %v11038_v2 = vld [vmem:[#allocation12 + $0x188] ss:$16 sps:$4 sm:$0xff]  }
 0x49a   :  { %5640 = vmatpush1.bf16.msra.mxu1 %v11026_v60  ;;  %5415 = vmatprep.subr.bf16.mxu0 %v11031_v53  ;;  %v3099_v60 = vmax.f32 %v9954_v32, 0.0  ;;  %v14789_v53 = vmax.f32 %v14788_v4, 0.0  ;;  %v11044_v9 = vld [vmem:[#allocation12 + $0x1a8] ss:$16 sps:$4 sm:$0xff]   ;;  %v11058_v32 = vld [vmem:[#allocation12 + $0x1ec] ss:$16 sps:$4 sm:$0xff]  }
 0x49b   :  { %5641 = vmatprep.subr.bf16.mxu1 %v11034_v49  ;;  %v14791_v49 = vld [vmem:[#allocation100_spill] sm:$0xff] }
 0x49c   :  { %v13205_v59 = vadd.f32 %v3103_v63, %v14789_v53  ;;  %v14792_v40 = vmax.f32 %v14791_v49, 0.0  ;;  %v11064_v63 = vld [vmem:[#allocation12 + $0x20c] ss:$16 sps:$4 sm:$0xff]   ;;  %v14795_v53 = vld [vmem:[#allocation80_spill] sm:$0xff] }
 0x49d   :  { %5416 = vmatpush1.bf16.msra.mxu0 %v11029_v39  ;;  %v11046_v39 = vld [vmem:[#allocation12 + $0x1ac] ss:$16 sps:$4 sm:$0xff]  }
 0x49e   :  { %5642 = vmatpush1.bf16.msra.mxu1 %v11032_v13  ;;  %5417 = vmatprep.subr.bf16.mxu0 %v11037_v20  ;;  %14790 = vst [vmem:[#allocation114_spill] sm:$0xff] %v13205_v59  ;;  %v13209_v55 = vadd.f32 %v3099_v60, %v14792_v40  ;;  %v11049_v13 = vld [vmem:[#allocation12 + $0x1c4] ss:$16 sps:$4 sm:$0xff]   ;;  %v11052_v20 = vld [vmem:[#allocation12 + $0x1cc] ss:$16 sps:$4 sm:$0xff]  }
 0x49f   :  { %4197 = vmatmul.mubr.bf16.gmra.mrb[88].mxu0 %v3324_v42  ;;  %5643 = vmatprep.subr.bf16.mxu1 %v11040_v45  ;;  %v11053_v45 = vld [vmem:[#allocation12 + $0x1e0] ss:$16 sps:$4 sm:$0xff]  }
 0x4a0   :  { %4423 = vmatmul.mubr.bf16.gmra.mrb[88].mxu1 %v3324_v42  ;;  %4206 = vmatprep.mubr.bf16.mxu0 %v3329_v14  ;;  %v3328_v15 = vpack.c.bf16 %v13205_v59, %v13209_v55  ;;  %v3297_v42 = vld [vmem:[#allocation10] sm:$0xf] }
 0x4a1   :  { %4432 = vmatprep.mubr.bf16.mxu1 %v3329_v14  ;;  %5418 = vmatpush1.bf16.msra.mxu0 %v11035_v46  ;;  %v14793_v46 = vld [vmem:[#allocation60_spill] sm:$0xff]  ;;  %v14794_v60 = vld [vmem:[#allocation61_spill] sm:$0xff]  ;;  %v13223_v49 = vrot.slane %v3297_v42, %v14795_v53 }
 0x4a2   :  { %5644 = vmatpush1.bf16.msra.mxu1 %v11038_v2  ;;  %5419 = vmatprep.subr.bf16.mxu0 %v11043_v52  ;;  %v13214_v14 = vrot.slane %v3297_v42, %v14793_v46  ;;  %v13217_v2 = vrot.slane %v3297_v42, %v12466_v24  ;;  %v13220_v4 = vrot.slane %v3297_v42, %v14794_v60 }
 0x4a3   :  { %5645 = vmatprep.subr.bf16.mxu1 %v11046_v39 }
 0x4a5   :  { %5420 = vmatpush1.bf16.msra.mxu0 %v11041_v41 }
 0x4a6   :  { %5646 = vmatpush1.bf16.msra.mxu1 %v11044_v9  ;;  %5421 = vmatprep.subr.bf16.mxu0 %v11049_v13 }
 0x4a7   :  { %4207 = vmatmul.mubr.bf16.gmra.mrb[92].mxu0 %v3328_v15  ;;  %5647 = vmatprep.subr.bf16.mxu1 %v11052_v20 }
 0x4a8   :  { %4433 = vmatmul.mubr.bf16.gmra.mrb[92].mxu1 %v3328_v15 }
 0x4a9   :  { %5422 = vmatpush1.bf16.msra.mxu0 %v11047_v0 }
 0x4aa   :  { %5648 = vmatpush1.bf16.msra.mxu1 %v11050_v37  ;;  %5423 = vmatprep.subr.bf16.mxu0 %v11055_v7 }
 0x4ab   :  { %5649 = vmatprep.subr.bf16.mxu1 %v11058_v32 }
 0x4ad   :  { %5424 = vmatpush1.bf16.msra.mxu0 %v11053_v45 }
 0x4ae   :  { %5650 = vmatpush1.bf16.msra.mxu1 %v11056_v48  ;;  %5506 = vmatprep.subr.bf16.mxu0 %v11061_v36 }
 0x4af   :  { %5732 = vmatprep.subr.bf16.mxu1 %v11064_v63 }
 0x542   :  { %v4138_v40 = vpop.f32.mrb[64].mxu0 }
 0x543   :  { %v9958_v15 = vadd.f32 %v4138_v40, %v13214_v14  ;;  %v4364_v52 = vpop.f32.mrb[64].mxu1  ;;  %v4140_v39 = vpop.f32.mrb[65].mxu0 }
 0x544   :  { %v9990_v41 = vadd.f32 %v4364_v52, %v13217_v2  ;;  %v9959_v9 = vadd.f32 %v4140_v39, %v13220_v4  ;;  %v4366_v13 = vpop.f32.mrb[65].mxu1  ;;  %v4142_v20 = vpop.f32.mrb[66].mxu0 }
 0x545   :  { %v4443_v0 = vmax.f32 %v9958_v15, 0.0  ;;  %v9991_v37 = vadd.f32 %v4366_v13, %v13223_v49  ;;  %v9960_v7 = vadd.f32 %v4142_v20, %v13214_v14  ;;  %v4368_v32 = vpop.f32.mrb[66].mxu1  ;;  %v4144_v45 = vpop.f32.mrb[67].mxu0  ;;  %v14796_v15 = vld [vmem:[#allocation104_spill] sm:$0xff]  ;;  %v14797_v13 = vld [vmem:[#allocation101_spill] sm:$0xff] }
 0x546   :  { %v4445_v48 = vmax.f32 %v9990_v41, 0.0  ;;  %v4444_v36 = vmax.f32 %v9959_v9, 0.0  ;;  %v9992_v63 = vadd.f32 %v4368_v32, %v13217_v2  ;;  %v9961_v42 = vadd.f32 %v4144_v45, %v13220_v4  ;;  %v4370_v40 = vpop.f32.mrb[67].mxu1  ;;  %v14798_v41 = vld [vmem:[#allocation102_spill] sm:$0xff] }
 0x547   :  { %v4446_v53 = vmax.f32 %v9991_v37, 0.0  ;;  %v4447_v52 = vmax.f32 %v9960_v7, 0.0  ;;  %v9993_v39 = vadd.f32 %v4370_v40, %v13223_v49  ;;  %v4507_v46 = vadd.f32 %v4443_v0, %v14796_v15 }
 0x548   :  { %v4449_v24 = vmax.f32 %v9992_v63, 0.0  ;;  %v4448_v60 = vmax.f32 %v9961_v42, 0.0  ;;  %v4509_v16 = vadd.f32 %v4445_v48, %v13025_v18  ;;  %v4508_v9 = vadd.f32 %v4444_v36, %v14798_v41 }
 0x549   :  { %v4511_v50 = vadd.f32 %v4447_v52, %v14797_v13  ;;  %v4450_v20 = vmax.f32 %v9993_v39, 0.0  ;;  %v4510_v37 = vadd.f32 %v4446_v53, %v13001_v34  ;;  %v11059_v52 = vld [vmem:[#allocation12 + $0x200] ss:$16 sps:$4 sm:$0xff]  }
 0x54a   :  { %v4513_v32 = vadd.f32 %v4449_v24, %v13013_v47  ;;  %v4512_v45 = vadd.f32 %v4448_v60, %v14799_v5  ;;  %v4148_v59 = vpop.f32.mrb[68].mxu0  ;;  %v11062_v47 = vld [vmem:[#allocation12 + $0x208] ss:$16 sps:$4 sm:$0xff]   ;;  %v11067_v5 = vld [vmem:[#allocation12 + $0x224] ss:$16 sps:$4 sm:$0xff]  }
 0x54b   :  { %v4700_v7 = vpack.c.bf16 %v4511_v50, %v4507_v46  ;;  %v4514_v63 = vadd.f32 %v4450_v20, %v12981_v10  ;;  %v9962_v42 = vadd.f32 %v4148_v59, %v13214_v14  ;;  %v4374_v0 = vpop.f32.mrb[68].mxu1  ;;  %v4150_v40 = vpop.f32.mrb[69].mxu0  ;;  %v11070_v59 = vld [vmem:[#allocation12 + $0x22c] ss:$16 sps:$4 sm:$0xff]  }
 0x54c   :  { %v13242_v39 = vpack.c.bf16 %v4513_v32, %v4509_v16  ;;  %v9963_v18 = vadd.f32 %v4150_v40, %v13220_v4  ;;  %v4376_v48 = vpop.f32.mrb[69].mxu1  ;;  %v4152_v36 = vpop.f32.mrb[70].mxu0  ;;  %v4701_v24 = vpack.c.bf16 %v4512_v45, %v4508_v9  ;;  %v9994_v16 = vadd.f32 %v4374_v0, %v13217_v2  ;;  %v14801_v0 = vld [vmem:[#allocation108_spill] sm:$0xff] }
 0x54d   :  { %v4451_v60 = vmax.f32 %v9962_v42, 0.0  ;;  %v9995_v34 = vadd.f32 %v4376_v48, %v13223_v49  ;;  %v9964_v50 = vadd.f32 %v4152_v36, %v13214_v14  ;;  %v4378_v10 = vpop.f32.mrb[70].mxu1  ;;  %v4154_v46 = vpop.f32.mrb[71].mxu0  ;;  %v13247_v53 = vpack.c.bf16 %v4514_v63, %v4510_v37  ;;  %v11065_v37 = vld [vmem:[#allocation12 + $0x220] ss:$16 sps:$4 sm:$0xff]  }
 0x54e   :  { %14800 = vst [vmem:[#allocation85_spill] sm:$0xff] %v13242_v39  ;;  %v4452_v15 = vmax.f32 %v9963_v18, 0.0  ;;  %v9996_v13 = vadd.f32 %v4378_v10, %v13217_v2  ;;  %v9965_v20 = vadd.f32 %v4154_v46, %v13220_v4  ;;  %v4380_v41 = vpop.f32.mrb[71].mxu1  ;;  %5425 = vmatprep.mubr.bf16.mxu0 %v4701_v24  ;;  %5651 = vmatprep.mubr.bf16.mxu1 %v4701_v24  ;;  %v11068_v63 = vld [vmem:[#allocation12 + $0x228] ss:$16 sps:$4 sm:$0xff]  }
 0x54f   :  { %v4454_v9 = vmax.f32 %v9995_v34, 0.0  ;;  %v4455_v32 = vmax.f32 %v9964_v50, 0.0  ;;  %v9997_v45 = vadd.f32 %v4380_v41, %v13223_v49  ;;  %5426 = vmatmul.mubr.bf16.vlgmr.msra.gmra.mrb[96].mxu0 %v4700_v7  ;;  %5652 = vmatmul.mubr.bf16.vlgmr.msra.gmra.mrb[96].mxu1 %v4700_v7  ;;  %v4515_v18 = vadd.f32 %v4451_v60, %v14801_v0  ;;  %v14802_v48 = vld [vmem:[#allocation105_spill] sm:$0xff]  ;;  %v11073_v24 = vld [vmem:[#allocation12 + $0x244] ss:$16 sps:$4 sm:$0xff]   ;;  %v14804_v39 = vld [vmem:[#allocation107_spill] sm:$0xff] }
 0x550   :  { %v4457_v42 = vmax.f32 %v9996_v13, 0.0  ;;  %v4456_v40 = vmax.f32 %v9965_v20, 0.0  ;;  %5507 = vmatpush1.bf16.msra.mxu0 %v11059_v52  ;;  %5733 = vmatpush1.bf16.msra.mxu1 %v11062_v47  ;;  %v11076_v34 = vld [vmem:[#allocation12 + $0x24c] ss:$16 sps:$4 sm:$0xff]   ;;  %v4453_v50 = vmax.f32 %v9994_v16, 0.0  ;;  %v14803_v46 = vld [vmem:[#allocation106_spill] sm:$0xff] }
 0x551   :  { %v4519_v36 = vadd.f32 %v4455_v32, %v14802_v48  ;;  %v4458_v10 = vmax.f32 %v9997_v45, 0.0  ;;  %5508 = vmatprep.subr.bf16.mxu0 %v11067_v5  ;;  %5734 = vmatprep.subr.bf16.mxu1 %v11070_v59  ;;  %v4516_v41 = vadd.f32 %v4452_v15, %v14803_v46  ;;  %v4518_v52 = vadd.f32 %v4454_v9, %v13031_v11  ;;  %v11071_v45 = vld [vmem:[#allocation12 + $0x240] ss:$16 sps:$4 sm:$0xff]   ;;  %v11074_v15 = vld [vmem:[#allocation12 + $0x248] ss:$16 sps:$4 sm:$0xff]  }
 0x552   :  { %v4520_v7 = vadd.f32 %v4456_v40, %v14804_v39  ;;  %v4158_v13 = vpop.f32.mrb[72].mxu0  ;;  %v4521_v5 = vadd.f32 %v4457_v42, %v13041_v21  ;;  %v11079_v40 = vld [vmem:[#allocation12 + $0x264] ss:$16 sps:$4 sm:$0xff]  }
 0x553   :  { %v4522_v47 = vadd.f32 %v4458_v10, %v13019_v31  ;;  %v9966_v20 = vadd.f32 %v4158_v13, %v13214_v14  ;;  %v4384_v60 = vpop.f32.mrb[72].mxu1  ;;  %v4160_v0 = vpop.f32.mrb[73].mxu0  ;;  %v4704_v32 = vpack.c.bf16 %v4519_v36, %v4515_v18  ;;  %v11082_v18 = vld [vmem:[#allocation12 + $0x26c] ss:$16 sps:$4 sm:$0xff]  }
 0x554   :  { %v9967_v59 = vadd.f32 %v4160_v0, %v13220_v4  ;;  %v4386_v16 = vpop.f32.mrb[73].mxu1  ;;  %v4162_v48 = vpop.f32.mrb[74].mxu0  ;;  %5509 = vmatpush1.bf16.msra.mxu0 %v11065_v37  ;;  %5735 = vmatpush1.bf16.msra.mxu1 %v11068_v63  ;;  %v4705_v39 = vpack.c.bf16 %v4520_v7, %v4516_v41  ;;  %v13267_v42 = vadd.f32 %v4384_v60, %v13217_v2  ;;  %v11080_v60 = vld [vmem:[#allocation12 + $0x268] ss:$16 sps:$4 sm:$0xff]  }
 0x555   :  { %v4459_v11 = vmax.f32 %v9966_v20, 0.0  ;;  %v9999_v31 = vadd.f32 %v4386_v16, %v13223_v49  ;;  %v9968_v9 = vadd.f32 %v4162_v48, %v13214_v14  ;;  %v4388_v10 = vpop.f32.mrb[74].mxu1  ;;  %v4164_v46 = vpop.f32.mrb[75].mxu0  ;;  %5510 = vmatprep.subr.bf16.mxu0 %v11073_v24  ;;  %5736 = vmatprep.subr.bf16.mxu1 %v11076_v34  ;;  %v13264_v21 = vpack.c.bf16 %v4522_v47, %v4518_v52  ;;  %v11077_v47 = vld [vmem:[#allocation12 + $0x260] ss:$16 sps:$4 sm:$0xff]  }
 0x556   :  { %v4460_v37 = vmax.f32 %v9967_v59, 0.0  ;;  %v10000_v63 = vadd.f32 %v4388_v10, %v13217_v2  ;;  %v9969_v36 = vadd.f32 %v4164_v46, %v13220_v4  ;;  %v4390_v41 = vpop.f32.mrb[75].mxu1  ;;  %5435 = vmatprep.mubr.bf16.mxu0 %v4705_v39  ;;  %5661 = vmatprep.mubr.bf16.mxu1 %v4705_v39  ;;  %v4517_v7 = vadd.f32 %v4453_v50, %v13053_v56  ;;  %v14805_v0 = vld [vmem:[#allocation63_spill] sm:$0xff]  ;;  %v14806_v16 = vld [vmem:[#allocation109_spill] sm:$0xff]  ;;  %v11085_v56 = vld [vmem:[#allocation12 + $0x284] ss:$16 sps:$4 sm:$0xff]  }
 0x557   :  { %v4462_v13 = vmax.f32 %v9999_v31, 0.0  ;;  %v4463_v20 = vmax.f32 %v9968_v9, 0.0  ;;  %v10001_v24 = vadd.f32 %v4390_v41, %v13223_v49  ;;  %5436 = vmatmul.mubr.bf16.gmra.mrb[100].mxu0 %v4704_v32  ;;  %5662 = vmatmul.mubr.bf16.gmra.mrb[100].mxu1 %v4704_v32  ;;  %v4523_v59 = vadd.f32 %v4459_v11, %v14805_v0  ;;  %v11088_v50 = vld [vmem:[#allocation12 + $0x28c] ss:$16 sps:$4 sm:$0xff]   ;;  %v14807_v32 = vld [vmem:[#allocation62_spill] sm:$0xff]  ;;  %v14808_v46 = vld [vmem:[#allocation64_spill] sm:$0xff] }
 0x558   :  { %v4465_v34 = vmax.f32 %v10000_v63, 0.0  ;;  %v4464_v52 = vmax.f32 %v9969_v36, 0.0  ;;  %5511 = vmatpush1.bf16.msra.mxu0 %v11071_v45  ;;  %5737 = vmatpush1.bf16.msra.mxu1 %v11074_v15  ;;  %v13275_v39 = vpack.c.bf16 %v4521_v5, %v4517_v7  ;;  %v4461_v31 = vmax.f32 %v13267_v42, 0.0  ;;  %v11091_v0 = vld [vmem:[#allocation12 + $0x2a4] ss:$16 sps:$4 sm:$0xff]  }
 0x559   :  { %v4527_v48 = vadd.f32 %v4463_v20, %v14806_v16  ;;  %v4466_v10 = vmax.f32 %v10001_v24, 0.0  ;;  %5512 = vmatprep.subr.bf16.mxu0 %v11079_v40  ;;  %5738 = vmatprep.subr.bf16.mxu1 %v11082_v18  ;;  %v4524_v9 = vadd.f32 %v4460_v37, %v14807_v32  ;;  %v4526_v63 = vadd.f32 %v4462_v13, %v13059_v22  ;;  %v11083_v20 = vld [vmem:[#allocation12 + $0x280] ss:$16 sps:$4 sm:$0xff]  }
 0x55a   :  { %v4528_v45 = vadd.f32 %v4464_v52, %v14808_v46  ;;  %v4168_v15 = vpop.f32.mrb[76].mxu0  ;;  %v4529_v5 = vadd.f32 %v4465_v34, %v13069_v38  ;;  %v11086_v52 = vld [vmem:[#allocation12 + $0x288] ss:$16 sps:$4 sm:$0xff]  }
 0x55b   :  { %v4530_v11 = vadd.f32 %v4466_v10, %v13047_v57  ;;  %v9970_v36 = vadd.f32 %v4168_v15, %v13214_v14  ;;  %v4394_v41 = vpop.f32.mrb[76].mxu1  ;;  %v4170_v40 = vpop.f32.mrb[77].mxu0  ;;  %v4708_v18 = vpack.c.bf16 %v4527_v48, %v4523_v59  ;;  %v11094_v59 = vld [vmem:[#allocation12 + $0x2ac] ss:$16 sps:$4 sm:$0xff]  }
 0x55c   :  { %v9971_v7 = vadd.f32 %v4170_v40, %v13220_v4  ;;  %v4396_v42 = vpop.f32.mrb[77].mxu1  ;;  %v4172_v24 = vpop.f32.mrb[78].mxu0  ;;  %5513 = vmatpush1.bf16.msra.mxu0 %v11077_v47  ;;  %5739 = vmatpush1.bf16.msra.mxu1 %v11080_v60  ;;  %v4709_v37 = vpack.c.bf16 %v4528_v45, %v4524_v9  ;;  %v13290_v34 = vadd.f32 %v4394_v41, %v13217_v2  ;;  %v14810_v40 = vld [vmem:[#allocation67_spill] sm:$0xff] }
 0x55d   :  { %v4467_v22 = vmax.f32 %v9970_v36, 0.0  ;;  %v10003_v57 = vadd.f32 %v4396_v42, %v13223_v49  ;;  %v9972_v13 = vadd.f32 %v4172_v24, %v13214_v14  ;;  %v4398_v16 = vpop.f32.mrb[78].mxu1  ;;  %v4174_v10 = vpop.f32.mrb[79].mxu0  ;;  %5514 = vmatprep.subr.bf16.mxu0 %v11085_v56  ;;  %5740 = vmatprep.subr.bf16.mxu1 %v11088_v50  ;;  %v13287_v38 = vpack.c.bf16 %v4530_v11, %v4526_v63  ;;  %v11089_v63 = vld [vmem:[#allocation12 + $0x2a0] ss:$16 sps:$4 sm:$0xff]  }
 0x55e   :  { %v4468_v47 = vmax.f32 %v9971_v7, 0.0  ;;  %v10004_v60 = vadd.f32 %v4398_v16, %v13217_v2  ;;  %v9973_v48 = vadd.f32 %v4174_v10, %v13220_v4  ;;  %v4400_v32 = vpop.f32.mrb[79].mxu1  ;;  %5445 = vmatprep.mubr.bf16.mxu0 %v4709_v37  ;;  %5671 = vmatprep.mubr.bf16.mxu1 %v4709_v37  ;;  %v4525_v9 = vadd.f32 %v4461_v31, %v13081_v6  ;;  %v11092_v11 = vld [vmem:[#allocation12 + $0x2a8] ss:$16 sps:$4 sm:$0xff]   ;;  %v11097_v6 = vld [vmem:[#allocation12 + $0x2c4] ss:$16 sps:$4 sm:$0xff]  }
 0x55f   :  { %v4470_v46 = vmax.f32 %v10003_v57, 0.0  ;;  %v4471_v45 = vmax.f32 %v9972_v13, 0.0  ;;  %v10005_v56 = vadd.f32 %v4400_v32, %v13223_v49  ;;  %5446 = vmatmul.mubr.bf16.gmra.mrb[104].mxu0 %v4708_v18  ;;  %5672 = vmatmul.mubr.bf16.gmra.mrb[104].mxu1 %v4708_v18  ;;  %v14809_v36 = vld [vmem:[#allocation66_spill] sm:$0xff]  ;;  %v11100_v31 = vld [vmem:[#allocation12 + $0x2cc] ss:$16 sps:$4 sm:$0xff]   ;;  %v4469_v37 = vmax.f32 %v13290_v34, 0.0 }
 0x560   :  { %v4473_v50 = vmax.f32 %v10004_v60, 0.0  ;;  %v4472_v15 = vmax.f32 %v9973_v48, 0.0  ;;  %5515 = vmatpush1.bf16.msra.mxu0 %v11083_v20  ;;  %5741 = vmatpush1.bf16.msra.mxu1 %v11086_v52  ;;  %v4531_v41 = vadd.f32 %v4467_v22, %v14809_v36  ;;  %v13298_v24 = vpack.c.bf16 %v4529_v5, %v4525_v9  ;;  %v14811_v18 = vld [vmem:[#allocation65_spill] sm:$0xff]  ;;  %v14812_v13 = vld [vmem:[#allocation68_spill] sm:$0xff] }
 0x561   :  { %v4535_v7 = vadd.f32 %v4471_v45, %v14810_v40  ;;  %v4474_v42 = vmax.f32 %v10005_v56, 0.0  ;;  %5516 = vmatprep.subr.bf16.mxu0 %v11091_v0  ;;  %5742 = vmatprep.subr.bf16.mxu1 %v11094_v59  ;;  %v4532_v57 = vadd.f32 %v4468_v47, %v14811_v18  ;;  %v4534_v16 = vadd.f32 %v4470_v46, %v13087_v8  ;;  %v11095_v48 = vld [vmem:[#allocation12 + $0x2c0] ss:$16 sps:$4 sm:$0xff]   ;;  %v11098_v45 = vld [vmem:[#allocation12 + $0x2c8] ss:$16 sps:$4 sm:$0xff]  }
 0x562   :  { %v4536_v20 = vadd.f32 %v4472_v15, %v14812_v13  ;;  %v4178_v52 = vpop.f32.mrb[80].mxu0  ;;  %v4537_v5 = vadd.f32 %v4473_v50, %v13097_v43  ;;  %v11103_v56 = vld [vmem:[#allocation12 + $0x2e4] ss:$16 sps:$4 sm:$0xff]  }
 0x563   :  { %v4538_v22 = vadd.f32 %v4474_v42, %v13075_v12  ;;  %v9974_v10 = vadd.f32 %v4178_v52, %v13214_v14  ;;  %v4404_v60 = vpop.f32.mrb[80].mxu1  ;;  %v4180_v0 = vpop.f32.mrb[81].mxu0  ;;  %v4712_v59 = vpack.c.bf16 %v4535_v7, %v4531_v41  ;;  %v11106_v41 = vld [vmem:[#allocation12 + $0x2ec] ss:$16 sps:$4 sm:$0xff]   ;;  %v4533_v42 = vadd.f32 %v4469_v37, %v13109_v27  ;;  %v11104_v52 = vld [vmem:[#allocation12 + $0x2e8] ss:$16 sps:$4 sm:$0xff]  }
 0x564   :  { %v9975_v32 = vadd.f32 %v4180_v0, %v13220_v4  ;;  %v4406_v34 = vpop.f32.mrb[81].mxu1  ;;  %v4182_v9 = vpop.f32.mrb[82].mxu0  ;;  %5517 = vmatpush1.bf16.msra.mxu0 %v11089_v63  ;;  %5743 = vmatpush1.bf16.msra.mxu1 %v11092_v11  ;;  %v4713_v47 = vpack.c.bf16 %v4536_v20, %v4532_v57  ;;  %v13313_v50 = vadd.f32 %v4404_v60, %v13217_v2  ;;  %v11101_v20 = vld [vmem:[#allocation12 + $0x2e0] ss:$16 sps:$4 sm:$0xff]   ;;  %v11109_v27 = vld [vmem:[#allocation12 + $0x304] ss:$16 sps:$4 sm:$0xff]  }
 0x565   :  { %v4475_v8 = vmax.f32 %v9974_v10, 0.0  ;;  %v10007_v12 = vadd.f32 %v4406_v34, %v13223_v49  ;;  %v9976_v46 = vadd.f32 %v4182_v9, %v13214_v14  ;;  %v4408_v15 = vpop.f32.mrb[82].mxu1  ;;  %v4184_v36 = vpop.f32.mrb[83].mxu0  ;;  %5518 = vmatprep.subr.bf16.mxu0 %v11097_v6  ;;  %5744 = vmatprep.subr.bf16.mxu1 %v11100_v31  ;;  %v13310_v43 = vpack.c.bf16 %v4538_v22, %v4534_v16  ;;  %v14813_v16 = vld [vmem:[#allocation70_spill] sm:$0xff]  ;;  %v14814_v10 = vld [vmem:[#allocation71_spill] sm:$0xff] }
 0x566   :  { %v4476_v63 = vmax.f32 %v9975_v32, 0.0  ;;  %v10008_v11 = vadd.f32 %v4408_v15, %v13217_v2  ;;  %v9977_v40 = vadd.f32 %v4184_v36, %v13220_v4  ;;  %v4410_v7 = vpop.f32.mrb[83].mxu1  ;;  %5455 = vmatprep.mubr.bf16.mxu0 %v4713_v47  ;;  %5681 = vmatprep.mubr.bf16.mxu1 %v4713_v47  ;;  %v11112_v37 = vld [vmem:[#allocation12 + $0x30c] ss:$16 sps:$4 sm:$0xff]   ;;  %v13321_v32 = vpack.c.bf16 %v4537_v5, %v4533_v42  ;;  %v14816_v47 = vld [vmem:[#allocation72_spill] sm:$0xff] }
 0x567   :  { %v4478_v18 = vmax.f32 %v10007_v12, 0.0  ;;  %v4479_v57 = vmax.f32 %v9976_v46, 0.0  ;;  %v10009_v6 = vadd.f32 %v4410_v7, %v13223_v49  ;;  %5456 = vmatmul.mubr.bf16.gmra.mrb[108].mxu0 %v4712_v59  ;;  %5682 = vmatmul.mubr.bf16.gmra.mrb[108].mxu1 %v4712_v59  ;;  %v4539_v22 = vadd.f32 %v4475_v8, %v14813_v16  ;;  %v14815_v59 = vld [vmem:[#allocation69_spill] sm:$0xff]  ;;  %v11115_v42 = vld [vmem:[#allocation12 + $0x324] ss:$16 sps:$4 sm:$0xff]  }
 0x568   :  { %v4481_v31 = vmax.f32 %v10008_v11, 0.0  ;;  %v4480_v13 = vmax.f32 %v9977_v40, 0.0  ;;  %5519 = vmatpush1.bf16.msra.mxu0 %v11095_v48  ;;  %5745 = vmatpush1.bf16.msra.mxu1 %v11098_v45  ;;  %v4477_v34 = vmax.f32 %v13313_v50, 0.0  ;;  %v4540_v9 = vadd.f32 %v4476_v63, %v14815_v59  ;;  %v11110_v7 = vld [vmem:[#allocation12 + $0x308] ss:$16 sps:$4 sm:$0xff]  }
 0x569   :  { %v4543_v60 = vadd.f32 %v4479_v57, %v14814_v10  ;;  %v4482_v0 = vmax.f32 %v10009_v6, 0.0  ;;  %5520 = vmatprep.subr.bf16.mxu0 %v11103_v56  ;;  %5746 = vmatprep.subr.bf16.mxu1 %v11106_v41  ;;  %v4542_v12 = vadd.f32 %v4478_v18, %v13115_v23  ;;  %v11107_v41 = vld [vmem:[#allocation12 + $0x300] ss:$16 sps:$4 sm:$0xff]  }
 0x56a   :  { %v4544_v48 = vadd.f32 %v4480_v13, %v14816_v47  ;;  %v4188_v45 = vpop.f32.mrb[84].mxu0  ;;  %v4545_v5 = vadd.f32 %v4481_v31, %v13125_v26  ;;  %v11118_v13 = vld [vmem:[#allocation12 + $0x32c] ss:$16 sps:$4 sm:$0xff]   ;;  %v4541_v10 = vadd.f32 %v4477_v34, %v13137_v17  ;;  %v11116_v47 = vld [vmem:[#allocation12 + $0x328] ss:$16 sps:$4 sm:$0xff]  }
 0x56b   :  { %v4546_v8 = vadd.f32 %v4482_v0, %v13103_v30  ;;  %v9978_v46 = vadd.f32 %v4188_v45, %v13214_v14  ;;  %v4414_v15 = vpop.f32.mrb[84].mxu1  ;;  %v4190_v56 = vpop.f32.mrb[85].mxu0  ;;  %v4716_v36 = vpack.c.bf16 %v4543_v60, %v4539_v22  ;;  %v11121_v17 = vld [vmem:[#allocation12 + $0x344] ss:$16 sps:$4 sm:$0xff]   ;;  %v11124_v34 = vld [vmem:[#allocation12 + $0x34c] ss:$16 sps:$4 sm:$0xff]  }
 0x56c   :  { %v9979_v11 = vadd.f32 %v4190_v56, %v13220_v4  ;;  %v4416_v50 = vpop.f32.mrb[85].mxu1  ;;  %v4192_v40 = vpop.f32.mrb[86].mxu0  ;;  %5521 = vmatpush1.bf16.msra.mxu0 %v11101_v20  ;;  %5747 = vmatpush1.bf16.msra.mxu1 %v11104_v52  ;;  %v4717_v63 = vpack.c.bf16 %v4544_v48, %v4540_v9  ;;  %v13336_v31 = vadd.f32 %v4414_v15, %v13217_v2  ;;  %v11113_v9 = vld [vmem:[#allocation12 + $0x320] ss:$16 sps:$4 sm:$0xff]  }
 0x56d   :  { %v4483_v23 = vmax.f32 %v9978_v46, 0.0  ;;  %v10011_v30 = vadd.f32 %v4416_v50, %v13223_v49  ;;  %v9980_v18 = vadd.f32 %v4192_v40, %v13214_v14  ;;  %v4418_v57 = vpop.f32.mrb[86].mxu1  ;;  %v4194_v6 = vpop.f32.mrb[87].mxu0  ;;  %5522 = vmatprep.subr.bf16.mxu0 %v11109_v27  ;;  %5748 = vmatprep.subr.bf16.mxu1 %v11112_v37  ;;  %v13333_v26 = vpack.c.bf16 %v4546_v8, %v4542_v12  ;;  %v14817_v48 = vld [vmem:[#allocation74_spill] sm:$0xff]  ;;  %v14818_v12 = vld [vmem:[#allocation75_spill] sm:$0xff]  ;;  %v14820_v50 = vld [vmem:[#allocation76_spill] sm:$0xff] }
 0x56e   :  { %v4484_v20 = vmax.f32 %v9979_v11, 0.0  ;;  %v10012_v52 = vadd.f32 %v4418_v57, %v13217_v2  ;;  %v9981_v16 = vadd.f32 %v4194_v6, %v13220_v4  ;;  %v4420_v22 = vpop.f32.mrb[87].mxu1  ;;  %5465 = vmatprep.mubr.bf16.mxu0 %v4717_v63  ;;  %5691 = vmatprep.mubr.bf16.mxu1 %v4717_v63  ;;  %v13344_v15 = vpack.c.bf16 %v4545_v5, %v4541_v10  ;;  %v11119_v57 = vld [vmem:[#allocation12 + $0x340] ss:$16 sps:$4 sm:$0xff]  }
 0x56f   :  { %v4486_v60 = vmax.f32 %v10011_v30, 0.0  ;;  %v4487_v0 = vmax.f32 %v9980_v18, 0.0  ;;  %v10013_v27 = vadd.f32 %v4420_v22, %v13223_v49  ;;  %5466 = vmatmul.mubr.bf16.gmra.mrb[112].mxu0 %v4716_v36  ;;  %5692 = vmatmul.mubr.bf16.gmra.mrb[112].mxu1 %v4716_v36  ;;  %v4547_v45 = vadd.f32 %v4483_v23, %v14817_v48  ;;  %v14819_v36 = vld [vmem:[#allocation73_spill] sm:$0xff] }
 0x570   :  { %v4489_v37 = vmax.f32 %v10012_v52, 0.0  ;;  %v4488_v59 = vmax.f32 %v9981_v16, 0.0  ;;  %5523 = vmatpush1.bf16.msra.mxu0 %v11107_v41  ;;  %5749 = vmatpush1.bf16.msra.mxu1 %v11110_v7  ;;  %v4485_v56 = vmax.f32 %v13336_v31, 0.0  ;;  %v4548_v11 = vadd.f32 %v4484_v20, %v14819_v36  ;;  %v11122_v52 = vld [vmem:[#allocation12 + $0x348] ss:$16 sps:$4 sm:$0xff]  }
 0x571   :  { %v4551_v8 = vadd.f32 %v4487_v0, %v14818_v12  ;;  %v4490_v46 = vmax.f32 %v10013_v27, 0.0  ;;  %5524 = vmatprep.subr.bf16.mxu0 %v11115_v42  ;;  %5750 = vmatprep.subr.bf16.mxu1 %v11118_v13  ;;  %v4550_v63 = vadd.f32 %v4486_v60, %v13143_v35  ;;  %v11127_v16 = vld [vmem:[#allocation12 + $0x364] ss:$16 sps:$4 sm:$0xff]   ;;  %v11130_v0 = vld [vmem:[#allocation12 + $0x36c] ss:$16 sps:$4 sm:$0xff]  }
 0x572   :  { %v4552_v41 = vadd.f32 %v4488_v59, %v14820_v50  ;;  %v4198_v40 = vpop.f32.mrb[88].mxu0  ;;  %v4553_v5 = vadd.f32 %v4489_v37, %v13153_v33  ;;  %v4549_v48 = vadd.f32 %v4485_v56, %v13165_v25  ;;  %v11128_v36 = vld [vmem:[#allocation12 + $0x368] ss:$16 sps:$4 sm:$0xff]   ;;  %v11133_v25 = vld [vmem:[#allocation12 + $0x384] ss:$16 sps:$4 sm:$0xff]  }
 0x573   :  { %v4554_v7 = vadd.f32 %v4490_v46, %v13131_v44  ;;  %v9982_v23 = vadd.f32 %v4198_v40, %v13214_v14  ;;  %v4424_v30 = vpop.f32.mrb[88].mxu1  ;;  %v4200_v42 = vpop.f32.mrb[89].mxu0  ;;  %v4720_v18 = vpack.c.bf16 %v4551_v8, %v4547_v45  ;;  %v11136_v56 = vld [vmem:[#allocation12 + $0x38c] ss:$16 sps:$4 sm:$0xff]  }
 0x574   :  { %v9983_v6 = vadd.f32 %v4200_v42, %v13220_v4  ;;  %v4426_v13 = vpop.f32.mrb[89].mxu1  ;;  %v4202_v31 = vpop.f32.mrb[90].mxu0  ;;  %5525 = vmatpush1.bf16.msra.mxu0 %v11113_v9  ;;  %5751 = vmatpush1.bf16.msra.mxu1 %v11116_v47  ;;  %v4721_v20 = vpack.c.bf16 %v4552_v41, %v4548_v11  ;;  %v13359_v27 = vadd.f32 %v4424_v30, %v13217_v2  ;;  %v14821_v30 = vld [vmem:[#allocation79_spill] sm:$0xff] }
 0x575   :  { %v4491_v35 = vmax.f32 %v9982_v23, 0.0  ;;  %v10015_v44 = vadd.f32 %v4426_v13, %v13223_v49  ;;  %v9984_v22 = vadd.f32 %v4202_v31, %v13214_v14  ;;  %v4428_v10 = vpop.f32.mrb[90].mxu1  ;;  %v4204_v60 = vpop.f32.mrb[91].mxu0  ;;  %5526 = vmatprep.subr.bf16.mxu0 %v11121_v17  ;;  %5752 = vmatprep.subr.bf16.mxu1 %v11124_v34  ;;  %v13356_v33 = vpack.c.bf16 %v4554_v7, %v4550_v63  ;;  %v11125_v34 = vld [vmem:[#allocation12 + $0x360] ss:$16 sps:$4 sm:$0xff]  }
 0x576   :  { %v4492_v37 = vmax.f32 %v9983_v6, 0.0  ;;  %v10016_v59 = vadd.f32 %v4428_v10, %v13217_v2  ;;  %v9985_v9 = vadd.f32 %v4204_v60, %v13220_v4  ;;  %v4430_v47 = vpop.f32.mrb[91].mxu1  ;;  %5475 = vmatprep.mubr.bf16.mxu0 %v4721_v20  ;;  %5701 = vmatprep.mubr.bf16.mxu1 %v4721_v20  ;;  %v13367_v40 = vpack.c.bf16 %v4553_v5, %v4549_v48  ;;  %v11131_v5 = vld [vmem:[#allocation12 + $0x380] ss:$16 sps:$4 sm:$0xff]  }
 0x577   :  { %v4494_v45 = vmax.f32 %v10015_v44, 0.0  ;;  %v4495_v12 = vmax.f32 %v9984_v22, 0.0  ;;  %v10017_v8 = vadd.f32 %v4430_v47, %v13223_v49  ;;  %5476 = vmatmul.mubr.bf16.gmra.mrb[116].mxu0 %v4720_v18  ;;  %5702 = vmatmul.mubr.bf16.gmra.mrb[116].mxu1 %v4720_v18  ;;  %v4555_v11 = vadd.f32 %v4491_v35, %v12949_v3  ;;  %v11134_v35 = vld [vmem:[#allocation12 + $0x388] ss:$16 sps:$4 sm:$0xff]   ;;  %v11139_v44 = vld [vmem:[#allocation12 + $0x3a4] ss:$16 sps:$4 sm:$0xff]  }
 0x578   :  { %v4497_v46 = vmax.f32 %v10016_v59, 0.0  ;;  %v4496_v17 = vmax.f32 %v9985_v9, 0.0  ;;  %5527 = vmatpush1.bf16.msra.mxu0 %v11119_v57  ;;  %5753 = vmatpush1.bf16.msra.mxu1 %v11122_v52  ;;  %v4493_v63 = vmax.f32 %v13359_v27, 0.0  ;;  %v4556_v7 = vadd.f32 %v4492_v37, %v12941_v62 }
 0x579   :  { %v4559_v50 = vadd.f32 %v4495_v12, %v12935_v51  ;;  %v4498_v41 = vmax.f32 %v10017_v8, 0.0  ;;  %5528 = vmatprep.subr.bf16.mxu0 %v11127_v16  ;;  %5754 = vmatprep.subr.bf16.mxu1 %v11130_v0  ;;  %v4558_v23 = vadd.f32 %v4494_v45, %v13171_v58  ;;  %v11142_v0 = vld [vmem:[#allocation12 + $0x3ac] ss:$16 sps:$4 sm:$0xff]  }
 0x57a   :  { %v4560_v42 = vadd.f32 %v4496_v17, %v14821_v30  ;;  %v4208_v18 = vpop.f32.mrb[92].mxu0  ;;  %v4561_v3 = vadd.f32 %v4497_v46, %v13181_v54  ;;  %v4557_v45 = vadd.f32 %v4493_v63, %v13191_v28  ;;  %v11145_v28 = vld [vmem:[#allocation12 + $0x3c4] ss:$16 sps:$4 sm:$0xff]  }
 0x57b   :  { %v4562_v51 = vadd.f32 %v4498_v41, %v13159_v1  ;;  %v9986_v57 = vadd.f32 %v4208_v18, %v13214_v14  ;;  %v4434_v6 = vpop.f32.mrb[92].mxu1  ;;  %v4210_v13 = vpop.f32.mrb[93].mxu0  ;;  %v4724_v31 = vpack.c.bf16 %v4559_v50, %v4555_v11  ;;  %v11148_v50 = vld [vmem:[#allocation12 + $0x3cc] ss:$16 sps:$4 sm:$0xff]   ;;  %v14824_v30 = vld [vmem:[#allocation84_spill] sm:$0xff] }
 0x57c   :  { %v10018_v20 = vadd.f32 %v4434_v6, %v13217_v2  ;;  %v9987_v52 = vadd.f32 %v4210_v13, %v13220_v4  ;;  %v4436_v62 = vpop.f32.mrb[93].mxu1  ;;  %v4212_v16 = vpop.f32.mrb[94].mxu0  ;;  %5529 = vmatpush1.bf16.msra.mxu0 %v11125_v34  ;;  %5755 = vmatpush1.bf16.msra.mxu1 %v11128_v36  ;;  %v4725_v58 = vpack.c.bf16 %v4560_v42, %v4556_v7  ;;  %v11137_v34 = vld [vmem:[#allocation12 + $0x3a0] ss:$16 sps:$4 sm:$0xff]   ;;  %v11140_v36 = vld [vmem:[#allocation12 + $0x3a8] ss:$16 sps:$4 sm:$0xff]  }
 0x57d   :  { %v4499_v54 = vmax.f32 %v9986_v57, 0.0  ;;  %v10019_v1 = vadd.f32 %v4436_v62, %v13223_v49  ;;  %v9988_v22 = vadd.f32 %v4212_v16, %v13214_v14  ;;  %v4438_v10 = vpop.f32.mrb[94].mxu1  ;;  %v4214_v60 = vpop.f32.mrb[95].mxu0  ;;  %5530 = vmatprep.subr.bf16.mxu0 %v11133_v25  ;;  %5756 = vmatprep.subr.bf16.mxu1 %v11136_v56  ;;  %v13380_v27 = vpack.c.bf16 %v4562_v51, %v4558_v23  ;;  %v14822_v56 = vld [vmem:[#allocation114_spill] sm:$0xff]  ;;  %v11154_v13 = vld [vmem:[#allocation12 + $0x3ec] ss:$16 sps:$4 sm:$0xff]  }
 0x57e   :  { %v4501_v37 = vmax.f32 %v10018_v20, 0.0  ;;  %v4500_v59 = vmax.f32 %v9987_v52, 0.0  ;;  %v10020_v9 = vadd.f32 %v4438_v10, %v13217_v2  ;;  %v9989_v47 = vadd.f32 %v4214_v60, %v13220_v4  ;;  %v4440_v48 = vpop.f32.mrb[95].mxu1  ;;  %5485 = vmatprep.mubr.bf16.mxu0 %v4725_v58  ;;  %5711 = vmatprep.mubr.bf16.mxu1 %v4725_v58  ;;  %v14823_v7 = vld [vmem:[#allocation78_spill] sm:$0xff]  ;;  %v11155_v52 = vld [vmem:[%s14826_s24] ss:$8 sps:$4 sm:$0xff]  }
 0x57f   :  { %v4502_v12 = vmax.f32 %v10019_v1, 0.0  ;;  %v4503_v14 = vmax.f32 %v9988_v22, 0.0  ;;  %v10021_v8 = vadd.f32 %v4440_v48, %v13223_v49  ;;  %5486 = vmatmul.mubr.bf16.gmra.mrb[120].mxu0 %v4724_v31  ;;  %5712 = vmatmul.mubr.bf16.gmra.mrb[120].mxu1 %v4724_v31  ;;  %v4563_v2 = vadd.f32 %v4499_v54, %v12997_v19  ;;  %v14825_v19 = vld [vmem:[#allocation83_spill] sm:$0xff]  ;;  %v11157_v20 = vld [vmem:[%s14826_s24 + $0x4] ss:$8 sps:$4 sm:$0xff]  }
 0x580   :  { %v4505_v46 = vmax.f32 %v10020_v9, 0.0  ;;  %v4504_v17 = vmax.f32 %v9989_v47, 0.0  ;;  %5531 = vmatpush1.bf16.msra.mxu0 %v11131_v5  ;;  %5757 = vmatpush1.bf16.msra.mxu1 %v11134_v35  ;;  %v13388_v41 = vpack.c.bf16 %v4561_v3, %v4557_v45  ;;  %v4565_v49 = vadd.f32 %v4501_v37, %v13209_v55  ;;  %v11143_v57 = vld [vmem:[#allocation12 + $0x3c0] ss:$16 sps:$4 sm:$0xff]   ;;  %v11146_v55 = vld [vmem:[#allocation12 + $0x3c8] ss:$16 sps:$4 sm:$0xff]  }
 0x581   :  { %v4567_v4 = vadd.f32 %v4503_v14, %v12977_v61  ;;  %v4506_v11 = vmax.f32 %v10021_v8, 0.0  ;;  %5532 = vmatprep.subr.bf16.mxu0 %v11139_v44  ;;  %5758 = vmatprep.subr.bf16.mxu1 %v11142_v0  ;;  %v4564_v25 = vadd.f32 %v4500_v59, %v12987_v29  ;;  %v4566_v42 = vadd.f32 %v4502_v12, %v14824_v30  ;;  %v11151_v3 = vld [vmem:[#allocation12 + $0x3e4] ss:$16 sps:$4 sm:$0xff]   ;;  %v11149_v31 = vld [vmem:[#allocation12 + $0x3e0] ss:$16 sps:$4 sm:$0xff]  }
 0x582   :  { %v4569_v63 = vadd.f32 %v4505_v46, %v14822_v56  ;;  %v4568_v23 = vadd.f32 %v4504_v17, %v14823_v7  ;;  %v11152_v5 = vld [vmem:[#allocation12 + $0x3e8] ss:$16 sps:$4 sm:$0xff]   ;;  %v11161_v35 = vld [vmem:[%s14826_s24 + $0x20] ss:$8 sps:$4 sm:$0xff]   ;;  %v11200_v14 = vld [vmem:[%s14826_s24 + $0xf0] ss:$8 sps:$4 sm:$0xff]  }
 0x583   :  { %v4570_v18 = vadd.f32 %v4506_v11, %v14825_v19  ;;  %v4728_v61 = vpack.c.bf16 %v4567_v4, %v4563_v2  ;;  %v11160_v62 = vld [vmem:[%s14826_s24 + $0x14] ss:$8 sps:$4 sm:$0xff]   ;;  %v14827_v16 = vld [vmem:[#allocation85_spill] sm:$0xff] }
 0x584   :  { %5533 = vmatpush1.bf16.msra.mxu0 %v11137_v34  ;;  %5759 = vmatpush1.bf16.msra.mxu1 %v11140_v36  ;;  %v4729_v51 = vpack.c.bf16 %v4568_v23, %v4564_v25  ;;  %v13396_v6 = vpack.c.bf16 %v4569_v63, %v4565_v49  ;;  %v11163_v58 = vld [vmem:[%s14826_s24 + $0x24] ss:$8 sps:$4 sm:$0xff]   ;;  %v11166_v44 = vld [vmem:[%s14826_s24 + $0x34] ss:$8 sps:$4 sm:$0xff]   ;;  %v11167_v1 = vld [vmem:[%s14826_s24 + $0x40] ss:$8 sps:$4 sm:$0xff]  }
 0x585   :  { %5534 = vmatprep.subr.bf16.mxu0 %v11145_v28  ;;  %5760 = vmatprep.subr.bf16.mxu1 %v11148_v50  ;;  %v13398_v29 = vpack.c.bf16 %v4570_v18, %v4566_v42  ;;  %v11169_v54 = vld [vmem:[%s14826_s24 + $0x44] ss:$8 sps:$4 sm:$0xff]   ;;  %v11172_v22 = vld [vmem:[%s14826_s24 + $0x54] ss:$8 sps:$4 sm:$0xff]   ;;  %v11173_v10 = vld [vmem:[%s14826_s24 + $0x60] ss:$8 sps:$4 sm:$0xff]  }
 0x586   :  { %5495 = vmatprep.mubr.bf16.mxu0 %v4729_v51  ;;  %5721 = vmatprep.mubr.bf16.mxu1 %v4729_v51  ;;  %v11178_v60 = vld [vmem:[%s14826_s24 + $0x74] ss:$8 sps:$4 sm:$0xff]   ;;  %v11179_v0 = vld [vmem:[%s14826_s24 + $0x80] ss:$8 sps:$4 sm:$0xff]   ;;  %v11199_v45 = vld [vmem:[%s14826_s24 + $0xe4] ss:$8 sps:$4 sm:$0xff]  }
 0x587   :  { %5496 = vmatmul.mubr.bf16.gmra.mrb[124].mxu0 %v4728_v61  ;;  %5722 = vmatmul.mubr.bf16.gmra.mrb[124].mxu1 %v4728_v61  ;;  %v11184_v37 = vld [vmem:[%s14826_s24 + $0x94] ss:$8 sps:$4 sm:$0xff]   ;;  %v11185_v59 = vld [vmem:[%s14826_s24 + $0xa0] ss:$8 sps:$4 sm:$0xff]   ;;  %v4699_v36 = vld [vmem:[#allocation13] sm:$0xf] }
 0x588   :  { %5535 = vmatpush1.bf16.msra.mxu0 %v11143_v57  ;;  %5538 = vmatprep.mubr.bf16.mxu0 %v13247_v53  ;;  %v11190_v9 = vld [vmem:[%s14826_s24 + $0xb4] ss:$8 sps:$4 sm:$0xff]   ;;  %v11191_v47 = vld [vmem:[%s14826_s24 + $0xc0] ss:$8 sps:$4 sm:$0xff]  }
 0x589   :  { %5761 = vmatpush1.bf16.msra.mxu1 %v11146_v55  ;;  %5764 = vmatprep.mubr.bf16.mxu1 %v13247_v53  ;;  %v11158_v53 = vld [vmem:[%s14826_s24 + $0x10] ss:$8 sps:$4 sm:$0xff]   ;;  %v11197_v48 = vld [vmem:[%s14826_s24 + $0xe0] ss:$8 sps:$4 sm:$0xff]   ;;  %v11202_v12 = vld [vmem:[%s14826_s24 + $0xf4] ss:$8 sps:$4 sm:$0xff]  }
 0x58a   :  { %5536 = vmatprep.subr.bf16.mxu0 %v11151_v3  ;;  %5762 = vmatprep.subr.bf16.mxu1 %v11154_v13  ;;  %v11203_v8 = vld [vmem:[%s14828_s8] sm:$0xff]   ;;  %v11204_v46 = vld [vmem:[%s14828_s8 + $0x8] sm:$0xff]   ;;  %v11205_v17 = vld [vmem:[%s14828_s8 + $0x10] sm:$0xff]  }
 0x58b   :  { %v11206_v34 = vld [vmem:[%s14828_s8 + $0x18] sm:$0xff]   ;;  %v14830_v11 = vld [vmem:[#allocation61_spill] sm:$0xff]  ;;  %v14831_v50 = vld [vmem:[#allocation82_spill] sm:$0xff] }
 0x58c   :  { %5537 = vmatpush1.bf16.msra.mxu0 %v11149_v31  ;;  %v14829_v2 = vld [vmem:[#allocation60_spill] sm:$0xff]  ;;  %v13472_v28 = vrot.slane %v4699_v36, %v14830_v11 }
 0x58d   :  { %5763 = vmatpush1.bf16.msra.mxu1 %v11152_v5  ;;  %6129 = vmatprep.subr.bf16.mxu0 %v11157_v20  ;;  %v13469_v4 = vrot.slane %v4699_v36, %v14829_v2  ;;  %v14832_v25 = vld [vmem:[#allocation80_spill] sm:$0xff] }
 0x58e   :  { %9478 = vmatprep.subr.bf16.mxu1 %v11203_v8  ;;  %v13478_v56 = vrot.slane %v4699_v36, %v14832_v25 }
 0x58f   :  { %5539 = vmatmul.mubr.bf16.vlgmr.msra.gmra.mrb[96].mxu0 %v14827_v16 }
 0x590   :  { %5765 = vmatmul.mubr.bf16.vlgmr.msra.gmra.mrb[96].mxu1 %v14827_v16  ;;  %5548 = vmatprep.mubr.bf16.mxu0 %v13264_v21 }
 0x591   :  { %5774 = vmatprep.mubr.bf16.mxu1 %v13264_v21  ;;  %6130 = vmatpush1.bf16.msra.mxu0 %v11155_v52  ;;  %v11164_v21 = vld [vmem:[%s14826_s24 + $0x30] ss:$8 sps:$4 sm:$0xff]  }
 0x592   :  { %6131 = vmatprep.subr.bf16.mxu0 %v11160_v62  ;;  %9479 = vmatpush3.bf16.msra.mxu1 %v11203_v8 }
 0x593   :  { %9480 = vmatprep.subr.bf16.mxu1 %v11204_v46 }
 0x595   :  { %6132 = vmatpush1.bf16.msra.mxu0 %v11158_v53 }
 0x596   :  { %6133 = vmatprep.subr.bf16.mxu0 %v11163_v58  ;;  %9481 = vmatpush3.bf16.msra.mxu1 %v11204_v46 }
 0x597   :  { %5549 = vmatmul.mubr.bf16.gmra.mrb[100].mxu0 %v13275_v39  ;;  %9482 = vmatprep.subr.bf16.mxu1 %v11205_v17 }
 0x598   :  { %5775 = vmatmul.mubr.bf16.gmra.mrb[100].mxu1 %v13275_v39  ;;  %5558 = vmatprep.mubr.bf16.mxu0 %v13287_v38  ;;  %v11170_v39 = vld [vmem:[%s14826_s24 + $0x50] ss:$8 sps:$4 sm:$0xff]  }
 0x599   :  { %5784 = vmatprep.mubr.bf16.mxu1 %v13287_v38  ;;  %6134 = vmatpush1.bf16.msra.mxu0 %v11161_v35  ;;  %v11175_v38 = vld [vmem:[%s14826_s24 + $0x64] ss:$8 sps:$4 sm:$0xff]  }
 0x59a   :  { %6135 = vmatprep.subr.bf16.mxu0 %v11166_v44  ;;  %9483 = vmatpush3.bf16.msra.mxu1 %v11205_v17 }
 0x59b   :  { %9484 = vmatprep.subr.bf16.mxu1 %v11206_v34 }
 0x59d   :  { %6136 = vmatpush1.bf16.msra.mxu0 %v11164_v21 }
 0x59e   :  { %6137 = vmatprep.subr.bf16.mxu0 %v11169_v54  ;;  %9485 = vmatpush3.bf16.msra.mxu1 %v11206_v34 }
 0x59f   :  { %5559 = vmatmul.mubr.bf16.gmra.mrb[104].mxu0 %v13298_v24 }
 0x5a0   :  { %5785 = vmatmul.mubr.bf16.gmra.mrb[104].mxu1 %v13298_v24  ;;  %5568 = vmatprep.mubr.bf16.mxu0 %v13310_v43  ;;  %v11176_v24 = vld [vmem:[%s14826_s24 + $0x70] ss:$8 sps:$4 sm:$0xff]  }
 0x5a1   :  { %5794 = vmatprep.mubr.bf16.mxu1 %v13310_v43  ;;  %6138 = vmatpush1.bf16.msra.mxu0 %v11167_v1  ;;  %v11181_v43 = vld [vmem:[%s14826_s24 + $0x84] ss:$8 sps:$4 sm:$0xff]  }
 0x5a2   :  { %6139 = vmatprep.subr.bf16.mxu0 %v11172_v22 }
 0x5a5   :  { %6140 = vmatpush1.bf16.msra.mxu0 %v11170_v39 }
 0x5a6   :  { %6141 = vmatprep.subr.bf16.mxu0 %v11175_v38 }
 0x5a7   :  { %5569 = vmatmul.mubr.bf16.gmra.mrb[108].mxu0 %v13321_v32 }
 0x5a8   :  { %5795 = vmatmul.mubr.bf16.gmra.mrb[108].mxu1 %v13321_v32  ;;  %5578 = vmatprep.mubr.bf16.mxu0 %v13333_v26  ;;  %v11182_v32 = vld [vmem:[%s14826_s24 + $0x90] ss:$8 sps:$4 sm:$0xff]  }
 0x5a9   :  { %5804 = vmatprep.mubr.bf16.mxu1 %v13333_v26  ;;  %6142 = vmatpush1.bf16.msra.mxu0 %v11173_v10  ;;  %v11187_v26 = vld [vmem:[%s14826_s24 + $0xa4] ss:$8 sps:$4 sm:$0xff]  }
 0x5aa   :  { %6143 = vmatprep.subr.bf16.mxu0 %v11178_v60 }
 0x5ad   :  { %6144 = vmatpush1.bf16.msra.mxu0 %v11176_v24 }
 0x5ae   :  { %6145 = vmatprep.subr.bf16.mxu0 %v11181_v43 }
 0x5af   :  { %5579 = vmatmul.mubr.bf16.gmra.mrb[112].mxu0 %v13344_v15 }
 0x5b0   :  { %5805 = vmatmul.mubr.bf16.gmra.mrb[112].mxu1 %v13344_v15  ;;  %5588 = vmatprep.mubr.bf16.mxu0 %v13356_v33  ;;  %v11188_v15 = vld [vmem:[%s14826_s24 + $0xb0] ss:$8 sps:$4 sm:$0xff]  }
 0x5b1   :  { %5814 = vmatprep.mubr.bf16.mxu1 %v13356_v33  ;;  %6146 = vmatpush1.bf16.msra.mxu0 %v11179_v0  ;;  %v11193_v33 = vld [vmem:[%s14826_s24 + $0xc4] ss:$8 sps:$4 sm:$0xff]  }
 0x5b2   :  { %6147 = vmatprep.subr.bf16.mxu0 %v11184_v37 }
 0x5b5   :  { %6148 = vmatpush1.bf16.msra.mxu0 %v11182_v32 }
 0x5b6   :  { %6149 = vmatprep.subr.bf16.mxu0 %v11187_v26 }
 0x5b7   :  { %5589 = vmatmul.mubr.bf16.gmra.mrb[116].mxu0 %v13367_v40 }
 0x5b8   :  { %5815 = vmatmul.mubr.bf16.gmra.mrb[116].mxu1 %v13367_v40  ;;  %5598 = vmatprep.mubr.bf16.mxu0 %v13380_v27  ;;  %v11196_v40 = vld [vmem:[%s14826_s24 + $0xd4] ss:$8 sps:$4 sm:$0xff]  }
 0x5b9   :  { %5824 = vmatprep.mubr.bf16.mxu1 %v13380_v27  ;;  %6150 = vmatpush1.bf16.msra.mxu0 %v11185_v59  ;;  %v11194_v27 = vld [vmem:[%s14826_s24 + $0xd0] ss:$8 sps:$4 sm:$0xff]  }
 0x5ba   :  { %6151 = vmatprep.subr.bf16.mxu0 %v11190_v9 }
 0x5bd   :  { %6152 = vmatpush1.bf16.msra.mxu0 %v11188_v15 }
 0x5be   :  { %6153 = vmatprep.subr.bf16.mxu0 %v11193_v33 }
 0x5bf   :  { %5599 = vmatmul.mubr.bf16.gmra.mrb[120].mxu0 %v13388_v41 }
 0x5c0   :  { %5825 = vmatmul.mubr.bf16.gmra.mrb[120].mxu1 %v13388_v41  ;;  %5608 = vmatprep.mubr.bf16.mxu0 %v13398_v29  ;;  %v13475_v41 = vrot.slane %v4699_v36, %v14831_v50 }
 0x5c1   :  { %5834 = vmatprep.mubr.bf16.mxu1 %v13398_v29  ;;  %6154 = vmatpush1.bf16.msra.mxu0 %v11191_v47 }
 0x5c2   :  { %6155 = vmatprep.subr.bf16.mxu0 %v11196_v40 }
 0x5c5   :  { %6156 = vmatpush1.bf16.msra.mxu0 %v11194_v27 }
 0x5c6   :  { %6157 = vmatprep.subr.bf16.mxu0 %v11199_v45 }
 0x5c7   :  { %5609 = vmatmul.mubr.bf16.gmra.mrb[124].mxu0 %v13396_v6 }
 0x5c8   :  { %5835 = vmatmul.mubr.bf16.gmra.mrb[124].mxu1 %v13396_v6 }
 0x5c9   :  { %6158 = vmatpush1.bf16.msra.mxu0 %v11197_v48 }
 0x5ca   :  { %6159 = vmatprep.subr.bf16.mxu0 %v11202_v12 }
 0x5cd   :  { %6160 = vmatpush1.bf16.msra.mxu0 %v11200_v14 }
 0x662   :  { %v5540_v49 = vpop.f32.mrb[96].mxu0 }
 0x663   :  { %v10022_v63 = vadd.f32 %v5540_v49, %v13469_v4  ;;  %v5766_v7 = vpop.f32.mrb[96].mxu1  ;;  %v5542_v23 = vpop.f32.mrb[97].mxu0 }
 0x664   :  { %v10023_v30 = vadd.f32 %v5542_v23, %v13472_v28  ;;  %v5768_v42 = vpop.f32.mrb[97].mxu1  ;;  %v5544_v19 = vpop.f32.mrb[98].mxu0  ;;  %v10054_v61 = vadd.f32 %v5766_v7, %v13475_v41 }
 0x665   :  { %v5845_v18 = vmax.f32 %v10022_v63, 0.0  ;;  %v10024_v51 = vadd.f32 %v5544_v19, %v13469_v4  ;;  %v5770_v57 = vpop.f32.mrb[98].mxu1  ;;  %v5546_v6 = vpop.f32.mrb[99].mxu0  ;;  %v10055_v29 = vadd.f32 %v5768_v42, %v13478_v56 }
 0x666   :  { %v5846_v55 = vmax.f32 %v10023_v30, 0.0  ;;  %v10025_v3 = vadd.f32 %v5546_v6, %v13472_v28  ;;  %v5772_v13 = vpop.f32.mrb[99].mxu1  ;;  %v10056_v20 = vadd.f32 %v5770_v57, %v13475_v41 }
 0x667   :  { %v5877_v31 = vadd.f32 %v10054_v61, %v5845_v18  ;;  %v5847_v5 = vmax.f32 %v10024_v51, 0.0  ;;  %v10057_v16 = vadd.f32 %v5772_v13, %v13478_v56 }
 0x668   :  { %v5878_v52 = vadd.f32 %v10055_v29, %v5846_v55  ;;  %v5848_v62 = vmax.f32 %v10025_v3, 0.0 }
 0x669   :  { %v5879_v53 = vadd.f32 %v10056_v20, %v5847_v5 }
 0x66a   :  { %v5880_v58 = vadd.f32 %v10057_v16, %v5848_v62  ;;  %v5550_v35 = vpop.f32.mrb[100].mxu0 }
 0x66b   :  { %v5942_v44 = vpack.c.bf16 %v5879_v53, %v5877_v31  ;;  %v10026_v21 = vadd.f32 %v5550_v35, %v13469_v4  ;;  %v5776_v54 = vpop.f32.mrb[100].mxu1  ;;  %v5552_v1 = vpop.f32.mrb[101].mxu0 }
 0x66c   :  { %v10027_v22 = vadd.f32 %v5552_v1, %v13472_v28  ;;  %v5778_v39 = vpop.f32.mrb[101].mxu1  ;;  %v5554_v38 = vpop.f32.mrb[102].mxu0  ;;  %v5943_v10 = vpack.c.bf16 %v5880_v58, %v5878_v52  ;;  %v10058_v24 = vadd.f32 %v5776_v54, %v13475_v41 }
 0x66d   :  { %v5849_v60 = vmax.f32 %v10026_v21, 0.0  ;;  %v10028_v43 = vadd.f32 %v5554_v38, %v13469_v4  ;;  %v5780_v0 = vpop.f32.mrb[102].mxu1  ;;  %v5556_v37 = vpop.f32.mrb[103].mxu0  ;;  %v10059_v26 = vadd.f32 %v5778_v39, %v13478_v56 }
 0x66e   :  { %v5850_v32 = vmax.f32 %v10027_v22, 0.0  ;;  %v10029_v59 = vadd.f32 %v5556_v37, %v13472_v28  ;;  %v5782_v9 = vpop.f32.mrb[103].mxu1  ;;  %6161 = vmatprep.mubr.bf16.mxu0 %v5943_v10  ;;  %v10060_v47 = vadd.f32 %v5780_v0, %v13475_v41 }
 0x66f   :  { %v5881_v15 = vadd.f32 %v10058_v24, %v5849_v60  ;;  %v5851_v33 = vmax.f32 %v10028_v43, 0.0  ;;  %6162 = vmatmul.mubr.bf16.vlgmr.msra.gmra.mrb[128].mxu0 %v5942_v44  ;;  %v10061_v48 = vadd.f32 %v5782_v9, %v13478_v56 }
 0x670   :  { %v5882_v40 = vadd.f32 %v10059_v26, %v5850_v32  ;;  %v5852_v27 = vmax.f32 %v10029_v59, 0.0 }
 0x671   :  { %v5883_v45 = vadd.f32 %v10060_v47, %v5851_v33 }
 0x672   :  { %v5884_v12 = vadd.f32 %v10061_v48, %v5852_v27  ;;  %v5560_v14 = vpop.f32.mrb[104].mxu0 }
 0x673   :  { %v10030_v8 = vadd.f32 %v5560_v14, %v13469_v4  ;;  %v5786_v46 = vpop.f32.mrb[104].mxu1  ;;  %v5562_v17 = vpop.f32.mrb[105].mxu0  ;;  %v5944_v34 = vpack.c.bf16 %v5883_v45, %v5881_v15 }
 0x674   :  { %v10031_v36 = vadd.f32 %v5562_v17, %v13472_v28  ;;  %v5788_v50 = vpop.f32.mrb[105].mxu1  ;;  %v5564_v49 = vpop.f32.mrb[106].mxu0  ;;  %v5945_v25 = vpack.c.bf16 %v5884_v12, %v5882_v40  ;;  %v10062_v7 = vadd.f32 %v5786_v46, %v13475_v41 }
 0x675   :  { %v5853_v63 = vmax.f32 %v10030_v8, 0.0  ;;  %v10032_v23 = vadd.f32 %v5564_v49, %v13469_v4  ;;  %v5790_v30 = vpop.f32.mrb[106].mxu1  ;;  %v5566_v42 = vpop.f32.mrb[107].mxu0  ;;  %v10063_v18 = vadd.f32 %v5788_v50, %v13478_v56 }
 0x676   :  { %v5854_v19 = vmax.f32 %v10031_v36, 0.0  ;;  %v10033_v61 = vadd.f32 %v5566_v42, %v13472_v28  ;;  %v5792_v51 = vpop.f32.mrb[107].mxu1  ;;  %6171 = vmatprep.mubr.bf16.mxu0 %v5945_v25  ;;  %v10064_v55 = vadd.f32 %v5790_v30, %v13475_v41 }
 0x677   :  { %v5885_v57 = vadd.f32 %v10062_v7, %v5853_v63  ;;  %v5855_v6 = vmax.f32 %v10032_v23, 0.0  ;;  %6172 = vmatmul.mubr.bf16.gmra.mrb[132].mxu0 %v5944_v34  ;;  %v10065_v13 = vadd.f32 %v5792_v51, %v13478_v56 }
 0x678   :  { %v5886_v29 = vadd.f32 %v10063_v18, %v5854_v19  ;;  %v5856_v3 = vmax.f32 %v10033_v61, 0.0 }
 0x679   :  { %v5887_v31 = vadd.f32 %v10064_v55, %v5855_v6 }
 0x67a   :  { %v5888_v5 = vadd.f32 %v10065_v13, %v5856_v3  ;;  %v5570_v20 = vpop.f32.mrb[108].mxu0 }
 0x67b   :  { %v10034_v52 = vadd.f32 %v5570_v20, %v13469_v4  ;;  %v5796_v62 = vpop.f32.mrb[108].mxu1  ;;  %v5572_v16 = vpop.f32.mrb[109].mxu0  ;;  %v5946_v53 = vpack.c.bf16 %v5887_v31, %v5885_v57 }
 0x67c   :  { %v10035_v58 = vadd.f32 %v5572_v16, %v13472_v28  ;;  %v5798_v35 = vpop.f32.mrb[109].mxu1  ;;  %v5574_v44 = vpop.f32.mrb[110].mxu0  ;;  %v5947_v21 = vpack.c.bf16 %v5888_v5, %v5886_v29  ;;  %v10066_v1 = vadd.f32 %v5796_v62, %v13475_v41 }
 0x67d   :  { %v5857_v54 = vmax.f32 %v10034_v52, 0.0  ;;  %v10036_v22 = vadd.f32 %v5574_v44, %v13469_v4  ;;  %v5800_v39 = vpop.f32.mrb[110].mxu1  ;;  %v5576_v38 = vpop.f32.mrb[111].mxu0  ;;  %v10067_v60 = vadd.f32 %v5798_v35, %v13478_v56 }
 0x67e   :  { %v5858_v10 = vmax.f32 %v10035_v58, 0.0  ;;  %v10037_v24 = vadd.f32 %v5576_v38, %v13472_v28  ;;  %v5802_v43 = vpop.f32.mrb[111].mxu1  ;;  %6181 = vmatprep.mubr.bf16.mxu0 %v5947_v21  ;;  %v10068_v32 = vadd.f32 %v5800_v39, %v13475_v41 }
 0x67f   :  { %v5889_v0 = vadd.f32 %v10066_v1, %v5857_v54  ;;  %v5859_v37 = vmax.f32 %v10036_v22, 0.0  ;;  %6182 = vmatmul.mubr.bf16.gmra.mrb[136].mxu0 %v5946_v53  ;;  %v10069_v9 = vadd.f32 %v5802_v43, %v13478_v56 }
 0x680   :  { %v5890_v26 = vadd.f32 %v10067_v60, %v5858_v10  ;;  %v5860_v59 = vmax.f32 %v10037_v24, 0.0 }
 0x681   :  { %v5891_v15 = vadd.f32 %v10068_v32, %v5859_v37 }
 0x682   :  { %v5892_v33 = vadd.f32 %v10069_v9, %v5860_v59  ;;  %v5580_v47 = vpop.f32.mrb[112].mxu0 }
 0x683   :  { %v10038_v40 = vadd.f32 %v5580_v47, %v13469_v4  ;;  %v5806_v27 = vpop.f32.mrb[112].mxu1  ;;  %v5582_v48 = vpop.f32.mrb[113].mxu0  ;;  %v5948_v45 = vpack.c.bf16 %v5891_v15, %v5889_v0 }
 0x684   :  { %v10039_v12 = vadd.f32 %v5582_v48, %v13472_v28  ;;  %v5808_v14 = vpop.f32.mrb[113].mxu1  ;;  %v5584_v8 = vpop.f32.mrb[114].mxu0  ;;  %v5949_v46 = vpack.c.bf16 %v5892_v33, %v5890_v26  ;;  %v10070_v34 = vadd.f32 %v5806_v27, %v13475_v41 }
 0x685   :  { %v5861_v17 = vmax.f32 %v10038_v40, 0.0  ;;  %v10040_v36 = vadd.f32 %v5584_v8, %v13469_v4  ;;  %v5810_v50 = vpop.f32.mrb[114].mxu1  ;;  %v5586_v49 = vpop.f32.mrb[115].mxu0  ;;  %v10071_v63 = vadd.f32 %v5808_v14, %v13478_v56 }
 0x686   :  { %v5862_v25 = vmax.f32 %v10039_v12, 0.0  ;;  %v10041_v7 = vadd.f32 %v5586_v49, %v13472_v28  ;;  %v5812_v23 = vpop.f32.mrb[115].mxu1  ;;  %6191 = vmatprep.mubr.bf16.mxu0 %v5949_v46  ;;  %v10072_v19 = vadd.f32 %v5810_v50, %v13475_v41 }
 0x687   :  { %v5893_v30 = vadd.f32 %v10070_v34, %v5861_v17  ;;  %v5863_v42 = vmax.f32 %v10040_v36, 0.0  ;;  %6192 = vmatmul.mubr.bf16.gmra.mrb[140].mxu0 %v5948_v45  ;;  %v10073_v51 = vadd.f32 %v5812_v23, %v13478_v56 }
 0x688   :  { %v5894_v18 = vadd.f32 %v10071_v63, %v5862_v25  ;;  %v5864_v61 = vmax.f32 %v10041_v7, 0.0 }
 0x689   :  { %v5895_v57 = vadd.f32 %v10072_v19, %v5863_v42 }
 0x68a   :  { %v5896_v6 = vadd.f32 %v10073_v51, %v5864_v61  ;;  %v5590_v55 = vpop.f32.mrb[116].mxu0 }
 0x68b   :  { %v10042_v29 = vadd.f32 %v5590_v55, %v13469_v4  ;;  %v5816_v3 = vpop.f32.mrb[116].mxu1  ;;  %v5592_v13 = vpop.f32.mrb[117].mxu0  ;;  %v5950_v31 = vpack.c.bf16 %v5895_v57, %v5893_v30 }
 0x68c   :  { %v10043_v5 = vadd.f32 %v5592_v13, %v13472_v28  ;;  %v5818_v20 = vpop.f32.mrb[117].mxu1  ;;  %v5594_v52 = vpop.f32.mrb[118].mxu0  ;;  %v5951_v62 = vpack.c.bf16 %v5896_v6, %v5894_v18  ;;  %v10074_v53 = vadd.f32 %v5816_v3, %v13475_v41 }
 0x68d   :  { %v5865_v16 = vmax.f32 %v10042_v29, 0.0  ;;  %v10044_v58 = vadd.f32 %v5594_v52, %v13469_v4  ;;  %v5820_v35 = vpop.f32.mrb[118].mxu1  ;;  %v5596_v44 = vpop.f32.mrb[119].mxu0  ;;  %v10075_v54 = vadd.f32 %v5818_v20, %v13478_v56 }
 0x68e   :  { %v5866_v21 = vmax.f32 %v10043_v5, 0.0  ;;  %v10045_v1 = vadd.f32 %v5596_v44, %v13472_v28  ;;  %v5822_v22 = vpop.f32.mrb[119].mxu1  ;;  %6201 = vmatprep.mubr.bf16.mxu0 %v5951_v62  ;;  %v10076_v10 = vadd.f32 %v5820_v35, %v13475_v41 }
 0x68f   :  { %v5897_v39 = vadd.f32 %v10074_v53, %v5865_v16  ;;  %v5867_v38 = vmax.f32 %v10044_v58, 0.0  ;;  %6202 = vmatmul.mubr.bf16.gmra.mrb[144].mxu0 %v5950_v31  ;;  %v10077_v43 = vadd.f32 %v5822_v22, %v13478_v56 }
 0x690   :  { %v5898_v60 = vadd.f32 %v10075_v54, %v5866_v21  ;;  %v5868_v24 = vmax.f32 %v10045_v1, 0.0 }
 0x691   :  { %v5899_v0 = vadd.f32 %v10076_v10, %v5867_v38  ;;  %v11207_v10 = vld [vmem:[%s14828_s8 + $0x20] sm:$0xff]  }
 0x692   :  { %v5900_v37 = vadd.f32 %v10077_v43, %v5868_v24  ;;  %v5600_v32 = vpop.f32.mrb[120].mxu0  ;;  %9486 = vmatprep.subr.bf16.mxu1 %v11207_v10  ;;  %v11210_v24 = vld [vmem:[%s14828_s8 + $0x38] sm:$0xff]   ;;  %v5941_v43 = vld [vmem:[%s14834_s12] sm:$0x3] }
 0x693   :  { %v10046_v26 = vadd.f32 %v5600_v32, %v13469_v4  ;;  %v5826_v59 = vpop.f32.mrb[120].mxu1  ;;  %v5602_v9 = vpop.f32.mrb[121].mxu0  ;;  %v5952_v15 = vpack.c.bf16 %v5899_v0, %v5897_v39  ;;  %9487 = vmatpush3.bf16.msra.mxu1 %v11207_v10  ;;  %v13551_v0 = vrot.slane %v5941_v43, %v14829_v2 }
 0x694   :  { %v10047_v33 = vadd.f32 %v5602_v9, %v13472_v28  ;;  %v5828_v47 = vpop.f32.mrb[121].mxu1  ;;  %v5604_v40 = vpop.f32.mrb[122].mxu0  ;;  %v5953_v27 = vpack.c.bf16 %v5900_v37, %v5898_v60  ;;  %v10078_v45 = vadd.f32 %v5826_v59, %v13475_v41  ;;  %v11208_v60 = vld [vmem:[%s14828_s8 + $0x28] sm:$0xff]   ;;  %v13554_v37 = vrot.slane %v5941_v43, %v14830_v11 }
 0x695   :  { %v5869_v48 = vmax.f32 %v10046_v26, 0.0  ;;  %v10048_v12 = vadd.f32 %v5604_v40, %v13469_v4  ;;  %v5830_v14 = vpop.f32.mrb[122].mxu1  ;;  %v5606_v8 = vpop.f32.mrb[123].mxu0  ;;  %v10079_v17 = vadd.f32 %v5828_v47, %v13478_v56  ;;  %9488 = vmatprep.subr.bf16.mxu1 %v11208_v60 }
 0x696   :  { %v5870_v46 = vmax.f32 %v10047_v33, 0.0  ;;  %v10049_v34 = vadd.f32 %v5606_v8, %v13472_v28  ;;  %v5832_v36 = vpop.f32.mrb[123].mxu1  ;;  %6211 = vmatprep.mubr.bf16.mxu0 %v5953_v27  ;;  %v10080_v25 = vadd.f32 %v5830_v14, %v13475_v41 }
 0x697   :  { %v5901_v50 = vadd.f32 %v10078_v45, %v5869_v48  ;;  %v5871_v49 = vmax.f32 %v10048_v12, 0.0  ;;  %6212 = vmatmul.mubr.bf16.gmra.mrb[148].mxu0 %v5952_v15  ;;  %v10081_v23 = vadd.f32 %v5832_v36, %v13478_v56  ;;  %9489 = vmatpush3.bf16.msra.mxu1 %v11208_v60 }
 0x698   :  { %v5902_v63 = vadd.f32 %v10079_v17, %v5870_v46  ;;  %v5872_v7 = vmax.f32 %v10049_v34, 0.0 }
 0x699   :  { %v5903_v30 = vadd.f32 %v10080_v25, %v5871_v49 }
 0x69a   :  { %v5904_v42 = vadd.f32 %v10081_v23, %v5872_v7  ;;  %v5610_v19 = vpop.f32.mrb[124].mxu0 }
 0x69b   :  { %v10050_v18 = vadd.f32 %v5610_v19, %v13469_v4  ;;  %v5836_v61 = vpop.f32.mrb[124].mxu1  ;;  %v5612_v51 = vpop.f32.mrb[125].mxu0  ;;  %v5954_v57 = vpack.c.bf16 %v5903_v30, %v5901_v50 }
 0x69c   :  { %v10051_v6 = vadd.f32 %v5612_v51, %v13472_v28  ;;  %v5838_v55 = vpop.f32.mrb[125].mxu1  ;;  %v5614_v29 = vpop.f32.mrb[126].mxu0  ;;  %v5955_v3 = vpack.c.bf16 %v5904_v42, %v5902_v63  ;;  %v10082_v31 = vadd.f32 %v5836_v61, %v13475_v41 }
 0x69d   :  { %v5873_v13 = vmax.f32 %v10050_v18, 0.0  ;;  %v10052_v5 = vadd.f32 %v5614_v29, %v13469_v4  ;;  %v5840_v20 = vpop.f32.mrb[126].mxu1  ;;  %v5616_v52 = vpop.f32.mrb[127].mxu0  ;;  %v10083_v16 = vadd.f32 %v5838_v55, %v13478_v56  ;;  %v11212_v18 = vld [vmem:[%s14833_s22 + $0x8] sm:$0xff]  }
 0x69e   :  { %v5874_v62 = vmax.f32 %v10051_v6, 0.0  ;;  %v10053_v53 = vadd.f32 %v5616_v52, %v13472_v28  ;;  %v5842_v58 = vpop.f32.mrb[127].mxu1  ;;  %6221 = vmatprep.mubr.bf16.mxu0 %v5955_v3  ;;  %v10084_v21 = vadd.f32 %v5840_v20, %v13475_v41  ;;  %v11209_v41 = vld [vmem:[%s14828_s8 + $0x30] sm:$0xff]  }
 0x69f   :  { %v5905_v35 = vadd.f32 %v10082_v31, %v5873_v13  ;;  %v5875_v44 = vmax.f32 %v10052_v5, 0.0  ;;  %6222 = vmatmul.mubr.bf16.gmra.mrb[152].mxu0 %v5954_v57  ;;  %v10085_v4 = vadd.f32 %v5842_v58, %v13478_v56  ;;  %9490 = vmatprep.subr.bf16.mxu1 %v11209_v41  ;;  %v11211_v56 = vld [vmem:[%s14833_s22] sm:$0xff]   ;;  %v11213_v31 = vld [vmem:[%s14833_s22 + $0x10] sm:$0xff]  }
 0x6a0   :  { %v5906_v54 = vadd.f32 %v10083_v16, %v5874_v62  ;;  %v5876_v1 = vmax.f32 %v10053_v53, 0.0  ;;  %9491 = vmatpush3.bf16.msra.mxu1 %v11209_v41  ;;  %v11214_v53 = vld [vmem:[%s14833_s22 + $0x18] sm:$0xff]  }
 0x6a1   :  { %v5907_v22 = vadd.f32 %v10084_v21, %v5875_v44  ;;  %9492 = vmatprep.subr.bf16.mxu1 %v11210_v24 }
 0x6a2   :  { %v5908_v39 = vadd.f32 %v10085_v4, %v5876_v1 }
 0x6a3   :  { %v5956_v38 = vpack.c.bf16 %v5907_v22, %v5905_v35 }
 0x6a4   :  { %v5957_v28 = vpack.c.bf16 %v5908_v39, %v5906_v54  ;;  %9493 = vmatpush3.bf16.msra.mxu1 %v11210_v24  ;;  %v11215_v39 = vld [vmem:[%s14833_s22 + $0x20] sm:$0xff]  }
 0x6a5   :  { %9510 = vmatprep.subr.bf16.mxu1 %v11211_v56 }
 0x6a6   :  { %6231 = vmatprep.mubr.bf16.mxu0 %v5957_v28 }
 0x6a7   :  { %6232 = vmatmul.mubr.bf16.gmra.mrb[156].mxu0 %v5956_v38 }
 0x742   :  { %v6163_v32 = vpop.f32.mrb[128].mxu0 }
 0x743   :  { %v6164_v26 = vadd.f32 %v6163_v32, %v13551_v0  ;;  %v6165_v59 = vpop.f32.mrb[129].mxu0 }
 0x744   :  { %v6166_v9 = vadd.f32 %v6165_v59, %v13554_v37  ;;  %v6167_v15 = vpop.f32.mrb[130].mxu0 }
 0x745   :  { %v6242_v33 = vmax.f32 %v6164_v26, 0.0  ;;  %v6168_v47 = vadd.f32 %v6167_v15, %v13551_v0  ;;  %v6169_v40 = vpop.f32.mrb[131].mxu0 }
 0x746   :  { %v6170_v27 = vadd.f32 %v6169_v40, %v13554_v37 }
 0x747   :  { %v13560_v48 = vadd.f32 %v6242_v33, %v6166_v9  ;;  %v6243_v2 = vmax.f32 %v6168_v47, 0.0 }
 0x749   :  { %v13562_v45 = vadd.f32 %v6243_v2, %v6170_v27 }
 0x74a   :  { %v6173_v11 = vpop.f32.mrb[132].mxu0 }
 0x74b   :  { %v6174_v12 = vadd.f32 %v6173_v11, %v13551_v0  ;;  %v6175_v14 = vpop.f32.mrb[133].mxu0  ;;  %v6291_v8 = vpack.c.bf16 %v13562_v45, %v13560_v48 }
 0x74c   :  { %v6176_v46 = vadd.f32 %v6175_v14, %v13554_v37  ;;  %v6177_v17 = vpop.f32.mrb[134].mxu0 }
 0x74d   :  { %v6244_v34 = vmax.f32 %v6174_v12, 0.0  ;;  %v6178_v36 = vadd.f32 %v6177_v17, %v13551_v0  ;;  %v6179_v50 = vpop.f32.mrb[135].mxu0  ;;  %9494 = vmatprep.mubr.bf16.mxu1 %v6291_v8 }
 0x74e   :  { %v6180_v49 = vadd.f32 %v6179_v50, %v13554_v37 }
 0x74f   :  { %v13570_v25 = vadd.f32 %v6244_v34, %v6176_v46  ;;  %v6245_v63 = vmax.f32 %v6178_v36, 0.0 }
 0x751   :  { %v13572_v7 = vadd.f32 %v6245_v63, %v6180_v49 }
 0x752   :  { %v6183_v23 = vpop.f32.mrb[136].mxu0 }
 0x753   :  { %v6292_v30 = vpack.c.bf16 %v13572_v7, %v13570_v25  ;;  %v6184_v42 = vadd.f32 %v6183_v23, %v13551_v0  ;;  %v6185_v19 = vpop.f32.mrb[137].mxu0 }
 0x754   :  { %v6186_v61 = vadd.f32 %v6185_v19, %v13554_v37  ;;  %v6187_v51 = vpop.f32.mrb[138].mxu0 }
 0x755   :  { %v6246_v57 = vmax.f32 %v6184_v42, 0.0  ;;  %v6188_v6 = vadd.f32 %v6187_v51, %v13551_v0  ;;  %v6189_v55 = vpop.f32.mrb[139].mxu0  ;;  %9495 = vmatmul.mubr.bf16.vlgmr.msra.gmra.mrb[128].mxu1 %v6292_v30 }
 0x756   :  { %v6190_v29 = vadd.f32 %v6189_v55, %v13554_v37  ;;  %9511 = vmatpush3.bf16.msra.mxu1 %v11211_v56 }
 0x757   :  { %v13581_v3 = vadd.f32 %v6246_v57, %v6186_v61  ;;  %v6247_v13 = vmax.f32 %v6188_v6, 0.0  ;;  %9512 = vmatprep.subr.bf16.mxu1 %v11212_v18 }
 0x759   :  { %v13584_v5 = vadd.f32 %v6247_v13, %v6190_v29 }
 0x75a   :  { %v6193_v20 = vpop.f32.mrb[140].mxu0  ;;  %9513 = vmatpush3.bf16.msra.mxu1 %v11212_v18 }
 0x75b   :  { %v6194_v52 = vadd.f32 %v6193_v20, %v13551_v0  ;;  %v6195_v62 = vpop.f32.mrb[141].mxu0  ;;  %v6293_v16 = vpack.c.bf16 %v13584_v5, %v13581_v3  ;;  %9514 = vmatprep.subr.bf16.mxu1 %v11213_v31 }
 0x75c   :  { %v6196_v58 = vadd.f32 %v6195_v62, %v13554_v37  ;;  %v6197_v35 = vpop.f32.mrb[142].mxu0 }
 0x75d   :  { %v6248_v44 = vmax.f32 %v6194_v52, 0.0  ;;  %v6198_v21 = vadd.f32 %v6197_v35, %v13551_v0  ;;  %v6199_v54 = vpop.f32.mrb[143].mxu0  ;;  %9498 = vmatprep.mubr.bf16.mxu1 %v6293_v16 }
 0x75e   :  { %v6200_v1 = vadd.f32 %v6199_v54, %v13554_v37  ;;  %9515 = vmatpush3.bf16.msra.mxu1 %v11213_v31 }
 0x75f   :  { %v13593_v4 = vadd.f32 %v6248_v44, %v6196_v58  ;;  %v6249_v22 = vmax.f32 %v6198_v21, 0.0  ;;  %9516 = vmatprep.subr.bf16.mxu1 %v11214_v53 }
 0x761   :  { %v13596_v38 = vadd.f32 %v6249_v22, %v6200_v1 }
 0x762   :  { %v6203_v28 = vpop.f32.mrb[144].mxu0  ;;  %9517 = vmatpush3.bf16.msra.mxu1 %v11214_v53 }
 0x763   :  { %v6204_v10 = vadd.f32 %v6203_v28, %v13551_v0  ;;  %v6205_v60 = vpop.f32.mrb[145].mxu0  ;;  %v6294_v41 = vpack.c.bf16 %v13596_v38, %v13593_v4  ;;  %9518 = vmatprep.subr.bf16.mxu1 %v11215_v39  ;;  %v11218_v28 = vld [vmem:[%s14833_s22 + $0x38] sm:$0xff]  }
 0x764   :  { %v6206_v24 = vadd.f32 %v6205_v60, %v13554_v37  ;;  %v6207_v56 = vpop.f32.mrb[146].mxu0  ;;  %v11221_v60 = vld [vmem:[%s14835_s5 + $0x10] sm:$0xff]  }
 0x765   :  { %v6250_v43 = vmax.f32 %v6204_v10, 0.0  ;;  %v6208_v32 = vadd.f32 %v6207_v56, %v13551_v0  ;;  %v6209_v26 = vpop.f32.mrb[147].mxu0  ;;  %9499 = vmatmul.mubr.bf16.gmra.mrb[132].mxu1 %v6294_v41  ;;  %v11220_v10 = vld [vmem:[%s14835_s5 + $0x8] sm:$0xff]   ;;  %v11222_v41 = vld [vmem:[%s14835_s5 + $0x18] sm:$0xff]   ;;  %v13649_v56 = vld [vmem:[%s14836_s23] ss:$0 sm:$0xff] }
 0x766   :  { %v6210_v59 = vadd.f32 %v6209_v26, %v13554_v37  ;;  %9519 = vmatpush3.bf16.msra.mxu1 %v11215_v39  ;;  %v11216_v39 = vld [vmem:[%s14833_s22 + $0x28] sm:$0xff]  }
 0x767   :  { %v13604_v9 = vadd.f32 %v6250_v43, %v6206_v24  ;;  %v6251_v15 = vmax.f32 %v6208_v32, 0.0  ;;  %9520 = vmatprep.subr.bf16.mxu1 %v11216_v39  ;;  %v11223_v24 = vld [vmem:[%s14835_s5 + $0x20] sm:$0xff]  }
 0x769   :  { %v13606_v33 = vadd.f32 %v6251_v15, %v6210_v59 }
 0x76a   :  { %v6213_v47 = vpop.f32.mrb[148].mxu0  ;;  %9521 = vmatpush3.bf16.msra.mxu1 %v11216_v39 }
 0x76b   :  { %v6214_v40 = vadd.f32 %v6213_v47, %v13551_v0  ;;  %v6215_v27 = vpop.f32.mrb[149].mxu0  ;;  %v6295_v2 = vpack.c.bf16 %v13606_v33, %v13604_v9 }
 0x76c   :  { %v6216_v11 = vadd.f32 %v6215_v27, %v13554_v37  ;;  %v6217_v12 = vpop.f32.mrb[150].mxu0 }
 0x76d   :  { %v6252_v14 = vmax.f32 %v6214_v40, 0.0  ;;  %v6218_v8 = vadd.f32 %v6217_v12, %v13551_v0  ;;  %v6219_v46 = vpop.f32.mrb[151].mxu0  ;;  %9502 = vmatprep.mubr.bf16.mxu1 %v6295_v2 }
 0x76e   :  { %v6220_v17 = vadd.f32 %v6219_v46, %v13554_v37 }
 0x76f   :  { %v13614_v34 = vadd.f32 %v6252_v14, %v6216_v11  ;;  %v6253_v36 = vmax.f32 %v6218_v8, 0.0 }
 0x771   :  { %v13616_v50 = vadd.f32 %v6253_v36, %v6220_v17 }
 0x772   :  { %v6223_v49 = vpop.f32.mrb[152].mxu0 }
 0x773   :  { %v6224_v63 = vadd.f32 %v6223_v49, %v13551_v0  ;;  %v6225_v23 = vpop.f32.mrb[153].mxu0  ;;  %v6296_v30 = vpack.c.bf16 %v13616_v50, %v13614_v34 }
 0x774   :  { %v6226_v42 = vadd.f32 %v6225_v23, %v13554_v37  ;;  %v6227_v19 = vpop.f32.mrb[154].mxu0 }
 0x775   :  { %v6254_v18 = vmax.f32 %v6224_v63, 0.0  ;;  %v6228_v61 = vadd.f32 %v6227_v19, %v13551_v0  ;;  %v6229_v51 = vpop.f32.mrb[155].mxu0  ;;  %9503 = vmatmul.mubr.bf16.gmra.mrb[136].mxu1 %v6296_v30 }
 0x776   :  { %v6230_v57 = vadd.f32 %v6229_v51, %v13554_v37 }
 0x777   :  { %v13624_v6 = vadd.f32 %v6254_v18, %v6226_v42  ;;  %v6255_v55 = vmax.f32 %v6228_v61, 0.0 }
 0x779   :  { %v13626_v29 = vadd.f32 %v6255_v55, %v6230_v57 }
 0x77a   :  { %v6233_v13 = vpop.f32.mrb[156].mxu0 }
 0x77b   :  { %v6234_v31 = vadd.f32 %v6233_v13, %v13551_v0  ;;  %v6235_v20 = vpop.f32.mrb[157].mxu0  ;;  %v6297_v52 = vpack.c.bf16 %v13626_v29, %v13624_v6 }
 0x77c   :  { %v6236_v62 = vadd.f32 %v6235_v20, %v13554_v37  ;;  %v6237_v16 = vpop.f32.mrb[158].mxu0 }
 0x77d   :  { %v6256_v53 = vmax.f32 %v6234_v31, 0.0  ;;  %v6238_v58 = vadd.f32 %v6237_v16, %v13551_v0  ;;  %v6239_v35 = vpop.f32.mrb[159].mxu0  ;;  %9506 = vmatprep.mubr.bf16.mxu1 %v6297_v52  ;;  %v11217_v0 = vld [vmem:[%s14833_s22 + $0x30] sm:$0xff]  }
 0x77e   :  { %v6240_v44 = vadd.f32 %v6239_v35, %v13554_v37  ;;  %9522 = vmatprep.subr.bf16.mxu1 %v11217_v0  ;;  %v11219_v37 = vld [vmem:[%s14835_s5] sm:$0xff]  }
 0x77f   :  { %v13634_v21 = vadd.f32 %v6256_v53, %v6236_v62  ;;  %v6257_v54 = vmax.f32 %v6238_v58, 0.0  ;;  %9523 = vmatpush3.bf16.msra.mxu1 %v11217_v0  ;;  %9542 = vmatprep.subr.bf16.mxu0 %v11219_v37 }
 0x780   :  { %9524 = vmatprep.subr.bf16.mxu1 %v11218_v28  ;;  %9543 = vmatpush3.bf16.msra.mxu0 %v11219_v37 }
 0x781   :  { %v13636_v1 = vadd.f32 %v6257_v54, %v6240_v44  ;;  %9544 = vmatprep.subr.bf16.mxu0 %v11220_v10 }
 0x783   :  { %v6298_v22 = vpack.c.bf16 %v13636_v1, %v13634_v21  ;;  %9525 = vmatpush3.bf16.msra.mxu1 %v11218_v28 }
 0x784   :  { %9545 = vmatpush3.bf16.msra.mxu0 %v11220_v10 }
 0x785   :  { %9507 = vmatmul.mubr.bf16.gmra.mrb[140].mxu1 %v6298_v22  ;;  %9546 = vmatprep.subr.bf16.mxu0 %v11221_v60 }
 0x788   :  { %9547 = vmatpush3.bf16.msra.mxu0 %v11221_v60 }
 0x789   :  { %9548 = vmatprep.subr.bf16.mxu0 %v11222_v41 }
 0x78c   :  { %9549 = vmatpush3.bf16.msra.mxu0 %v11222_v41 }
 0x78d   :  { %9550 = vmatprep.subr.bf16.mxu0 %v11223_v24 }
 0x790   :  { %9551 = vmatpush3.bf16.msra.mxu0 %v11223_v24 }
 0x828   :  { %v9496_v43 = vpop.f32.mrb[128].mxu1 }
 0x829   :  { %v6396_v32 = vadd.f32 %v9496_v43, %v13649_v56  ;;  %v6387_v26 = vpop.f32.mrb[129].mxu1 }
 0x82a   :  { %v6388_v59 = vadd.f32 %v13649_v56, %v6387_v26  ;;  %v9497_v15 = vpop.f32.mrb[130].mxu1 }
 0x82b   :  { %v6399_v47 = vadd.f32 %v9497_v15, %v13649_v56  ;;  %v6390_v40 = vpop.f32.mrb[131].mxu1  ;;  %v6452_v11 = vmax.f32 %v6396_v32, 0.0 }
 0x82c   :  { %v6450_v27 = vmax.f32 %v6388_v59, 0.0  ;;  %v6391_v2 = vadd.f32 %v13649_v56, %v6390_v40 }
 0x82d   :  { %v6453_v12 = vmax.f32 %v6399_v47, 0.0  ;;  %v13665_v36 = vadd.f32 %v6452_v11, %v13570_v25 }
 0x82e   :  { %v6451_v14 = vmax.f32 %v6391_v2, 0.0  ;;  %v13659_v46 = vadd.f32 %v6450_v27, %v13560_v48 }
 0x82f   :  { %v13656_v8 = vadd.f32 %v6453_v12, %v13572_v7 }
 0x830   :  { %v13662_v17 = vadd.f32 %v6451_v14, %v13562_v45 }
 0x831   :  { %v6500_v63 = vpack.c.bf16 %v13656_v8, %v13665_v36 }
 0x832   :  { %v6499_v49 = vpack.c.bf16 %v13662_v17, %v13659_v46 }
 0x834   :  { %9526 = vmatprep.mubr.bf16.mxu1 %v6499_v49  ;;  %v11228_v49 = vld [vmem:[%s14837_s27 + $0x8] sm:$0xff]  }
 0x835   :  { %9527 = vmatmul.mubr.bf16.vlgmr.msra.gmra.mrb[144].mxu1 %v6500_v63  ;;  %v11229_v63 = vld [vmem:[%s14837_s27 + $0x10] sm:$0xff]  }
 0x838   :  { %v9500_v23 = vpop.f32.mrb[132].mxu1 }
 0x839   :  { %v6412_v7 = vadd.f32 %v9500_v23, %v13649_v56  ;;  %v6403_v30 = vpop.f32.mrb[133].mxu1  ;;  %v11230_v23 = vld [vmem:[%s14837_s27 + $0x18] sm:$0xff]  }
 0x83a   :  { %v6404_v48 = vadd.f32 %v13649_v56, %v6403_v30  ;;  %v9501_v42 = vpop.f32.mrb[134].mxu1  ;;  %v13739_v30 = vld [vmem:[#allocation15] ss:$0 sm:$0xff] }
 0x83b   :  { %v6415_v45 = vadd.f32 %v9501_v42, %v13649_v56  ;;  %v6406_v19 = vpop.f32.mrb[135].mxu1  ;;  %v6456_v61 = vmax.f32 %v6412_v7, 0.0  ;;  %v11231_v7 = vld [vmem:[%s14837_s27 + $0x20] sm:$0xff]  }
 0x83c   :  { %v6454_v25 = vmax.f32 %v6404_v48, 0.0  ;;  %v6407_v18 = vadd.f32 %v13649_v56, %v6406_v19 }
 0x83d   :  { %v6457_v51 = vmax.f32 %v6415_v45, 0.0  ;;  %v13685_v20 = vadd.f32 %v6456_v61, %v13593_v4 }
 0x83e   :  { %v6455_v57 = vmax.f32 %v6407_v18, 0.0  ;;  %v13679_v13 = vadd.f32 %v6454_v25, %v13581_v3 }
 0x83f   :  { %v13676_v55 = vadd.f32 %v6457_v51, %v13596_v38 }
 0x840   :  { %v13682_v31 = vadd.f32 %v6455_v57, %v13584_v5 }
 0x841   :  { %v6502_v62 = vpack.c.bf16 %v13676_v55, %v13685_v20 }
 0x842   :  { %v6501_v52 = vpack.c.bf16 %v13682_v31, %v13679_v13 }
 0x844   :  { %9530 = vmatprep.mubr.bf16.mxu1 %v6501_v52 }
 0x845   :  { %9531 = vmatmul.mubr.bf16.gmra.mrb[148].mxu1 %v6502_v62 }
 0x848   :  { %v9504_v16 = vpop.f32.mrb[136].mxu1 }
 0x849   :  { %v6428_v38 = vadd.f32 %v9504_v16, %v13649_v56  ;;  %v6419_v53 = vpop.f32.mrb[137].mxu1 }
 0x84a   :  { %v6420_v3 = vadd.f32 %v13649_v56, %v6419_v53  ;;  %v9505_v58 = vpop.f32.mrb[138].mxu1 }
 0x84b   :  { %v6431_v5 = vadd.f32 %v9505_v58, %v13649_v56  ;;  %v6422_v35 = vpop.f32.mrb[139].mxu1  ;;  %v6460_v54 = vmax.f32 %v6428_v38, 0.0 }
 0x84c   :  { %v6458_v4 = vmax.f32 %v6420_v3, 0.0  ;;  %v6423_v44 = vadd.f32 %v13649_v56, %v6422_v35 }
 0x84d   :  { %v6461_v22 = vmax.f32 %v6431_v5, 0.0  ;;  %v13705_v10 = vadd.f32 %v6460_v54, %v13614_v34 }
 0x84e   :  { %v6459_v39 = vmax.f32 %v6423_v44, 0.0  ;;  %v13699_v28 = vadd.f32 %v6458_v4, %v13604_v9 }
 0x84f   :  { %v13696_v0 = vadd.f32 %v6461_v22, %v13616_v50 }
 0x850   :  { %v13702_v37 = vadd.f32 %v6459_v39, %v13606_v33 }
 0x851   :  { %v6504_v41 = vpack.c.bf16 %v13696_v0, %v13705_v10 }
 0x852   :  { %v6503_v60 = vpack.c.bf16 %v13702_v37, %v13699_v28 }
 0x854   :  { %9534 = vmatprep.mubr.bf16.mxu1 %v6503_v60 }
 0x855   :  { %9535 = vmatmul.mubr.bf16.gmra.mrb[152].mxu1 %v6504_v41 }
 0x858   :  { %v9508_v24 = vpop.f32.mrb[140].mxu1 }
 0x859   :  { %v6444_v50 = vadd.f32 %v9508_v24, %v13649_v56  ;;  %v6435_v43 = vpop.f32.mrb[141].mxu1 }
 0x85a   :  { %v6436_v9 = vadd.f32 %v13649_v56, %v6435_v43  ;;  %v9509_v32 = vpop.f32.mrb[142].mxu1 }
 0x85b   :  { %v6447_v33 = vadd.f32 %v9509_v32, %v13649_v56  ;;  %v6438_v34 = vpop.f32.mrb[143].mxu1  ;;  %v6464_v15 = vmax.f32 %v6444_v50, 0.0 }
 0x85c   :  { %v6462_v26 = vmax.f32 %v6436_v9, 0.0  ;;  %v6439_v59 = vadd.f32 %v13649_v56, %v6438_v34 }
 0x85d   :  { %v6465_v47 = vmax.f32 %v6447_v33, 0.0  ;;  %v13725_v12 = vadd.f32 %v6464_v15, %v13634_v21  ;;  %v11227_v21 = vld [vmem:[%s14837_s27] sm:$0xff]  }
 0x85e   :  { %v6463_v40 = vmax.f32 %v6439_v59, 0.0  ;;  %v13719_v2 = vadd.f32 %v6462_v26, %v13624_v6  ;;  %v11225_v6 = vld [vmem:[%s14835_s5 + $0x30] sm:$0xff]   ;;  %9574 = vmatprep.subr.bf16.mxu1 %v11227_v21 }
 0x85f   :  { %v13716_v27 = vadd.f32 %v6465_v47, %v13636_v1  ;;  %v11224_v1 = vld [vmem:[%s14835_s5 + $0x28] sm:$0xff]   ;;  %9575 = vmatpush3.bf16.msra.mxu1 %v11227_v21 }
 0x860   :  { %v13722_v11 = vadd.f32 %v6463_v40, %v13626_v29  ;;  %9552 = vmatprep.subr.bf16.mxu0 %v11224_v1  ;;  %v11226_v29 = vld [vmem:[%s14835_s5 + $0x38] sm:$0xff]   ;;  %9576 = vmatprep.subr.bf16.mxu1 %v11228_v49 }
 0x861   :  { %v6506_v14 = vpack.c.bf16 %v13716_v27, %v13725_v12  ;;  %9553 = vmatpush3.bf16.msra.mxu0 %v11224_v1 }
 0x862   :  { %v6505_v56 = vpack.c.bf16 %v13722_v11, %v13719_v2  ;;  %9554 = vmatprep.subr.bf16.mxu0 %v11225_v6 }
 0x863   :  { %9577 = vmatpush3.bf16.msra.mxu1 %v11228_v49 }
 0x864   :  { %9538 = vmatprep.mubr.bf16.mxu1 %v6505_v56  ;;  %9578 = vmatprep.subr.bf16.mxu1 %v11229_v63 }
 0x865   :  { %9539 = vmatmul.mubr.bf16.gmra.mrb[156].mxu1 %v6506_v14  ;;  %9555 = vmatpush3.bf16.msra.mxu0 %v11225_v6 }
 0x866   :  { %9556 = vmatprep.subr.bf16.mxu0 %v11226_v29 }
 0x867   :  { %9579 = vmatpush3.bf16.msra.mxu1 %v11229_v63 }
 0x868   :  { %9580 = vmatprep.subr.bf16.mxu1 %v11230_v23 }
 0x869   :  { %9557 = vmatpush3.bf16.msra.mxu0 %v11226_v29 }
 0x86b   :  { %9581 = vmatpush3.bf16.msra.mxu1 %v11230_v23 }
 0x86c   :  { %9582 = vmatprep.subr.bf16.mxu1 %v11231_v7 }
 0x86f   :  { %9583 = vmatpush3.bf16.msra.mxu1 %v11231_v7 }
 0x908   :  { %v9528_v48 = vpop.f32.mrb[144].mxu1 }
 0x909   :  { %v6604_v42 = vadd.f32 %v9528_v48, %v13739_v30  ;;  %v6595_v45 = vpop.f32.mrb[145].mxu1 }
 0x90a   :  { %v6596_v19 = vadd.f32 %v13739_v30, %v6595_v45  ;;  %v9529_v25 = vpop.f32.mrb[146].mxu1 }
 0x90b   :  { %v6607_v18 = vadd.f32 %v9529_v25, %v13739_v30  ;;  %v6598_v61 = vpop.f32.mrb[147].mxu1  ;;  %v6660_v52 = vmax.f32 %v6604_v42, 0.0 }
 0x90c   :  { %v6658_v51 = vmax.f32 %v6596_v19, 0.0  ;;  %v6599_v57 = vadd.f32 %v13739_v30, %v6598_v61 }
 0x90d   :  { %v6661_v62 = vmax.f32 %v6607_v18, 0.0  ;;  %v13755_v58 = vadd.f32 %v6660_v52, %v13665_v36 }
 0x90e   :  { %v6659_v16 = vmax.f32 %v6599_v57, 0.0  ;;  %v13749_v53 = vadd.f32 %v6658_v51, %v13659_v46 }
 0x90f   :  { %v13746_v38 = vadd.f32 %v6661_v62, %v13656_v8 }
 0x910   :  { %v13752_v3 = vadd.f32 %v6659_v16, %v13662_v17 }
 0x911   :  { %v6708_v35 = vpack.c.bf16 %v13746_v38, %v13755_v58 }
 0x912   :  { %v6707_v5 = vpack.c.bf16 %v13752_v3, %v13749_v53 }
 0x914   :  { %9558 = vmatprep.mubr.bf16.mxu0 %v6707_v5  ;;  %v11236_v5 = vld [vmem:[%s14838_s13 + $0x8] sm:$0xff]  }
 0x915   :  { %9559 = vmatmul.mubr.bf16.vlgmr.msra.gmra.mrb[160].mxu0 %v6708_v35  ;;  %v11237_v35 = vld [vmem:[%s14838_s13 + $0x10] sm:$0xff]  }
 0x918   :  { %v9532_v4 = vpop.f32.mrb[148].mxu1 }
 0x919   :  { %v6620_v8 = vadd.f32 %v9532_v4, %v13739_v30  ;;  %v6611_v44 = vpop.f32.mrb[149].mxu1  ;;  %v11238_v4 = vld [vmem:[%s14838_s13 + $0x18] sm:$0xff]  }
 0x91a   :  { %v6612_v46 = vadd.f32 %v13739_v30, %v6611_v44  ;;  %v9533_v54 = vpop.f32.mrb[150].mxu1  ;;  %v13829_v44 = vld [vmem:[#allocation16] ss:$0 sm:$0xff] }
 0x91b   :  { %v6623_v17 = vadd.f32 %v9533_v54, %v13739_v30  ;;  %v6614_v22 = vpop.f32.mrb[151].mxu1  ;;  %v6664_v60 = vmax.f32 %v6620_v8, 0.0  ;;  %v11239_v8 = vld [vmem:[%s14838_s13 + $0x20] sm:$0xff]  }
 0x91c   :  { %v6662_v36 = vmax.f32 %v6612_v46, 0.0  ;;  %v6615_v39 = vadd.f32 %v13739_v30, %v6614_v22 }
 0x91d   :  { %v6665_v41 = vmax.f32 %v6623_v17, 0.0  ;;  %v13775_v32 = vadd.f32 %v6664_v60, %v13685_v20 }
 0x91e   :  { %v6663_v24 = vmax.f32 %v6615_v39, 0.0  ;;  %v13769_v43 = vadd.f32 %v6662_v36, %v13679_v13 }
 0x91f   :  { %v13766_v50 = vadd.f32 %v6665_v41, %v13676_v55 }
 0x920   :  { %v13772_v9 = vadd.f32 %v6663_v24, %v13682_v31 }
 0x921   :  { %v6710_v34 = vpack.c.bf16 %v13766_v50, %v13775_v32 }
 0x922   :  { %v6709_v33 = vpack.c.bf16 %v13772_v9, %v13769_v43 }
 0x924   :  { %9562 = vmatprep.mubr.bf16.mxu0 %v6709_v33 }
 0x925   :  { %9563 = vmatmul.mubr.bf16.gmra.mrb[164].mxu0 %v6710_v34 }
 0x928   :  { %v9536_v26 = vpop.f32.mrb[152].mxu1 }
 0x929   :  { %v6636_v55 = vadd.f32 %v9536_v26, %v13739_v30  ;;  %v6627_v59 = vpop.f32.mrb[153].mxu1 }
 0x92a   :  { %v6628_v13 = vadd.f32 %v13739_v30, %v6627_v59  ;;  %v9537_v15 = vpop.f32.mrb[154].mxu1 }
 0x92b   :  { %v6639_v31 = vadd.f32 %v9537_v15, %v13739_v30  ;;  %v6630_v47 = vpop.f32.mrb[155].mxu1  ;;  %v6668_v56 = vmax.f32 %v6636_v55, 0.0 }
 0x92c   :  { %v6666_v20 = vmax.f32 %v6628_v13, 0.0  ;;  %v6631_v40 = vadd.f32 %v13739_v30, %v6630_v47 }
 0x92d   :  { %v6669_v14 = vmax.f32 %v6639_v31, 0.0  ;;  %v13795_v49 = vadd.f32 %v6668_v56, %v13705_v10 }
 0x92e   :  { %v6667_v1 = vmax.f32 %v6631_v40, 0.0  ;;  %v13789_v29 = vadd.f32 %v6666_v20, %v13699_v28 }
 0x92f   :  { %v13786_v6 = vadd.f32 %v6669_v14, %v13696_v0 }
 0x930   :  { %v13792_v21 = vadd.f32 %v6667_v1, %v13702_v37 }
 0x931   :  { %v6712_v23 = vpack.c.bf16 %v13786_v6, %v13795_v49 }
 0x932   :  { %v6711_v63 = vpack.c.bf16 %v13792_v21, %v13789_v29 }
 0x934   :  { %9566 = vmatprep.mubr.bf16.mxu0 %v6711_v63 }
 0x935   :  { %9567 = vmatmul.mubr.bf16.gmra.mrb[168].mxu0 %v6712_v23 }
 0x938   :  { %v9540_v7 = vpop.f32.mrb[156].mxu1 }
 0x939   :  { %v6652_v0 = vadd.f32 %v9540_v7, %v13739_v30  ;;  %v6643_v48 = vpop.f32.mrb[157].mxu1 }
 0x93a   :  { %v6644_v28 = vadd.f32 %v13739_v30, %v6643_v48  ;;  %v9541_v42 = vpop.f32.mrb[158].mxu1 }
 0x93b   :  { %v6655_v37 = vadd.f32 %v9541_v42, %v13739_v30  ;;  %v6646_v10 = vpop.f32.mrb[159].mxu1  ;;  %v6672_v25 = vmax.f32 %v6652_v0, 0.0 }
 0x93c   :  { %v6670_v45 = vmax.f32 %v6644_v28, 0.0  ;;  %v6647_v19 = vadd.f32 %v13739_v30, %v6646_v10 }
 0x93d   :  { %v6673_v18 = vmax.f32 %v6655_v37, 0.0  ;;  %v13815_v62 = vadd.f32 %v6672_v25, %v13725_v12  ;;  %v11235_v12 = vld [vmem:[%s14838_s13] sm:$0xff]  }
 0x93e   :  { %v6671_v61 = vmax.f32 %v6647_v19, 0.0  ;;  %v13809_v57 = vadd.f32 %v6670_v45, %v13719_v2  ;;  %v11233_v2 = vld [vmem:[%s14837_s27 + $0x30] sm:$0xff]   ;;  %9606 = vmatprep.subr.bf16.mxu0 %v11235_v12 }
 0x93f   :  { %v13806_v51 = vadd.f32 %v6673_v18, %v13716_v27  ;;  %v11232_v27 = vld [vmem:[%s14837_s27 + $0x28] sm:$0xff]   ;;  %9607 = vmatpush3.bf16.msra.mxu0 %v11235_v12 }
 0x940   :  { %v13812_v52 = vadd.f32 %v6671_v61, %v13722_v11  ;;  %9584 = vmatprep.subr.bf16.mxu1 %v11232_v27  ;;  %v11234_v11 = vld [vmem:[%s14837_s27 + $0x38] sm:$0xff]   ;;  %9608 = vmatprep.subr.bf16.mxu0 %v11236_v5 }
 0x941   :  { %v6714_v16 = vpack.c.bf16 %v13806_v51, %v13815_v62  ;;  %9585 = vmatpush3.bf16.msra.mxu1 %v11232_v27 }
 0x942   :  { %v6713_v30 = vpack.c.bf16 %v13812_v52, %v13809_v57  ;;  %9586 = vmatprep.subr.bf16.mxu1 %v11233_v2 }
 0x943   :  { %9609 = vmatpush3.bf16.msra.mxu0 %v11236_v5 }
 0x944   :  { %9570 = vmatprep.mubr.bf16.mxu0 %v6713_v30  ;;  %9610 = vmatprep.subr.bf16.mxu0 %v11237_v35 }
 0x945   :  { %9571 = vmatmul.mubr.bf16.gmra.mrb[172].mxu0 %v6714_v16  ;;  %9587 = vmatpush3.bf16.msra.mxu1 %v11233_v2 }
 0x946   :  { %9588 = vmatprep.subr.bf16.mxu1 %v11234_v11 }
 0x947   :  { %9611 = vmatpush3.bf16.msra.mxu0 %v11237_v35 }
 0x948   :  { %9612 = vmatprep.subr.bf16.mxu0 %v11238_v4 }
 0x949   :  { %9589 = vmatpush3.bf16.msra.mxu1 %v11234_v11 }
 0x94b   :  { %9613 = vmatpush3.bf16.msra.mxu0 %v11238_v4 }
 0x94c   :  { %9614 = vmatprep.subr.bf16.mxu0 %v11239_v8 }
 0x94f   :  { %9615 = vmatpush3.bf16.msra.mxu0 %v11239_v8 }
 0x9e8   :  { %v9560_v46 = vpop.f32.mrb[160].mxu0 }
 0x9e9   :  { %v6812_v54 = vadd.f32 %v9560_v46, %v13829_v44  ;;  %v6803_v17 = vpop.f32.mrb[161].mxu0 }
 0x9ea   :  { %v6804_v22 = vadd.f32 %v13829_v44, %v6803_v17  ;;  %v9561_v36 = vpop.f32.mrb[162].mxu0 }
 0x9eb   :  { %v6815_v39 = vadd.f32 %v9561_v36, %v13829_v44  ;;  %v6806_v60 = vpop.f32.mrb[163].mxu0  ;;  %v6868_v33 = vmax.f32 %v6812_v54, 0.0 }
 0x9ec   :  { %v6866_v41 = vmax.f32 %v6804_v22, 0.0  ;;  %v6807_v24 = vadd.f32 %v13829_v44, %v6806_v60 }
 0x9ed   :  { %v6869_v34 = vmax.f32 %v6815_v39, 0.0  ;;  %v13845_v15 = vadd.f32 %v6868_v33, %v13755_v58 }
 0x9ee   :  { %v6867_v26 = vmax.f32 %v6807_v24, 0.0  ;;  %v13839_v59 = vadd.f32 %v6866_v41, %v13749_v53 }
 0x9ef   :  { %v13836_v55 = vadd.f32 %v6869_v34, %v13746_v38 }
 0x9f0   :  { %v13842_v13 = vadd.f32 %v6867_v26, %v13752_v3 }
 0x9f1   :  { %v6916_v47 = vpack.c.bf16 %v13836_v55, %v13845_v15 }
 0x9f2   :  { %v6915_v31 = vpack.c.bf16 %v13842_v13, %v13839_v59 }
 0x9f4   :  { %9590 = vmatprep.mubr.bf16.mxu1 %v6915_v31  ;;  %v11240_v31 = vld [vmem:[%s14838_s13 + $0x28] sm:$0xff]  }
 0x9f5   :  { %9591 = vmatmul.mubr.bf16.vlgmr.msra.gmra.mrb[160].mxu1 %v6916_v47  ;;  %9616 = vmatprep.subr.bf16.mxu0 %v11240_v31  ;;  %v11245_v47 = vld [vmem:[#allocation21 + $0x10] sm:$0xff]  }
 0x9f6   :  { %9617 = vmatpush3.bf16.msra.mxu0 %v11240_v31 }
 0x9f8   :  { %v9564_v20 = vpop.f32.mrb[164].mxu0 }
 0x9f9   :  { %v6828_v38 = vadd.f32 %v9564_v20, %v13829_v44  ;;  %v6819_v40 = vpop.f32.mrb[165].mxu0  ;;  %v11246_v20 = vld [vmem:[#allocation21 + $0x18] sm:$0xff]  }
 0x9fa   :  { %v6820_v53 = vadd.f32 %v13829_v44, %v6819_v40  ;;  %v9565_v56 = vpop.f32.mrb[166].mxu0  ;;  %v13914_v40 = vld [vmem:[#allocation18] ss:$0 sm:$0xff] }
 0x9fb   :  { %v6831_v3 = vadd.f32 %v9565_v56, %v13829_v44  ;;  %v6822_v14 = vpop.f32.mrb[167].mxu0  ;;  %v6872_v63 = vmax.f32 %v6828_v38, 0.0  ;;  %v11247_v38 = vld [vmem:[#allocation21 + $0x20] sm:$0xff]  }
 0x9fc   :  { %v6870_v58 = vmax.f32 %v6820_v53, 0.0  ;;  %v6823_v1 = vadd.f32 %v13829_v44, %v6822_v14 }
 0x9fd   :  { %v6873_v23 = vmax.f32 %v6831_v3, 0.0  ;;  %v13865_v42 = vadd.f32 %v6872_v63, %v13775_v32 }
 0x9fe   :  { %v6871_v7 = vmax.f32 %v6823_v1, 0.0  ;;  %v13859_v48 = vadd.f32 %v6870_v58, %v13769_v43 }
 0x9ff   :  { %v13856_v0 = vadd.f32 %v6873_v23, %v13766_v50 }
 0xa00   :  { %v13862_v28 = vadd.f32 %v6871_v7, %v13772_v9 }
 0xa01   :  { %v6918_v10 = vpack.c.bf16 %v13856_v0, %v13865_v42 }
 0xa02   :  { %v6917_v37 = vpack.c.bf16 %v13862_v28, %v13859_v48 }
 0xa04   :  { %9594 = vmatprep.mubr.bf16.mxu1 %v6917_v37 }
 0xa05   :  { %9595 = vmatmul.mubr.bf16.gmra.mrb[164].mxu1 %v6918_v10 }
 0xa08   :  { %v9568_v45 = vpop.f32.mrb[168].mxu0 }
 0xa09   :  { %v6844_v50 = vadd.f32 %v9568_v45, %v13829_v44  ;;  %v6835_v19 = vpop.f32.mrb[169].mxu0 }
 0xa0a   :  { %v6836_v43 = vadd.f32 %v13829_v44, %v6835_v19  ;;  %v9569_v25 = vpop.f32.mrb[170].mxu0 }
 0xa0b   :  { %v6847_v9 = vadd.f32 %v9569_v25, %v13829_v44  ;;  %v6838_v18 = vpop.f32.mrb[171].mxu0  ;;  %v6876_v30 = vmax.f32 %v6844_v50, 0.0 }
 0xa0c   :  { %v6874_v32 = vmax.f32 %v6836_v43, 0.0  ;;  %v6839_v61 = vadd.f32 %v13829_v44, %v6838_v18 }
 0xa0d   :  { %v6877_v16 = vmax.f32 %v6847_v9, 0.0  ;;  %v13885_v5 = vadd.f32 %v6876_v30, %v13795_v49 }
 0xa0e   :  { %v6875_v27 = vmax.f32 %v6839_v61, 0.0  ;;  %v13879_v11 = vadd.f32 %v6874_v32, %v13789_v29 }
 0xa0f   :  { %v13876_v2 = vadd.f32 %v6877_v16, %v13786_v6 }
 0xa10   :  { %v13882_v12 = vadd.f32 %v6875_v27, %v13792_v21 }
 0xa11   :  { %v6920_v4 = vpack.c.bf16 %v13876_v2, %v13885_v5 }
 0xa12   :  { %v6919_v35 = vpack.c.bf16 %v13882_v12, %v13879_v11 }
 0xa14   :  { %9598 = vmatprep.mubr.bf16.mxu1 %v6919_v35 }
 0xa15   :  { %9599 = vmatmul.mubr.bf16.gmra.mrb[168].mxu1 %v6920_v4 }
 0xa18   :  { %v9572_v8 = vpop.f32.mrb[172].mxu0 }
 0xa19   :  { %v6860_v6 = vadd.f32 %v9572_v8, %v13829_v44  ;;  %v6851_v46 = vpop.f32.mrb[173].mxu0 }
 0xa1a   :  { %v6852_v29 = vadd.f32 %v13829_v44, %v6851_v46  ;;  %v9573_v54 = vpop.f32.mrb[174].mxu0 }
 0xa1b   :  { %v6863_v21 = vadd.f32 %v9573_v54, %v13829_v44  ;;  %v6854_v49 = vpop.f32.mrb[175].mxu0  ;;  %v6880_v36 = vmax.f32 %v6860_v6, 0.0 }
 0xa1c   :  { %v6878_v17 = vmax.f32 %v6852_v29, 0.0  ;;  %v6855_v22 = vadd.f32 %v13829_v44, %v6854_v49 }
 0xa1d   :  { %v6881_v39 = vmax.f32 %v6863_v21, 0.0  ;;  %v13905_v34 = vadd.f32 %v6880_v36, %v13815_v62  ;;  %v11244_v62 = vld [vmem:[#allocation21 + $0x8] sm:$0xff]  }
 0xa1e   :  { %v6879_v60 = vmax.f32 %v6855_v22, 0.0  ;;  %v13899_v24 = vadd.f32 %v6878_v17, %v13809_v57  ;;  %v11242_v57 = vld [vmem:[%s14838_s13 + $0x38] sm:$0xff]  }
 0xa1f   :  { %v13896_v41 = vadd.f32 %v6881_v39, %v13806_v51  ;;  %v11241_v51 = vld [vmem:[%s14838_s13 + $0x30] sm:$0xff]  }
 0xa20   :  { %v13902_v33 = vadd.f32 %v6879_v60, %v13812_v52  ;;  %9618 = vmatprep.subr.bf16.mxu0 %v11241_v51  ;;  %v11243_v52 = vld [vmem:[#allocation21] sm:$0xff]  }
 0xa21   :  { %v6922_v44 = vpack.c.bf16 %v13896_v41, %v13905_v34  ;;  %9619 = vmatpush3.bf16.msra.mxu0 %v11241_v51  ;;  %9638 = vmatprep.subr.bf16.mxu1 %v11243_v52 }
 0xa22   :  { %v6921_v26 = vpack.c.bf16 %v13902_v33, %v13899_v24  ;;  %9620 = vmatprep.subr.bf16.mxu0 %v11242_v57  ;;  %9639 = vmatpush3.bf16.msra.mxu1 %v11243_v52 }
 0xa23   :  { %9640 = vmatprep.subr.bf16.mxu1 %v11244_v62 }
 0xa24   :  { %9602 = vmatprep.mubr.bf16.mxu1 %v6921_v26 }
 0xa25   :  { %9603 = vmatmul.mubr.bf16.gmra.mrb[172].mxu1 %v6922_v44  ;;  %9621 = vmatpush3.bf16.msra.mxu0 %v11242_v57 }
 0xa26   :  { %9641 = vmatpush3.bf16.msra.mxu1 %v11244_v62 }
 0xa27   :  { %9642 = vmatprep.subr.bf16.mxu1 %v11245_v47 }
 0xa2a   :  { %9643 = vmatpush3.bf16.msra.mxu1 %v11245_v47 }
 0xa2b   :  { %9644 = vmatprep.subr.bf16.mxu1 %v11246_v20 }
 0xa2e   :  { %9645 = vmatpush3.bf16.msra.mxu1 %v11246_v20 }
 0xa2f   :  { %9646 = vmatprep.subr.bf16.mxu1 %v11247_v38 }
 0xa32   :  { %9647 = vmatpush3.bf16.msra.mxu1 %v11247_v38 }
 0xac8   :  { %v9592_v53 = vpop.f32.mrb[160].mxu1 }
 0xac9   :  { %v7020_v56 = vadd.f32 %v9592_v53, %v13914_v40  ;;  %v7011_v3 = vpop.f32.mrb[161].mxu1 }
 0xaca   :  { %v7012_v14 = vadd.f32 %v13914_v40, %v7011_v3  ;;  %v9593_v58 = vpop.f32.mrb[162].mxu1 }
 0xacb   :  { %v7023_v1 = vadd.f32 %v9593_v58, %v13914_v40  ;;  %v7014_v63 = vpop.f32.mrb[163].mxu1  ;;  %v7076_v37 = vmax.f32 %v7020_v56, 0.0 }
 0xacc   :  { %v7074_v23 = vmax.f32 %v7012_v14, 0.0  ;;  %v7015_v7 = vadd.f32 %v13914_v40, %v7014_v63 }
 0xacd   :  { %v7077_v10 = vmax.f32 %v7023_v1, 0.0  ;;  %v13930_v25 = vadd.f32 %v7076_v37, %v13845_v15 }
 0xace   :  { %v7075_v45 = vmax.f32 %v7015_v7, 0.0  ;;  %v13924_v19 = vadd.f32 %v7074_v23, %v13839_v59 }
 0xacf   :  { %v13921_v50 = vadd.f32 %v7077_v10, %v13836_v55 }
 0xad0   :  { %v13927_v43 = vadd.f32 %v7075_v45, %v13842_v13 }
 0xad1   :  { %v7124_v18 = vpack.c.bf16 %v13921_v50, %v13930_v25 }
 0xad2   :  { %v7123_v9 = vpack.c.bf16 %v13927_v43, %v13924_v19 }
 0xad4   :  { %9622 = vmatprep.mubr.bf16.mxu0 %v7123_v9  ;;  %v11248_v9 = vld [vmem:[#allocation21 + $0x28] sm:$0xff]  }
 0xad5   :  { %9623 = vmatmul.mubr.bf16.vlgmr.msra.gmra.mrb[176].mxu0 %v7124_v18  ;;  %9648 = vmatprep.subr.bf16.mxu1 %v11248_v9  ;;  %v11253_v18 = vld [vmem:[#allocation24 + $0x10] sm:$0xff]  }
 0xad6   :  { %9649 = vmatpush3.bf16.msra.mxu1 %v11248_v9 }
 0xad8   :  { %v9596_v32 = vpop.f32.mrb[164].mxu1 }
 0xad9   :  { %v7036_v55 = vadd.f32 %v9596_v32, %v13914_v40  ;;  %v7027_v61 = vpop.f32.mrb[165].mxu1  ;;  %v11254_v32 = vld [vmem:[#allocation24 + $0x18] sm:$0xff]  }
 0xada   :  { %v7028_v59 = vadd.f32 %v13914_v40, %v7027_v61  ;;  %v9597_v30 = vpop.f32.mrb[166].mxu1  ;;  %v13996_v61 = vld [vmem:[#allocation19] ss:$0 sm:$0xff] }
 0xadb   :  { %v7039_v13 = vadd.f32 %v9597_v30, %v13914_v40  ;;  %v7030_v16 = vpop.f32.mrb[167].mxu1  ;;  %v7080_v35 = vmax.f32 %v7036_v55, 0.0  ;;  %v11255_v55 = vld [vmem:[#allocation24 + $0x20] sm:$0xff]  }
 0xadc   :  { %v7078_v15 = vmax.f32 %v7028_v59, 0.0  ;;  %v7031_v27 = vadd.f32 %v13914_v40, %v7030_v16 }
 0xadd   :  { %v7081_v4 = vmax.f32 %v7039_v13, 0.0  ;;  %v13950_v54 = vadd.f32 %v7080_v35, %v13865_v42 }
 0xade   :  { %v7079_v8 = vmax.f32 %v7031_v27, 0.0  ;;  %v13944_v46 = vadd.f32 %v7078_v15, %v13859_v48 }
 0xadf   :  { %v13941_v6 = vadd.f32 %v7081_v4, %v13856_v0 }
 0xae0   :  { %v13947_v29 = vadd.f32 %v7079_v8, %v13862_v28 }
 0xae1   :  { %v7126_v49 = vpack.c.bf16 %v13941_v6, %v13950_v54 }
 0xae2   :  { %v7125_v21 = vpack.c.bf16 %v13947_v29, %v13944_v46 }
 0xae4   :  { %9626 = vmatprep.mubr.bf16.mxu0 %v7125_v21 }
 0xae5   :  { %9627 = vmatmul.mubr.bf16.gmra.mrb[180].mxu0 %v7126_v49 }
 0xae8   :  { %v9600_v17 = vpop.f32.mrb[168].mxu1 }
 0xae9   :  { %v7052_v0 = vadd.f32 %v9600_v17, %v13914_v40  ;;  %v7043_v22 = vpop.f32.mrb[169].mxu1 }
 0xaea   :  { %v7044_v48 = vadd.f32 %v13914_v40, %v7043_v22  ;;  %v9601_v36 = vpop.f32.mrb[170].mxu1 }
 0xaeb   :  { %v7055_v28 = vadd.f32 %v9601_v36, %v13914_v40  ;;  %v7046_v39 = vpop.f32.mrb[171].mxu1  ;;  %v7084_v26 = vmax.f32 %v7052_v0, 0.0 }
 0xaec   :  { %v7082_v42 = vmax.f32 %v7044_v48, 0.0  ;;  %v7047_v60 = vadd.f32 %v13914_v40, %v7046_v39 }
 0xaed   :  { %v7085_v44 = vmax.f32 %v7055_v28, 0.0  ;;  %v13970_v62 = vadd.f32 %v7084_v26, %v13885_v5 }
 0xaee   :  { %v7083_v31 = vmax.f32 %v7047_v60, 0.0  ;;  %v13964_v57 = vadd.f32 %v7082_v42, %v13879_v11 }
 0xaef   :  { %v13961_v51 = vadd.f32 %v7085_v44, %v13876_v2 }
 0xaf0   :  { %v13967_v52 = vadd.f32 %v7083_v31, %v13882_v12 }
 0xaf1   :  { %v7128_v20 = vpack.c.bf16 %v13961_v51, %v13970_v62 }
 0xaf2   :  { %v7127_v47 = vpack.c.bf16 %v13967_v52, %v13964_v57 }
 0xaf4   :  { %9630 = vmatprep.mubr.bf16.mxu0 %v7127_v47 }
 0xaf5   :  { %9631 = vmatmul.mubr.bf16.gmra.mrb[184].mxu0 %v7128_v20 }
 0xaf8   :  { %v9604_v38 = vpop.f32.mrb[172].mxu1 }
 0xaf9   :  { %v7068_v2 = vadd.f32 %v9604_v38, %v13914_v40  ;;  %v7059_v53 = vpop.f32.mrb[173].mxu1 }
 0xafa   :  { %v7060_v11 = vadd.f32 %v13914_v40, %v7059_v53  ;;  %v9605_v56 = vpop.f32.mrb[174].mxu1 }
 0xafb   :  { %v7071_v12 = vadd.f32 %v9605_v56, %v13914_v40  ;;  %v7062_v3 = vpop.f32.mrb[175].mxu1  ;;  %v7088_v58 = vmax.f32 %v7068_v2, 0.0 }
 0xafc   :  { %v7086_v5 = vmax.f32 %v7060_v11, 0.0  ;;  %v7063_v14 = vadd.f32 %v13914_v40, %v7062_v3 }
 0xafd   :  { %v7089_v1 = vmax.f32 %v7071_v12, 0.0  ;;  %v13990_v10 = vadd.f32 %v7088_v58, %v13905_v34  ;;  %v11252_v34 = vld [vmem:[#allocation24 + $0x8] sm:$0xff]  }
 0xafe   :  { %v7087_v63 = vmax.f32 %v7063_v14, 0.0  ;;  %v13984_v7 = vadd.f32 %v7086_v5, %v13899_v24  ;;  %v11250_v24 = vld [vmem:[#allocation21 + $0x38] sm:$0xff]  }
 0xaff   :  { %v13981_v23 = vadd.f32 %v7089_v1, %v13896_v41  ;;  %v11249_v41 = vld [vmem:[#allocation21 + $0x30] sm:$0xff]  }
 0xb00   :  { %v13987_v37 = vadd.f32 %v7087_v63, %v13902_v33  ;;  %9650 = vmatprep.subr.bf16.mxu1 %v11249_v41  ;;  %v11251_v33 = vld [vmem:[#allocation24] sm:$0xff]  }
 0xb01   :  { %v7130_v40 = vpack.c.bf16 %v13981_v23, %v13990_v10  ;;  %9651 = vmatpush3.bf16.msra.mxu1 %v11249_v41  ;;  %9670 = vmatprep.subr.bf16.mxu0 %v11251_v33 }
 0xb02   :  { %v7129_v45 = vpack.c.bf16 %v13987_v37, %v13984_v7  ;;  %9652 = vmatprep.subr.bf16.mxu1 %v11250_v24  ;;  %9671 = vmatpush3.bf16.msra.mxu0 %v11251_v33 }
 0xb03   :  { %9672 = vmatprep.subr.bf16.mxu0 %v11252_v34 }
 0xb04   :  { %9634 = vmatprep.mubr.bf16.mxu0 %v7129_v45 }
 0xb05   :  { %9635 = vmatmul.mubr.bf16.gmra.mrb[188].mxu0 %v7130_v40  ;;  %9653 = vmatpush3.bf16.msra.mxu1 %v11250_v24 }
 0xb06   :  { %9673 = vmatpush3.bf16.msra.mxu0 %v11252_v34 }
 0xb07   :  { %9674 = vmatprep.subr.bf16.mxu0 %v11253_v18 }
 0xb0a   :  { %9675 = vmatpush3.bf16.msra.mxu0 %v11253_v18 }
 0xb0b   :  { %9676 = vmatprep.subr.bf16.mxu0 %v11254_v32 }
 0xb0e   :  { %9677 = vmatpush3.bf16.msra.mxu0 %v11254_v32 }
 0xb0f   :  { %9678 = vmatprep.subr.bf16.mxu0 %v11255_v55 }
 0xb12   :  { %9679 = vmatpush3.bf16.msra.mxu0 %v11255_v55 }
 0xba8   :  { %v9624_v59 = vpop.f32.mrb[176].mxu0 }
 0xba9   :  { %v7228_v30 = vadd.f32 %v9624_v59, %v13996_v61  ;;  %v7219_v13 = vpop.f32.mrb[177].mxu0 }
 0xbaa   :  { %v7220_v16 = vadd.f32 %v13996_v61, %v7219_v13  ;;  %v9625_v15 = vpop.f32.mrb[178].mxu0 }
 0xbab   :  { %v7231_v27 = vadd.f32 %v9625_v15, %v13996_v61  ;;  %v7222_v35 = vpop.f32.mrb[179].mxu0  ;;  %v7284_v21 = vmax.f32 %v7228_v30, 0.0 }
 0xbac   :  { %v7282_v4 = vmax.f32 %v7220_v16, 0.0  ;;  %v7223_v8 = vadd.f32 %v13996_v61, %v7222_v35 }
 0xbad   :  { %v7285_v49 = vmax.f32 %v7231_v27, 0.0  ;;  %v14012_v36 = vadd.f32 %v7284_v21, %v13930_v25 }
 0xbae   :  { %v7283_v17 = vmax.f32 %v7223_v8, 0.0  ;;  %v14006_v22 = vadd.f32 %v7282_v4, %v13924_v19 }
 0xbaf   :  { %v14003_v0 = vadd.f32 %v7285_v49, %v13921_v50 }
 0xbb0   :  { %v14009_v48 = vadd.f32 %v7283_v17, %v13927_v43 }
 0xbb1   :  { %v7332_v39 = vpack.c.bf16 %v14003_v0, %v14012_v36 }
 0xbb2   :  { %v7331_v28 = vpack.c.bf16 %v14009_v48, %v14006_v22 }
 0xbb4   :  { %9654 = vmatprep.mubr.bf16.mxu1 %v7331_v28  ;;  %v11256_v28 = vld [vmem:[#allocation24 + $0x28] sm:$0xff]  }
 0xbb5   :  { %9655 = vmatmul.mubr.bf16.vlgmr.msra.gmra.mrb[176].mxu1 %v7332_v39  ;;  %9680 = vmatprep.subr.bf16.mxu0 %v11256_v28  ;;  %v11261_v39 = vld [vmem:[#allocation27 + $0x10] sm:$0xff]  }
 0xbb6   :  { %9681 = vmatpush3.bf16.msra.mxu0 %v11256_v28 }
 0xbb8   :  { %v9628_v42 = vpop.f32.mrb[180].mxu0 }
 0xbb9   :  { %v7244_v50 = vadd.f32 %v9628_v42, %v13996_v61  ;;  %v7235_v60 = vpop.f32.mrb[181].mxu0  ;;  %v11262_v42 = vld [vmem:[#allocation27 + $0x18] sm:$0xff]  }
 0xbba   :  { %v7236_v19 = vadd.f32 %v13996_v61, %v7235_v60  ;;  %v9629_v26 = vpop.f32.mrb[182].mxu0  ;;  %v14078_v60 = vld [vmem:[#allocation22] ss:$0 sm:$0xff] }
 0xbbb   :  { %v7247_v43 = vadd.f32 %v9629_v26, %v13996_v61  ;;  %v7238_v44 = vpop.f32.mrb[183].mxu0  ;;  %v7288_v47 = vmax.f32 %v7244_v50, 0.0  ;;  %v11263_v50 = vld [vmem:[#allocation27 + $0x20] sm:$0xff]  }
 0xbbc   :  { %v7286_v25 = vmax.f32 %v7236_v19, 0.0  ;;  %v7239_v31 = vadd.f32 %v13996_v61, %v7238_v44 }
 0xbbd   :  { %v7289_v20 = vmax.f32 %v7247_v43, 0.0  ;;  %v14032_v56 = vadd.f32 %v7288_v47, %v13950_v54 }
 0xbbe   :  { %v7287_v38 = vmax.f32 %v7239_v31, 0.0  ;;  %v14026_v53 = vadd.f32 %v7286_v25, %v13944_v46 }
 0xbbf   :  { %v14023_v2 = vadd.f32 %v7289_v20, %v13941_v6 }
 0xbc0   :  { %v14029_v11 = vadd.f32 %v7287_v38, %v13947_v29 }
 0xbc1   :  { %v7334_v3 = vpack.c.bf16 %v14023_v2, %v14032_v56 }
 0xbc2   :  { %v7333_v12 = vpack.c.bf16 %v14029_v11, %v14026_v53 }
 0xbc4   :  { %9658 = vmatprep.mubr.bf16.mxu1 %v7333_v12 }
 0xbc5   :  { %9659 = vmatmul.mubr.bf16.gmra.mrb[180].mxu1 %v7334_v3 }
 0xbc8   :  { %v9632_v5 = vpop.f32.mrb[184].mxu0 }
 0xbc9   :  { %v7260_v6 = vadd.f32 %v9632_v5, %v13996_v61  ;;  %v7251_v14 = vpop.f32.mrb[185].mxu0 }
 0xbca   :  { %v7252_v46 = vadd.f32 %v13996_v61, %v7251_v14  ;;  %v9633_v58 = vpop.f32.mrb[186].mxu0 }
 0xbcb   :  { %v7263_v29 = vadd.f32 %v9633_v58, %v13996_v61  ;;  %v7254_v1 = vpop.f32.mrb[187].mxu0  ;;  %v7292_v45 = vmax.f32 %v7260_v6, 0.0 }
 0xbcc   :  { %v7290_v54 = vmax.f32 %v7252_v46, 0.0  ;;  %v7255_v63 = vadd.f32 %v13996_v61, %v7254_v1 }
 0xbcd   :  { %v7293_v40 = vmax.f32 %v7263_v29, 0.0  ;;  %v14052_v34 = vadd.f32 %v7292_v45, %v13970_v62 }
 0xbce   :  { %v7291_v9 = vmax.f32 %v7255_v63, 0.0  ;;  %v14046_v24 = vadd.f32 %v7290_v54, %v13964_v57 }
 0xbcf   :  { %v14043_v41 = vadd.f32 %v7293_v40, %v13961_v51 }
 0xbd0   :  { %v14049_v33 = vadd.f32 %v7291_v9, %v13967_v52 }
 0xbd1   :  { %v7336_v32 = vpack.c.bf16 %v14043_v41, %v14052_v34 }
 0xbd2   :  { %v7335_v18 = vpack.c.bf16 %v14049_v33, %v14046_v24 }
 0xbd4   :  { %9662 = vmatprep.mubr.bf16.mxu1 %v7335_v18 }
 0xbd5   :  { %9663 = vmatmul.mubr.bf16.gmra.mrb[184].mxu1 %v7336_v32 }
 0xbd8   :  { %v9636_v55 = vpop.f32.mrb[188].mxu0 }
 0xbd9   :  { %v7276_v51 = vadd.f32 %v9636_v55, %v13996_v61  ;;  %v7267_v59 = vpop.f32.mrb[189].mxu0 }
 0xbda   :  { %v7268_v57 = vadd.f32 %v13996_v61, %v7267_v59  ;;  %v9637_v30 = vpop.f32.mrb[190].mxu0 }
 0xbdb   :  { %v7279_v52 = vadd.f32 %v9637_v30, %v13996_v61  ;;  %v7270_v13 = vpop.f32.mrb[191].mxu0  ;;  %v7296_v15 = vmax.f32 %v7276_v51, 0.0 }
 0xbdc   :  { %v7294_v62 = vmax.f32 %v7268_v57, 0.0  ;;  %v7271_v16 = vadd.f32 %v13996_v61, %v7270_v13 }
 0xbdd   :  { %v7297_v27 = vmax.f32 %v7279_v52, 0.0  ;;  %v14072_v49 = vadd.f32 %v7296_v15, %v13990_v10  ;;  %v11260_v10 = vld [vmem:[#allocation27 + $0x8] sm:$0xff]  }
 0xbde   :  { %v7295_v35 = vmax.f32 %v7271_v16, 0.0  ;;  %v14066_v8 = vadd.f32 %v7294_v62, %v13984_v7  ;;  %v11258_v7 = vld [vmem:[#allocation24 + $0x38] sm:$0xff]  }
 0xbdf   :  { %v14063_v4 = vadd.f32 %v7297_v27, %v13981_v23  ;;  %v11257_v23 = vld [vmem:[#allocation24 + $0x30] sm:$0xff]  }
 0xbe0   :  { %v14069_v21 = vadd.f32 %v7295_v35, %v13987_v37  ;;  %9682 = vmatprep.subr.bf16.mxu0 %v11257_v23  ;;  %v11259_v37 = vld [vmem:[#allocation27] sm:$0xff]  }
 0xbe1   :  { %v7338_v61 = vpack.c.bf16 %v14063_v4, %v14072_v49  ;;  %9683 = vmatpush3.bf16.msra.mxu0 %v11257_v23  ;;  %9702 = vmatprep.subr.bf16.mxu1 %v11259_v37 }
 0xbe2   :  { %v7337_v17 = vpack.c.bf16 %v14069_v21, %v14066_v8  ;;  %9684 = vmatprep.subr.bf16.mxu0 %v11258_v7  ;;  %9703 = vmatpush3.bf16.msra.mxu1 %v11259_v37 }
 0xbe3   :  { %9704 = vmatprep.subr.bf16.mxu1 %v11260_v10 }
 0xbe4   :  { %9666 = vmatprep.mubr.bf16.mxu1 %v7337_v17 }
 0xbe5   :  { %9667 = vmatmul.mubr.bf16.gmra.mrb[188].mxu1 %v7338_v61  ;;  %9685 = vmatpush3.bf16.msra.mxu0 %v11258_v7 }
 0xbe6   :  { %9705 = vmatpush3.bf16.msra.mxu1 %v11260_v10 }
 0xbe7   :  { %9706 = vmatprep.subr.bf16.mxu1 %v11261_v39 }
 0xbea   :  { %9707 = vmatpush3.bf16.msra.mxu1 %v11261_v39 }
 0xbeb   :  { %9708 = vmatprep.subr.bf16.mxu1 %v11262_v42 }
 0xbee   :  { %9709 = vmatpush3.bf16.msra.mxu1 %v11262_v42 }
 0xbef   :  { %9710 = vmatprep.subr.bf16.mxu1 %v11263_v50 }
 0xbf2   :  { %9711 = vmatpush3.bf16.msra.mxu1 %v11263_v50 }
 0xc88   :  { %v9656_v19 = vpop.f32.mrb[176].mxu1 }
 0xc89   :  { %v7436_v26 = vadd.f32 %v9656_v19, %v14078_v60  ;;  %v7427_v43 = vpop.f32.mrb[177].mxu1 }
 0xc8a   :  { %v7428_v44 = vadd.f32 %v14078_v60, %v7427_v43  ;;  %v9657_v25 = vpop.f32.mrb[178].mxu1 }
 0xc8b   :  { %v7439_v31 = vadd.f32 %v9657_v25, %v14078_v60  ;;  %v7430_v47 = vpop.f32.mrb[179].mxu1  ;;  %v7492_v12 = vmax.f32 %v7436_v26, 0.0 }
 0xc8c   :  { %v7490_v20 = vmax.f32 %v7428_v44, 0.0  ;;  %v7431_v38 = vadd.f32 %v14078_v60, %v7430_v47 }
 0xc8d   :  { %v7493_v3 = vmax.f32 %v7439_v31, 0.0  ;;  %v14094_v58 = vadd.f32 %v7492_v12, %v14012_v36 }
 0xc8e   :  { %v7491_v5 = vmax.f32 %v7431_v38, 0.0  ;;  %v14088_v14 = vadd.f32 %v7490_v20, %v14006_v22 }
 0xc8f   :  { %v14085_v6 = vadd.f32 %v7493_v3, %v14003_v0 }
 0xc90   :  { %v14091_v46 = vadd.f32 %v7491_v5, %v14009_v48 }
 0xc91   :  { %v7540_v1 = vpack.c.bf16 %v14085_v6, %v14094_v58 }
 0xc92   :  { %v7539_v29 = vpack.c.bf16 %v14091_v46, %v14088_v14 }
 0xc94   :  { %9686 = vmatprep.mubr.bf16.mxu0 %v7539_v29  ;;  %v11268_v29 = vld [vmem:[%s14839_s28 + $0x8] sm:$0xff]  }
 0xc95   :  { %9687 = vmatmul.mubr.bf16.vlgmr.msra.gmra.mrb[192].mxu0 %v7540_v1  ;;  %v11269_v1 = vld [vmem:[%s14839_s28 + $0x10] sm:$0xff]  }
 0xc98   :  { %v9660_v54 = vpop.f32.mrb[180].mxu1 }
 0xc99   :  { %v7452_v0 = vadd.f32 %v9660_v54, %v14078_v60  ;;  %v7443_v63 = vpop.f32.mrb[181].mxu1  ;;  %v11270_v54 = vld [vmem:[%s14839_s28 + $0x18] sm:$0xff]  }
 0xc9a   :  { %v7444_v22 = vadd.f32 %v14078_v60, %v7443_v63  ;;  %v9661_v45 = vpop.f32.mrb[182].mxu1  ;;  %v14165_v63 = vld [vmem:[#allocation25] ss:$0 sm:$0xff] }
 0xc9b   :  { %v7455_v48 = vadd.f32 %v9661_v45, %v14078_v60  ;;  %v7446_v40 = vpop.f32.mrb[183].mxu1  ;;  %v7496_v18 = vmax.f32 %v7452_v0, 0.0  ;;  %v11271_v0 = vld [vmem:[%s14839_s28 + $0x20] sm:$0xff]  }
 0xc9c   :  { %v7494_v36 = vmax.f32 %v7444_v22, 0.0  ;;  %v7447_v9 = vadd.f32 %v14078_v60, %v7446_v40 }
 0xc9d   :  { %v7497_v32 = vmax.f32 %v7455_v48, 0.0  ;;  %v14114_v30 = vadd.f32 %v7496_v18, %v14032_v56 }
 0xc9e   :  { %v7495_v55 = vmax.f32 %v7447_v9, 0.0  ;;  %v14108_v59 = vadd.f32 %v7494_v36, %v14026_v53 }
 0xc9f   :  { %v14105_v51 = vadd.f32 %v7497_v32, %v14023_v2 }
 0xca0   :  { %v14111_v57 = vadd.f32 %v7495_v55, %v14029_v11 }
 0xca1   :  { %v7542_v13 = vpack.c.bf16 %v14105_v51, %v14114_v30 }
 0xca2   :  { %v7541_v52 = vpack.c.bf16 %v14111_v57, %v14108_v59 }
 0xca4   :  { %9690 = vmatprep.mubr.bf16.mxu0 %v7541_v52 }
 0xca5   :  { %9691 = vmatmul.mubr.bf16.gmra.mrb[196].mxu0 %v7542_v13 }
 0xca8   :  { %v9664_v62 = vpop.f32.mrb[184].mxu1 }
 0xca9   :  { %v7468_v2 = vadd.f32 %v9664_v62, %v14078_v60  ;;  %v7459_v16 = vpop.f32.mrb[185].mxu1 }
 0xcaa   :  { %v7460_v53 = vadd.f32 %v14078_v60, %v7459_v16  ;;  %v9665_v15 = vpop.f32.mrb[186].mxu1 }
 0xcab   :  { %v7471_v11 = vadd.f32 %v9665_v15, %v14078_v60  ;;  %v7462_v27 = vpop.f32.mrb[187].mxu1  ;;  %v7500_v17 = vmax.f32 %v7468_v2, 0.0 }
 0xcac   :  { %v7498_v56 = vmax.f32 %v7460_v53, 0.0  ;;  %v7463_v35 = vadd.f32 %v14078_v60, %v7462_v27 }
 0xcad   :  { %v7501_v61 = vmax.f32 %v7471_v11, 0.0  ;;  %v14134_v10 = vadd.f32 %v7500_v17, %v14052_v34 }
 0xcae   :  { %v7499_v28 = vmax.f32 %v7463_v35, 0.0  ;;  %v14128_v7 = vadd.f32 %v7498_v56, %v14046_v24 }
 0xcaf   :  { %v14125_v23 = vadd.f32 %v7501_v61, %v14043_v41 }
 0xcb0   :  { %v14131_v37 = vadd.f32 %v7499_v28, %v14049_v33 }
 0xcb1   :  { %v7544_v42 = vpack.c.bf16 %v14125_v23, %v14134_v10 }
 0xcb2   :  { %v7543_v39 = vpack.c.bf16 %v14131_v37, %v14128_v7 }
 0xcb4   :  { %9694 = vmatprep.mubr.bf16.mxu0 %v7543_v39 }
 0xcb5   :  { %9695 = vmatmul.mubr.bf16.gmra.mrb[200].mxu0 %v7544_v42 }
 0xcb8   :  { %v9668_v50 = vpop.f32.mrb[188].mxu1 }
 0xcb9   :  { %v7484_v41 = vadd.f32 %v9668_v50, %v14078_v60  ;;  %v7475_v19 = vpop.f32.mrb[189].mxu1 }
 0xcba   :  { %v7476_v24 = vadd.f32 %v14078_v60, %v7475_v19  ;;  %v9669_v26 = vpop.f32.mrb[190].mxu1 }
 0xcbb   :  { %v7487_v33 = vadd.f32 %v9669_v26, %v14078_v60  ;;  %v7478_v43 = vpop.f32.mrb[191].mxu1  ;;  %v7504_v25 = vmax.f32 %v7484_v41, 0.0 }
 0xcbc   :  { %v7502_v34 = vmax.f32 %v7476_v24, 0.0  ;;  %v7479_v44 = vadd.f32 %v14078_v60, %v7478_v43 }
 0xcbd   :  { %v7505_v31 = vmax.f32 %v7487_v33, 0.0  ;;  %v14154_v3 = vadd.f32 %v7504_v25, %v14072_v49  ;;  %v11267_v49 = vld [vmem:[%s14839_s28] sm:$0xff]  }
 0xcbe   :  { %v7503_v47 = vmax.f32 %v7479_v44, 0.0  ;;  %v14148_v38 = vadd.f32 %v7502_v34, %v14066_v8  ;;  %v11265_v8 = vld [vmem:[#allocation27 + $0x30] sm:$0xff]   ;;  %9734 = vmatprep.subr.bf16.mxu0 %v11267_v49 }
 0xcbf   :  { %v14145_v20 = vadd.f32 %v7505_v31, %v14063_v4  ;;  %v11264_v4 = vld [vmem:[#allocation27 + $0x28] sm:$0xff]   ;;  %9735 = vmatpush3.bf16.msra.mxu0 %v11267_v49 }
 0xcc0   :  { %v14151_v12 = vadd.f32 %v7503_v47, %v14069_v21  ;;  %9712 = vmatprep.subr.bf16.mxu1 %v11264_v4  ;;  %v11266_v21 = vld [vmem:[#allocation27 + $0x38] sm:$0xff]   ;;  %9736 = vmatprep.subr.bf16.mxu0 %v11268_v29 }
 0xcc1   :  { %v7546_v5 = vpack.c.bf16 %v14145_v20, %v14154_v3  ;;  %9713 = vmatpush3.bf16.msra.mxu1 %v11264_v4 }
 0xcc2   :  { %v7545_v60 = vpack.c.bf16 %v14151_v12, %v14148_v38  ;;  %9714 = vmatprep.subr.bf16.mxu1 %v11265_v8 }
 0xcc3   :  { %9737 = vmatpush3.bf16.msra.mxu0 %v11268_v29 }
 0xcc4   :  { %9698 = vmatprep.mubr.bf16.mxu0 %v7545_v60  ;;  %9738 = vmatprep.subr.bf16.mxu0 %v11269_v1 }
 0xcc5   :  { %9699 = vmatmul.mubr.bf16.gmra.mrb[204].mxu0 %v7546_v5  ;;  %9715 = vmatpush3.bf16.msra.mxu1 %v11265_v8 }
 0xcc6   :  { %9716 = vmatprep.subr.bf16.mxu1 %v11266_v21 }
 0xcc7   :  { %9739 = vmatpush3.bf16.msra.mxu0 %v11269_v1 }
 0xcc8   :  { %9740 = vmatprep.subr.bf16.mxu0 %v11270_v54 }
 0xcc9   :  { %9717 = vmatpush3.bf16.msra.mxu1 %v11266_v21 }
 0xccb   :  { %9741 = vmatpush3.bf16.msra.mxu0 %v11270_v54 }
 0xccc   :  { %9742 = vmatprep.subr.bf16.mxu0 %v11271_v0 }
 0xccf   :  { %9743 = vmatpush3.bf16.msra.mxu0 %v11271_v0 }
 0xd68   :  { %v9688_v22 = vpop.f32.mrb[192].mxu0 }
 0xd69   :  { %v7644_v45 = vadd.f32 %v9688_v22, %v14165_v63  ;;  %v7635_v48 = vpop.f32.mrb[193].mxu0 }
 0xd6a   :  { %v7636_v40 = vadd.f32 %v14165_v63, %v7635_v48  ;;  %v9689_v36 = vpop.f32.mrb[194].mxu0 }
 0xd6b   :  { %v7647_v9 = vadd.f32 %v9689_v36, %v14165_v63  ;;  %v7638_v18 = vpop.f32.mrb[195].mxu0  ;;  %v7700_v52 = vmax.f32 %v7644_v45, 0.0 }
 0xd6c   :  { %v7698_v32 = vmax.f32 %v7636_v40, 0.0  ;;  %v7639_v55 = vadd.f32 %v14165_v63, %v7638_v18 }
 0xd6d   :  { %v7701_v13 = vmax.f32 %v7647_v9, 0.0  ;;  %v14181_v15 = vadd.f32 %v7700_v52, %v14094_v58 }
 0xd6e   :  { %v7699_v62 = vmax.f32 %v7639_v55, 0.0  ;;  %v14175_v16 = vadd.f32 %v7698_v32, %v14088_v14 }
 0xd6f   :  { %v14172_v2 = vadd.f32 %v7701_v13, %v14085_v6 }
 0xd70   :  { %v14178_v53 = vadd.f32 %v7699_v62, %v14091_v46 }
 0xd71   :  { %v7748_v27 = vpack.c.bf16 %v14172_v2, %v14181_v15 }
 0xd72   :  { %v7747_v11 = vpack.c.bf16 %v14178_v53, %v14175_v16 }
 0xd74   :  { %9718 = vmatprep.mubr.bf16.mxu1 %v7747_v11  ;;  %v11272_v11 = vld [vmem:[%s14839_s28 + $0x28] sm:$0xff]  }
 0xd75   :  { %9719 = vmatmul.mubr.bf16.vlgmr.msra.gmra.mrb[192].mxu1 %v7748_v27  ;;  %9744 = vmatprep.subr.bf16.mxu0 %v11272_v11  ;;  %v11277_v27 = vld [vmem:[#allocation30 + $0x10] sm:$0xff]  }
 0xd76   :  { %9745 = vmatpush3.bf16.msra.mxu0 %v11272_v11 }
 0xd78   :  { %v9692_v56 = vpop.f32.mrb[196].mxu0 }
 0xd79   :  { %v7660_v6 = vadd.f32 %v9692_v56, %v14165_v63  ;;  %v7651_v35 = vpop.f32.mrb[197].mxu0  ;;  %v11278_v56 = vld [vmem:[#allocation30 + $0x18] sm:$0xff]  }
 0xd7a   :  { %v7652_v14 = vadd.f32 %v14165_v63, %v7651_v35  ;;  %v9693_v17 = vpop.f32.mrb[198].mxu0  ;;  %v14250_v35 = vld [vmem:[#allocation28] ss:$0 sm:$0xff] }
 0xd7b   :  { %v7663_v46 = vadd.f32 %v9693_v17, %v14165_v63  ;;  %v7654_v61 = vpop.f32.mrb[199].mxu0  ;;  %v7704_v39 = vmax.f32 %v7660_v6, 0.0  ;;  %v11279_v6 = vld [vmem:[#allocation30 + $0x20] sm:$0xff]  }
 0xd7c   :  { %v7702_v58 = vmax.f32 %v7652_v14, 0.0  ;;  %v7655_v28 = vadd.f32 %v14165_v63, %v7654_v61 }
 0xd7d   :  { %v7705_v42 = vmax.f32 %v7663_v46, 0.0  ;;  %v14201_v26 = vadd.f32 %v7704_v39, %v14114_v30 }
 0xd7e   :  { %v7703_v50 = vmax.f32 %v7655_v28, 0.0  ;;  %v14195_v19 = vadd.f32 %v7702_v58, %v14108_v59 }
 0xd7f   :  { %v14192_v41 = vadd.f32 %v7705_v42, %v14105_v51 }
 0xd80   :  { %v14198_v24 = vadd.f32 %v7703_v50, %v14111_v57 }
 0xd81   :  { %v7750_v43 = vpack.c.bf16 %v14192_v41, %v14201_v26 }
 0xd82   :  { %v7749_v33 = vpack.c.bf16 %v14198_v24, %v14195_v19 }
 0xd84   :  { %9722 = vmatprep.mubr.bf16.mxu1 %v7749_v33 }
 0xd85   :  { %9723 = vmatmul.mubr.bf16.gmra.mrb[196].mxu1 %v7750_v43 }
 0xd88   :  { %v9696_v34 = vpop.f32.mrb[200].mxu0 }
 0xd89   :  { %v7676_v51 = vadd.f32 %v9696_v34, %v14165_v63  ;;  %v7667_v44 = vpop.f32.mrb[201].mxu0 }
 0xd8a   :  { %v7668_v59 = vadd.f32 %v14165_v63, %v7667_v44  ;;  %v9697_v25 = vpop.f32.mrb[202].mxu0 }
 0xd8b   :  { %v7679_v57 = vadd.f32 %v9697_v25, %v14165_v63  ;;  %v7670_v31 = vpop.f32.mrb[203].mxu0  ;;  %v7708_v60 = vmax.f32 %v7676_v51, 0.0 }
 0xd8c   :  { %v7706_v30 = vmax.f32 %v7668_v59, 0.0  ;;  %v7671_v47 = vadd.f32 %v14165_v63, %v7670_v31 }
 0xd8d   :  { %v7709_v5 = vmax.f32 %v7679_v57, 0.0  ;;  %v14221_v29 = vadd.f32 %v7708_v60, %v14134_v10 }
 0xd8e   :  { %v7707_v4 = vmax.f32 %v7671_v47, 0.0  ;;  %v14215_v21 = vadd.f32 %v7706_v30, %v14128_v7 }
 0xd8f   :  { %v14212_v8 = vadd.f32 %v7709_v5, %v14125_v23 }
 0xd90   :  { %v14218_v49 = vadd.f32 %v7707_v4, %v14131_v37 }
 0xd91   :  { %v7752_v54 = vpack.c.bf16 %v14212_v8, %v14221_v29 }
 0xd92   :  { %v7751_v1 = vpack.c.bf16 %v14218_v49, %v14215_v21 }
 0xd94   :  { %9726 = vmatprep.mubr.bf16.mxu1 %v7751_v1 }
 0xd95   :  { %9727 = vmatmul.mubr.bf16.gmra.mrb[200].mxu1 %v7752_v54 }
 0xd98   :  { %v9700_v0 = vpop.f32.mrb[204].mxu0 }
 0xd99   :  { %v7692_v23 = vadd.f32 %v9700_v0, %v14165_v63  ;;  %v7683_v22 = vpop.f32.mrb[205].mxu0 }
 0xd9a   :  { %v7684_v7 = vadd.f32 %v14165_v63, %v7683_v22  ;;  %v9701_v45 = vpop.f32.mrb[206].mxu0 }
 0xd9b   :  { %v7695_v37 = vadd.f32 %v9701_v45, %v14165_v63  ;;  %v7686_v10 = vpop.f32.mrb[207].mxu0  ;;  %v7712_v36 = vmax.f32 %v7692_v23, 0.0 }
 0xd9c   :  { %v7710_v48 = vmax.f32 %v7684_v7, 0.0  ;;  %v7687_v40 = vadd.f32 %v14165_v63, %v7686_v10 }
 0xd9d   :  { %v7713_v9 = vmax.f32 %v7695_v37, 0.0  ;;  %v14241_v13 = vadd.f32 %v7712_v36, %v14154_v3  ;;  %v11276_v3 = vld [vmem:[#allocation30 + $0x8] sm:$0xff]  }
 0xd9e   :  { %v7711_v18 = vmax.f32 %v7687_v40, 0.0  ;;  %v14235_v55 = vadd.f32 %v7710_v48, %v14148_v38  ;;  %v11274_v38 = vld [vmem:[%s14839_s28 + $0x38] sm:$0xff]  }
 0xd9f   :  { %v14232_v32 = vadd.f32 %v7713_v9, %v14145_v20  ;;  %v11273_v20 = vld [vmem:[%s14839_s28 + $0x30] sm:$0xff]  }
 0xda0   :  { %v14238_v52 = vadd.f32 %v7711_v18, %v14151_v12  ;;  %9746 = vmatprep.subr.bf16.mxu0 %v11273_v20  ;;  %v11275_v12 = vld [vmem:[#allocation30] sm:$0xff]  }
 0xda1   :  { %v7754_v63 = vpack.c.bf16 %v14232_v32, %v14241_v13  ;;  %9747 = vmatpush3.bf16.msra.mxu0 %v11273_v20  ;;  %9766 = vmatprep.subr.bf16.mxu1 %v11275_v12 }
 0xda2   :  { %v7753_v62 = vpack.c.bf16 %v14238_v52, %v14235_v55  ;;  %9748 = vmatprep.subr.bf16.mxu0 %v11274_v38  ;;  %9767 = vmatpush3.bf16.msra.mxu1 %v11275_v12 }
 0xda3   :  { %9768 = vmatprep.subr.bf16.mxu1 %v11276_v3 }
 0xda4   :  { %9730 = vmatprep.mubr.bf16.mxu1 %v7753_v62 }
 0xda5   :  { %9731 = vmatmul.mubr.bf16.gmra.mrb[204].mxu1 %v7754_v63  ;;  %9749 = vmatpush3.bf16.msra.mxu0 %v11274_v38 }
 0xda6   :  { %9769 = vmatpush3.bf16.msra.mxu1 %v11276_v3 }
 0xda7   :  { %9770 = vmatprep.subr.bf16.mxu1 %v11277_v27 }
 0xdaa   :  { %9771 = vmatpush3.bf16.msra.mxu1 %v11277_v27 }
 0xdab   :  { %9772 = vmatprep.subr.bf16.mxu1 %v11278_v56 }
 0xdae   :  { %9773 = vmatpush3.bf16.msra.mxu1 %v11278_v56 }
 0xdaf   :  { %9774 = vmatprep.subr.bf16.mxu1 %v11279_v6 }
 0xdb2   :  { %9775 = vmatpush3.bf16.msra.mxu1 %v11279_v6 }
 0xe48   :  { %v9720_v14 = vpop.f32.mrb[192].mxu1 }
 0xe49   :  { %v7852_v17 = vadd.f32 %v9720_v14, %v14250_v35  ;;  %v7843_v46 = vpop.f32.mrb[193].mxu1 }
 0xe4a   :  { %v7844_v61 = vadd.f32 %v14250_v35, %v7843_v46  ;;  %v9721_v58 = vpop.f32.mrb[194].mxu1 }
 0xe4b   :  { %v7855_v28 = vadd.f32 %v9721_v58, %v14250_v35  ;;  %v7846_v39 = vpop.f32.mrb[195].mxu1  ;;  %v7908_v33 = vmax.f32 %v7852_v17, 0.0 }
 0xe4c   :  { %v7906_v42 = vmax.f32 %v7844_v61, 0.0  ;;  %v7847_v50 = vadd.f32 %v14250_v35, %v7846_v39 }
 0xe4d   :  { %v7909_v43 = vmax.f32 %v7855_v28, 0.0  ;;  %v14266_v25 = vadd.f32 %v7908_v33, %v14181_v15 }
 0xe4e   :  { %v7907_v34 = vmax.f32 %v7847_v50, 0.0  ;;  %v14260_v44 = vadd.f32 %v7906_v42, %v14175_v16 }
 0xe4f   :  { %v14257_v51 = vadd.f32 %v7909_v43, %v14172_v2 }
 0xe50   :  { %v14263_v59 = vadd.f32 %v7907_v34, %v14178_v53 }
 0xe51   :  { %v7956_v31 = vpack.c.bf16 %v14257_v51, %v14266_v25 }
 0xe52   :  { %v7955_v57 = vpack.c.bf16 %v14263_v59, %v14260_v44 }
 0xe54   :  { %9750 = vmatprep.mubr.bf16.mxu0 %v7955_v57  ;;  %v11282_v57 = vld [vmem:[#allocation30 + $0x38] sm:$0xff]  }
 0xe55   :  { %9751 = vmatmul.mubr.bf16.vlgmr.msra.gmra.mrb[208].mxu0 %v7956_v31 }
 0xe58   :  { %v9724_v30 = vpop.f32.mrb[196].mxu1 }
 0xe59   :  { %v7868_v2 = vadd.f32 %v9724_v30, %v14250_v35  ;;  %v7859_v47 = vpop.f32.mrb[197].mxu1 }
 0xe5a   :  { %v7860_v16 = vadd.f32 %v14250_v35, %v7859_v47  ;;  %v9725_v60 = vpop.f32.mrb[198].mxu1 }
 0xe5b   :  { %v7871_v53 = vadd.f32 %v9725_v60, %v14250_v35  ;;  %v7862_v5 = vpop.f32.mrb[199].mxu1  ;;  %v7912_v1 = vmax.f32 %v7868_v2, 0.0 }
 0xe5c   :  { %v7910_v15 = vmax.f32 %v7860_v16, 0.0  ;;  %v7863_v4 = vadd.f32 %v14250_v35, %v7862_v5 }
 0xe5d   :  { %v7913_v54 = vmax.f32 %v7871_v53, 0.0  ;;  %v14286_v45 = vadd.f32 %v7912_v1, %v14201_v26 }
 0xe5e   :  { %v7911_v0 = vmax.f32 %v7863_v4, 0.0  ;;  %v14280_v22 = vadd.f32 %v7910_v15, %v14195_v19 }
 0xe5f   :  { %v14277_v23 = vadd.f32 %v7913_v54, %v14192_v41 }
 0xe60   :  { %v14283_v7 = vadd.f32 %v7911_v0, %v14198_v24 }
 0xe61   :  { %v7958_v10 = vpack.c.bf16 %v14277_v23, %v14286_v45 }
 0xe62   :  { %v7957_v37 = vpack.c.bf16 %v14283_v7, %v14280_v22 }
 0xe64   :  { %9754 = vmatprep.mubr.bf16.mxu0 %v7957_v37 }
 0xe65   :  { %9755 = vmatmul.mubr.bf16.gmra.mrb[212].mxu0 %v7958_v10 }
 0xe68   :  { %v9728_v48 = vpop.f32.mrb[200].mxu1 }
 0xe69   :  { %v7884_v41 = vadd.f32 %v9728_v48, %v14250_v35  ;;  %v7875_v40 = vpop.f32.mrb[201].mxu1 }
 0xe6a   :  { %v7876_v19 = vadd.f32 %v14250_v35, %v7875_v40  ;;  %v9729_v36 = vpop.f32.mrb[202].mxu1 }
 0xe6b   :  { %v7887_v24 = vadd.f32 %v9729_v36, %v14250_v35  ;;  %v7878_v9 = vpop.f32.mrb[203].mxu1  ;;  %v7916_v62 = vmax.f32 %v7884_v41, 0.0 }
 0xe6c   :  { %v7914_v26 = vmax.f32 %v7876_v19, 0.0  ;;  %v7879_v18 = vadd.f32 %v14250_v35, %v7878_v9 }
 0xe6d   :  { %v7917_v63 = vmax.f32 %v7887_v24, 0.0  ;;  %v14306_v3 = vadd.f32 %v7916_v62, %v14221_v29 }
 0xe6e   :  { %v7915_v11 = vmax.f32 %v7879_v18, 0.0  ;;  %v14300_v38 = vadd.f32 %v7914_v26, %v14215_v21 }
 0xe6f   :  { %v14297_v20 = vadd.f32 %v7917_v63, %v14212_v8 }
 0xe70   :  { %v14303_v12 = vadd.f32 %v7915_v11, %v14218_v49 }
 0xe71   :  { %v7960_v56 = vpack.c.bf16 %v14297_v20, %v14306_v3 }
 0xe72   :  { %v7959_v27 = vpack.c.bf16 %v14303_v12, %v14300_v38 }
 0xe74   :  { %9758 = vmatprep.mubr.bf16.mxu0 %v7959_v27 }
 0xe75   :  { %9759 = vmatmul.mubr.bf16.gmra.mrb[216].mxu0 %v7960_v56 }
 0xe78   :  { %v9732_v6 = vpop.f32.mrb[204].mxu1 }
 0xe79   :  { %v7900_v8 = vadd.f32 %v9732_v6, %v14250_v35  ;;  %v7891_v14 = vpop.f32.mrb[205].mxu1 }
 0xe7a   :  { %v7892_v21 = vadd.f32 %v14250_v35, %v7891_v14  ;;  %v9733_v17 = vpop.f32.mrb[206].mxu1 }
 0xe7b   :  { %v7903_v49 = vadd.f32 %v9733_v17, %v14250_v35  ;;  %v7894_v46 = vpop.f32.mrb[207].mxu1  ;;  %v7920_v58 = vmax.f32 %v7900_v8, 0.0 }
 0xe7c   :  { %v7918_v29 = vmax.f32 %v7892_v21, 0.0  ;;  %v7895_v61 = vadd.f32 %v14250_v35, %v7894_v46 }
 0xe7d   :  { %v7921_v28 = vmax.f32 %v7903_v49, 0.0  ;;  %v14326_v43 = vadd.f32 %v7920_v58, %v14241_v13 }
 0xe7e   :  { %v7919_v39 = vmax.f32 %v7895_v61, 0.0  ;;  %v14320_v50 = vadd.f32 %v7918_v29, %v14235_v55  ;;  %v11281_v55 = vld [vmem:[#allocation30 + $0x30] sm:$0xff]  }
 0xe7f   :  { %v14317_v42 = vadd.f32 %v7921_v28, %v14232_v32  ;;  %v11280_v32 = vld [vmem:[#allocation30 + $0x28] sm:$0xff]  }
 0xe80   :  { %v14323_v33 = vadd.f32 %v7919_v39, %v14238_v52  ;;  %9776 = vmatprep.subr.bf16.mxu1 %v11280_v32  ;;  %v14333_v52 = vld [vmem:[%s14840_s1] ss:$0 sm:$0xff] }
 0xe81   :  { %v7962_v35 = vpack.c.bf16 %v14317_v42, %v14326_v43  ;;  %9777 = vmatpush3.bf16.msra.mxu1 %v11280_v32 }
 0xe82   :  { %v7961_v34 = vpack.c.bf16 %v14323_v33, %v14320_v50  ;;  %9778 = vmatprep.subr.bf16.mxu1 %v11281_v55 }
 0xe84   :  { %9762 = vmatprep.mubr.bf16.mxu0 %v7961_v34 }
 0xe85   :  { %9763 = vmatmul.mubr.bf16.gmra.mrb[220].mxu0 %v7962_v35  ;;  %9779 = vmatpush3.bf16.msra.mxu1 %v11281_v55 }
 0xe86   :  { %9780 = vmatprep.subr.bf16.mxu1 %v11282_v57 }
 0xe89   :  { %9781 = vmatpush3.bf16.msra.mxu1 %v11282_v57 }
 0xf28   :  { %v9752_v13 = vpop.f32.mrb[208].mxu0 }
 0xf29   :  { %v8060_v31 = vadd.f32 %v9752_v13, %v14333_v52  ;;  %v8051_v30 = vpop.f32.mrb[209].mxu0 }
 0xf2a   :  { %v8052_v2 = vadd.f32 %v14333_v52, %v8051_v30  ;;  %v9753_v47 = vpop.f32.mrb[210].mxu0 }
 0xf2b   :  { %v8116_v16 = vmax.f32 %v8060_v31, 0.0  ;;  %v8063_v60 = vadd.f32 %v9753_v47, %v14333_v52  ;;  %v8054_v53 = vpop.f32.mrb[211].mxu0 }
 0xf2c   :  { %v8114_v5 = vmax.f32 %v8052_v2, 0.0  ;;  %v8055_v15 = vadd.f32 %v14333_v52, %v8054_v53 }
 0xf2d   :  { %v8117_v4 = vmax.f32 %v8063_v60, 0.0  ;;  %v8132_v54 = vadd.f32 %v8116_v16, %v14266_v25 }
 0xf2e   :  { %v8115_v1 = vmax.f32 %v8055_v15, 0.0  ;;  %v8130_v37 = vadd.f32 %v8114_v5, %v14260_v44 }
 0xf2f   :  { %v8133_v0 = vadd.f32 %v8117_v4, %v14257_v51 }
 0xf30   :  { %v8131_v10 = vadd.f32 %v8115_v1, %v14263_v59 }
 0xf31   :  { %v8164_v48 = vpack.c.bf16 %v8133_v0, %v8132_v54  ;;  %v11283_v0 = vld [vmem:[#allocation31] sm:$0xff]  }
 0xf32   :  { %v8163_v41 = vpack.c.bf16 %v8131_v10, %v8130_v37  ;;  %9798 = vmatprep.subr.bf16.mxu0 %v11283_v0  ;;  %9822 = vmatprep.subr.bf16.mxu1 %v11283_v0 }
 0xf33   :  { %9799 = vmatpush3.bf16.msra.mxu0 %v11283_v0 }
 0xf34   :  { %9782 = vmatprep.mubr.bf16.mxu1 %v8163_v41 }
 0xf35   :  { %9783 = vmatmul.mubr.bf16.vlgmr.msra.gmra.mrb[208].mxu1 %v8164_v48 }
 0xf36   :  { %9826 = vmatpush3.bf16.msra.mxu1 %v11283_v0 }
 0xf38   :  { %v9756_v40 = vpop.f32.mrb[212].mxu0 }
 0xf39   :  { %v8076_v19 = vadd.f32 %v9756_v40, %v14333_v52  ;;  %v8067_v36 = vpop.f32.mrb[213].mxu0 }
 0xf3a   :  { %v8068_v24 = vadd.f32 %v14333_v52, %v8067_v36  ;;  %v9757_v9 = vpop.f32.mrb[214].mxu0 }
 0xf3b   :  { %v8120_v26 = vmax.f32 %v8076_v19, 0.0  ;;  %v8079_v25 = vadd.f32 %v9757_v9, %v14333_v52  ;;  %v8070_v18 = vpop.f32.mrb[215].mxu0 }
 0xf3c   :  { %v8118_v51 = vmax.f32 %v8068_v24, 0.0  ;;  %v8071_v44 = vadd.f32 %v14333_v52, %v8070_v18 }
 0xf3d   :  { %v8121_v62 = vmax.f32 %v8079_v25, 0.0  ;;  %v8136_v63 = vadd.f32 %v8120_v26, %v14286_v45 }
 0xf3e   :  { %v8119_v59 = vmax.f32 %v8071_v44, 0.0  ;;  %v8134_v27 = vadd.f32 %v8118_v51, %v14280_v22 }
 0xf3f   :  { %v8137_v11 = vadd.f32 %v8121_v62, %v14277_v23 }
 0xf40   :  { %v8135_v56 = vadd.f32 %v8119_v59, %v14283_v7 }
 0xf41   :  { %v8166_v6 = vpack.c.bf16 %v8137_v11, %v8136_v63 }
 0xf42   :  { %v8165_v8 = vpack.c.bf16 %v8135_v56, %v8134_v27 }
 0xf44   :  { %9786 = vmatprep.mubr.bf16.mxu1 %v8165_v8 }
 0xf45   :  { %9787 = vmatmul.mubr.bf16.gmra.mrb[212].mxu1 %v8166_v6 }
 0xf48   :  { %v9760_v14 = vpop.f32.mrb[216].mxu0 }
 0xf49   :  { %v8092_v21 = vadd.f32 %v9760_v14, %v14333_v52  ;;  %v8083_v17 = vpop.f32.mrb[217].mxu0 }
 0xf4a   :  { %v8084_v49 = vadd.f32 %v14333_v52, %v8083_v17  ;;  %v9761_v46 = vpop.f32.mrb[218].mxu0 }
 0xf4b   :  { %v8124_v29 = vmax.f32 %v8092_v21, 0.0  ;;  %v8095_v45 = vadd.f32 %v9761_v46, %v14333_v52  ;;  %v8086_v61 = vpop.f32.mrb[219].mxu0 }
 0xf4c   :  { %v8122_v23 = vmax.f32 %v8084_v49, 0.0  ;;  %v8087_v22 = vadd.f32 %v14333_v52, %v8086_v61 }
 0xf4d   :  { %v8125_v58 = vmax.f32 %v8095_v45, 0.0  ;;  %v8140_v28 = vadd.f32 %v8124_v29, %v14306_v3 }
 0xf4e   :  { %v8123_v7 = vmax.f32 %v8087_v22, 0.0  ;;  %v8138_v34 = vadd.f32 %v8122_v23, %v14300_v38 }
 0xf4f   :  { %v8141_v39 = vadd.f32 %v8125_v58, %v14297_v20 }
 0xf50   :  { %v8139_v35 = vadd.f32 %v8123_v7, %v14303_v12 }
 0xf51   :  { %v8168_v32 = vpack.c.bf16 %v8141_v39, %v8140_v28 }
 0xf52   :  { %v8167_v55 = vpack.c.bf16 %v8139_v35, %v8138_v34 }
 0xf54   :  { %9790 = vmatprep.mubr.bf16.mxu1 %v8167_v55 }
 0xf55   :  { %9791 = vmatmul.mubr.bf16.gmra.mrb[216].mxu1 %v8168_v32 }
 0xf58   :  { %v9764_v57 = vpop.f32.mrb[220].mxu0 }
 0xf59   :  { %v8108_v13 = vadd.f32 %v9764_v57, %v14333_v52  ;;  %v8099_v31 = vpop.f32.mrb[221].mxu0 }
 0xf5a   :  { %v8100_v30 = vadd.f32 %v14333_v52, %v8099_v31  ;;  %v9765_v2 = vpop.f32.mrb[222].mxu0 }
 0xf5b   :  { %v8128_v47 = vmax.f32 %v8108_v13, 0.0  ;;  %v8111_v3 = vadd.f32 %v9765_v2, %v14333_v52  ;;  %v8102_v16 = vpop.f32.mrb[223].mxu0 }
 0xf5c   :  { %v8126_v20 = vmax.f32 %v8100_v30, 0.0  ;;  %v8103_v38 = vadd.f32 %v14333_v52, %v8102_v16  ;;  %v11284_v52 = vld [vmem:[#allocation31 + $0x8] sm:$0xff]  }
 0xf5d   :  { %v8129_v60 = vmax.f32 %v8111_v3, 0.0  ;;  %v8144_v53 = vadd.f32 %v8128_v47, %v14326_v43  ;;  %9800 = vmatprep.subr.bf16.mxu0 %v11284_v52  ;;  %9823 = vmatprep.subr.bf16.mxu1 %v11284_v52  ;;  %v11286_v43 = vld [vmem:[#allocation31 + $0x18] sm:$0xff]  }
 0xf5e   :  { %v8127_v12 = vmax.f32 %v8103_v38, 0.0  ;;  %v8142_v15 = vadd.f32 %v8126_v20, %v14320_v50  ;;  %9801 = vmatpush3.bf16.msra.mxu0 %v11284_v52  ;;  %9827 = vmatpush3.bf16.msra.mxu1 %v11284_v52  ;;  %v9284_v50 = vld [vmem:[%s11964_s30] ss:$0 sm:$0xff] }
 0xf5f   :  { %v8145_v5 = vadd.f32 %v8129_v60, %v14317_v42  ;;  %v11285_v42 = vld [vmem:[#allocation31 + $0x10] sm:$0xff]  }
 0xf60   :  { %v8143_v4 = vadd.f32 %v8127_v12, %v14323_v33  ;;  %9802 = vmatprep.subr.bf16.mxu0 %v11285_v42  ;;  %9824 = vmatprep.subr.bf16.mxu1 %v11285_v42 }
 0xf61   :  { %v8170_v1 = vpack.c.bf16 %v8145_v5, %v8144_v53 }
 0xf62   :  { %v8169_v54 = vpack.c.bf16 %v8143_v4, %v8142_v15  ;;  %9803 = vmatpush3.bf16.msra.mxu0 %v11285_v42  ;;  %9828 = vmatpush3.bf16.msra.mxu1 %v11285_v42 }
 0xf63   :  { %9804 = vmatprep.subr.bf16.mxu0 %v11286_v43  ;;  %9825 = vmatprep.subr.bf16.mxu1 %v11286_v43 }
 0xf64   :  { %9794 = vmatprep.mubr.bf16.mxu1 %v8169_v54 }
 0xf65   :  { %9795 = vmatmul.mubr.bf16.gmra.mrb[220].mxu1 %v8170_v1 }
 0xf66   :  { %9805 = vmatpush3.bf16.msra.mxu0 %v11286_v43  ;;  %9829 = vmatpush3.bf16.msra.mxu1 %v11286_v43 }
0x1008   :  { %v9784_v33 = vpop.f32.mrb[208].mxu1 }
0x1009   :  { %v8268_v37 = vadd.f32 %v9784_v33, %v9284_v50  ;;  %v8259_v10 = vpop.f32.mrb[209].mxu1 }
0x100a   :  { %v9785_v48 = vpop.f32.mrb[210].mxu1  ;;  %v8260_v19 = vadd.f32 %v9284_v50, %v8259_v10 }
0x100b   :  { %v8271_v41 = vadd.f32 %v9785_v48, %v9284_v50  ;;  %8358 = vrot.lane.b32.xlu0 %v8268_v37, %s11800_s26  ;;  %v8262_v40 = vpop.f32.mrb[211].mxu1  ;;  %v8324_v58 = vmax.f32 %v8268_v37, 0.0 }
0x100c   :  { %v8263_v36 = vadd.f32 %v9284_v50, %v8262_v40  ;;  %v8322_v55 = vmax.f32 %v8260_v19, 0.0 }
0x100d   :  { %8360 = vrot.lane.b32.xlu1 %v8271_v41, %s11800_s26  ;;  %v8325_v7 = vmax.f32 %v8271_v41, 0.0 }
0x100e   :  { %v8323_v57 = vmax.f32 %v8263_v36, 0.0 }
0x100f   :  { %8354 = vrot.lane.b32.xlu0 %v8260_v19, %s11800_s26 }
0x1013   :  { %8356 = vrot.lane.b32.xlu0 %v8263_v36, %s11800_s26 }
0x1018   :  { %v9788_v24 = vpop.f32.mrb[212].mxu1 }
0x1019   :  { %v14372_v9 = vadd.f32 %v9788_v24, %v9284_v50  ;;  %v8275_v26 = vpop.f32.mrb[213].mxu1 }
0x101a   :  { %v9789_v25 = vpop.f32.mrb[214].mxu1  ;;  %v8276_v44 = vadd.f32 %v9284_v50, %v8275_v26 }
0x101b   :  { %v8278_v18 = vpop.f32.mrb[215].mxu1  ;;  %8366 = vrot.lane.b32.xlu0 %v14372_v9, %s11800_s26  ;;  %v8287_v14 = vadd.f32 %v9789_v25, %v9284_v50  ;;  %v8328_v48 = vmax.f32 %v14372_v9, 0.0 }
0x101c   :  { %v8279_v51 = vadd.f32 %v9284_v50, %v8278_v18  ;;  %v8326_v20 = vmax.f32 %v8276_v44, 0.0 }
0x101d   :  { %v8329_v40 = vmax.f32 %v8287_v14, 0.0 }
0x101e   :  { %8364 = vrot.lane.b32.xlu1 %v8279_v51, %s11800_s26  ;;  %v8327_v3 = vmax.f32 %v8279_v51, 0.0 }
0x101f   :  { %8362 = vrot.lane.b32.xlu0 %v8276_v44, %s11800_s26 }
0x1028   :  { %v9792_v62 = vpop.f32.mrb[216].mxu1 }
0x1029   :  { %v8300_v59 = vadd.f32 %v9792_v62, %v9284_v50  ;;  %v8291_v63 = vpop.f32.mrb[217].mxu1 }
0x102a   :  { %v8292_v11 = vadd.f32 %v9284_v50, %v8291_v63  ;;  %v9793_v27 = vpop.f32.mrb[218].mxu1 }
0x102b   :  { %v8294_v56 = vpop.f32.mrb[219].mxu1  ;;  %8374 = vrot.lane.b32.xlu0 %v8300_v59, %s11800_s26  ;;  %v8303_v6 = vadd.f32 %v9793_v27, %v9284_v50  ;;  %v8332_v4 = vmax.f32 %v8300_v59, 0.0 }
0x102c   :  { %8370 = vrot.lane.b32.xlu1 %v8292_v11, %s11800_s26  ;;  %v8295_v8 = vadd.f32 %v9284_v50, %v8294_v56  ;;  %v8330_v42 = vmax.f32 %v8292_v11, 0.0 }
0x102d   :  { %v8333_v1 = vmax.f32 %v8303_v6, 0.0 }
0x102e   :  { %v8331_v33 = vmax.f32 %v8295_v8, 0.0 }
0x1030   :  { %8376 = vrot.lane.b32.xlu1 %v8303_v6, %s11800_s26 }
0x1034   :  { %8372 = vrot.lane.b32.xlu1 %v8295_v8, %s11800_s26 }
0x1038   :  { %v9796_v21 = vpop.f32.mrb[220].mxu1  ;;  %8368 = vrot.lane.b32.xlu1 %v8287_v14, %s11800_s26 }
0x1039   :  { %v8307_v17 = vpop.f32.mrb[221].mxu1  ;;  %v14387_v61 = vadd.f32 %v9796_v21, %v9284_v50  ;;  %v9293_v21 = vld [vmem:[%s11974_s4] ss:$0 sm:$0xff] }
0x103a   :  { %v14383_v49 = vadd.f32 %v9284_v50, %v8307_v17  ;;  %v9797_v46 = vpop.f32.mrb[222].mxu1 }
0x103b   :  { %v8310_v29 = vpop.f32.mrb[223].mxu1  ;;  %v14390_v23 = vadd.f32 %v9797_v46, %v9284_v50  ;;  %v8336_v11 = vmax.f32 %v14387_v61, 0.0 }
0x103c   :  { %v8311_v45 = vadd.f32 %v9284_v50, %v8310_v29  ;;  %8378 = vrot.lane.b32.xlu0 %v14383_v49, %s11800_s26  ;;  %v8334_v18 = vmax.f32 %v14383_v49, 0.0 }
0x103d   :  { %v8337_v27 = vmax.f32 %v14390_v23, 0.0 }
0x103e   :  { %8380 = vrot.lane.b32.xlu1 %v8311_v45, %s11800_s26  ;;  %v8335_v51 = vmax.f32 %v8311_v45, 0.0 }
0x1040   :  { %8382 = vrot.lane.b32.xlu0 %v14387_v61, %s11800_s26 }
0x1042   :  { %8384 = vrot.lane.b32.xlu1 %v14390_v23, %s11800_s26 }
0x107d   :  { %v8359_v22 = vpop.permute.xlu0 %8358 }
0x107e   :  { %v8404_v39 = vadd.f32 %v8359_v22, %v8324_v58 }
0x107f   :  { %v8361_v28 = vpop.permute.xlu1 %8360 }
0x1080   :  { %v8405_v34 = vadd.f32 %v8361_v28, %v8325_v7 }
0x1081   :  { %v8355_v35 = vpop.permute.xlu0 %8354 }
0x1082   :  { %v8428_v32 = vpack.c.bf16 %v8405_v34, %v8404_v39  ;;  %v8402_v31 = vadd.f32 %v8355_v35, %v8322_v55 }
0x1085   :  { %v8357_v13 = vpop.permute.xlu0 %8356 }
0x1086   :  { %v8403_v30 = vadd.f32 %v8357_v13, %v8323_v57 }
0x1088   :  { %v8427_v2 = vpack.c.bf16 %v8403_v30, %v8402_v31 }
0x108a   :  { %9806 = vmatprep.mubr.msk.bf16.mxu0 %vm8465_vm1, %v8427_v2 }
0x108b   :  { %9807 = vmatmul.mubr.msk.bf16.vlgmr.msra.gmra.mrb[224].mxu0 %vm8465_vm1, %v8428_v32 }
0x108d   :  { %v8367_v47 = vpop.permute.xlu0 %8366 }
0x108e   :  { %v8408_v36 = vadd.f32 %v8367_v47, %v8328_v48 }
0x1090   :  { %v8365_v16 = vpop.permute.xlu1 %8364 }
0x1091   :  { %v8407_v38 = vadd.f32 %v8365_v16, %v8327_v3  ;;  %v8363_v60 = vpop.permute.xlu0 %8362 }
0x1092   :  { %v8406_v12 = vadd.f32 %v8363_v60, %v8326_v20 }
0x1094   :  { %v8429_v53 = vpack.c.bf16 %v8407_v38, %v8406_v12 }
0x1096   :  { %9810 = vmatprep.mubr.msk.bf16.mxu0 %vm8465_vm1, %v8429_v53 }
0x109d   :  { %v8375_v15 = vpop.permute.xlu0 %8374 }
0x109e   :  { %v8371_v5 = vpop.permute.xlu1 %8370  ;;  %v8412_v0 = vadd.f32 %v8375_v15, %v8332_v4 }
0x109f   :  { %v8410_v37 = vadd.f32 %v8371_v5, %v8330_v42 }
0x10a2   :  { %v8377_v54 = vpop.permute.xlu1 %8376 }
0x10a3   :  { %v8413_v52 = vadd.f32 %v8377_v54, %v8333_v1 }
0x10a5   :  { %v8432_v50 = vpack.c.bf16 %v8413_v52, %v8412_v0 }
0x10a6   :  { %v8373_v43 = vpop.permute.xlu1 %8372 }
0x10a7   :  { %v8411_v10 = vadd.f32 %v8373_v43, %v8331_v33 }
0x10a9   :  { %v8431_v41 = vpack.c.bf16 %v8411_v10, %v8410_v37 }
0x10aa   :  { %v8369_v19 = vpop.permute.xlu1 %8368 }
0x10ab   :  { %v8409_v24 = vadd.f32 %v8369_v19, %v8329_v40  ;;  %9814 = vmatprep.mubr.msk.bf16.mxu1 %vm8465_vm1, %v8431_v41 }
0x10ac   :  { %9815 = vmatmul.mubr.msk.bf16.vlgmr.msra.gmra.mrb[224].mxu1 %vm8465_vm1, %v8432_v50 }
0x10ad   :  { %v8430_v26 = vpack.c.bf16 %v8409_v24, %v8408_v36 }
0x10ae   :  { %v8379_v25 = vpop.permute.xlu0 %8378 }
0x10af   :  { %9811 = vmatmul.mubr.msk.bf16.gmra.mrb[228].mxu0 %vm8465_vm1, %v8430_v26  ;;  %v8414_v62 = vadd.f32 %v8379_v25, %v8334_v18 }
0x10b0   :  { %v8381_v44 = vpop.permute.xlu1 %8380 }
0x10b1   :  { %v8415_v9 = vadd.f32 %v8381_v44, %v8335_v51 }
0x10b2   :  { %v8383_v59 = vpop.permute.xlu0 %8382 }
0x10b3   :  { %v8433_v63 = vpack.c.bf16 %v8415_v9, %v8414_v62  ;;  %v8416_v6 = vadd.f32 %v8383_v59, %v8336_v11 }
0x10b4   :  { %v8385_v56 = vpop.permute.xlu1 %8384 }
0x10b5   :  { %v8417_v8 = vadd.f32 %v8385_v56, %v8337_v27  ;;  %9818 = vmatprep.mubr.msk.bf16.mxu1 %vm8465_vm1, %v8433_v63 }
0x10b7   :  { %v8434_v14 = vpack.c.bf16 %v8417_v8, %v8416_v6 }
0x10b9   :  { %9819 = vmatmul.mubr.msk.bf16.gmra.mrb[228].mxu1 %vm8465_vm1, %v8434_v14 }
0x115e   :  { %v9808_v17 = vpop.f32.mrb[224].mxu0 }
0x115f   :  { %v8533_v49 = vadd.f32 %v9808_v17, %v9293_v21  ;;  %v8524_v46 = vpop.f32.mrb[225].mxu0 }
0x1160   :  { %v8525_v29 = vadd.f32 %v9293_v21, %v8524_v46  ;;  %v9809_v45 = vpop.f32.mrb[226].mxu0 }
0x1161   :  { %8589 = vst [vmem:[%s11979_s14 + $0x10] sm:$0xff] %v8533_v49  ;;  %v8536_v61 = vadd.f32 %v9809_v45, %v9293_v21  ;;  %v8527_v23 = vpop.f32.mrb[227].mxu0 }
0x1162   :  { %8587 = vst [vmem:[%s11979_s14] sm:$0xff] %v8525_v29  ;;  %v8528_v22 = vadd.f32 %v9293_v21, %v8527_v23 }
0x1163   :  { %8590 = vst [vmem:[%s11979_s14 + $0x18] sm:$0xff] %v8536_v61 }
0x1164   :  { %8588 = vst [vmem:[%s11979_s14 + $0x8] sm:$0xff] %v8528_v22 }
0x117f   :  { %v9816_v58 = vpop.f32.mrb[224].mxu1 }
0x1180   :  { %v8565_v7 = vadd.f32 %v9816_v58, %v9293_v21  ;;  %v8556_v28 = vpop.f32.mrb[225].mxu1 }
0x1181   :  { %v8557_v39 = vadd.f32 %v9293_v21, %v8556_v28  ;;  %v9817_v34 = vpop.f32.mrb[226].mxu1 }
0x1182   :  { %8597 = vst [vmem:[%s11979_s14 + $0x50] sm:$0xff] %v8565_v7  ;;  %v8568_v35 = vadd.f32 %v9817_v34, %v9293_v21  ;;  %v9812_v32 = vpop.f32.mrb[228].mxu0  ;;  %v8559_v55 = vpop.f32.mrb[227].mxu1 }
0x1183   :  { %8595 = vst [vmem:[%s11979_s14 + $0x40] sm:$0xff] %v8557_v39  ;;  %v8549_v57 = vadd.f32 %v9812_v32, %v9293_v21  ;;  %v8560_v13 = vadd.f32 %v9293_v21, %v8559_v55  ;;  %v8540_v31 = vpop.f32.mrb[229].mxu0 }
0x1184   :  { %8598 = vst [vmem:[%s11979_s14 + $0x58] sm:$0xff] %v8568_v35  ;;  %v8541_v30 = vadd.f32 %v9293_v21, %v8540_v31  ;;  %v9813_v2 = vpop.f32.mrb[230].mxu0 }
0x1185   :  { %8593 = vst [vmem:[%s11979_s14 + $0x30] sm:$0xff] %v8549_v57  ;;  %8596 = vst [vmem:[%s11979_s14 + $0x48] sm:$0xff] %v8560_v13  ;;  %v8552_v47 = vadd.f32 %v9813_v2, %v9293_v21  ;;  %v8543_v3 = vpop.f32.mrb[231].mxu0 }
0x1186   :  { %8591 = vst [vmem:[%s11979_s14 + $0x20] sm:$0xff] %v8541_v30  ;;  %v8544_v16 = vadd.f32 %v9293_v21, %v8543_v3 }
0x1187   :  { %8594 = vst [vmem:[%s11979_s14 + $0x38] sm:$0xff] %v8552_v47 }
0x1188   :  { %8592 = vst [vmem:[%s11979_s14 + $0x28] sm:$0xff] %v8544_v16 }
0x118c   :  { %v9820_v20 = vpop.f32.mrb[228].mxu1 }
0x118d   :  { %v8581_v38 = vadd.f32 %v9820_v20, %v9293_v21  ;;  %v8572_v60 = vpop.f32.mrb[229].mxu1 }
0x118e   :  { %v8573_v12 = vadd.f32 %v9293_v21, %v8572_v60  ;;  %v9821_v53 = vpop.f32.mrb[230].mxu1 }
0x118f   :  { %8601 = vst [vmem:[%s11979_s14 + $0x70] sm:$0xff] %v8581_v38  ;;  %v8584_v5 = vadd.f32 %v9821_v53, %v9293_v21  ;;  %v8575_v15 = vpop.f32.mrb[231].mxu1 }
0x1190   :  { %8599 = vst [vmem:[%s11979_s14 + $0x60] sm:$0xff] %v8573_v12  ;;  %v8576_v4 = vadd.f32 %v9293_v21, %v8575_v15 }
0x1191   :  { %8602 = vst [vmem:[%s11979_s14 + $0x78] sm:$0xff] %v8584_v5 }
0x1192   :  { %8600 = vst [vmem:[%s11979_s14 + $0x68] sm:$0xff] %v8576_v4 }
0x1193   :  { %8607 = vsyncpa [#allocation3], 1 }
0x1194   :  { %8608 = vsyncpa [#allocation5], 1 }
0x1195   :  { %8609 = vsyncpa [#allocation8], 1 }
0x1196   :  { %8610 = vsyncpa [#allocation11], 1 }
0x1197   :  { %8611 = vsyncpa [#allocation14], 1 }
0x1198   :  { %8612 = vsyncpa [#allocation17], 1 }
0x1199   :  { %8613 = vsyncpa [#allocation20], 1 }
0x119a   :  { %8614 = vsyncpa [#allocation23], 1 }
0x119b   :  { %8615 = vsyncpa [#allocation26], 1 }
0x119c   :  { %8616 = vsyncpa [#allocation29], 1 }
0x119d   :  { %8617 = vsyncpa [#allocation32], 1 }

</bundles_post_ra>
